<compile_context>
chip_gen: v7x
topology: tpu7x:2x2x1
jax: 0.10.0
libtpu: 0.0.40
codegen_flags: <defaults>
</compile_context>

<pallas_src>
import math

import jax
import jax.numpy as jnp
from jax.experimental import pallas as pl
from jax.experimental.pallas import tpu as pltpu


# ----------------------------------------------------------------------------
# In-kernel building blocks (operate on VMEM-resident (nb, T, C) values)
# ----------------------------------------------------------------------------
def _shift_t(x, s):
    """Causal time shift on (nb, T, C): out[:, t] = x[:, t-s] (zeros for t<s)."""
    if s == 0:
        return x
    nb, T, C = x.shape
    if s >= T:                       # whole window falls into the causal padding
        return jnp.zeros_like(x)
    pad = jnp.zeros((nb, s, C), x.dtype)
    # TODO(synk): pltpu.roll(x, s, axis=1) + iota mask would keep this on the XLU.
    return jnp.concatenate([pad, x[:, :T - s, :]], axis=1)


def _mm(x3, w, b):
    """(nb, T, K) x (K, N) + b -> (nb, T, N).  Folds batch into the MXU M dim."""
    nb, T, K = x3.shape
    N = w.shape[1]
    if T % 8 == 0 or nb == 1:
        # Layout-preserving flatten (sublane tiles unchanged when T % 8 == 0).
        y = jnp.dot(x3.reshape(nb * T, K), w,
                    preferred_element_type=jnp.float32) + b
        return y.reshape(nb, T, N)
    # Rare fallback (never hit at the demo shapes): per-batch 2-D dots.
    ys = [jnp.dot(x3[i], w, preferred_element_type=jnp.float32) + b
          for i in range(nb)]
    return jnp.concatenate([y[None] for y in ys], axis=0)


def _causal_conv(x, w_flat, b, *, K, dilation=1, relu_in=False, relu_out=False):
    """Causal 1-D conv on (nb, T, Cin).  w_flat: (K*Cin, Cout) tap-major."""
    if relu_in:
        x = jnp.maximum(x, 0.0)
    if K == 1:
        y = _mm(x, w_flat, b)
    else:
        pad = (K - 1) * dilation
        taps = [_shift_t(x, pad - k * dilation) for k in range(K)]
        y = _mm(jnp.concatenate(taps, axis=-1), w_flat, b)   # one wide MXU pass
    if relu_out:
        y = jnp.maximum(y, 0.0)
    return y


def _down_conv_pairs(x_eo, w_flat, b, *, K, C):
    """Stride-2 causal down-conv from a pair-packed input.

    x_eo: (nb, T_out, 2C) where [..., :C] = x[2t], [..., C:] = x[2t+1]
          (produced by a FREE reshape in the wrapper).
    w_flat: (K*C, Cout), tap-major; causal left pad = K-1.
    y[t] = sum_k W_k @ x[2t + k - (K-1)]  -> built from lane-aligned even/odd
    slices plus causal shifts; no strided loads.
    """
    xe = x_eo[..., :C]               # x[2t]      (lane-aligned slice)
    xo = x_eo[..., C:]               # x[2t + 1]
    pad = K - 1
    taps = []
    for k in range(K):
        m = k - pad                  # needs x[2t + m]
        if m % 2 == 0:
            taps.append(_shift_t(xe, (-m) // 2))
        else:
            taps.append(_shift_t(xo, (-m + 1) // 2))
    # TODO(synk): torch-side CausalConv may use pad = K - stride instead of K-1
    # (reference sources unavailable); alignment kept consistent with v1.
    return _mm(jnp.concatenate(taps, axis=-1), w_flat, b)


def _res_stack(h, w1s, b1s, w2s, b2s, dilations):
    """`len(dilations)` ResConv1DBlocks: relu->conv3(dil)->relu->conv1 -> +x."""
    for i, dil in enumerate(dilations):
        r = _causal_conv(h, w1s[i], b1s[i], K=3, dilation=dil, relu_in=True)
        r = _causal_conv(r, w2s[i], b2s[i], K=1, relu_in=True)
        h = h + r
    return h


# ----------------------------------------------------------------------------
# Fused kernel bodies (acts / params are lists of loaded VMEM values)
# ----------------------------------------------------------------------------
def _enc_in_body(acts, params, cfg):
    (x,) = acts
    w, b = params
    return [_causal_conv(x, w, b, K=3, relu_out=True)]


def _enc_stage_body(acts, params, cfg):
    (x_eo,) = acts                                   # (nb, T_out, 2W) pair-packed
    wd, bd, w1s, b1s, w2s, b2s = params
    h = _down_conv_pairs(x_eo, wd, bd, K=cfg["filter_t"], C=cfg["width"])
    h = _res_stack(h, w1s, b1s, w2s, b2s, cfg["enc_dilations"])
    return [h]


def _mid_body(acts, params, cfg):
    h, eps = acts
    latent = cfg["latent_dim"]
    (wo, bo, wh, bh, wp, bp, wi, bi, w1s, b1s, w2s, b2s) = params
    h = _causal_conv(h, wo, bo, K=3)                 # encoder out_conv
    moments = _mm(h, wh, bh)                         # fused mu/logvar heads
    mu = moments[..., :latent]
    logvar = moments[..., latent:]
    z = mu + eps * jnp.exp(0.5 * logvar)             # reparameterize
    # TODO(synk): apply clip_range clamp on z when non-empty (default [] = no-op).
    d = _mm(z, wp, bp)                               # decode_proj (Linear)
    hd = _causal_conv(d, wi, bi, K=3, relu_out=True)  # decoder in_conv
    hd = _res_stack(hd, w1s, b1s, w2s, b2s, cfg["dec_dilations"])
    return [moments, hd]                             # single lane-dense moments out


def _dec_mid_body(acts, params, cfg):
    (h,) = acts                                      # already x2-upsampled (XLA glue)
    wu, bu, w1s, b1s, w2s, b2s = params
    h = _causal_conv(h, wu, bu, K=3)                 # up conv
    h = _res_stack(h, w1s, b1s, w2s, b2s, cfg["dec_dilations"])
    return [h]


def _dec_tail_body(acts, params, cfg):
    (h,) = acts                                      # already x2-upsampled (XLA glue)
    wu, bu, w1, b1, w2, b2 = params
    h = _causal_conv(h, wu, bu, K=3)                 # last up conv
    h = _causal_conv(h, w1, b1, K=3, relu_out=True)  # out_conv1
    h = _causal_conv(h, w2, b2, K=3)                 # out_conv2 (lane-padded cols)
    return [h]


# ----------------------------------------------------------------------------
# Pallas wrapper: `nb` batch elements per grid step, weights resident in VMEM
# ----------------------------------------------------------------------------
def _pick_nb(B, T, target_rows=256):
    """Largest divisor of B with nb*T <= target_rows (fills MXU M, keeps blocks sane)."""
    nb = 1
    for cand in range(1, B + 1):
        if B % cand == 0 and cand * T <= max(target_rows, T):
            nb = cand
    return nb


def _const_index_map(ndim):
    zeros = (0,) * ndim
    return lambda b: zeros


def _flops(rows, plist):
    f = 0
    for p in plist:
        if p.ndim >= 2 and p.shape[-2] > 1:          # weights, not (...,1,C) biases
            stacks = p.shape[0] if p.ndim == 3 else 1
            f += 2 * rows * stacks * int(math.prod(p.shape[-2:]))
    return int(f)


def _fused_call(body, cfg, acts, plist, out_shapes, *, nb, flops):
    """acts: list of (B, T, C) arrays; plist: 2-D/3-D weight & bias arrays;
    out_shapes: per-block output shapes [(T, C), ...] (leading nb added)."""
    B = acts[0].shape[0]
    assert B % nb == 0
    nB = B // nb
    n_act, n_par = len(acts), len(plist)

    def kernel(*refs):
        a = [refs[i][...] for i in range(n_act)]
        p = [refs[n_act + i][...] for i in range(n_par)]
        outs = body(a, p, cfg)
        for r, o in zip(refs[n_act + n_par:], outs):
            r[...] = o.astype(r.dtype)

    act_specs = [pl.BlockSpec((nb,) + a.shape[1:], lambda b: (b, 0, 0))
                 for a in acts]
    par_specs = [pl.BlockSpec(p.shape, _const_index_map(p.ndim)) for p in plist]
    out_specs = [pl.BlockSpec((nb,) + s, lambda b: (b, 0, 0)) for s in out_shapes]
    out_shape = [jax.ShapeDtypeStruct((B,) + s, jnp.float32) for s in out_shapes]

    # Explicit VMEM budget (default scoped limits are 16/32 MiB) + cost hint.
    act_bytes = sum(nb * int(math.prod(a.shape[1:])) * 4 for a in acts)
    par_bytes = sum(int(p.size) * 4 for p in plist)
    out_bytes = sum(nb * int(math.prod(s)) * 4 for s in out_shapes)
    vmem_limit = int(min(64 * 2**20,
                         max(16 * 2**20,
                             2 * (act_bytes + par_bytes + out_bytes) + (4 << 20))))
    hbm_bytes = (act_bytes + out_bytes) * nB + par_bytes

    return pl.pallas_call(
        kernel,
        out_shape=out_shape,
        grid_spec=pltpu.PrefetchScalarGridSpec(
            num_scalar_prefetch=0,
            grid=(nB,),
            in_specs=act_specs + par_specs,
            out_specs=out_specs),
        compiler_params=pltpu.CompilerParams(
            dimension_semantics=("parallel",),       # v7x: 2 TCs split the batch
            vmem_limit_bytes=vmem_limit),
        cost_estimate=pl.CostEstimate(
            flops=flops, transcendentals=0, bytes_accessed=int(hbm_bytes)),
    )(*acts, *plist)


# ----------------------------------------------------------------------------
# Parameter init (deterministic, synthetic; matmul-ready, lane-padded layout)
# ----------------------------------------------------------------------------
def _conv_init(key, cin, cout, k, cin_pad=None, cout_pad=None):
    cin_pad = cin if cin_pad is None else cin_pad
    cout_pad = cout if cout_pad is None else cout_pad
    kw, kb = jax.random.split(key)
    s = 1.0 / (cin * k) ** 0.5
    w = jax.random.uniform(kw, (cout, cin, k), jnp.float32, -s, s)   # torch layout
    b = jax.random.uniform(kb, (cout,), jnp.float32, -s, s)
    w = jnp.pad(w, ((0, cout_pad - cout), (0, cin_pad - cin), (0, 0)))
    b = jnp.pad(b, (0, cout_pad - cout))
    return {"w": jnp.transpose(w, (2, 1, 0)).reshape(k * cin_pad, cout_pad),
            "b": b.reshape(1, cout_pad)}


def _res_stack_init(key, W, depth):
    ks = jax.random.split(key, 2 * depth)
    c1 = [_conv_init(ks[2 * i], W, W, 3) for i in range(depth)]
    c2 = [_conv_init(ks[2 * i + 1], W, W, 1) for i in range(depth)]
    return {"w1": jnp.stack([c["w"] for c in c1]),   # (depth, 3W, W)
            "b1": jnp.stack([c["b"] for c in c1]),   # (depth, 1, W)
            "w2": jnp.stack([c["w"] for c in c2]),   # (depth, W, W)
            "b2": jnp.stack([c["b"] for c in c2])}   # (depth, 1, W)


def init_params(key, cfg):
    keys = iter(jax.random.split(key, 64))
    W, depth = cfg["width"], cfg["depth"]
    in_dim, in_pad = cfg["in_dim"], cfg["in_dim_pad"]
    hidden, latent = cfg["hidden_size"], cfg["latent_dim"]
    filter_t = cfg["stride_t"] * 2

    mu = _conv_init(next(keys), hidden, latent, 1)
    logvar = _conv_init(next(keys), hidden, latent, 1)
    heads = {"w": jnp.concatenate([mu["w"], logvar["w"]], axis=1),   # (hidden, 2*latent)
             "b": jnp.concatenate([mu["b"], logvar["b"]], axis=1)}

    return {
        "enc_in": _conv_init(next(keys), in_dim, W, 3, cin_pad=in_pad),
        "enc_stages": [{"down": _conv_init(next(keys), W, W, filter_t),
                        "res": _res_stack_init(next(keys), W, depth)}
                       for _ in range(cfg["down_t"])],
        "enc_out": _conv_init(next(keys), W, hidden, 3),
        "heads": heads,
        "decode_proj": _conv_init(next(keys), latent, W, 1),
        "dec_in": _conv_init(next(keys), W, W, 3),
        "dec_stages": [{"res": _res_stack_init(next(keys), W, depth),
                        "up": _conv_init(next(keys), W, W, 3)}
                       for _ in range(cfg["down_t"])],
        "dec_out1": _conv_init(next(keys), W, W, 3),
        "dec_out2": _conv_init(next(keys), W, in_dim, 3, cout_pad=in_pad),
    }


# ----------------------------------------------------------------------------
# Full Causal_HumanTAE forward (6 pallas_calls + tiny XLA glue)
# ----------------------------------------------------------------------------
def make_forward(cfg):
    enc_dils = tuple(cfg["dilation_growth_rate"] ** d for d in range(cfg["depth"]))
    c = dict(cfg, enc_dilations=enc_dils, dec_dilations=enc_dils[::-1],
             filter_t=cfg["stride_t"] * 2)
    W, latent = cfg["width"], cfg["latent_dim"]
    in_dim, in_pad = cfg["in_dim"], cfg["in_dim_pad"]
    stride_t = cfg["stride_t"]
    assert stride_t == 2, "pair-packed down-conv path assumes stride_t == 2"

    def rs_plist(rs):
        return [rs["w1"], rs["b1"], rs["w2"], rs["b2"]]

    def forward(params, x, eps):
        B, T, _ = x.shape
        # Lane-pad the 272-ch input to 384 (zero weight rows match) -> wide matmuls.
        x = jnp.pad(x, ((0, 0), (0, 0), (0, in_pad - in_dim)))

        # ------------------------------ encoder ------------------------------
        plist = [params["enc_in"]["w"], params["enc_in"]["b"]]
        (h,) = _fused_call(_enc_in_body, c, [x], plist, [(T, W)],
                           nb=_pick_nb(B, T), flops=_flops(B * T, plist))
        for st in params["enc_stages"]:
            T //= 2
            x_eo = h.reshape(B, T, 2 * W)            # FREE pair-pack (even/odd in lanes)
            plist = [st["down"]["w"], st["down"]["b"]] + rs_plist(st["res"])
            (h,) = _fused_call(_enc_stage_body, c, [x_eo], plist, [(T, W)],
                               nb=_pick_nb(B, T), flops=_flops(B * T, plist))

        # --- bottleneck: out_conv + heads + reparam + decode_proj + dec in_conv
        #     + first decoder res stack, all in one kernel ---------------------
        plist = [params["enc_out"]["w"], params["enc_out"]["b"],
                 params["heads"]["w"], params["heads"]["b"],
                 params["decode_proj"]["w"], params["decode_proj"]["b"],
                 params["dec_in"]["w"], params["dec_in"]["b"]] \
                + rs_plist(params["dec_stages"][0]["res"])
        moments, h = _fused_call(_mid_body, c, [h, eps], plist,
                                 [(T, 2 * latent), (T, W)],
                                 nb=_pick_nb(B, T), flops=_flops(B * T, plist))
        mu, logvar = moments[..., :latent], moments[..., latent:]

        # ------------------------------ decoder ------------------------------
        for si in range(1, len(params["dec_stages"])):
            h = jnp.repeat(h, stride_t, axis=1)      # XLA glue: nearest x2 upsample
            T *= 2                                   # TODO(synk): fuse upsample in-kernel
            up = params["dec_stages"][si - 1]["up"]
            plist = [up["w"], up["b"]] + rs_plist(params["dec_stages"][si]["res"])
            (h,) = _fused_call(_dec_mid_body, c, [h], plist, [(T, W)],
                               nb=_pick_nb(B, T), flops=_flops(B * T, plist))

        h = jnp.repeat(h, stride_t, axis=1)          # XLA glue: nearest x2 upsample
        T *= 2
        up = params["dec_stages"][-1]["up"]
        plist = [up["w"], up["b"],
                 params["dec_out1"]["w"], params["dec_out1"]["b"],
                 params["dec_out2"]["w"], params["dec_out2"]["b"]]
        (x_out,) = _fused_call(_dec_tail_body, c, [h], plist, [(T, in_pad)],
                               nb=_pick_nb(B, T), flops=_flops(B * T, plist))
        return x_out[..., :in_dim], mu, logvar       # drop lane padding in XLA

    return jax.jit(forward)


# ----------------------------------------------------------------------------
if __name__ == "__main__":
    cfg = dict(
        in_dim=272,              # hard-coded input feature size in Causal_TAE
        in_dim_pad=384,          # lane-padded (3 * 128) I/O width
        hidden_size=128,         # width == hidden_size in Causal_HumanTAE
        width=128,               # lane-aligned small stand-in for default 1024
        down_t=2,
        stride_t=2,
        depth=3,
        dilation_growth_rate=3,
        latent_dim=16,
    )
    B, T = 2, 32                 # T multiple of 8 through every stage

    key = jax.random.PRNGKey(0)
    kx, keps, kp = jax.random.split(key, 3)
    x = jax.random.normal(kx, (B, T, cfg["in_dim"]), jnp.float32)
    T_lat = T // (cfg["stride_t"] ** cfg["down_t"])
    eps = jax.random.normal(keps, (B, T_lat, cfg["latent_dim"]), jnp.float32)

    params = init_params(kp, cfg)
    forward = make_forward(cfg)

    x_out, mu, logvar = forward(params, x, eps)
    jax.block_until_ready((x_out, mu, logvar))

    assert x_out.shape == (B, T, cfg["in_dim"]), x_out.shape
    assert mu.shape == (B, T_lat, cfg["latent_dim"]), mu.shape
    assert logvar.shape == (B, T_lat, cfg["latent_dim"]), logvar.shape
    assert bool(jnp.all(jnp.isfinite(x_out))) and bool(jnp.all(jnp.isfinite(mu)))

    print("KERNEL_OK")
</pallas_src>

<mosaic_0001>
module attributes {stable_mosaic.version = 11 : i64} {
  func.func @kernel(%arg0: i32, %arg1: memref<2x32x384xf32, #tpu.memory_space<vmem>>, %arg2: memref<1152x128xf32, #tpu.memory_space<vmem>>, %arg3: memref<1x128xf32, #tpu.memory_space<vmem>>, %arg4: memref<2x32x128xf32, #tpu.memory_space<vmem>>) attributes {dimension_semantics = [#tpu.dimension_semantics<parallel>], iteration_bounds = array<i64: 1>, scalar_prefetch = 0 : i64, scratch_operands = 0 : i64, tpu.core_type = #tpu.core_type<tc>, window_params = [{transform_indices = @transform_0, window_bounds = array<i64: 2, 32, 384>}, {pipeline_mode = #tpu.pipeline_mode<synchronous>, transform_indices = @transform_1, window_bounds = array<i64: 1152, 128>}, {pipeline_mode = #tpu.pipeline_mode<synchronous>, transform_indices = @transform_2, window_bounds = array<i64: 1, 128>}, {transform_indices = @transform_3, window_bounds = array<i64: 2, 32, 128>}]} {
    %c0 = arith.constant 0 : index
    %c0_0 = arith.constant 0 : index
    %c0_1 = arith.constant 0 : index
    %0 = vector.load %arg1[%c0, %c0_0, %c0_1] : memref<2x32x384xf32, #tpu.memory_space<vmem>>, vector<2x32x384xf32>
    %c0_2 = arith.constant 0 : index
    %c0_3 = arith.constant 0 : index
    %1 = vector.load %arg2[%c0_2, %c0_3] : memref<1152x128xf32, #tpu.memory_space<vmem>>, vector<1152x128xf32>
    %c0_4 = arith.constant 0 : index
    %c0_5 = arith.constant 0 : index
    %2 = vector.load %arg3[%c0_4, %c0_5] : memref<1x128xf32, #tpu.memory_space<vmem>>, vector<1x128xf32>
    %cst = arith.constant 0.000000e+00 : f32
    %3 = vector.broadcast %cst : f32 to vector<2x2x384xf32>
    %4 = vector.extract_strided_slice %0 {offsets = [0, 0, 0], sizes = [2, 30, 384], strides = [1, 1, 1]} : vector<2x32x384xf32> to vector<2x30x384xf32>
    %5 = tpu.concatenate %3, %4 in 1 : vector<2x2x384xf32>, vector<2x30x384xf32> -> vector<2x32x384xf32>
    %cst_6 = arith.constant 0.000000e+00 : f32
    %6 = vector.broadcast %cst_6 : f32 to vector<2x1x384xf32>
    %7 = vector.extract_strided_slice %0 {offsets = [0, 0, 0], sizes = [2, 31, 384], strides = [1, 1, 1]} : vector<2x32x384xf32> to vector<2x31x384xf32>
    %8 = tpu.concatenate %6, %7 in 1 : vector<2x1x384xf32>, vector<2x31x384xf32> -> vector<2x32x384xf32>
    %9 = tpu.concatenate %5, %8, %0 in 2 : vector<2x32x384xf32>, vector<2x32x384xf32>, vector<2x32x384xf32> -> vector<2x32x1152xf32>
    %10 = vector.shape_cast %9 : vector<2x32x1152xf32> to vector<64x1152xf32>
    %cst_7 = arith.constant dense<0.000000e+00> : vector<64x128xf32>
    %11 = tpu.matmul %10, %1, %cst_7 {dimension_numbers = #tpu.dot_dimension_numbers<[1], [0], [0], [1], [0, 0, 1, 1], [], []>} : vector<64x1152xf32>, vector<1152x128xf32>, vector<64x128xf32> -> vector<64x128xf32>
    %12 = vector.broadcast %2 : vector<1x128xf32> to vector<64x128xf32>
    %13 = arith.addf %11, %12 : vector<64x128xf32>
    %14 = vector.shape_cast %13 : vector<64x128xf32> to vector<2x32x128xf32>
    %cst_8 = arith.constant 0.000000e+00 : f32
    %15 = vector.broadcast %cst_8 : f32 to vector<2x32x128xf32>
    %16 = arith.maximumf %14, %15 : vector<2x32x128xf32>
    %c0_9 = arith.constant 0 : index
    %c0_10 = arith.constant 0 : index
    %c0_11 = arith.constant 0 : index
    %17 = vector.load %arg4[%c0_9, %c0_10, %c0_11] : memref<2x32x128xf32, #tpu.memory_space<vmem>>, vector<2x32x128xf32>
    tpu.vector_store %arg4[%c0_9, %c0_10, %c0_11], %16 {strides = array<i32>} : memref<2x32x128xf32, #tpu.memory_space<vmem>>, vector<2x32x128xf32>,
    return
  }
  func.func @transform_0(%arg0: i32) -> (i32, i32, i32) {
    %c0_i32 = arith.constant 0 : i32
    %c0_i32_0 = arith.constant 0 : i32
    %c0_i32_1 = arith.constant 0 : i32
    return %arg0, %c0_i32, %c0_i32_0 : i32, i32, i32
  }
  func.func @transform_1(%arg0: i32) -> (i32, i32) {
    %c0_i32 = arith.constant 0 : i32
    %c0_i32_0 = arith.constant 0 : i32
    %c0_i32_1 = arith.constant 0 : i32
    return %c0_i32, %c0_i32_0 : i32, i32
  }
  func.func @transform_2(%arg0: i32) -> (i32, i32) {
    %c0_i32 = arith.constant 0 : i32
    %c0_i32_0 = arith.constant 0 : i32
    %c0_i32_1 = arith.constant 0 : i32
    return %c0_i32, %c0_i32_0 : i32, i32
  }
  func.func @transform_3(%arg0: i32) -> (i32, i32, i32) {
    %c0_i32 = arith.constant 0 : i32
    %c0_i32_0 = arith.constant 0 : i32
    %c0_i32_1 = arith.constant 0 : i32
    return %arg0, %c0_i32, %c0_i32_0 : i32, i32, i32
  }
}

module attributes {stable_mosaic.version = 11 : i64} {
  func.func @kernel(%arg0: i32, %arg1: memref<2x16x256xf32, #tpu.memory_space<vmem>>, %arg2: memref<512x128xf32, #tpu.memory_space<vmem>>, %arg3: memref<1x128xf32, #tpu.memory_space<vmem>>, %arg4: memref<3x384x128xf32, #tpu.memory_space<vmem>>, %arg5: memref<3x1x128xf32, #tpu.memory_space<vmem>>, %arg6: memref<3x128x128xf32, #tpu.memory_space<vmem>>, %arg7: memref<3x1x128xf32, #tpu.memory_space<vmem>>, %arg8: memref<2x16x128xf32, #tpu.memory_space<vmem>>) attributes {dimension_semantics = [#tpu.dimension_semantics<parallel>], iteration_bounds = array<i64: 1>, scalar_prefetch = 0 : i64, scratch_operands = 0 : i64, tpu.core_type = #tpu.core_type<tc>, window_params = [{transform_indices = @transform_0, window_bounds = array<i64: 2, 16, 256>}, {pipeline_mode = #tpu.pipeline_mode<synchronous>, transform_indices = @transform_1, window_bounds = array<i64: 512, 128>}, {pipeline_mode = #tpu.pipeline_mode<synchronous>, transform_indices = @transform_2, window_bounds = array<i64: 1, 128>}, {pipeline_mode = #tpu.pipeline_mode<synchronous>, transform_indices = @transform_3, window_bounds = array<i64: 3, 384, 128>}, {pipeline_mode = #tpu.pipeline_mode<synchronous>, transform_indices = @transform_4, window_bounds = array<i64: 3, 1, 128>}, {pipeline_mode = #tpu.pipeline_mode<synchronous>, transform_indices = @transform_5, window_bounds = array<i64: 3, 128, 128>}, {pipeline_mode = #tpu.pipeline_mode<synchronous>, transform_indices = @transform_6, window_bounds = array<i64: 3, 1, 128>}, {transform_indices = @transform_7, window_bounds = array<i64: 2, 16, 128>}]} {
    %c0 = arith.constant 0 : index
    %c0_0 = arith.constant 0 : index
    %c0_1 = arith.constant 0 : index
    %0 = vector.load %arg1[%c0, %c0_0, %c0_1] : memref<2x16x256xf32, #tpu.memory_space<vmem>>, vector<2x16x256xf32>
    %c0_2 = arith.constant 0 : index
    %c0_3 = arith.constant 0 : index
    %1 = vector.load %arg2[%c0_2, %c0_3] : memref<512x128xf32, #tpu.memory_space<vmem>>, vector<512x128xf32>
    %c0_4 = arith.constant 0 : index
    %c0_5 = arith.constant 0 : index
    %2 = vector.load %arg3[%c0_4, %c0_5] : memref<1x128xf32, #tpu.memory_space<vmem>>, vector<1x128xf32>
    %c0_6 = arith.constant 0 : index
    %c0_7 = arith.constant 0 : index
    %c0_8 = arith.constant 0 : index
    %3 = vector.load %arg4[%c0_6, %c0_7, %c0_8] : memref<3x384x128xf32, #tpu.memory_space<vmem>>, vector<3x384x128xf32>
    %c0_9 = arith.constant 0 : index
    %c0_10 = arith.constant 0 : index
    %c0_11 = arith.constant 0 : index
    %4 = vector.load %arg5[%c0_9, %c0_10, %c0_11] : memref<3x1x128xf32, #tpu.memory_space<vmem>>, vector<3x1x128xf32>
    %c0_12 = arith.constant 0 : index
    %c0_13 = arith.constant 0 : index
    %c0_14 = arith.constant 0 : index
    %5 = vector.load %arg6[%c0_12, %c0_13, %c0_14] : memref<3x128x128xf32, #tpu.memory_space<vmem>>, vector<3x128x128xf32>
    %c0_15 = arith.constant 0 : index
    %c0_16 = arith.constant 0 : index
    %c0_17 = arith.constant 0 : index
    %6 = vector.load %arg7[%c0_15, %c0_16, %c0_17] : memref<3x1x128xf32, #tpu.memory_space<vmem>>, vector<3x1x128xf32>
    %7 = vector.extract_strided_slice %0 {offsets = [0, 0, 0], sizes = [2, 16, 128], strides = [1, 1, 1]} : vector<2x16x256xf32> to vector<2x16x128xf32>
    %8 = vector.extract_strided_slice %0 {offsets = [0, 0, 128], sizes = [2, 16, 128], strides = [1, 1, 1]} : vector<2x16x256xf32> to vector<2x16x128xf32>
    %cst = arith.constant 0.000000e+00 : f32
    %9 = vector.broadcast %cst : f32 to vector<2x2x128xf32>
    %10 = vector.extract_strided_slice %8 {offsets = [0, 0, 0], sizes = [2, 14, 128], strides = [1, 1, 1]} : vector<2x16x128xf32> to vector<2x14x128xf32>
    %11 = tpu.concatenate %9, %10 in 1 : vector<2x2x128xf32>, vector<2x14x128xf32> -> vector<2x16x128xf32>
    %cst_18 = arith.constant 0.000000e+00 : f32
    %12 = vector.broadcast %cst_18 : f32 to vector<2x1x128xf32>
    %13 = vector.extract_strided_slice %7 {offsets = [0, 0, 0], sizes = [2, 15, 128], strides = [1, 1, 1]} : vector<2x16x128xf32> to vector<2x15x128xf32>
    %14 = tpu.concatenate %12, %13 in 1 : vector<2x1x128xf32>, vector<2x15x128xf32> -> vector<2x16x128xf32>
    %cst_19 = arith.constant 0.000000e+00 : f32
    %15 = vector.broadcast %cst_19 : f32 to vector<2x1x128xf32>
    %16 = vector.extract_strided_slice %8 {offsets = [0, 0, 0], sizes = [2, 15, 128], strides = [1, 1, 1]} : vector<2x16x128xf32> to vector<2x15x128xf32>
    %17 = tpu.concatenate %15, %16 in 1 : vector<2x1x128xf32>, vector<2x15x128xf32> -> vector<2x16x128xf32>
    %18 = tpu.concatenate %11, %14, %17, %7 in 2 : vector<2x16x128xf32>, vector<2x16x128xf32>, vector<2x16x128xf32>, vector<2x16x128xf32> -> vector<2x16x512xf32>
    %19 = vector.shape_cast %18 : vector<2x16x512xf32> to vector<32x512xf32>
    %cst_20 = arith.constant dense<0.000000e+00> : vector<32x128xf32>
    %20 = tpu.matmul %19, %1, %cst_20 {dimension_numbers = #tpu.dot_dimension_numbers<[1], [0], [0], [1], [0, 0, 1, 1], [], []>} : vector<32x512xf32>, vector<512x128xf32>, vector<32x128xf32> -> vector<32x128xf32>
    %21 = vector.broadcast %2 : vector<1x128xf32> to vector<32x128xf32>
    %22 = arith.addf %20, %21 : vector<32x128xf32>
    %23 = vector.shape_cast %22 : vector<32x128xf32> to vector<2x16x128xf32>
    %24 = vector.extract_strided_slice %3 {offsets = [0, 0, 0], sizes = [1, 384, 128], strides = [1, 1, 1]} : vector<3x384x128xf32> to vector<1x384x128xf32>
    %25 = vector.shape_cast %24 : vector<1x384x128xf32> to vector<384x128xf32>
    %26 = vector.extract_strided_slice %4 {offsets = [0, 0, 0], sizes = [1, 1, 128], strides = [1, 1, 1]} : vector<3x1x128xf32> to vector<1x1x128xf32>
    %27 = vector.shape_cast %26 : vector<1x1x128xf32> to vector<1x128xf32>
    %cst_21 = arith.constant 0.000000e+00 : f32
    %28 = vector.broadcast %cst_21 : f32 to vector<2x16x128xf32>
    %29 = arith.maximumf %23, %28 : vector<2x16x128xf32>
    %cst_22 = arith.constant 0.000000e+00 : f32
    %30 = vector.broadcast %cst_22 : f32 to vector<2x2x128xf32>
    %31 = vector.extract_strided_slice %29 {offsets = [0, 0, 0], sizes = [2, 14, 128], strides = [1, 1, 1]} : vector<2x16x128xf32> to vector<2x14x128xf32>
    %32 = tpu.concatenate %30, %31 in 1 : vector<2x2x128xf32>, vector<2x14x128xf32> -> vector<2x16x128xf32>
    %cst_23 = arith.constant 0.000000e+00 : f32
    %33 = vector.broadcast %cst_23 : f32 to vector<2x1x128xf32>
    %34 = vector.extract_strided_slice %29 {offsets = [0, 0, 0], sizes = [2, 15, 128], strides = [1, 1, 1]} : vector<2x16x128xf32> to vector<2x15x128xf32>
    %35 = tpu.concatenate %33, %34 in 1 : vector<2x1x128xf32>, vector<2x15x128xf32> -> vector<2x16x128xf32>
    %36 = tpu.concatenate %32, %35, %29 in 2 : vector<2x16x128xf32>, vector<2x16x128xf32>, vector<2x16x128xf32> -> vector<2x16x384xf32>
    %37 = vector.shape_cast %36 : vector<2x16x384xf32> to vector<32x384xf32>
    %cst_24 = arith.constant dense<0.000000e+00> : vector<32x128xf32>
    %38 = tpu.matmul %37, %25, %cst_24 {dimension_numbers = #tpu.dot_dimension_numbers<[1], [0], [0], [1], [0, 0, 1, 1], [], []>} : vector<32x384xf32>, vector<384x128xf32>, vector<32x128xf32> -> vector<32x128xf32>
    %39 = vector.broadcast %27 : vector<1x128xf32> to vector<32x128xf32>
    %40 = arith.addf %38, %39 : vector<32x128xf32>
    %41 = vector.shape_cast %40 : vector<32x128xf32> to vector<2x16x128xf32>
    %42 = vector.extract_strided_slice %5 {offsets = [0, 0, 0], sizes = [1, 128, 128], strides = [1, 1, 1]} : vector<3x128x128xf32> to vector<1x128x128xf32>
    %43 = vector.shape_cast %42 : vector<1x128x128xf32> to vector<128x128xf32>
    %44 = vector.extract_strided_slice %6 {offsets = [0, 0, 0], sizes = [1, 1, 128], strides = [1, 1, 1]} : vector<3x1x128xf32> to vector<1x1x128xf32>
    %45 = vector.shape_cast %44 : vector<1x1x128xf32> to vector<1x128xf32>
    %cst_25 = arith.constant 0.000000e+00 : f32
    %46 = vector.broadcast %cst_25 : f32 to vector<2x16x128xf32>
    %47 = arith.maximumf %41, %46 : vector<2x16x128xf32>
    %48 = vector.shape_cast %47 : vector<2x16x128xf32> to vector<32x128xf32>
    %cst_26 = arith.constant dense<0.000000e+00> : vector<32x128xf32>
    %49 = tpu.matmul %48, %43, %cst_26 {dimension_numbers = #tpu.dot_dimension_numbers<[1], [0], [0], [1], [0, 0, 1, 1], [], []>} : vector<32x128xf32>, vector<128x128xf32>, vector<32x128xf32> -> vector<32x128xf32>
    %50 = vector.broadcast %45 : vector<1x128xf32> to vector<32x128xf32>
    %51 = arith.addf %49, %50 : vector<32x128xf32>
    %52 = vector.shape_cast %51 : vector<32x128xf32> to vector<2x16x128xf32>
    %53 = arith.addf %23, %52 : vector<2x16x128xf32>
    %54 = vector.extract_strided_slice %3 {offsets = [1, 0, 0], sizes = [1, 384, 128], strides = [1, 1, 1]} : vector<3x384x128xf32> to vector<1x384x128xf32>
    %55 = vector.shape_cast %54 : vector<1x384x128xf32> to vector<384x128xf32>
    %56 = vector.extract_strided_slice %4 {offsets = [1, 0, 0], sizes = [1, 1, 128], strides = [1, 1, 1]} : vector<3x1x128xf32> to vector<1x1x128xf32>
    %57 = vector.shape_cast %56 : vector<1x1x128xf32> to vector<1x128xf32>
    %cst_27 = arith.constant 0.000000e+00 : f32
    %58 = vector.broadcast %cst_27 : f32 to vector<2x16x128xf32>
    %59 = arith.maximumf %53, %58 : vector<2x16x128xf32>
    %cst_28 = arith.constant 0.000000e+00 : f32
    %60 = vector.broadcast %cst_28 : f32 to vector<2x6x128xf32>
    %61 = vector.extract_strided_slice %59 {offsets = [0, 0, 0], sizes = [2, 10, 128], strides = [1, 1, 1]} : vector<2x16x128xf32> to vector<2x10x128xf32>
    %62 = tpu.concatenate %60, %61 in 1 : vector<2x6x128xf32>, vector<2x10x128xf32> -> vector<2x16x128xf32>
    %cst_29 = arith.constant 0.000000e+00 : f32
    %63 = vector.broadcast %cst_29 : f32 to vector<2x3x128xf32>
    %64 = vector.extract_strided_slice %59 {offsets = [0, 0, 0], sizes = [2, 13, 128], strides = [1, 1, 1]} : vector<2x16x128xf32> to vector<2x13x128xf32>
    %65 = tpu.concatenate %63, %64 in 1 : vector<2x3x128xf32>, vector<2x13x128xf32> -> vector<2x16x128xf32>
    %66 = tpu.concatenate %62, %65, %59 in 2 : vector<2x16x128xf32>, vector<2x16x128xf32>, vector<2x16x128xf32> -> vector<2x16x384xf32>
    %67 = vector.shape_cast %66 : vector<2x16x384xf32> to vector<32x384xf32>
    %cst_30 = arith.constant dense<0.000000e+00> : vector<32x128xf32>
    %68 = tpu.matmul %67, %55, %cst_30 {dimension_numbers = #tpu.dot_dimension_numbers<[1], [0], [0], [1], [0, 0, 1, 1], [], []>} : vector<32x384xf32>, vector<384x128xf32>, vector<32x128xf32> -> vector<32x128xf32>
    %69 = vector.broadcast %57 : vector<1x128xf32> to vector<32x128xf32>
    %70 = arith.addf %68, %69 : vector<32x128xf32>
    %71 = vector.shape_cast %70 : vector<32x128xf32> to vector<2x16x128xf32>
    %72 = vector.extract_strided_slice %5 {offsets = [1, 0, 0], sizes = [1, 128, 128], strides = [1, 1, 1]} : vector<3x128x128xf32> to vector<1x128x128xf32>
    %73 = vector.shape_cast %72 : vector<1x128x128xf32> to vector<128x128xf32>
    %74 = vector.extract_strided_slice %6 {offsets = [1, 0, 0], sizes = [1, 1, 128], strides = [1, 1, 1]} : vector<3x1x128xf32> to vector<1x1x128xf32>
    %75 = vector.shape_cast %74 : vector<1x1x128xf32> to vector<1x128xf32>
    %cst_31 = arith.constant 0.000000e+00 : f32
    %76 = vector.broadcast %cst_31 : f32 to vector<2x16x128xf32>
    %77 = arith.maximumf %71, %76 : vector<2x16x128xf32>
    %78 = vector.shape_cast %77 : vector<2x16x128xf32> to vector<32x128xf32>
    %cst_32 = arith.constant dense<0.000000e+00> : vector<32x128xf32>
    %79 = tpu.matmul %78, %73, %cst_32 {dimension_numbers = #tpu.dot_dimension_numbers<[1], [0], [0], [1], [0, 0, 1, 1], [], []>} : vector<32x128xf32>, vector<128x128xf32>, vector<32x128xf32> -> vector<32x128xf32>
    %80 = vector.broadcast %75 : vector<1x128xf32> to vector<32x128xf32>
    %81 = arith.addf %79, %80 : vector<32x128xf32>
    %82 = vector.shape_cast %81 : vector<32x128xf32> to vector<2x16x128xf32>
    %83 = arith.addf %53, %82 : vector<2x16x128xf32>
    %84 = vector.extract_strided_slice %3 {offsets = [2, 0, 0], sizes = [1, 384, 128], strides = [1, 1, 1]} : vector<3x384x128xf32> to vector<1x384x128xf32>
    %85 = vector.shape_cast %84 : vector<1x384x128xf32> to vector<384x128xf32>
    %86 = vector.extract_strided_slice %4 {offsets = [2, 0, 0], sizes = [1, 1, 128], strides = [1, 1, 1]} : vector<3x1x128xf32> to vector<1x1x128xf32>
    %87 = vector.shape_cast %86 : vector<1x1x128xf32> to vector<1x128xf32>
    %cst_33 = arith.constant 0.000000e+00 : f32
    %88 = vector.broadcast %cst_33 : f32 to vector<2x16x128xf32>
    %89 = arith.maximumf %83, %88 : vector<2x16x128xf32>
    %cst_34 = arith.constant 0.000000e+00 : f32
    %90 = vector.broadcast %cst_34 : f32 to vector<2x16x128xf32>
    %cst_35 = arith.constant 0.000000e+00 : f32
    %91 = vector.broadcast %cst_35 : f32 to vector<2x9x128xf32>
    %92 = vector.extract_strided_slice %89 {offsets = [0, 0, 0], sizes = [2, 7, 128], strides = [1, 1, 1]} : vector<2x16x128xf32> to vector<2x7x128xf32>
    %93 = tpu.concatenate %91, %92 in 1 : vector<2x9x128xf32>, vector<2x7x128xf32> -> vector<2x16x128xf32>
    %94 = tpu.concatenate %90, %93, %89 in 2 : vector<2x16x128xf32>, vector<2x16x128xf32>, vector<2x16x128xf32> -> vector<2x16x384xf32>
    %95 = vector.shape_cast %94 : vector<2x16x384xf32> to vector<32x384xf32>
    %cst_36 = arith.constant dense<0.000000e+00> : vector<32x128xf32>
    %96 = tpu.matmul %95, %85, %cst_36 {dimension_numbers = #tpu.dot_dimension_numbers<[1], [0], [0], [1], [0, 0, 1, 1], [], []>} : vector<32x384xf32>, vector<384x128xf32>, vector<32x128xf32> -> vector<32x128xf32>
    %97 = vector.broadcast %87 : vector<1x128xf32> to vector<32x128xf32>
    %98 = arith.addf %96, %97 : vector<32x128xf32>
    %99 = vector.shape_cast %98 : vector<32x128xf32> to vector<2x16x128xf32>
    %100 = vector.extract_strided_slice %5 {offsets = [2, 0, 0], sizes = [1, 128, 128], strides = [1, 1, 1]} : vector<3x128x128xf32> to vector<1x128x128xf32>
    %101 = vector.shape_cast %100 : vector<1x128x128xf32> to vector<128x128xf32>
    %102 = vector.extract_strided_slice %6 {offsets = [2, 0, 0], sizes = [1, 1, 128], strides = [1, 1, 1]} : vector<3x1x128xf32> to vector<1x1x128xf32>
    %103 = vector.shape_cast %102 : vector<1x1x128xf32> to vector<1x128xf32>
    %cst_37 = arith.constant 0.000000e+00 : f32
    %104 = vector.broadcast %cst_37 : f32 to vector<2x16x128xf32>
    %105 = arith.maximumf %99, %104 : vector<2x16x128xf32>
    %106 = vector.shape_cast %105 : vector<2x16x128xf32> to vector<32x128xf32>
    %cst_38 = arith.constant dense<0.000000e+00> : vector<32x128xf32>
    %107 = tpu.matmul %106, %101, %cst_38 {dimension_numbers = #tpu.dot_dimension_numbers<[1], [0], [0], [1], [0, 0, 1, 1], [], []>} : vector<32x128xf32>, vector<128x128xf32>, vector<32x128xf32> -> vector<32x128xf32>
    %108 = vector.broadcast %103 : vector<1x128xf32> to vector<32x128xf32>
    %109 = arith.addf %107, %108 : vector<32x128xf32>
    %110 = vector.shape_cast %109 : vector<32x128xf32> to vector<2x16x128xf32>
    %111 = arith.addf %83, %110 : vector<2x16x128xf32>
    %c0_39 = arith.constant 0 : index
    %c0_40 = arith.constant 0 : index
    %c0_41 = arith.constant 0 : index
    %112 = vector.load %arg8[%c0_39, %c0_40, %c0_41] : memref<2x16x128xf32, #tpu.memory_space<vmem>>, vector<2x16x128xf32>
    tpu.vector_store %arg8[%c0_39, %c0_40, %c0_41], %111 {strides = array<i32>} : memref<2x16x128xf32, #tpu.memory_space<vmem>>, vector<2x16x128xf32>,
    return
  }
  func.func @transform_0(%arg0: i32) -> (i32, i32, i32) {
    %c0_i32 = arith.constant 0 : i32
    %c0_i32_0 = arith.constant 0 : i32
    %c0_i32_1 = arith.constant 0 : i32
    return %arg0, %c0_i32, %c0_i32_0 : i32, i32, i32
  }
  func.func @transform_1(%arg0: i32) -> (i32, i32) {
    %c0_i32 = arith.constant 0 : i32
    %c0_i32_0 = arith.constant 0 : i32
    %c0_i32_1 = arith.constant 0 : i32
    return %c0_i32, %c0_i32_0 : i32, i32
  }
  func.func @transform_2(%arg0: i32) -> (i32, i32) {
    %c0_i32 = arith.constant 0 : i32
    %c0_i32_0 = arith.constant 0 : i32
    %c0_i32_1 = arith.constant 0 : i32
    return %c0_i32, %c0_i32_0 : i32, i32
  }
  func.func @transform_3(%arg0: i32) -> (i32, i32, i32) {
    %c0_i32 = arith.constant 0 : i32
    %c0_i32_0 = arith.constant 0 : i32
    %c0_i32_1 = arith.constant 0 : i32
    %c0_i32_2 = arith.constant 0 : i32
    return %c0_i32, %c0_i32_0, %c0_i32_1 : i32, i32, i32
  }
  func.func @transform_4(%arg0: i32) -> (i32, i32, i32) {
    %c0_i32 = arith.constant 0 : i32
    %c0_i32_0 = arith.constant 0 : i32
    %c0_i32_1 = arith.constant 0 : i32
    %c0_i32_2 = arith.constant 0 : i32
    return %c0_i32, %c0_i32_0, %c0_i32_1 : i32, i32, i32
  }
  func.func @transform_5(%arg0: i32) -> (i32, i32, i32) {
    %c0_i32 = arith.constant 0 : i32
    %c0_i32_0 = arith.constant 0 : i32
    %c0_i32_1 = arith.constant 0 : i32
    %c0_i32_2 = arith.constant 0 : i32
    return %c0_i32, %c0_i32_0, %c0_i32_1 : i32, i32, i32
  }
  func.func @transform_6(%arg0: i32) -> (i32, i32, i32) {
    %c0_i32 = arith.constant 0 : i32
    %c0_i32_0 = arith.constant 0 : i32
    %c0_i32_1 = arith.constant 0 : i32
    %c0_i32_2 = arith.constant 0 : i32
    return %c0_i32, %c0_i32_0, %c0_i32_1 : i32, i32, i32
  }
  func.func @transform_7(%arg0: i32) -> (i32, i32, i32) {
    %c0_i32 = arith.constant 0 : i32
    %c0_i32_0 = arith.constant 0 : i32
    %c0_i32_1 = arith.constant 0 : i32
    return %arg0, %c0_i32, %c0_i32_0 : i32, i32, i32
  }
}

module attributes {stable_mosaic.version = 11 : i64} {
  func.func @kernel(%arg0: i32, %arg1: memref<2x8x256xf32, #tpu.memory_space<vmem>>, %arg2: memref<512x128xf32, #tpu.memory_space<vmem>>, %arg3: memref<1x128xf32, #tpu.memory_space<vmem>>, %arg4: memref<3x384x128xf32, #tpu.memory_space<vmem>>, %arg5: memref<3x1x128xf32, #tpu.memory_space<vmem>>, %arg6: memref<3x128x128xf32, #tpu.memory_space<vmem>>, %arg7: memref<3x1x128xf32, #tpu.memory_space<vmem>>, %arg8: memref<2x8x128xf32, #tpu.memory_space<vmem>>) attributes {dimension_semantics = [#tpu.dimension_semantics<parallel>], iteration_bounds = array<i64: 1>, scalar_prefetch = 0 : i64, scratch_operands = 0 : i64, tpu.core_type = #tpu.core_type<tc>, window_params = [{transform_indices = @transform_0, window_bounds = array<i64: 2, 8, 256>}, {pipeline_mode = #tpu.pipeline_mode<synchronous>, transform_indices = @transform_1, window_bounds = array<i64: 512, 128>}, {pipeline_mode = #tpu.pipeline_mode<synchronous>, transform_indices = @transform_2, window_bounds = array<i64: 1, 128>}, {pipeline_mode = #tpu.pipeline_mode<synchronous>, transform_indices = @transform_3, window_bounds = array<i64: 3, 384, 128>}, {pipeline_mode = #tpu.pipeline_mode<synchronous>, transform_indices = @transform_4, window_bounds = array<i64: 3, 1, 128>}, {pipeline_mode = #tpu.pipeline_mode<synchronous>, transform_indices = @transform_5, window_bounds = array<i64: 3, 128, 128>}, {pipeline_mode = #tpu.pipeline_mode<synchronous>, transform_indices = @transform_6, window_bounds = array<i64: 3, 1, 128>}, {transform_indices = @transform_7, window_bounds = array<i64: 2, 8, 128>}]} {
    %c0 = arith.constant 0 : index
    %c0_0 = arith.constant 0 : index
    %c0_1 = arith.constant 0 : index
    %0 = vector.load %arg1[%c0, %c0_0, %c0_1] : memref<2x8x256xf32, #tpu.memory_space<vmem>>, vector<2x8x256xf32>
    %c0_2 = arith.constant 0 : index
    %c0_3 = arith.constant 0 : index
    %1 = vector.load %arg2[%c0_2, %c0_3] : memref<512x128xf32, #tpu.memory_space<vmem>>, vector<512x128xf32>
    %c0_4 = arith.constant 0 : index
    %c0_5 = arith.constant 0 : index
    %2 = vector.load %arg3[%c0_4, %c0_5] : memref<1x128xf32, #tpu.memory_space<vmem>>, vector<1x128xf32>
    %c0_6 = arith.constant 0 : index
    %c0_7 = arith.constant 0 : index
    %c0_8 = arith.constant 0 : index
    %3 = vector.load %arg4[%c0_6, %c0_7, %c0_8] : memref<3x384x128xf32, #tpu.memory_space<vmem>>, vector<3x384x128xf32>
    %c0_9 = arith.constant 0 : index
    %c0_10 = arith.constant 0 : index
    %c0_11 = arith.constant 0 : index
    %4 = vector.load %arg5[%c0_9, %c0_10, %c0_11] : memref<3x1x128xf32, #tpu.memory_space<vmem>>, vector<3x1x128xf32>
    %c0_12 = arith.constant 0 : index
    %c0_13 = arith.constant 0 : index
    %c0_14 = arith.constant 0 : index
    %5 = vector.load %arg6[%c0_12, %c0_13, %c0_14] : memref<3x128x128xf32, #tpu.memory_space<vmem>>, vector<3x128x128xf32>
    %c0_15 = arith.constant 0 : index
    %c0_16 = arith.constant 0 : index
    %c0_17 = arith.constant 0 : index
    %6 = vector.load %arg7[%c0_15, %c0_16, %c0_17] : memref<3x1x128xf32, #tpu.memory_space<vmem>>, vector<3x1x128xf32>
    %7 = vector.extract_strided_slice %0 {offsets = [0, 0, 0], sizes = [2, 8, 128], strides = [1, 1, 1]} : vector<2x8x256xf32> to vector<2x8x128xf32>
    %8 = vector.extract_strided_slice %0 {offsets = [0, 0, 128], sizes = [2, 8, 128], strides = [1, 1, 1]} : vector<2x8x256xf32> to vector<2x8x128xf32>
    %cst = arith.constant 0.000000e+00 : f32
    %9 = vector.broadcast %cst : f32 to vector<2x2x128xf32>
    %10 = vector.extract_strided_slice %8 {offsets = [0, 0, 0], sizes = [2, 6, 128], strides = [1, 1, 1]} : vector<2x8x128xf32> to vector<2x6x128xf32>
    %11 = tpu.concatenate %9, %10 in 1 : vector<2x2x128xf32>, vector<2x6x128xf32> -> vector<2x8x128xf32>
    %cst_18 = arith.constant 0.000000e+00 : f32
    %12 = vector.broadcast %cst_18 : f32 to vector<2x1x128xf32>
    %13 = vector.extract_strided_slice %7 {offsets = [0, 0, 0], sizes = [2, 7, 128], strides = [1, 1, 1]} : vector<2x8x128xf32> to vector<2x7x128xf32>
    %14 = tpu.concatenate %12, %13 in 1 : vector<2x1x128xf32>, vector<2x7x128xf32> -> vector<2x8x128xf32>
    %cst_19 = arith.constant 0.000000e+00 : f32
    %15 = vector.broadcast %cst_19 : f32 to vector<2x1x128xf32>
    %16 = vector.extract_strided_slice %8 {offsets = [0, 0, 0], sizes = [2, 7, 128], strides = [1, 1, 1]} : vector<2x8x128xf32> to vector<2x7x128xf32>
    %17 = tpu.concatenate %15, %16 in 1 : vector<2x1x128xf32>, vector<2x7x128xf32> -> vector<2x8x128xf32>
    %18 = tpu.concatenate %11, %14, %17, %7 in 2 : vector<2x8x128xf32>, vector<2x8x128xf32>, vector<2x8x128xf32>, vector<2x8x128xf32> -> vector<2x8x512xf32>
    %19 = vector.shape_cast %18 : vector<2x8x512xf32> to vector<16x512xf32>
    %cst_20 = arith.constant dense<0.000000e+00> : vector<16x128xf32>
    %20 = tpu.matmul %19, %1, %cst_20 {dimension_numbers = #tpu.dot_dimension_numbers<[1], [0], [0], [1], [0, 0, 1, 1], [], []>} : vector<16x512xf32>, vector<512x128xf32>, vector<16x128xf32> -> vector<16x128xf32>
    %21 = vector.broadcast %2 : vector<1x128xf32> to vector<16x128xf32>
    %22 = arith.addf %20, %21 : vector<16x128xf32>
    %23 = vector.shape_cast %22 : vector<16x128xf32> to vector<2x8x128xf32>
    %24 = vector.extract_strided_slice %3 {offsets = [0, 0, 0], sizes = [1, 384, 128], strides = [1, 1, 1]} : vector<3x384x128xf32> to vector<1x384x128xf32>
    %25 = vector.shape_cast %24 : vector<1x384x128xf32> to vector<384x128xf32>
    %26 = vector.extract_strided_slice %4 {offsets = [0, 0, 0], sizes = [1, 1, 128], strides = [1, 1, 1]} : vector<3x1x128xf32> to vector<1x1x128xf32>
    %27 = vector.shape_cast %26 : vector<1x1x128xf32> to vector<1x128xf32>
    %cst_21 = arith.constant 0.000000e+00 : f32
    %28 = vector.broadcast %cst_21 : f32 to vector<2x8x128xf32>
    %29 = arith.maximumf %23, %28 : vector<2x8x128xf32>
    %cst_22 = arith.constant 0.000000e+00 : f32
    %30 = vector.broadcast %cst_22 : f32 to vector<2x2x128xf32>
    %31 = vector.extract_strided_slice %29 {offsets = [0, 0, 0], sizes = [2, 6, 128], strides = [1, 1, 1]} : vector<2x8x128xf32> to vector<2x6x128xf32>
    %32 = tpu.concatenate %30, %31 in 1 : vector<2x2x128xf32>, vector<2x6x128xf32> -> vector<2x8x128xf32>
    %cst_23 = arith.constant 0.000000e+00 : f32
    %33 = vector.broadcast %cst_23 : f32 to vector<2x1x128xf32>
    %34 = vector.extract_strided_slice %29 {offsets = [0, 0, 0], sizes = [2, 7, 128], strides = [1, 1, 1]} : vector<2x8x128xf32> to vector<2x7x128xf32>
    %35 = tpu.concatenate %33, %34 in 1 : vector<2x1x128xf32>, vector<2x7x128xf32> -> vector<2x8x128xf32>
    %36 = tpu.concatenate %32, %35, %29 in 2 : vector<2x8x128xf32>, vector<2x8x128xf32>, vector<2x8x128xf32> -> vector<2x8x384xf32>
    %37 = vector.shape_cast %36 : vector<2x8x384xf32> to vector<16x384xf32>
    %cst_24 = arith.constant dense<0.000000e+00> : vector<16x128xf32>
    %38 = tpu.matmul %37, %25, %cst_24 {dimension_numbers = #tpu.dot_dimension_numbers<[1], [0], [0], [1], [0, 0, 1, 1], [], []>} : vector<16x384xf32>, vector<384x128xf32>, vector<16x128xf32> -> vector<16x128xf32>
    %39 = vector.broadcast %27 : vector<1x128xf32> to vector<16x128xf32>
    %40 = arith.addf %38, %39 : vector<16x128xf32>
    %41 = vector.shape_cast %40 : vector<16x128xf32> to vector<2x8x128xf32>
    %42 = vector.extract_strided_slice %5 {offsets = [0, 0, 0], sizes = [1, 128, 128], strides = [1, 1, 1]} : vector<3x128x128xf32> to vector<1x128x128xf32>
    %43 = vector.shape_cast %42 : vector<1x128x128xf32> to vector<128x128xf32>
    %44 = vector.extract_strided_slice %6 {offsets = [0, 0, 0], sizes = [1, 1, 128], strides = [1, 1, 1]} : vector<3x1x128xf32> to vector<1x1x128xf32>
    %45 = vector.shape_cast %44 : vector<1x1x128xf32> to vector<1x128xf32>
    %cst_25 = arith.constant 0.000000e+00 : f32
    %46 = vector.broadcast %cst_25 : f32 to vector<2x8x128xf32>
    %47 = arith.maximumf %41, %46 : vector<2x8x128xf32>
    %48 = vector.shape_cast %47 : vector<2x8x128xf32> to vector<16x128xf32>
    %cst_26 = arith.constant dense<0.000000e+00> : vector<16x128xf32>
    %49 = tpu.matmul %48, %43, %cst_26 {dimension_numbers = #tpu.dot_dimension_numbers<[1], [0], [0], [1], [0, 0, 1, 1], [], []>} : vector<16x128xf32>, vector<128x128xf32>, vector<16x128xf32> -> vector<16x128xf32>
    %50 = vector.broadcast %45 : vector<1x128xf32> to vector<16x128xf32>
    %51 = arith.addf %49, %50 : vector<16x128xf32>
    %52 = vector.shape_cast %51 : vector<16x128xf32> to vector<2x8x128xf32>
    %53 = arith.addf %23, %52 : vector<2x8x128xf32>
    %54 = vector.extract_strided_slice %3 {offsets = [1, 0, 0], sizes = [1, 384, 128], strides = [1, 1, 1]} : vector<3x384x128xf32> to vector<1x384x128xf32>
    %55 = vector.shape_cast %54 : vector<1x384x128xf32> to vector<384x128xf32>
    %56 = vector.extract_strided_slice %4 {offsets = [1, 0, 0], sizes = [1, 1, 128], strides = [1, 1, 1]} : vector<3x1x128xf32> to vector<1x1x128xf32>
    %57 = vector.shape_cast %56 : vector<1x1x128xf32> to vector<1x128xf32>
    %cst_27 = arith.constant 0.000000e+00 : f32
    %58 = vector.broadcast %cst_27 : f32 to vector<2x8x128xf32>
    %59 = arith.maximumf %53, %58 : vector<2x8x128xf32>
    %cst_28 = arith.constant 0.000000e+00 : f32
    %60 = vector.broadcast %cst_28 : f32 to vector<2x6x128xf32>
    %61 = vector.extract_strided_slice %59 {offsets = [0, 0, 0], sizes = [2, 2, 128], strides = [1, 1, 1]} : vector<2x8x128xf32> to vector<2x2x128xf32>
    %62 = tpu.concatenate %60, %61 in 1 : vector<2x6x128xf32>, vector<2x2x128xf32> -> vector<2x8x128xf32>
    %cst_29 = arith.constant 0.000000e+00 : f32
    %63 = vector.broadcast %cst_29 : f32 to vector<2x3x128xf32>
    %64 = vector.extract_strided_slice %59 {offsets = [0, 0, 0], sizes = [2, 5, 128], strides = [1, 1, 1]} : vector<2x8x128xf32> to vector<2x5x128xf32>
    %65 = tpu.concatenate %63, %64 in 1 : vector<2x3x128xf32>, vector<2x5x128xf32> -> vector<2x8x128xf32>
    %66 = tpu.concatenate %62, %65, %59 in 2 : vector<2x8x128xf32>, vector<2x8x128xf32>, vector<2x8x128xf32> -> vector<2x8x384xf32>
    %67 = vector.shape_cast %66 : vector<2x8x384xf32> to vector<16x384xf32>
    %cst_30 = arith.constant dense<0.000000e+00> : vector<16x128xf32>
    %68 = tpu.matmul %67, %55, %cst_30 {dimension_numbers = #tpu.dot_dimension_numbers<[1], [0], [0], [1], [0, 0, 1, 1], [], []>} : vector<16x384xf32>, vector<384x128xf32>, vector<16x128xf32> -> vector<16x128xf32>
    %69 = vector.broadcast %57 : vector<1x128xf32> to vector<16x128xf32>
    %70 = arith.addf %68, %69 : vector<16x128xf32>
    %71 = vector.shape_cast %70 : vector<16x128xf32> to vector<2x8x128xf32>
    %72 = vector.extract_strided_slice %5 {offsets = [1, 0, 0], sizes = [1, 128, 128], strides = [1, 1, 1]} : vector<3x128x128xf32> to vector<1x128x128xf32>
    %73 = vector.shape_cast %72 : vector<1x128x128xf32> to vector<128x128xf32>
    %74 = vector.extract_strided_slice %6 {offsets = [1, 0, 0], sizes = [1, 1, 128], strides = [1, 1, 1]} : vector<3x1x128xf32> to vector<1x1x128xf32>
    %75 = vector.shape_cast %74 : vector<1x1x128xf32> to vector<1x128xf32>
    %cst_31 = arith.constant 0.000000e+00 : f32
    %76 = vector.broadcast %cst_31 : f32 to vector<2x8x128xf32>
    %77 = arith.maximumf %71, %76 : vector<2x8x128xf32>
    %78 = vector.shape_cast %77 : vector<2x8x128xf32> to vector<16x128xf32>
    %cst_32 = arith.constant dense<0.000000e+00> : vector<16x128xf32>
    %79 = tpu.matmul %78, %73, %cst_32 {dimension_numbers = #tpu.dot_dimension_numbers<[1], [0], [0], [1], [0, 0, 1, 1], [], []>} : vector<16x128xf32>, vector<128x128xf32>, vector<16x128xf32> -> vector<16x128xf32>
    %80 = vector.broadcast %75 : vector<1x128xf32> to vector<16x128xf32>
    %81 = arith.addf %79, %80 : vector<16x128xf32>
    %82 = vector.shape_cast %81 : vector<16x128xf32> to vector<2x8x128xf32>
    %83 = arith.addf %53, %82 : vector<2x8x128xf32>
    %84 = vector.extract_strided_slice %3 {offsets = [2, 0, 0], sizes = [1, 384, 128], strides = [1, 1, 1]} : vector<3x384x128xf32> to vector<1x384x128xf32>
    %85 = vector.shape_cast %84 : vector<1x384x128xf32> to vector<384x128xf32>
    %86 = vector.extract_strided_slice %4 {offsets = [2, 0, 0], sizes = [1, 1, 128], strides = [1, 1, 1]} : vector<3x1x128xf32> to vector<1x1x128xf32>
    %87 = vector.shape_cast %86 : vector<1x1x128xf32> to vector<1x128xf32>
    %cst_33 = arith.constant 0.000000e+00 : f32
    %88 = vector.broadcast %cst_33 : f32 to vector<2x8x128xf32>
    %89 = arith.maximumf %83, %88 : vector<2x8x128xf32>
    %cst_34 = arith.constant 0.000000e+00 : f32
    %90 = vector.broadcast %cst_34 : f32 to vector<2x8x128xf32>
    %cst_35 = arith.constant 0.000000e+00 : f32
    %91 = vector.broadcast %cst_35 : f32 to vector<2x8x128xf32>
    %92 = tpu.concatenate %90, %91, %89 in 2 : vector<2x8x128xf32>, vector<2x8x128xf32>, vector<2x8x128xf32> -> vector<2x8x384xf32>
    %93 = vector.shape_cast %92 : vector<2x8x384xf32> to vector<16x384xf32>
    %cst_36 = arith.constant dense<0.000000e+00> : vector<16x128xf32>
    %94 = tpu.matmul %93, %85, %cst_36 {dimension_numbers = #tpu.dot_dimension_numbers<[1], [0], [0], [1], [0, 0, 1, 1], [], []>} : vector<16x384xf32>, vector<384x128xf32>, vector<16x128xf32> -> vector<16x128xf32>
    %95 = vector.broadcast %87 : vector<1x128xf32> to vector<16x128xf32>
    %96 = arith.addf %94, %95 : vector<16x128xf32>
    %97 = vector.shape_cast %96 : vector<16x128xf32> to vector<2x8x128xf32>
    %98 = vector.extract_strided_slice %5 {offsets = [2, 0, 0], sizes = [1, 128, 128], strides = [1, 1, 1]} : vector<3x128x128xf32> to vector<1x128x128xf32>
    %99 = vector.shape_cast %98 : vector<1x128x128xf32> to vector<128x128xf32>
    %100 = vector.extract_strided_slice %6 {offsets = [2, 0, 0], sizes = [1, 1, 128], strides = [1, 1, 1]} : vector<3x1x128xf32> to vector<1x1x128xf32>
    %101 = vector.shape_cast %100 : vector<1x1x128xf32> to vector<1x128xf32>
    %cst_37 = arith.constant 0.000000e+00 : f32
    %102 = vector.broadcast %cst_37 : f32 to vector<2x8x128xf32>
    %103 = arith.maximumf %97, %102 : vector<2x8x128xf32>
    %104 = vector.shape_cast %103 : vector<2x8x128xf32> to vector<16x128xf32>
    %cst_38 = arith.constant dense<0.000000e+00> : vector<16x128xf32>
    %105 = tpu.matmul %104, %99, %cst_38 {dimension_numbers = #tpu.dot_dimension_numbers<[1], [0], [0], [1], [0, 0, 1, 1], [], []>} : vector<16x128xf32>, vector<128x128xf32>, vector<16x128xf32> -> vector<16x128xf32>
    %106 = vector.broadcast %101 : vector<1x128xf32> to vector<16x128xf32>
    %107 = arith.addf %105, %106 : vector<16x128xf32>
    %108 = vector.shape_cast %107 : vector<16x128xf32> to vector<2x8x128xf32>
    %109 = arith.addf %83, %108 : vector<2x8x128xf32>
    %c0_39 = arith.constant 0 : index
    %c0_40 = arith.constant 0 : index
    %c0_41 = arith.constant 0 : index
    %110 = vector.load %arg8[%c0_39, %c0_40, %c0_41] : memref<2x8x128xf32, #tpu.memory_space<vmem>>, vector<2x8x128xf32>
    tpu.vector_store %arg8[%c0_39, %c0_40, %c0_41], %109 {strides = array<i32>} : memref<2x8x128xf32, #tpu.memory_space<vmem>>, vector<2x8x128xf32>,
    return
  }
  func.func @transform_0(%arg0: i32) -> (i32, i32, i32) {
    %c0_i32 = arith.constant 0 : i32
    %c0_i32_0 = arith.constant 0 : i32
    %c0_i32_1 = arith.constant 0 : i32
    return %arg0, %c0_i32, %c0_i32_0 : i32, i32, i32
  }
  func.func @transform_1(%arg0: i32) -> (i32, i32) {
    %c0_i32 = arith.constant 0 : i32
    %c0_i32_0 = arith.constant 0 : i32
    %c0_i32_1 = arith.constant 0 : i32
    return %c0_i32, %c0_i32_0 : i32, i32
  }
  func.func @transform_2(%arg0: i32) -> (i32, i32) {
    %c0_i32 = arith.constant 0 : i32
    %c0_i32_0 = arith.constant 0 : i32
    %c0_i32_1 = arith.constant 0 : i32
    return %c0_i32, %c0_i32_0 : i32, i32
  }
  func.func @transform_3(%arg0: i32) -> (i32, i32, i32) {
    %c0_i32 = arith.constant 0 : i32
    %c0_i32_0 = arith.constant 0 : i32
    %c0_i32_1 = arith.constant 0 : i32
    %c0_i32_2 = arith.constant 0 : i32
    return %c0_i32, %c0_i32_0, %c0_i32_1 : i32, i32, i32
  }
  func.func @transform_4(%arg0: i32) -> (i32, i32, i32) {
    %c0_i32 = arith.constant 0 : i32
    %c0_i32_0 = arith.constant 0 : i32
    %c0_i32_1 = arith.constant 0 : i32
    %c0_i32_2 = arith.constant 0 : i32
    return %c0_i32, %c0_i32_0, %c0_i32_1 : i32, i32, i32
  }
  func.func @transform_5(%arg0: i32) -> (i32, i32, i32) {
    %c0_i32 = arith.constant 0 : i32
    %c0_i32_0 = arith.constant 0 : i32
    %c0_i32_1 = arith.constant 0 : i32
    %c0_i32_2 = arith.constant 0 : i32
    return %c0_i32, %c0_i32_0, %c0_i32_1 : i32, i32, i32
  }
  func.func @transform_6(%arg0: i32) -> (i32, i32, i32) {
    %c0_i32 = arith.constant 0 : i32
    %c0_i32_0 = arith.constant 0 : i32
    %c0_i32_1 = arith.constant 0 : i32
    %c0_i32_2 = arith.constant 0 : i32
    return %c0_i32, %c0_i32_0, %c0_i32_1 : i32, i32, i32
  }
  func.func @transform_7(%arg0: i32) -> (i32, i32, i32) {
    %c0_i32 = arith.constant 0 : i32
    %c0_i32_0 = arith.constant 0 : i32
    %c0_i32_1 = arith.constant 0 : i32
    return %arg0, %c0_i32, %c0_i32_0 : i32, i32, i32
  }
}

module attributes {stable_mosaic.version = 11 : i64} {
  func.func @kernel(%arg0: i32, %arg1: memref<2x8x128xf32, #tpu.memory_space<vmem>>, %arg2: memref<2x8x16xf32, #tpu.memory_space<vmem>>, %arg3: memref<384x128xf32, #tpu.memory_space<vmem>>, %arg4: memref<1x128xf32, #tpu.memory_space<vmem>>, %arg5: memref<128x32xf32, #tpu.memory_space<vmem>>, %arg6: memref<1x32xf32, #tpu.memory_space<vmem>>, %arg7: memref<16x128xf32, #tpu.memory_space<vmem>>, %arg8: memref<1x128xf32, #tpu.memory_space<vmem>>, %arg9: memref<384x128xf32, #tpu.memory_space<vmem>>, %arg10: memref<1x128xf32, #tpu.memory_space<vmem>>, %arg11: memref<3x384x128xf32, #tpu.memory_space<vmem>>, %arg12: memref<3x1x128xf32, #tpu.memory_space<vmem>>, %arg13: memref<3x128x128xf32, #tpu.memory_space<vmem>>, %arg14: memref<3x1x128xf32, #tpu.memory_space<vmem>>, %arg15: memref<2x8x32xf32, #tpu.memory_space<vmem>>, %arg16: memref<2x8x128xf32, #tpu.memory_space<vmem>>) attributes {dimension_semantics = [#tpu.dimension_semantics<parallel>], iteration_bounds = array<i64: 1>, scalar_prefetch = 0 : i64, scratch_operands = 0 : i64, tpu.core_type = #tpu.core_type<tc>, window_params = [{transform_indices = @transform_0, window_bounds = array<i64: 2, 8, 128>}, {transform_indices = @transform_1, window_bounds = array<i64: 2, 8, 16>}, {pipeline_mode = #tpu.pipeline_mode<synchronous>, transform_indices = @transform_2, window_bounds = array<i64: 384, 128>}, {pipeline_mode = #tpu.pipeline_mode<synchronous>, transform_indices = @transform_3, window_bounds = array<i64: 1, 128>}, {pipeline_mode = #tpu.pipeline_mode<synchronous>, transform_indices = @transform_4, window_bounds = array<i64: 128, 32>}, {pipeline_mode = #tpu.pipeline_mode<synchronous>, transform_indices = @transform_5, window_bounds = array<i64: 1, 32>}, {pipeline_mode = #tpu.pipeline_mode<synchronous>, transform_indices = @transform_6, window_bounds = array<i64: 16, 128>}, {pipeline_mode = #tpu.pipeline_mode<synchronous>, transform_indices = @transform_7, window_bounds = array<i64: 1, 128>}, {pipeline_mode = #tpu.pipeline_mode<synchronous>, transform_indices = @transform_8, window_bounds = array<i64: 384, 128>}, {pipeline_mode = #tpu.pipeline_mode<synchronous>, transform_indices = @transform_9, window_bounds = array<i64: 1, 128>}, {pipeline_mode = #tpu.pipeline_mode<synchronous>, transform_indices = @transform_10, window_bounds = array<i64: 3, 384, 128>}, {pipeline_mode = #tpu.pipeline_mode<synchronous>, transform_indices = @transform_11, window_bounds = array<i64: 3, 1, 128>}, {pipeline_mode = #tpu.pipeline_mode<synchronous>, transform_indices = @transform_12, window_bounds = array<i64: 3, 128, 128>}, {pipeline_mode = #tpu.pipeline_mode<synchronous>, transform_indices = @transform_13, window_bounds = array<i64: 3, 1, 128>}, {transform_indices = @transform_14, window_bounds = array<i64: 2, 8, 32>}, {transform_indices = @transform_15, window_bounds = array<i64: 2, 8, 128>}]} {
    %c0 = arith.constant 0 : index
    %c0_0 = arith.constant 0 : index
    %c0_1 = arith.constant 0 : index
    %0 = vector.load %arg1[%c0, %c0_0, %c0_1] : memref<2x8x128xf32, #tpu.memory_space<vmem>>, vector<2x8x128xf32>
    %c0_2 = arith.constant 0 : index
    %c0_3 = arith.constant 0 : index
    %c0_4 = arith.constant 0 : index
    %1 = vector.load %arg2[%c0_2, %c0_3, %c0_4] : memref<2x8x16xf32, #tpu.memory_space<vmem>>, vector<2x8x16xf32>
    %c0_5 = arith.constant 0 : index
    %c0_6 = arith.constant 0 : index
    %2 = vector.load %arg3[%c0_5, %c0_6] : memref<384x128xf32, #tpu.memory_space<vmem>>, vector<384x128xf32>
    %c0_7 = arith.constant 0 : index
    %c0_8 = arith.constant 0 : index
    %3 = vector.load %arg4[%c0_7, %c0_8] : memref<1x128xf32, #tpu.memory_space<vmem>>, vector<1x128xf32>
    %c0_9 = arith.constant 0 : index
    %c0_10 = arith.constant 0 : index
    %4 = vector.load %arg5[%c0_9, %c0_10] : memref<128x32xf32, #tpu.memory_space<vmem>>, vector<128x32xf32>
    %c0_11 = arith.constant 0 : index
    %c0_12 = arith.constant 0 : index
    %5 = vector.load %arg6[%c0_11, %c0_12] : memref<1x32xf32, #tpu.memory_space<vmem>>, vector<1x32xf32>
    %c0_13 = arith.constant 0 : index
    %c0_14 = arith.constant 0 : index
    %6 = vector.load %arg7[%c0_13, %c0_14] : memref<16x128xf32, #tpu.memory_space<vmem>>, vector<16x128xf32>
    %c0_15 = arith.constant 0 : index
    %c0_16 = arith.constant 0 : index
    %7 = vector.load %arg8[%c0_15, %c0_16] : memref<1x128xf32, #tpu.memory_space<vmem>>, vector<1x128xf32>
    %c0_17 = arith.constant 0 : index
    %c0_18 = arith.constant 0 : index
    %8 = vector.load %arg9[%c0_17, %c0_18] : memref<384x128xf32, #tpu.memory_space<vmem>>, vector<384x128xf32>
    %c0_19 = arith.constant 0 : index
    %c0_20 = arith.constant 0 : index
    %9 = vector.load %arg10[%c0_19, %c0_20] : memref<1x128xf32, #tpu.memory_space<vmem>>, vector<1x128xf32>
    %c0_21 = arith.constant 0 : index
    %c0_22 = arith.constant 0 : index
    %c0_23 = arith.constant 0 : index
    %10 = vector.load %arg11[%c0_21, %c0_22, %c0_23] : memref<3x384x128xf32, #tpu.memory_space<vmem>>, vector<3x384x128xf32>
    %c0_24 = arith.constant 0 : index
    %c0_25 = arith.constant 0 : index
    %c0_26 = arith.constant 0 : index
    %11 = vector.load %arg12[%c0_24, %c0_25, %c0_26] : memref<3x1x128xf32, #tpu.memory_space<vmem>>, vector<3x1x128xf32>
    %c0_27 = arith.constant 0 : index
    %c0_28 = arith.constant 0 : index
    %c0_29 = arith.constant 0 : index
    %12 = vector.load %arg13[%c0_27, %c0_28, %c0_29] : memref<3x128x128xf32, #tpu.memory_space<vmem>>, vector<3x128x128xf32>
    %c0_30 = arith.constant 0 : index
    %c0_31 = arith.constant 0 : index
    %c0_32 = arith.constant 0 : index
    %13 = vector.load %arg14[%c0_30, %c0_31, %c0_32] : memref<3x1x128xf32, #tpu.memory_space<vmem>>, vector<3x1x128xf32>
    %cst = arith.constant 0.000000e+00 : f32
    %14 = vector.broadcast %cst : f32 to vector<2x2x128xf32>
    %15 = vector.extract_strided_slice %0 {offsets = [0, 0, 0], sizes = [2, 6, 128], strides = [1, 1, 1]} : vector<2x8x128xf32> to vector<2x6x128xf32>
    %16 = tpu.concatenate %14, %15 in 1 : vector<2x2x128xf32>, vector<2x6x128xf32> -> vector<2x8x128xf32>
    %cst_33 = arith.constant 0.000000e+00 : f32
    %17 = vector.broadcast %cst_33 : f32 to vector<2x1x128xf32>
    %18 = vector.extract_strided_slice %0 {offsets = [0, 0, 0], sizes = [2, 7, 128], strides = [1, 1, 1]} : vector<2x8x128xf32> to vector<2x7x128xf32>
    %19 = tpu.concatenate %17, %18 in 1 : vector<2x1x128xf32>, vector<2x7x128xf32> -> vector<2x8x128xf32>
    %20 = tpu.concatenate %16, %19, %0 in 2 : vector<2x8x128xf32>, vector<2x8x128xf32>, vector<2x8x128xf32> -> vector<2x8x384xf32>
    %21 = vector.shape_cast %20 : vector<2x8x384xf32> to vector<16x384xf32>
    %cst_34 = arith.constant dense<0.000000e+00> : vector<16x128xf32>
    %22 = tpu.matmul %21, %2, %cst_34 {dimension_numbers = #tpu.dot_dimension_numbers<[1], [0], [0], [1], [0, 0, 1, 1], [], []>} : vector<16x384xf32>, vector<384x128xf32>, vector<16x128xf32> -> vector<16x128xf32>
    %23 = vector.broadcast %3 : vector<1x128xf32> to vector<16x128xf32>
    %24 = arith.addf %22, %23 : vector<16x128xf32>
    %25 = vector.shape_cast %24 : vector<16x128xf32> to vector<2x8x128xf32>
    %26 = vector.shape_cast %25 : vector<2x8x128xf32> to vector<16x128xf32>
    %cst_35 = arith.constant dense<0.000000e+00> : vector<16x32xf32>
    %27 = tpu.matmul %26, %4, %cst_35 {dimension_numbers = #tpu.dot_dimension_numbers<[1], [0], [0], [1], [0, 0, 1, 1], [], []>} : vector<16x128xf32>, vector<128x32xf32>, vector<16x32xf32> -> vector<16x32xf32>
    %28 = vector.broadcast %5 : vector<1x32xf32> to vector<16x32xf32>
    %29 = arith.addf %27, %28 : vector<16x32xf32>
    %30 = vector.shape_cast %29 : vector<16x32xf32> to vector<2x8x32xf32>
    %31 = vector.extract_strided_slice %30 {offsets = [0, 0, 0], sizes = [2, 8, 16], strides = [1, 1, 1]} : vector<2x8x32xf32> to vector<2x8x16xf32>
    %32 = vector.extract_strided_slice %30 {offsets = [0, 0, 16], sizes = [2, 8, 16], strides = [1, 1, 1]} : vector<2x8x32xf32> to vector<2x8x16xf32>
    %cst_36 = arith.constant 5.000000e-01 : f32
    %33 = vector.broadcast %cst_36 : f32 to vector<2x8x16xf32>
    %34 = arith.mulf %33, %32 : vector<2x8x16xf32>
    %35 = math.exp %34 : vector<2x8x16xf32>
    %36 = arith.mulf %1, %35 : vector<2x8x16xf32>
    %37 = arith.addf %31, %36 : vector<2x8x16xf32>
    %38 = vector.shape_cast %37 : vector<2x8x16xf32> to vector<16x16xf32>
    %cst_37 = arith.constant dense<0.000000e+00> : vector<16x128xf32>
    %39 = tpu.matmul %38, %6, %cst_37 {dimension_numbers = #tpu.dot_dimension_numbers<[1], [0], [0], [1], [0, 0, 1, 1], [], []>} : vector<16x16xf32>, vector<16x128xf32>, vector<16x128xf32> -> vector<16x128xf32>
    %40 = vector.broadcast %7 : vector<1x128xf32> to vector<16x128xf32>
    %41 = arith.addf %39, %40 : vector<16x128xf32>
    %42 = vector.shape_cast %41 : vector<16x128xf32> to vector<2x8x128xf32>
    %cst_38 = arith.constant 0.000000e+00 : f32
    %43 = vector.broadcast %cst_38 : f32 to vector<2x2x128xf32>
    %44 = vector.extract_strided_slice %42 {offsets = [0, 0, 0], sizes = [2, 6, 128], strides = [1, 1, 1]} : vector<2x8x128xf32> to vector<2x6x128xf32>
    %45 = tpu.concatenate %43, %44 in 1 : vector<2x2x128xf32>, vector<2x6x128xf32> -> vector<2x8x128xf32>
    %cst_39 = arith.constant 0.000000e+00 : f32
    %46 = vector.broadcast %cst_39 : f32 to vector<2x1x128xf32>
    %47 = vector.extract_strided_slice %42 {offsets = [0, 0, 0], sizes = [2, 7, 128], strides = [1, 1, 1]} : vector<2x8x128xf32> to vector<2x7x128xf32>
    %48 = tpu.concatenate %46, %47 in 1 : vector<2x1x128xf32>, vector<2x7x128xf32> -> vector<2x8x128xf32>
    %49 = tpu.concatenate %45, %48, %42 in 2 : vector<2x8x128xf32>, vector<2x8x128xf32>, vector<2x8x128xf32> -> vector<2x8x384xf32>
    %50 = vector.shape_cast %49 : vector<2x8x384xf32> to vector<16x384xf32>
    %cst_40 = arith.constant dense<0.000000e+00> : vector<16x128xf32>
    %51 = tpu.matmul %50, %8, %cst_40 {dimension_numbers = #tpu.dot_dimension_numbers<[1], [0], [0], [1], [0, 0, 1, 1], [], []>} : vector<16x384xf32>, vector<384x128xf32>, vector<16x128xf32> -> vector<16x128xf32>
    %52 = vector.broadcast %9 : vector<1x128xf32> to vector<16x128xf32>
    %53 = arith.addf %51, %52 : vector<16x128xf32>
    %54 = vector.shape_cast %53 : vector<16x128xf32> to vector<2x8x128xf32>
    %cst_41 = arith.constant 0.000000e+00 : f32
    %55 = vector.broadcast %cst_41 : f32 to vector<2x8x128xf32>
    %56 = arith.maximumf %54, %55 : vector<2x8x128xf32>
    %57 = vector.extract_strided_slice %10 {offsets = [0, 0, 0], sizes = [1, 384, 128], strides = [1, 1, 1]} : vector<3x384x128xf32> to vector<1x384x128xf32>
    %58 = vector.shape_cast %57 : vector<1x384x128xf32> to vector<384x128xf32>
    %59 = vector.extract_strided_slice %11 {offsets = [0, 0, 0], sizes = [1, 1, 128], strides = [1, 1, 1]} : vector<3x1x128xf32> to vector<1x1x128xf32>
    %60 = vector.shape_cast %59 : vector<1x1x128xf32> to vector<1x128xf32>
    %cst_42 = arith.constant 0.000000e+00 : f32
    %61 = vector.broadcast %cst_42 : f32 to vector<2x8x128xf32>
    %62 = arith.maximumf %56, %61 : vector<2x8x128xf32>
    %cst_43 = arith.constant 0.000000e+00 : f32
    %63 = vector.broadcast %cst_43 : f32 to vector<2x8x128xf32>
    %cst_44 = arith.constant 0.000000e+00 : f32
    %64 = vector.broadcast %cst_44 : f32 to vector<2x8x128xf32>
    %65 = tpu.concatenate %63, %64, %62 in 2 : vector<2x8x128xf32>, vector<2x8x128xf32>, vector<2x8x128xf32> -> vector<2x8x384xf32>
    %66 = vector.shape_cast %65 : vector<2x8x384xf32> to vector<16x384xf32>
    %cst_45 = arith.constant dense<0.000000e+00> : vector<16x128xf32>
    %67 = tpu.matmul %66, %58, %cst_45 {dimension_numbers = #tpu.dot_dimension_numbers<[1], [0], [0], [1], [0, 0, 1, 1], [], []>} : vector<16x384xf32>, vector<384x128xf32>, vector<16x128xf32> -> vector<16x128xf32>
    %68 = vector.broadcast %60 : vector<1x128xf32> to vector<16x128xf32>
    %69 = arith.addf %67, %68 : vector<16x128xf32>
    %70 = vector.shape_cast %69 : vector<16x128xf32> to vector<2x8x128xf32>
    %71 = vector.extract_strided_slice %12 {offsets = [0, 0, 0], sizes = [1, 128, 128], strides = [1, 1, 1]} : vector<3x128x128xf32> to vector<1x128x128xf32>
    %72 = vector.shape_cast %71 : vector<1x128x128xf32> to vector<128x128xf32>
    %73 = vector.extract_strided_slice %13 {offsets = [0, 0, 0], sizes = [1, 1, 128], strides = [1, 1, 1]} : vector<3x1x128xf32> to vector<1x1x128xf32>
    %74 = vector.shape_cast %73 : vector<1x1x128xf32> to vector<1x128xf32>
    %cst_46 = arith.constant 0.000000e+00 : f32
    %75 = vector.broadcast %cst_46 : f32 to vector<2x8x128xf32>
    %76 = arith.maximumf %70, %75 : vector<2x8x128xf32>
    %77 = vector.shape_cast %76 : vector<2x8x128xf32> to vector<16x128xf32>
    %cst_47 = arith.constant dense<0.000000e+00> : vector<16x128xf32>
    %78 = tpu.matmul %77, %72, %cst_47 {dimension_numbers = #tpu.dot_dimension_numbers<[1], [0], [0], [1], [0, 0, 1, 1], [], []>} : vector<16x128xf32>, vector<128x128xf32>, vector<16x128xf32> -> vector<16x128xf32>
    %79 = vector.broadcast %74 : vector<1x128xf32> to vector<16x128xf32>
    %80 = arith.addf %78, %79 : vector<16x128xf32>
    %81 = vector.shape_cast %80 : vector<16x128xf32> to vector<2x8x128xf32>
    %82 = arith.addf %56, %81 : vector<2x8x128xf32>
    %83 = vector.extract_strided_slice %10 {offsets = [1, 0, 0], sizes = [1, 384, 128], strides = [1, 1, 1]} : vector<3x384x128xf32> to vector<1x384x128xf32>
    %84 = vector.shape_cast %83 : vector<1x384x128xf32> to vector<384x128xf32>
    %85 = vector.extract_strided_slice %11 {offsets = [1, 0, 0], sizes = [1, 1, 128], strides = [1, 1, 1]} : vector<3x1x128xf32> to vector<1x1x128xf32>
    %86 = vector.shape_cast %85 : vector<1x1x128xf32> to vector<1x128xf32>
    %cst_48 = arith.constant 0.000000e+00 : f32
    %87 = vector.broadcast %cst_48 : f32 to vector<2x8x128xf32>
    %88 = arith.maximumf %82, %87 : vector<2x8x128xf32>
    %cst_49 = arith.constant 0.000000e+00 : f32
    %89 = vector.broadcast %cst_49 : f32 to vector<2x6x128xf32>
    %90 = vector.extract_strided_slice %88 {offsets = [0, 0, 0], sizes = [2, 2, 128], strides = [1, 1, 1]} : vector<2x8x128xf32> to vector<2x2x128xf32>
    %91 = tpu.concatenate %89, %90 in 1 : vector<2x6x128xf32>, vector<2x2x128xf32> -> vector<2x8x128xf32>
    %cst_50 = arith.constant 0.000000e+00 : f32
    %92 = vector.broadcast %cst_50 : f32 to vector<2x3x128xf32>
    %93 = vector.extract_strided_slice %88 {offsets = [0, 0, 0], sizes = [2, 5, 128], strides = [1, 1, 1]} : vector<2x8x128xf32> to vector<2x5x128xf32>
    %94 = tpu.concatenate %92, %93 in 1 : vector<2x3x128xf32>, vector<2x5x128xf32> -> vector<2x8x128xf32>
    %95 = tpu.concatenate %91, %94, %88 in 2 : vector<2x8x128xf32>, vector<2x8x128xf32>, vector<2x8x128xf32> -> vector<2x8x384xf32>
    %96 = vector.shape_cast %95 : vector<2x8x384xf32> to vector<16x384xf32>
    %cst_51 = arith.constant dense<0.000000e+00> : vector<16x128xf32>
    %97 = tpu.matmul %96, %84, %cst_51 {dimension_numbers = #tpu.dot_dimension_numbers<[1], [0], [0], [1], [0, 0, 1, 1], [], []>} : vector<16x384xf32>, vector<384x128xf32>, vector<16x128xf32> -> vector<16x128xf32>
    %98 = vector.broadcast %86 : vector<1x128xf32> to vector<16x128xf32>
    %99 = arith.addf %97, %98 : vector<16x128xf32>
    %100 = vector.shape_cast %99 : vector<16x128xf32> to vector<2x8x128xf32>
    %101 = vector.extract_strided_slice %12 {offsets = [1, 0, 0], sizes = [1, 128, 128], strides = [1, 1, 1]} : vector<3x128x128xf32> to vector<1x128x128xf32>
    %102 = vector.shape_cast %101 : vector<1x128x128xf32> to vector<128x128xf32>
    %103 = vector.extract_strided_slice %13 {offsets = [1, 0, 0], sizes = [1, 1, 128], strides = [1, 1, 1]} : vector<3x1x128xf32> to vector<1x1x128xf32>
    %104 = vector.shape_cast %103 : vector<1x1x128xf32> to vector<1x128xf32>
    %cst_52 = arith.constant 0.000000e+00 : f32
    %105 = vector.broadcast %cst_52 : f32 to vector<2x8x128xf32>
    %106 = arith.maximumf %100, %105 : vector<2x8x128xf32>
    %107 = vector.shape_cast %106 : vector<2x8x128xf32> to vector<16x128xf32>
    %cst_53 = arith.constant dense<0.000000e+00> : vector<16x128xf32>
    %108 = tpu.matmul %107, %102, %cst_53 {dimension_numbers = #tpu.dot_dimension_numbers<[1], [0], [0], [1], [0, 0, 1, 1], [], []>} : vector<16x128xf32>, vector<128x128xf32>, vector<16x128xf32> -> vector<16x128xf32>
    %109 = vector.broadcast %104 : vector<1x128xf32> to vector<16x128xf32>
    %110 = arith.addf %108, %109 : vector<16x128xf32>
    %111 = vector.shape_cast %110 : vector<16x128xf32> to vector<2x8x128xf32>
    %112 = arith.addf %82, %111 : vector<2x8x128xf32>
    %113 = vector.extract_strided_slice %10 {offsets = [2, 0, 0], sizes = [1, 384, 128], strides = [1, 1, 1]} : vector<3x384x128xf32> to vector<1x384x128xf32>
    %114 = vector.shape_cast %113 : vector<1x384x128xf32> to vector<384x128xf32>
    %115 = vector.extract_strided_slice %11 {offsets = [2, 0, 0], sizes = [1, 1, 128], strides = [1, 1, 1]} : vector<3x1x128xf32> to vector<1x1x128xf32>
    %116 = vector.shape_cast %115 : vector<1x1x128xf32> to vector<1x128xf32>
    %cst_54 = arith.constant 0.000000e+00 : f32
    %117 = vector.broadcast %cst_54 : f32 to vector<2x8x128xf32>
    %118 = arith.maximumf %112, %117 : vector<2x8x128xf32>
    %cst_55 = arith.constant 0.000000e+00 : f32
    %119 = vector.broadcast %cst_55 : f32 to vector<2x2x128xf32>
    %120 = vector.extract_strided_slice %118 {offsets = [0, 0, 0], sizes = [2, 6, 128], strides = [1, 1, 1]} : vector<2x8x128xf32> to vector<2x6x128xf32>
    %121 = tpu.concatenate %119, %120 in 1 : vector<2x2x128xf32>, vector<2x6x128xf32> -> vector<2x8x128xf32>
    %cst_56 = arith.constant 0.000000e+00 : f32
    %122 = vector.broadcast %cst_56 : f32 to vector<2x1x128xf32>
    %123 = vector.extract_strided_slice %118 {offsets = [0, 0, 0], sizes = [2, 7, 128], strides = [1, 1, 1]} : vector<2x8x128xf32> to vector<2x7x128xf32>
    %124 = tpu.concatenate %122, %123 in 1 : vector<2x1x128xf32>, vector<2x7x128xf32> -> vector<2x8x128xf32>
    %125 = tpu.concatenate %121, %124, %118 in 2 : vector<2x8x128xf32>, vector<2x8x128xf32>, vector<2x8x128xf32> -> vector<2x8x384xf32>
    %126 = vector.shape_cast %125 : vector<2x8x384xf32> to vector<16x384xf32>
    %cst_57 = arith.constant dense<0.000000e+00> : vector<16x128xf32>
    %127 = tpu.matmul %126, %114, %cst_57 {dimension_numbers = #tpu.dot_dimension_numbers<[1], [0], [0], [1], [0, 0, 1, 1], [], []>} : vector<16x384xf32>, vector<384x128xf32>, vector<16x128xf32> -> vector<16x128xf32>
    %128 = vector.broadcast %116 : vector<1x128xf32> to vector<16x128xf32>
    %129 = arith.addf %127, %128 : vector<16x128xf32>
    %130 = vector.shape_cast %129 : vector<16x128xf32> to vector<2x8x128xf32>
    %131 = vector.extract_strided_slice %12 {offsets = [2, 0, 0], sizes = [1, 128, 128], strides = [1, 1, 1]} : vector<3x128x128xf32> to vector<1x128x128xf32>
    %132 = vector.shape_cast %131 : vector<1x128x128xf32> to vector<128x128xf32>
    %133 = vector.extract_strided_slice %13 {offsets = [2, 0, 0], sizes = [1, 1, 128], strides = [1, 1, 1]} : vector<3x1x128xf32> to vector<1x1x128xf32>
    %134 = vector.shape_cast %133 : vector<1x1x128xf32> to vector<1x128xf32>
    %cst_58 = arith.constant 0.000000e+00 : f32
    %135 = vector.broadcast %cst_58 : f32 to vector<2x8x128xf32>
    %136 = arith.maximumf %130, %135 : vector<2x8x128xf32>
    %137 = vector.shape_cast %136 : vector<2x8x128xf32> to vector<16x128xf32>
    %cst_59 = arith.constant dense<0.000000e+00> : vector<16x128xf32>
    %138 = tpu.matmul %137, %132, %cst_59 {dimension_numbers = #tpu.dot_dimension_numbers<[1], [0], [0], [1], [0, 0, 1, 1], [], []>} : vector<16x128xf32>, vector<128x128xf32>, vector<16x128xf32> -> vector<16x128xf32>
    %139 = vector.broadcast %134 : vector<1x128xf32> to vector<16x128xf32>
    %140 = arith.addf %138, %139 : vector<16x128xf32>
    %141 = vector.shape_cast %140 : vector<16x128xf32> to vector<2x8x128xf32>
    %142 = arith.addf %112, %141 : vector<2x8x128xf32>
    %c0_60 = arith.constant 0 : index
    %c0_61 = arith.constant 0 : index
    %c0_62 = arith.constant 0 : index
    %143 = vector.load %arg15[%c0_60, %c0_61, %c0_62] : memref<2x8x32xf32, #tpu.memory_space<vmem>>, vector<2x8x32xf32>
    tpu.vector_store %arg15[%c0_60, %c0_61, %c0_62], %30 {strides = array<i32>} : memref<2x8x32xf32, #tpu.memory_space<vmem>>, vector<2x8x32xf32>,
    %c0_63 = arith.constant 0 : index
    %c0_64 = arith.constant 0 : index
    %c0_65 = arith.constant 0 : index
    %144 = vector.load %arg16[%c0_63, %c0_64, %c0_65] : memref<2x8x128xf32, #tpu.memory_space<vmem>>, vector<2x8x128xf32>
    tpu.vector_store %arg16[%c0_63, %c0_64, %c0_65], %142 {strides = array<i32>} : memref<2x8x128xf32, #tpu.memory_space<vmem>>, vector<2x8x128xf32>,
    return
  }
  func.func @transform_0(%arg0: i32) -> (i32, i32, i32) {
    %c0_i32 = arith.constant 0 : i32
    %c0_i32_0 = arith.constant 0 : i32
    %c0_i32_1 = arith.constant 0 : i32
    return %arg0, %c0_i32, %c0_i32_0 : i32, i32, i32
  }
  func.func @transform_1(%arg0: i32) -> (i32, i32, i32) {
    %c0_i32 = arith.constant 0 : i32
    %c0_i32_0 = arith.constant 0 : i32
    %c0_i32_1 = arith.constant 0 : i32
    return %arg0, %c0_i32, %c0_i32_0 : i32, i32, i32
  }
  func.func @transform_2(%arg0: i32) -> (i32, i32) {
    %c0_i32 = arith.constant 0 : i32
    %c0_i32_0 = arith.constant 0 : i32
    %c0_i32_1 = arith.constant 0 : i32
    return %c0_i32, %c0_i32_0 : i32, i32
  }
  func.func @transform_3(%arg0: i32) -> (i32, i32) {
    %c0_i32 = arith.constant 0 : i32
    %c0_i32_0 = arith.constant 0 : i32
    %c0_i32_1 = arith.constant 0 : i32
    return %c0_i32, %c0_i32_0 : i32, i32
  }
  func.func @transform_4(%arg0: i32) -> (i32, i32) {
    %c0_i32 = arith.constant 0 : i32
    %c0_i32_0 = arith.constant 0 : i32
    %c0_i32_1 = arith.constant 0 : i32
    return %c0_i32, %c0_i32_0 : i32, i32
  }
  func.func @transform_5(%arg0: i32) -> (i32, i32) {
    %c0_i32 = arith.constant 0 : i32
    %c0_i32_0 = arith.constant 0 : i32
    %c0_i32_1 = arith.constant 0 : i32
    return %c0_i32, %c0_i32_0 : i32, i32
  }
  func.func @transform_6(%arg0: i32) -> (i32, i32) {
    %c0_i32 = arith.constant 0 : i32
    %c0_i32_0 = arith.constant 0 : i32
    %c0_i32_1 = arith.constant 0 : i32
    return %c0_i32, %c0_i32_0 : i32, i32
  }
  func.func @transform_7(%arg0: i32) -> (i32, i32) {
    %c0_i32 = arith.constant 0 : i32
    %c0_i32_0 = arith.constant 0 : i32
    %c0_i32_1 = arith.constant 0 : i32
    return %c0_i32, %c0_i32_0 : i32, i32
  }
  func.func @transform_8(%arg0: i32) -> (i32, i32) {
    %c0_i32 = arith.constant 0 : i32
    %c0_i32_0 = arith.constant 0 : i32
    %c0_i32_1 = arith.constant 0 : i32
    return %c0_i32, %c0_i32_0 : i32, i32
  }
  func.func @transform_9(%arg0: i32) -> (i32, i32) {
    %c0_i32 = arith.constant 0 : i32
    %c0_i32_0 = arith.constant 0 : i32
    %c0_i32_1 = arith.constant 0 : i32
    return %c0_i32, %c0_i32_0 : i32, i32
  }
  func.func @transform_10(%arg0: i32) -> (i32, i32, i32) {
    %c0_i32 = arith.constant 0 : i32
    %c0_i32_0 = arith.constant 0 : i32
    %c0_i32_1 = arith.constant 0 : i32
    %c0_i32_2 = arith.constant 0 : i32
    return %c0_i32, %c0_i32_0, %c0_i32_1 : i32, i32, i32
  }
  func.func @transform_11(%arg0: i32) -> (i32, i32, i32) {
    %c0_i32 = arith.constant 0 : i32
    %c0_i32_0 = arith.constant 0 : i32
    %c0_i32_1 = arith.constant 0 : i32
    %c0_i32_2 = arith.constant 0 : i32
    return %c0_i32, %c0_i32_0, %c0_i32_1 : i32, i32, i32
  }
  func.func @transform_12(%arg0: i32) -> (i32, i32, i32) {
    %c0_i32 = arith.constant 0 : i32
    %c0_i32_0 = arith.constant 0 : i32
    %c0_i32_1 = arith.constant 0 : i32
    %c0_i32_2 = arith.constant 0 : i32
    return %c0_i32, %c0_i32_0, %c0_i32_1 : i32, i32, i32
  }
  func.func @transform_13(%arg0: i32) -> (i32, i32, i32) {
    %c0_i32 = arith.constant 0 : i32
    %c0_i32_0 = arith.constant 0 : i32
    %c0_i32_1 = arith.constant 0 : i32
    %c0_i32_2 = arith.constant 0 : i32
    return %c0_i32, %c0_i32_0, %c0_i32_1 : i32, i32, i32
  }
  func.func @transform_14(%arg0: i32) -> (i32, i32, i32) {
    %c0_i32 = arith.constant 0 : i32
    %c0_i32_0 = arith.constant 0 : i32
    %c0_i32_1 = arith.constant 0 : i32
    return %arg0, %c0_i32, %c0_i32_0 : i32, i32, i32
  }
  func.func @transform_15(%arg0: i32) -> (i32, i32, i32) {
    %c0_i32 = arith.constant 0 : i32
    %c0_i32_0 = arith.constant 0 : i32
    %c0_i32_1 = arith.constant 0 : i32
    return %arg0, %c0_i32, %c0_i32_0 : i32, i32, i32
  }
}

module attributes {stable_mosaic.version = 11 : i64} {
  func.func @kernel(%arg0: i32, %arg1: memref<2x16x128xf32, #tpu.memory_space<vmem>>, %arg2: memref<384x128xf32, #tpu.memory_space<vmem>>, %arg3: memref<1x128xf32, #tpu.memory_space<vmem>>, %arg4: memref<3x384x128xf32, #tpu.memory_space<vmem>>, %arg5: memref<3x1x128xf32, #tpu.memory_space<vmem>>, %arg6: memref<3x128x128xf32, #tpu.memory_space<vmem>>, %arg7: memref<3x1x128xf32, #tpu.memory_space<vmem>>, %arg8: memref<2x16x128xf32, #tpu.memory_space<vmem>>) attributes {dimension_semantics = [#tpu.dimension_semantics<parallel>], iteration_bounds = array<i64: 1>, scalar_prefetch = 0 : i64, scratch_operands = 0 : i64, tpu.core_type = #tpu.core_type<tc>, window_params = [{transform_indices = @transform_0, window_bounds = array<i64: 2, 16, 128>}, {pipeline_mode = #tpu.pipeline_mode<synchronous>, transform_indices = @transform_1, window_bounds = array<i64: 384, 128>}, {pipeline_mode = #tpu.pipeline_mode<synchronous>, transform_indices = @transform_2, window_bounds = array<i64: 1, 128>}, {pipeline_mode = #tpu.pipeline_mode<synchronous>, transform_indices = @transform_3, window_bounds = array<i64: 3, 384, 128>}, {pipeline_mode = #tpu.pipeline_mode<synchronous>, transform_indices = @transform_4, window_bounds = array<i64: 3, 1, 128>}, {pipeline_mode = #tpu.pipeline_mode<synchronous>, transform_indices = @transform_5, window_bounds = array<i64: 3, 128, 128>}, {pipeline_mode = #tpu.pipeline_mode<synchronous>, transform_indices = @transform_6, window_bounds = array<i64: 3, 1, 128>}, {transform_indices = @transform_7, window_bounds = array<i64: 2, 16, 128>}]} {
    %c0 = arith.constant 0 : index
    %c0_0 = arith.constant 0 : index
    %c0_1 = arith.constant 0 : index
    %0 = vector.load %arg1[%c0, %c0_0, %c0_1] : memref<2x16x128xf32, #tpu.memory_space<vmem>>, vector<2x16x128xf32>
    %c0_2 = arith.constant 0 : index
    %c0_3 = arith.constant 0 : index
    %1 = vector.load %arg2[%c0_2, %c0_3] : memref<384x128xf32, #tpu.memory_space<vmem>>, vector<384x128xf32>
    %c0_4 = arith.constant 0 : index
    %c0_5 = arith.constant 0 : index
    %2 = vector.load %arg3[%c0_4, %c0_5] : memref<1x128xf32, #tpu.memory_space<vmem>>, vector<1x128xf32>
    %c0_6 = arith.constant 0 : index
    %c0_7 = arith.constant 0 : index
    %c0_8 = arith.constant 0 : index
    %3 = vector.load %arg4[%c0_6, %c0_7, %c0_8] : memref<3x384x128xf32, #tpu.memory_space<vmem>>, vector<3x384x128xf32>
    %c0_9 = arith.constant 0 : index
    %c0_10 = arith.constant 0 : index
    %c0_11 = arith.constant 0 : index
    %4 = vector.load %arg5[%c0_9, %c0_10, %c0_11] : memref<3x1x128xf32, #tpu.memory_space<vmem>>, vector<3x1x128xf32>
    %c0_12 = arith.constant 0 : index
    %c0_13 = arith.constant 0 : index
    %c0_14 = arith.constant 0 : index
    %5 = vector.load %arg6[%c0_12, %c0_13, %c0_14] : memref<3x128x128xf32, #tpu.memory_space<vmem>>, vector<3x128x128xf32>
    %c0_15 = arith.constant 0 : index
    %c0_16 = arith.constant 0 : index
    %c0_17 = arith.constant 0 : index
    %6 = vector.load %arg7[%c0_15, %c0_16, %c0_17] : memref<3x1x128xf32, #tpu.memory_space<vmem>>, vector<3x1x128xf32>
    %cst = arith.constant 0.000000e+00 : f32
    %7 = vector.broadcast %cst : f32 to vector<2x2x128xf32>
    %8 = vector.extract_strided_slice %0 {offsets = [0, 0, 0], sizes = [2, 14, 128], strides = [1, 1, 1]} : vector<2x16x128xf32> to vector<2x14x128xf32>
    %9 = tpu.concatenate %7, %8 in 1 : vector<2x2x128xf32>, vector<2x14x128xf32> -> vector<2x16x128xf32>
    %cst_18 = arith.constant 0.000000e+00 : f32
    %10 = vector.broadcast %cst_18 : f32 to vector<2x1x128xf32>
    %11 = vector.extract_strided_slice %0 {offsets = [0, 0, 0], sizes = [2, 15, 128], strides = [1, 1, 1]} : vector<2x16x128xf32> to vector<2x15x128xf32>
    %12 = tpu.concatenate %10, %11 in 1 : vector<2x1x128xf32>, vector<2x15x128xf32> -> vector<2x16x128xf32>
    %13 = tpu.concatenate %9, %12, %0 in 2 : vector<2x16x128xf32>, vector<2x16x128xf32>, vector<2x16x128xf32> -> vector<2x16x384xf32>
    %14 = vector.shape_cast %13 : vector<2x16x384xf32> to vector<32x384xf32>
    %cst_19 = arith.constant dense<0.000000e+00> : vector<32x128xf32>
    %15 = tpu.matmul %14, %1, %cst_19 {dimension_numbers = #tpu.dot_dimension_numbers<[1], [0], [0], [1], [0, 0, 1, 1], [], []>} : vector<32x384xf32>, vector<384x128xf32>, vector<32x128xf32> -> vector<32x128xf32>
    %16 = vector.broadcast %2 : vector<1x128xf32> to vector<32x128xf32>
    %17 = arith.addf %15, %16 : vector<32x128xf32>
    %18 = vector.shape_cast %17 : vector<32x128xf32> to vector<2x16x128xf32>
    %19 = vector.extract_strided_slice %3 {offsets = [0, 0, 0], sizes = [1, 384, 128], strides = [1, 1, 1]} : vector<3x384x128xf32> to vector<1x384x128xf32>
    %20 = vector.shape_cast %19 : vector<1x384x128xf32> to vector<384x128xf32>
    %21 = vector.extract_strided_slice %4 {offsets = [0, 0, 0], sizes = [1, 1, 128], strides = [1, 1, 1]} : vector<3x1x128xf32> to vector<1x1x128xf32>
    %22 = vector.shape_cast %21 : vector<1x1x128xf32> to vector<1x128xf32>
    %cst_20 = arith.constant 0.000000e+00 : f32
    %23 = vector.broadcast %cst_20 : f32 to vector<2x16x128xf32>
    %24 = arith.maximumf %18, %23 : vector<2x16x128xf32>
    %cst_21 = arith.constant 0.000000e+00 : f32
    %25 = vector.broadcast %cst_21 : f32 to vector<2x16x128xf32>
    %cst_22 = arith.constant 0.000000e+00 : f32
    %26 = vector.broadcast %cst_22 : f32 to vector<2x9x128xf32>
    %27 = vector.extract_strided_slice %24 {offsets = [0, 0, 0], sizes = [2, 7, 128], strides = [1, 1, 1]} : vector<2x16x128xf32> to vector<2x7x128xf32>
    %28 = tpu.concatenate %26, %27 in 1 : vector<2x9x128xf32>, vector<2x7x128xf32> -> vector<2x16x128xf32>
    %29 = tpu.concatenate %25, %28, %24 in 2 : vector<2x16x128xf32>, vector<2x16x128xf32>, vector<2x16x128xf32> -> vector<2x16x384xf32>
    %30 = vector.shape_cast %29 : vector<2x16x384xf32> to vector<32x384xf32>
    %cst_23 = arith.constant dense<0.000000e+00> : vector<32x128xf32>
    %31 = tpu.matmul %30, %20, %cst_23 {dimension_numbers = #tpu.dot_dimension_numbers<[1], [0], [0], [1], [0, 0, 1, 1], [], []>} : vector<32x384xf32>, vector<384x128xf32>, vector<32x128xf32> -> vector<32x128xf32>
    %32 = vector.broadcast %22 : vector<1x128xf32> to vector<32x128xf32>
    %33 = arith.addf %31, %32 : vector<32x128xf32>
    %34 = vector.shape_cast %33 : vector<32x128xf32> to vector<2x16x128xf32>
    %35 = vector.extract_strided_slice %5 {offsets = [0, 0, 0], sizes = [1, 128, 128], strides = [1, 1, 1]} : vector<3x128x128xf32> to vector<1x128x128xf32>
    %36 = vector.shape_cast %35 : vector<1x128x128xf32> to vector<128x128xf32>
    %37 = vector.extract_strided_slice %6 {offsets = [0, 0, 0], sizes = [1, 1, 128], strides = [1, 1, 1]} : vector<3x1x128xf32> to vector<1x1x128xf32>
    %38 = vector.shape_cast %37 : vector<1x1x128xf32> to vector<1x128xf32>
    %cst_24 = arith.constant 0.000000e+00 : f32
    %39 = vector.broadcast %cst_24 : f32 to vector<2x16x128xf32>
    %40 = arith.maximumf %34, %39 : vector<2x16x128xf32>
    %41 = vector.shape_cast %40 : vector<2x16x128xf32> to vector<32x128xf32>
    %cst_25 = arith.constant dense<0.000000e+00> : vector<32x128xf32>
    %42 = tpu.matmul %41, %36, %cst_25 {dimension_numbers = #tpu.dot_dimension_numbers<[1], [0], [0], [1], [0, 0, 1, 1], [], []>} : vector<32x128xf32>, vector<128x128xf32>, vector<32x128xf32> -> vector<32x128xf32>
    %43 = vector.broadcast %38 : vector<1x128xf32> to vector<32x128xf32>
    %44 = arith.addf %42, %43 : vector<32x128xf32>
    %45 = vector.shape_cast %44 : vector<32x128xf32> to vector<2x16x128xf32>
    %46 = arith.addf %18, %45 : vector<2x16x128xf32>
    %47 = vector.extract_strided_slice %3 {offsets = [1, 0, 0], sizes = [1, 384, 128], strides = [1, 1, 1]} : vector<3x384x128xf32> to vector<1x384x128xf32>
    %48 = vector.shape_cast %47 : vector<1x384x128xf32> to vector<384x128xf32>
    %49 = vector.extract_strided_slice %4 {offsets = [1, 0, 0], sizes = [1, 1, 128], strides = [1, 1, 1]} : vector<3x1x128xf32> to vector<1x1x128xf32>
    %50 = vector.shape_cast %49 : vector<1x1x128xf32> to vector<1x128xf32>
    %cst_26 = arith.constant 0.000000e+00 : f32
    %51 = vector.broadcast %cst_26 : f32 to vector<2x16x128xf32>
    %52 = arith.maximumf %46, %51 : vector<2x16x128xf32>
    %cst_27 = arith.constant 0.000000e+00 : f32
    %53 = vector.broadcast %cst_27 : f32 to vector<2x6x128xf32>
    %54 = vector.extract_strided_slice %52 {offsets = [0, 0, 0], sizes = [2, 10, 128], strides = [1, 1, 1]} : vector<2x16x128xf32> to vector<2x10x128xf32>
    %55 = tpu.concatenate %53, %54 in 1 : vector<2x6x128xf32>, vector<2x10x128xf32> -> vector<2x16x128xf32>
    %cst_28 = arith.constant 0.000000e+00 : f32
    %56 = vector.broadcast %cst_28 : f32 to vector<2x3x128xf32>
    %57 = vector.extract_strided_slice %52 {offsets = [0, 0, 0], sizes = [2, 13, 128], strides = [1, 1, 1]} : vector<2x16x128xf32> to vector<2x13x128xf32>
    %58 = tpu.concatenate %56, %57 in 1 : vector<2x3x128xf32>, vector<2x13x128xf32> -> vector<2x16x128xf32>
    %59 = tpu.concatenate %55, %58, %52 in 2 : vector<2x16x128xf32>, vector<2x16x128xf32>, vector<2x16x128xf32> -> vector<2x16x384xf32>
    %60 = vector.shape_cast %59 : vector<2x16x384xf32> to vector<32x384xf32>
    %cst_29 = arith.constant dense<0.000000e+00> : vector<32x128xf32>
    %61 = tpu.matmul %60, %48, %cst_29 {dimension_numbers = #tpu.dot_dimension_numbers<[1], [0], [0], [1], [0, 0, 1, 1], [], []>} : vector<32x384xf32>, vector<384x128xf32>, vector<32x128xf32> -> vector<32x128xf32>
    %62 = vector.broadcast %50 : vector<1x128xf32> to vector<32x128xf32>
    %63 = arith.addf %61, %62 : vector<32x128xf32>
    %64 = vector.shape_cast %63 : vector<32x128xf32> to vector<2x16x128xf32>
    %65 = vector.extract_strided_slice %5 {offsets = [1, 0, 0], sizes = [1, 128, 128], strides = [1, 1, 1]} : vector<3x128x128xf32> to vector<1x128x128xf32>
    %66 = vector.shape_cast %65 : vector<1x128x128xf32> to vector<128x128xf32>
    %67 = vector.extract_strided_slice %6 {offsets = [1, 0, 0], sizes = [1, 1, 128], strides = [1, 1, 1]} : vector<3x1x128xf32> to vector<1x1x128xf32>
    %68 = vector.shape_cast %67 : vector<1x1x128xf32> to vector<1x128xf32>
    %cst_30 = arith.constant 0.000000e+00 : f32
    %69 = vector.broadcast %cst_30 : f32 to vector<2x16x128xf32>
    %70 = arith.maximumf %64, %69 : vector<2x16x128xf32>
    %71 = vector.shape_cast %70 : vector<2x16x128xf32> to vector<32x128xf32>
    %cst_31 = arith.constant dense<0.000000e+00> : vector<32x128xf32>
    %72 = tpu.matmul %71, %66, %cst_31 {dimension_numbers = #tpu.dot_dimension_numbers<[1], [0], [0], [1], [0, 0, 1, 1], [], []>} : vector<32x128xf32>, vector<128x128xf32>, vector<32x128xf32> -> vector<32x128xf32>
    %73 = vector.broadcast %68 : vector<1x128xf32> to vector<32x128xf32>
    %74 = arith.addf %72, %73 : vector<32x128xf32>
    %75 = vector.shape_cast %74 : vector<32x128xf32> to vector<2x16x128xf32>
    %76 = arith.addf %46, %75 : vector<2x16x128xf32>
    %77 = vector.extract_strided_slice %3 {offsets = [2, 0, 0], sizes = [1, 384, 128], strides = [1, 1, 1]} : vector<3x384x128xf32> to vector<1x384x128xf32>
    %78 = vector.shape_cast %77 : vector<1x384x128xf32> to vector<384x128xf32>
    %79 = vector.extract_strided_slice %4 {offsets = [2, 0, 0], sizes = [1, 1, 128], strides = [1, 1, 1]} : vector<3x1x128xf32> to vector<1x1x128xf32>
    %80 = vector.shape_cast %79 : vector<1x1x128xf32> to vector<1x128xf32>
    %cst_32 = arith.constant 0.000000e+00 : f32
    %81 = vector.broadcast %cst_32 : f32 to vector<2x16x128xf32>
    %82 = arith.maximumf %76, %81 : vector<2x16x128xf32>
    %cst_33 = arith.constant 0.000000e+00 : f32
    %83 = vector.broadcast %cst_33 : f32 to vector<2x2x128xf32>
    %84 = vector.extract_strided_slice %82 {offsets = [0, 0, 0], sizes = [2, 14, 128], strides = [1, 1, 1]} : vector<2x16x128xf32> to vector<2x14x128xf32>
    %85 = tpu.concatenate %83, %84 in 1 : vector<2x2x128xf32>, vector<2x14x128xf32> -> vector<2x16x128xf32>
    %cst_34 = arith.constant 0.000000e+00 : f32
    %86 = vector.broadcast %cst_34 : f32 to vector<2x1x128xf32>
    %87 = vector.extract_strided_slice %82 {offsets = [0, 0, 0], sizes = [2, 15, 128], strides = [1, 1, 1]} : vector<2x16x128xf32> to vector<2x15x128xf32>
    %88 = tpu.concatenate %86, %87 in 1 : vector<2x1x128xf32>, vector<2x15x128xf32> -> vector<2x16x128xf32>
    %89 = tpu.concatenate %85, %88, %82 in 2 : vector<2x16x128xf32>, vector<2x16x128xf32>, vector<2x16x128xf32> -> vector<2x16x384xf32>
    %90 = vector.shape_cast %89 : vector<2x16x384xf32> to vector<32x384xf32>
    %cst_35 = arith.constant dense<0.000000e+00> : vector<32x128xf32>
    %91 = tpu.matmul %90, %78, %cst_35 {dimension_numbers = #tpu.dot_dimension_numbers<[1], [0], [0], [1], [0, 0, 1, 1], [], []>} : vector<32x384xf32>, vector<384x128xf32>, vector<32x128xf32> -> vector<32x128xf32>
    %92 = vector.broadcast %80 : vector<1x128xf32> to vector<32x128xf32>
    %93 = arith.addf %91, %92 : vector<32x128xf32>
    %94 = vector.shape_cast %93 : vector<32x128xf32> to vector<2x16x128xf32>
    %95 = vector.extract_strided_slice %5 {offsets = [2, 0, 0], sizes = [1, 128, 128], strides = [1, 1, 1]} : vector<3x128x128xf32> to vector<1x128x128xf32>
    %96 = vector.shape_cast %95 : vector<1x128x128xf32> to vector<128x128xf32>
    %97 = vector.extract_strided_slice %6 {offsets = [2, 0, 0], sizes = [1, 1, 128], strides = [1, 1, 1]} : vector<3x1x128xf32> to vector<1x1x128xf32>
    %98 = vector.shape_cast %97 : vector<1x1x128xf32> to vector<1x128xf32>
    %cst_36 = arith.constant 0.000000e+00 : f32
    %99 = vector.broadcast %cst_36 : f32 to vector<2x16x128xf32>
    %100 = arith.maximumf %94, %99 : vector<2x16x128xf32>
    %101 = vector.shape_cast %100 : vector<2x16x128xf32> to vector<32x128xf32>
    %cst_37 = arith.constant dense<0.000000e+00> : vector<32x128xf32>
    %102 = tpu.matmul %101, %96, %cst_37 {dimension_numbers = #tpu.dot_dimension_numbers<[1], [0], [0], [1], [0, 0, 1, 1], [], []>} : vector<32x128xf32>, vector<128x128xf32>, vector<32x128xf32> -> vector<32x128xf32>
    %103 = vector.broadcast %98 : vector<1x128xf32> to vector<32x128xf32>
    %104 = arith.addf %102, %103 : vector<32x128xf32>
    %105 = vector.shape_cast %104 : vector<32x128xf32> to vector<2x16x128xf32>
    %106 = arith.addf %76, %105 : vector<2x16x128xf32>
    %c0_38 = arith.constant 0 : index
    %c0_39 = arith.constant 0 : index
    %c0_40 = arith.constant 0 : index
    %107 = vector.load %arg8[%c0_38, %c0_39, %c0_40] : memref<2x16x128xf32, #tpu.memory_space<vmem>>, vector<2x16x128xf32>
    tpu.vector_store %arg8[%c0_38, %c0_39, %c0_40], %106 {strides = array<i32>} : memref<2x16x128xf32, #tpu.memory_space<vmem>>, vector<2x16x128xf32>,
    return
  }
  func.func @transform_0(%arg0: i32) -> (i32, i32, i32) {
    %c0_i32 = arith.constant 0 : i32
    %c0_i32_0 = arith.constant 0 : i32
    %c0_i32_1 = arith.constant 0 : i32
    return %arg0, %c0_i32, %c0_i32_0 : i32, i32, i32
  }
  func.func @transform_1(%arg0: i32) -> (i32, i32) {
    %c0_i32 = arith.constant 0 : i32
    %c0_i32_0 = arith.constant 0 : i32
    %c0_i32_1 = arith.constant 0 : i32
    return %c0_i32, %c0_i32_0 : i32, i32
  }
  func.func @transform_2(%arg0: i32) -> (i32, i32) {
    %c0_i32 = arith.constant 0 : i32
    %c0_i32_0 = arith.constant 0 : i32
    %c0_i32_1 = arith.constant 0 : i32
    return %c0_i32, %c0_i32_0 : i32, i32
  }
  func.func @transform_3(%arg0: i32) -> (i32, i32, i32) {
    %c0_i32 = arith.constant 0 : i32
    %c0_i32_0 = arith.constant 0 : i32
    %c0_i32_1 = arith.constant 0 : i32
    %c0_i32_2 = arith.constant 0 : i32
    return %c0_i32, %c0_i32_0, %c0_i32_1 : i32, i32, i32
  }
  func.func @transform_4(%arg0: i32) -> (i32, i32, i32) {
    %c0_i32 = arith.constant 0 : i32
    %c0_i32_0 = arith.constant 0 : i32
    %c0_i32_1 = arith.constant 0 : i32
    %c0_i32_2 = arith.constant 0 : i32
    return %c0_i32, %c0_i32_0, %c0_i32_1 : i32, i32, i32
  }
  func.func @transform_5(%arg0: i32) -> (i32, i32, i32) {
    %c0_i32 = arith.constant 0 : i32
    %c0_i32_0 = arith.constant 0 : i32
    %c0_i32_1 = arith.constant 0 : i32
    %c0_i32_2 = arith.constant 0 : i32
    return %c0_i32, %c0_i32_0, %c0_i32_1 : i32, i32, i32
  }
  func.func @transform_6(%arg0: i32) -> (i32, i32, i32) {
    %c0_i32 = arith.constant 0 : i32
    %c0_i32_0 = arith.constant 0 : i32
    %c0_i32_1 = arith.constant 0 : i32
    %c0_i32_2 = arith.constant 0 : i32
    return %c0_i32, %c0_i32_0, %c0_i32_1 : i32, i32, i32
  }
  func.func @transform_7(%arg0: i32) -> (i32, i32, i32) {
    %c0_i32 = arith.constant 0 : i32
    %c0_i32_0 = arith.constant 0 : i32
    %c0_i32_1 = arith.constant 0 : i32
    return %arg0, %c0_i32, %c0_i32_0 : i32, i32, i32
  }
}

module attributes {stable_mosaic.version = 11 : i64} {
  func.func @kernel(%arg0: i32, %arg1: memref<2x32x128xf32, #tpu.memory_space<vmem>>, %arg2: memref<384x128xf32, #tpu.memory_space<vmem>>, %arg3: memref<1x128xf32, #tpu.memory_space<vmem>>, %arg4: memref<384x128xf32, #tpu.memory_space<vmem>>, %arg5: memref<1x128xf32, #tpu.memory_space<vmem>>, %arg6: memref<384x384xf32, #tpu.memory_space<vmem>>, %arg7: memref<1x384xf32, #tpu.memory_space<vmem>>, %arg8: memref<2x32x384xf32, #tpu.memory_space<vmem>>) attributes {dimension_semantics = [#tpu.dimension_semantics<parallel>], iteration_bounds = array<i64: 1>, scalar_prefetch = 0 : i64, scratch_operands = 0 : i64, tpu.core_type = #tpu.core_type<tc>, window_params = [{transform_indices = @transform_0, window_bounds = array<i64: 2, 32, 128>}, {pipeline_mode = #tpu.pipeline_mode<synchronous>, transform_indices = @transform_1, window_bounds = array<i64: 384, 128>}, {pipeline_mode = #tpu.pipeline_mode<synchronous>, transform_indices = @transform_2, window_bounds = array<i64: 1, 128>}, {pipeline_mode = #tpu.pipeline_mode<synchronous>, transform_indices = @transform_3, window_bounds = array<i64: 384, 128>}, {pipeline_mode = #tpu.pipeline_mode<synchronous>, transform_indices = @transform_4, window_bounds = array<i64: 1, 128>}, {pipeline_mode = #tpu.pipeline_mode<synchronous>, transform_indices = @transform_5, window_bounds = array<i64: 384, 384>}, {pipeline_mode = #tpu.pipeline_mode<synchronous>, transform_indices = @transform_6, window_bounds = array<i64: 1, 384>}, {transform_indices = @transform_7, window_bounds = array<i64: 2, 32, 384>}]} {
    %c0 = arith.constant 0 : index
    %c0_0 = arith.constant 0 : index
    %c0_1 = arith.constant 0 : index
    %0 = vector.load %arg1[%c0, %c0_0, %c0_1] : memref<2x32x128xf32, #tpu.memory_space<vmem>>, vector<2x32x128xf32>
    %c0_2 = arith.constant 0 : index
    %c0_3 = arith.constant 0 : index
    %1 = vector.load %arg2[%c0_2, %c0_3] : memref<384x128xf32, #tpu.memory_space<vmem>>, vector<384x128xf32>
    %c0_4 = arith.constant 0 : index
    %c0_5 = arith.constant 0 : index
    %2 = vector.load %arg3[%c0_4, %c0_5] : memref<1x128xf32, #tpu.memory_space<vmem>>, vector<1x128xf32>
    %c0_6 = arith.constant 0 : index
    %c0_7 = arith.constant 0 : index
    %3 = vector.load %arg4[%c0_6, %c0_7] : memref<384x128xf32, #tpu.memory_space<vmem>>, vector<384x128xf32>
    %c0_8 = arith.constant 0 : index
    %c0_9 = arith.constant 0 : index
    %4 = vector.load %arg5[%c0_8, %c0_9] : memref<1x128xf32, #tpu.memory_space<vmem>>, vector<1x128xf32>
    %c0_10 = arith.constant 0 : index
    %c0_11 = arith.constant 0 : index
    %5 = vector.load %arg6[%c0_10, %c0_11] : memref<384x384xf32, #tpu.memory_space<vmem>>, vector<384x384xf32>
    %c0_12 = arith.constant 0 : index
    %c0_13 = arith.constant 0 : index
    %6 = vector.load %arg7[%c0_12, %c0_13] : memref<1x384xf32, #tpu.memory_space<vmem>>, vector<1x384xf32>
    %cst = arith.constant 0.000000e+00 : f32
    %7 = vector.broadcast %cst : f32 to vector<2x2x128xf32>
    %8 = vector.extract_strided_slice %0 {offsets = [0, 0, 0], sizes = [2, 30, 128], strides = [1, 1, 1]} : vector<2x32x128xf32> to vector<2x30x128xf32>
    %9 = tpu.concatenate %7, %8 in 1 : vector<2x2x128xf32>, vector<2x30x128xf32> -> vector<2x32x128xf32>
    %cst_14 = arith.constant 0.000000e+00 : f32
    %10 = vector.broadcast %cst_14 : f32 to vector<2x1x128xf32>
    %11 = vector.extract_strided_slice %0 {offsets = [0, 0, 0], sizes = [2, 31, 128], strides = [1, 1, 1]} : vector<2x32x128xf32> to vector<2x31x128xf32>
    %12 = tpu.concatenate %10, %11 in 1 : vector<2x1x128xf32>, vector<2x31x128xf32> -> vector<2x32x128xf32>
    %13 = tpu.concatenate %9, %12, %0 in 2 : vector<2x32x128xf32>, vector<2x32x128xf32>, vector<2x32x128xf32> -> vector<2x32x384xf32>
    %14 = vector.shape_cast %13 : vector<2x32x384xf32> to vector<64x384xf32>
    %cst_15 = arith.constant dense<0.000000e+00> : vector<64x128xf32>
    %15 = tpu.matmul %14, %1, %cst_15 {dimension_numbers = #tpu.dot_dimension_numbers<[1], [0], [0], [1], [0, 0, 1, 1], [], []>} : vector<64x384xf32>, vector<384x128xf32>, vector<64x128xf32> -> vector<64x128xf32>
    %16 = vector.broadcast %2 : vector<1x128xf32> to vector<64x128xf32>
    %17 = arith.addf %15, %16 : vector<64x128xf32>
    %18 = vector.shape_cast %17 : vector<64x128xf32> to vector<2x32x128xf32>
    %cst_16 = arith.constant 0.000000e+00 : f32
    %19 = vector.broadcast %cst_16 : f32 to vector<2x2x128xf32>
    %20 = vector.extract_strided_slice %18 {offsets = [0, 0, 0], sizes = [2, 30, 128], strides = [1, 1, 1]} : vector<2x32x128xf32> to vector<2x30x128xf32>
    %21 = tpu.concatenate %19, %20 in 1 : vector<2x2x128xf32>, vector<2x30x128xf32> -> vector<2x32x128xf32>
    %cst_17 = arith.constant 0.000000e+00 : f32
    %22 = vector.broadcast %cst_17 : f32 to vector<2x1x128xf32>
    %23 = vector.extract_strided_slice %18 {offsets = [0, 0, 0], sizes = [2, 31, 128], strides = [1, 1, 1]} : vector<2x32x128xf32> to vector<2x31x128xf32>
    %24 = tpu.concatenate %22, %23 in 1 : vector<2x1x128xf32>, vector<2x31x128xf32> -> vector<2x32x128xf32>
    %25 = tpu.concatenate %21, %24, %18 in 2 : vector<2x32x128xf32>, vector<2x32x128xf32>, vector<2x32x128xf32> -> vector<2x32x384xf32>
    %26 = vector.shape_cast %25 : vector<2x32x384xf32> to vector<64x384xf32>
    %cst_18 = arith.constant dense<0.000000e+00> : vector<64x128xf32>
    %27 = tpu.matmul %26, %3, %cst_18 {dimension_numbers = #tpu.dot_dimension_numbers<[1], [0], [0], [1], [0, 0, 1, 1], [], []>} : vector<64x384xf32>, vector<384x128xf32>, vector<64x128xf32> -> vector<64x128xf32>
    %28 = vector.broadcast %4 : vector<1x128xf32> to vector<64x128xf32>
    %29 = arith.addf %27, %28 : vector<64x128xf32>
    %30 = vector.shape_cast %29 : vector<64x128xf32> to vector<2x32x128xf32>
    %cst_19 = arith.constant 0.000000e+00 : f32
    %31 = vector.broadcast %cst_19 : f32 to vector<2x32x128xf32>
    %32 = arith.maximumf %30, %31 : vector<2x32x128xf32>
    %cst_20 = arith.constant 0.000000e+00 : f32
    %33 = vector.broadcast %cst_20 : f32 to vector<2x2x128xf32>
    %34 = vector.extract_strided_slice %32 {offsets = [0, 0, 0], sizes = [2, 30, 128], strides = [1, 1, 1]} : vector<2x32x128xf32> to vector<2x30x128xf32>
    %35 = tpu.concatenate %33, %34 in 1 : vector<2x2x128xf32>, vector<2x30x128xf32> -> vector<2x32x128xf32>
    %cst_21 = arith.constant 0.000000e+00 : f32
    %36 = vector.broadcast %cst_21 : f32 to vector<2x1x128xf32>
    %37 = vector.extract_strided_slice %32 {offsets = [0, 0, 0], sizes = [2, 31, 128], strides = [1, 1, 1]} : vector<2x32x128xf32> to vector<2x31x128xf32>
    %38 = tpu.concatenate %36, %37 in 1 : vector<2x1x128xf32>, vector<2x31x128xf32> -> vector<2x32x128xf32>
    %39 = tpu.concatenate %35, %38, %32 in 2 : vector<2x32x128xf32>, vector<2x32x128xf32>, vector<2x32x128xf32> -> vector<2x32x384xf32>
    %40 = vector.shape_cast %39 : vector<2x32x384xf32> to vector<64x384xf32>
    %cst_22 = arith.constant dense<0.000000e+00> : vector<64x384xf32>
    %41 = tpu.matmul %40, %5, %cst_22 {dimension_numbers = #tpu.dot_dimension_numbers<[1], [0], [0], [1], [0, 0, 1, 1], [], []>} : vector<64x384xf32>, vector<384x384xf32>, vector<64x384xf32> -> vector<64x384xf32>
    %42 = vector.broadcast %6 : vector<1x384xf32> to vector<64x384xf32>
    %43 = arith.addf %41, %42 : vector<64x384xf32>
    %44 = vector.shape_cast %43 : vector<64x384xf32> to vector<2x32x384xf32>
    %c0_23 = arith.constant 0 : index
    %c0_24 = arith.constant 0 : index
    %c0_25 = arith.constant 0 : index
    %45 = vector.load %arg8[%c0_23, %c0_24, %c0_25] : memref<2x32x384xf32, #tpu.memory_space<vmem>>, vector<2x32x384xf32>
    tpu.vector_store %arg8[%c0_23, %c0_24, %c0_25], %44 {strides = array<i32>} : memref<2x32x384xf32, #tpu.memory_space<vmem>>, vector<2x32x384xf32>,
    return
  }
  func.func @transform_0(%arg0: i32) -> (i32, i32, i32) {
    %c0_i32 = arith.constant 0 : i32
    %c0_i32_0 = arith.constant 0 : i32
    %c0_i32_1 = arith.constant 0 : i32
    return %arg0, %c0_i32, %c0_i32_0 : i32, i32, i32
  }
  func.func @transform_1(%arg0: i32) -> (i32, i32) {
    %c0_i32 = arith.constant 0 : i32
    %c0_i32_0 = arith.constant 0 : i32
    %c0_i32_1 = arith.constant 0 : i32
    return %c0_i32, %c0_i32_0 : i32, i32
  }
  func.func @transform_2(%arg0: i32) -> (i32, i32) {
    %c0_i32 = arith.constant 0 : i32
    %c0_i32_0 = arith.constant 0 : i32
    %c0_i32_1 = arith.constant 0 : i32
    return %c0_i32, %c0_i32_0 : i32, i32
  }
  func.func @transform_3(%arg0: i32) -> (i32, i32) {
    %c0_i32 = arith.constant 0 : i32
    %c0_i32_0 = arith.constant 0 : i32
    %c0_i32_1 = arith.constant 0 : i32
    return %c0_i32, %c0_i32_0 : i32, i32
  }
  func.func @transform_4(%arg0: i32) -> (i32, i32) {
    %c0_i32 = arith.constant 0 : i32
    %c0_i32_0 = arith.constant 0 : i32
    %c0_i32_1 = arith.constant 0 : i32
    return %c0_i32, %c0_i32_0 : i32, i32
  }
  func.func @transform_5(%arg0: i32) -> (i32, i32) {
    %c0_i32 = arith.constant 0 : i32
    %c0_i32_0 = arith.constant 0 : i32
    %c0_i32_1 = arith.constant 0 : i32
    return %c0_i32, %c0_i32_0 : i32, i32
  }
  func.func @transform_6(%arg0: i32) -> (i32, i32) {
    %c0_i32 = arith.constant 0 : i32
    %c0_i32_0 = arith.constant 0 : i32
    %c0_i32_1 = arith.constant 0 : i32
    return %c0_i32, %c0_i32_0 : i32, i32
  }
  func.func @transform_7(%arg0: i32) -> (i32, i32, i32) {
    %c0_i32 = arith.constant 0 : i32
    %c0_i32_0 = arith.constant 0 : i32
    %c0_i32_1 = arith.constant 0 : i32
    return %arg0, %c0_i32, %c0_i32_0 : i32, i32, i32
  }
}

</mosaic_0001>

<bundles_post_ra>
// kernel: forward.6
= control target key start
LH: loop header
LB: loop body
LE: loop exit
PB: predicated region body
PF: predicated region fallthrough
CT: control target
= control target key end

     0   :  { %8 = vsyncpa [#allocation3], 0  ;;  %s1439_s12 = smov [#allocation2]   ;;  %s1767_s0 = inlined_call_operand.vmem [shape: f32[2,32,384], index: 0, kind: input, shape index: {}]   ;;  %s1768_s1 = inlined_call_operand.hbm [shape: f32[1152,128], index: 1, kind: input, shape index: {}]   ;;  %s1769_s2 = inlined_call_operand.vmem [shape: f32[1,128], index: 2, kind: input, shape index: {}]   ;;  %s1770_s3 = inlined_call_operand.vmem [shape: f32[2,32,128], index: 3, kind: output, shape index: {}]  }
   0x1   :  { %s16_s13 = sshll.u32 %s1439_s12, 4  ;;  %s1415_s16 = scalar_lea.hbm %s1768_s1, 18432  ;;  %s17_s13 = int_to_ptr.vmem [resolvable:$true] %s16_s13 }
   0x2   :  { %p1416_p0 = scmp.ne.s32.totalorder %s1768_s1, %s1415_s16  ;;  %p1419_p1 = scmp.lt.u32.totalorder %s1415_s16, %s1768_s1 }
   0x4   :  { %p1421_p2 = pnand %p1419_p1, %p1416_p0 }
   0x6   :  { %1424 = shalt.err (!%p1421_p2)
}
   0x7   :  { %s1425_s21 = scalar_lea.vmem %s17_s13, 18432  ;;  %p1430_p4 = scmp.lt.s32.totalorder %s17_s13, %s17_s13 }
   0x8   :  { %p1426_p3 = scmp.ne.s32.totalorder %s17_s13, %s1425_s21  ;;  %p1431_p5 = scmp.lt.s32.totalorder %s1425_s21, %s1425_s21 }
   0xa   :  { %p1432_p6 = por %p1431_p5, %p1430_p4 }
   0xc   :  { %p1433_p7 = pnand %p1432_p6, %p1426_p3 }
   0xe   :  { %1436 = shalt.err (!%p1433_p7)
}
   0xf   :  { %s1440_s22 = smov 128   ;;  %s1441_s23 = smov 8  }
  0x10   :  { %22 = dma.hbm_to_vmem [thread:$0]  %s1768_s1, 18432, %s17_s13, [#allocation3], %s1440_s22, %s1440_s22, %s1441_s23  }
  0x11   :  { %1437 = dma.done.wait [#allocation3], 18432  }
  0x12   :  { %1438 = vsyncadd [#allocation3], 4294948864  ;;  %v68_v0 = vld [vmem:[#allocation2 + $0x80] sm:$0xff]  ;;  %v69_v1 = vld [vmem:[#allocation2 + $0x88] sm:$0xff]  ;;  %vm221_vm0 = vcmask 1041408   ;;  %vm294_vm2 = vcmask 1040384  }
  0x13   :  { %v100_v2 = vld [vmem:[#allocation2 + $0x180] sm:$0xff]  ;;  %v1236_v3 = vpack.c.bf16 %v69_v1, %v68_v0  ;;  %v101_v4 = vld [vmem:[#allocation2 + $0x188] sm:$0xff]  ;;  %v70_v11 = vld [vmem:[#allocation2 + $0x90] sm:$0xff] }
  0x14   :  { %v52_v5 = vld [vmem:[#allocation2] sm:$0xff]  ;;  %v53_v6 = vld [vmem:[#allocation2 + $0x8] sm:$0xff]  ;;  %v1268_v7 = vpack.c.bf16 %v101_v4, %v100_v2  ;;  %v71_v13 = vld [vmem:[#allocation2 + $0x98] sm:$0xff] }
  0x15   :  { %v1238_v8 = vpack.c.bf16 %v53_v6, %v52_v5  ;;  %v84_v9 = vld [vmem:[#allocation2 + $0x100] sm:$0xff]  ;;  %v85_v10 = vld [vmem:[#allocation2 + $0x108] sm:$0xff]  ;;  %1237 = vmatprep.subr.bf16.mxu0 %v1236_v3  ;;  %v102_v14 = vld [vmem:[#allocation2 + $0x190] sm:$0xff]  ;;  %v1240_v16 = vpack.c.bf16 %v71_v13, %v70_v11 }
  0x16   :  { %v1270_v12 = vpack.c.bf16 %v85_v10, %v84_v9  ;;  %v103_v15 = vld [vmem:[#allocation2 + $0x198] sm:$0xff]  ;;  %1269 = vmatprep.subr.bf16.mxu1 %v1268_v7  ;;  %v54_v18 = vld [vmem:[#allocation2 + $0x10] sm:$0xff]  ;;  %v72_v23 = vld [vmem:[#allocation2 + $0xa0] sm:$0xff] }
  0x17   :  { %1239 = vmatpush3.bf16.msra.mxu0 %v1238_v8  ;;  %v1272_v17 = vpack.c.bf16 %v103_v15, %v102_v14  ;;  %v55_v19 = vld [vmem:[#allocation2 + $0x18] sm:$0xff]  ;;  %v86_v20 = vld [vmem:[#allocation2 + $0x110] sm:$0xff]  ;;  %v73_v24 = vld [vmem:[#allocation2 + $0xa8] sm:$0xff] }
  0x18   :  { %1271 = vmatpush3.bf16.msra.mxu1 %v1270_v12  ;;  %v1242_v21 = vpack.c.bf16 %v55_v19, %v54_v18  ;;  %v87_v22 = vld [vmem:[#allocation2 + $0x118] sm:$0xff]  ;;  %1241 = vmatprep.subr.bf16.mxu0 %v1240_v16  ;;  %v1244_v26 = vpack.c.bf16 %v73_v24, %v72_v23  ;;  %v104_v27 = vld [vmem:[#allocation2 + $0x1a0] sm:$0xff]  ;;  %v105_v28 = vld [vmem:[#allocation2 + $0x1a8] sm:$0xff] }
  0x19   :  { %1273 = vmatprep.subr.bf16.mxu1 %v1272_v17  ;;  %v1274_v25 = vpack.c.bf16 %v87_v22, %v86_v20  ;;  %v56_v29 = vld [vmem:[#allocation2 + $0x20] sm:$0xff]  ;;  %v1276_v30 = vpack.c.bf16 %v105_v28, %v104_v27  ;;  %v57_v31 = vld [vmem:[#allocation2 + $0x28] sm:$0xff]  ;;  %v74_v35 = vld [vmem:[#allocation2 + $0xb0] sm:$0xff] }
  0x1a   :  { %v88_v32 = vld [vmem:[#allocation2 + $0x120] sm:$0xff]  ;;  %v89_v33 = vld [vmem:[#allocation2 + $0x128] sm:$0xff]  ;;  %v1246_v34 = vpack.c.bf16 %v57_v31, %v56_v29  ;;  %v75_v36 = vld [vmem:[#allocation2 + $0xb8] sm:$0xff] }
  0x1b   :  { %1243 = vmatpush3.bf16.msra.mxu0 %v1242_v21  ;;  %v106_v37 = vld [vmem:[#allocation2 + $0x1b0] sm:$0xff]  ;;  %v1278_v38 = vpack.c.bf16 %v89_v33, %v88_v32  ;;  %v1248_v39 = vpack.c.bf16 %v75_v36, %v74_v35  ;;  %v107_v40 = vld [vmem:[#allocation2 + $0x1b8] sm:$0xff]  ;;  %v76_v46 = vld [vmem:[#allocation2 + $0xc0] sm:$0xff] }
  0x1c   :  { %1275 = vmatpush3.bf16.msra.mxu1 %v1274_v25  ;;  %1245 = vmatprep.subr.bf16.mxu0 %v1244_v26  ;;  %v58_v41 = vld [vmem:[#allocation2 + $0x30] sm:$0xff]  ;;  %v59_v42 = vld [vmem:[#allocation2 + $0x38] sm:$0xff]  ;;  %v1280_v43 = vpack.c.bf16 %v107_v40, %v106_v37  ;;  %v77_v47 = vld [vmem:[#allocation2 + $0xc8] sm:$0xff] }
  0x1d   :  { %1277 = vmatprep.subr.bf16.mxu1 %v1276_v30  ;;  %v90_v44 = vld [vmem:[#allocation2 + $0x130] sm:$0xff]  ;;  %v91_v45 = vld [vmem:[#allocation2 + $0x138] sm:$0xff]  ;;  %v108_v48 = vld [vmem:[#allocation2 + $0x1c0] sm:$0xff]  ;;  %v1250_v50 = vpack.c.bf16 %v59_v42, %v58_v41  ;;  %v1252_v52 = vpack.c.bf16 %v77_v47, %v76_v46 }
  0x1e   :  { %v109_v49 = vld [vmem:[#allocation2 + $0x1c8] sm:$0xff]  ;;  %v1282_v51 = vpack.c.bf16 %v91_v45, %v90_v44  ;;  %v60_v53 = vld [vmem:[#allocation2 + $0x40] sm:$0xff]  ;;  %v78_v58 = vld [vmem:[#allocation2 + $0xd0] sm:$0xff] }
  0x1f   :  { %1247 = vmatpush3.bf16.msra.mxu0 %v1246_v34  ;;  %v61_v54 = vld [vmem:[#allocation2 + $0x48] sm:$0xff]  ;;  %v92_v55 = vld [vmem:[#allocation2 + $0x140] sm:$0xff]  ;;  %v1284_v56 = vpack.c.bf16 %v109_v49, %v108_v48  ;;  %v79_v59 = vld [vmem:[#allocation2 + $0xd8] sm:$0xff] }
  0x20   :  { %1279 = vmatpush3.bf16.msra.mxu1 %v1278_v38  ;;  %1249 = vmatprep.subr.bf16.mxu0 %v1248_v39  ;;  %v93_v57 = vld [vmem:[#allocation2 + $0x148] sm:$0xff]  ;;  %v110_v60 = vld [vmem:[#allocation2 + $0x1d0] sm:$0xff]  ;;  %v111_v61 = vld [vmem:[#allocation2 + $0x1d8] sm:$0xff]  ;;  %v1254_v62 = vpack.c.bf16 %v61_v54, %v60_v53  ;;  %v1256_v0 = vpack.c.bf16 %v79_v59, %v78_v58 }
  0x21   :  { %1281 = vmatprep.subr.bf16.mxu1 %v1280_v43  ;;  %v1286_v63 = vpack.c.bf16 %v93_v57, %v92_v55  ;;  %v62_v1 = vld [vmem:[#allocation2 + $0x50] sm:$0xff]  ;;  %v63_v2 = vld [vmem:[#allocation2 + $0x58] sm:$0xff]  ;;  %v1288_v4 = vpack.c.bf16 %v111_v61, %v110_v60  ;;  %v80_v6 = vld [vmem:[#allocation2 + $0xe0] sm:$0xff] }
  0x22   :  { %v94_v3 = vld [vmem:[#allocation2 + $0x150] sm:$0xff]  ;;  %v95_v5 = vld [vmem:[#allocation2 + $0x158] sm:$0xff]  ;;  %v81_v7 = vld [vmem:[#allocation2 + $0xe8] sm:$0xff]  ;;  %v1258_v10 = vpack.c.bf16 %v63_v2, %v62_v1 }
  0x23   :  { %1251 = vmatpush3.bf16.msra.mxu0 %v1250_v50  ;;  %v112_v8 = vld [vmem:[#allocation2 + $0x1e0] sm:$0xff]  ;;  %v113_v9 = vld [vmem:[#allocation2 + $0x1e8] sm:$0xff]  ;;  %vm1475_vm1 = vmneg %vm221_vm0  ;;  %v1290_v14 = vpack.c.bf16 %v95_v5, %v94_v3  ;;  %v1260_v15 = vpack.c.bf16 %v81_v7, %v80_v6 }
  0x24   :  { %1283 = vmatpush3.bf16.msra.mxu1 %v1282_v51  ;;  %1253 = vmatprep.subr.bf16.mxu0 %v1252_v52  ;;  %v64_v11 = vld [vmem:[#allocation2 + $0x60] sm:$0xff]  ;;  %v65_v12 = vld [vmem:[#allocation2 + $0x68] sm:$0xff]  ;;  %v1292_v19 = vpack.c.bf16 %v113_v9, %v112_v8  ;;  %v82_v21 = vld [vmem:[#allocation2 + $0xf0] sm:$0xff] }
  0x25   :  { %1285 = vmatprep.subr.bf16.mxu1 %v1284_v56  ;;  %v96_v16 = vld [vmem:[#allocation2 + $0x160] sm:$0xff]  ;;  %v1482_v17 = vld [vmem:[%s1767_s0 + $0x8] sm:$0xff]  ;;  %v83_v22 = vld [vmem:[#allocation2 + $0xf8] sm:$0xff]  ;;  %v1262_v28 = vpack.c.bf16 %v65_v12, %v64_v11 }
  0x26   :  { %v1487_v18 = vld [vmem:[%s1767_s0] sm:$0xff]  ;;  %v97_v20 = vld [vmem:[#allocation2 + $0x168] sm:$0xff]  ;;  %v223_v23 = vrot.slane %v1482_v17, 6  ;;  %v114_v24 = vld [vmem:[#allocation2 + $0x1f0] sm:$0xff]  ;;  %v1264_v30 = vpack.c.bf16 %v83_v22, %v82_v21 }
  0x27   :  { %1255 = vmatpush3.bf16.msra.mxu0 %v1254_v62  ;;  %v115_v25 = vld [vmem:[#allocation2 + $0x1f8] sm:$0xff]  ;;  %v295_v26 = vrot.slane %v1487_v18, 7  ;;  %vm1492_vm3 = vmneg %vm294_vm2  ;;  %v1294_v29 = vpack.c.bf16 %v97_v20, %v96_v16  ;;  %v66_v31 = vld [vmem:[#allocation2 + $0x70] sm:$0xff]  ;;  %v222_v53 = vrot.slane %v1487_v18, 6 }
  0x28   :  { %1287 = vmatpush3.bf16.msra.mxu1 %v1286_v63  ;;  %1257 = vmatprep.subr.bf16.mxu0 %v1256_v0  ;;  %v67_v32 = vld [vmem:[#allocation2 + $0x78] sm:$0xff]  ;;  %v98_v33 = vld [vmem:[#allocation2 + $0x170] sm:$0xff]  ;;  %v1296_v34 = vpack.c.bf16 %v115_v25, %v114_v24  ;;  %v132_v36 = vld [vmem:[#allocation2 + $0x280] sm:$0xff] }
  0x29   :  { %1289 = vmatprep.subr.bf16.mxu1 %v1288_v4  ;;  %921 = vmatprep.mubr.msk.f32.mxu0 %vm1475_vm1, %v223_v23  ;;  %v99_v35 = vld [vmem:[#allocation2 + $0x178] sm:$0xff]  ;;  %v133_v37 = vld [vmem:[#allocation2 + $0x288] sm:$0xff]  ;;  %v164_v38 = vld [vmem:[#allocation2 + $0x380] sm:$0xff]  ;;  %v1266_v41 = vpack.c.bf16 %v67_v32, %v66_v31 }
  0x2a   :  { %929 = vmatprep.mubr.msk.f32.mxu1 %vm1492_vm3, %v295_v26  ;;  %v165_v39 = vld [vmem:[#allocation2 + $0x388] sm:$0xff]  ;;  %v1505_v40 = vld [vmem:[%s1767_s0 + $0x20] sm:$0xff]  ;;  %v1510_v42 = vld [vmem:[%s1767_s0 + $0x18] sm:$0xff]  ;;  %v1298_v43 = vpack.c.bf16 %v99_v35, %v98_v33  ;;  %v1300_v45 = vpack.c.bf16 %v133_v37, %v132_v36 }
  0x2b   :  { %1259 = vmatpush3.bf16.msra.mxu0 %v1258_v10  ;;  %v1515_v44 = vld [vmem:[%s1767_s0 + $0x10] sm:$0xff]  ;;  %v116_v46 = vld [vmem:[#allocation2 + $0x200] sm:$0xff]  ;;  %v117_v47 = vld [vmem:[#allocation2 + $0x208] sm:$0xff]  ;;  %v1332_v48 = vpack.c.bf16 %v165_v39, %v164_v38  ;;  %v227_v51 = vrot.slane %v1505_v40, 6  ;;  %v298_v54 = vrot.slane %v1510_v42, 7  ;;  %v225_v60 = vrot.slane %v1510_v42, 6 }
  0x2c   :  { %1291 = vmatpush3.bf16.msra.mxu1 %v1290_v14  ;;  %1261 = vmatprep.subr.bf16.mxu0 %v1260_v15  ;;  %v148_v49 = vld [vmem:[#allocation2 + $0x300] sm:$0xff]  ;;  %v149_v50 = vld [vmem:[#allocation2 + $0x308] sm:$0xff]  ;;  %v134_v55 = vld [vmem:[#allocation2 + $0x290] sm:$0xff]  ;;  %v224_v58 = vrot.slane %v1515_v44, 6  ;;  %v1302_v59 = vpack.c.bf16 %v117_v47, %v116_v46 }
  0x2d   :  { %1293 = vmatprep.subr.bf16.mxu1 %v1292_v19  ;;  %v1521_v52 = vld [vmem:[%s1767_s0 + $0x28] sm:$0xff]  ;;  %v135_v56 = vld [vmem:[#allocation2 + $0x298] sm:$0xff]  ;;  %v166_v61 = vld [vmem:[#allocation2 + $0x390] sm:$0xff]  ;;  %v1334_v0 = vpack.c.bf16 %v149_v50, %v148_v49  ;;  %v228_v4 = vsel %vm221_vm0, %v223_v23, %v227_v51  ;;  %v299_v10 = vsel %vm294_vm2, %v295_v26, %v298_v54  ;;  %v226_v19 = vsel %vm221_vm0, %v222_v53, %v225_v60 }
  0x2e   :  { %v1528_v57 = vld [vmem:[%s1767_s0 + $0x38] sm:$0xff]  ;;  %v1535_v63 = vld [vmem:[%s1767_s0 + $0x30] sm:$0xff]  ;;  %v229_v1 = vrot.slane %v1521_v52, 6  ;;  %v1304_v5 = vpack.c.bf16 %v135_v56, %v134_v55  ;;  %v1543_v9 = vld [vmem:[%s1767_s0 + $0x40] sm:$0xff] }
  0x2f   :  { %1263 = vmatpush3.bf16.msra.mxu0 %v1262_v28  ;;  %v167_v62 = vld [vmem:[#allocation2 + $0x398] sm:$0xff]  ;;  %v118_v2 = vld [vmem:[#allocation2 + $0x210] sm:$0xff]  ;;  %v233_v8 = vrot.slane %v1528_v57, 6  ;;  %v304_v12 = vrot.slane %v1535_v63, 7  ;;  %v136_v14 = vld [vmem:[#allocation2 + $0x2a0] sm:$0xff]  ;;  %v231_v21 = vrot.slane %v1535_v63, 6 }
  0x30   :  { %1295 = vmatpush3.bf16.msra.mxu1 %v1294_v29  ;;  %1265 = vmatprep.subr.bf16.mxu0 %v1264_v30  ;;  %v119_v3 = vld [vmem:[#allocation2 + $0x218] sm:$0xff]  ;;  %v150_v6 = vld [vmem:[#allocation2 + $0x310] sm:$0xff]  ;;  %v1336_v11 = vpack.c.bf16 %v167_v62, %v166_v61  ;;  %v137_v15 = vld [vmem:[#allocation2 + $0x2a8] sm:$0xff]  ;;  %v230_v25 = vsel %vm221_vm0, %v224_v58, %v229_v1  ;;  %v235_v28 = vrot.slane %v1543_v9, 6 }
  0x31   :  { %1297 = vmatprep.subr.bf16.mxu1 %v1296_v34  ;;  %v151_v7 = vld [vmem:[#allocation2 + $0x318] sm:$0xff]  ;;  %v1554_v16 = vld [vmem:[%s1767_s0 + $0x50] sm:$0xff]  ;;  %v1306_v20 = vpack.c.bf16 %v119_v3, %v118_v2  ;;  %v168_v22 = vld [vmem:[#allocation2 + $0x3a0] sm:$0xff]  ;;  %v234_v31 = vsel %vm221_vm0, %v227_v51, %v233_v8  ;;  %v1308_v32 = vpack.c.bf16 %v137_v15, %v136_v14  ;;  %v305_v37 = vsel %vm294_vm2, %v298_v54, %v304_v12 }
  0x32   :  { %v169_v23 = vld [vmem:[#allocation2 + $0x3a8] sm:$0xff]  ;;  %v1338_v26 = vpack.c.bf16 %v151_v7, %v150_v6  ;;  %v120_v29 = vld [vmem:[#allocation2 + $0x220] sm:$0xff]  ;;  %v239_v35 = vrot.slane %v1554_v16, 6  ;;  %v1572_v36 = vld [vmem:[%s1767_s0 + $0x58] sm:$0xff]  ;;  %v236_v50 = vsel %vm221_vm0, %v229_v1, %v235_v28 }
  0x33   :  { %1267 = vmatpush3.bf16.msra.mxu0 %v1266_v41  ;;  %v1563_v24 = vld [vmem:[%s1767_s0 + $0x48] sm:$0xff]  ;;  %v152_v33 = vld [vmem:[#allocation2 + $0x320] sm:$0xff]  ;;  %v1340_v38 = vpack.c.bf16 %v169_v23, %v168_v22  ;;  %v138_v41 = vld [vmem:[#allocation2 + $0x2b0] sm:$0xff] }
  0x34   :  { %1299 = vmatpush3.bf16.msra.mxu1 %v1298_v43  ;;  %1301 = vmatprep.subr.bf16.mxu0 %v1300_v45  ;;  %v121_v30 = vld [vmem:[#allocation2 + $0x228] sm:$0xff]  ;;  %v310_v39 = vrot.slane %v1563_v24, 7  ;;  %v139_v43 = vld [vmem:[#allocation2 + $0x2b8] sm:$0xff]  ;;  %v232_v45 = vsel %vm221_vm0, %v225_v60, %v231_v21  ;;  %v237_v47 = vrot.slane %v1563_v24, 6  ;;  %v122_v54 = vld [vmem:[#allocation2 + $0x230] sm:$0xff] }
  0x35   :  { %1333 = vmatprep.subr.bf16.mxu1 %v1332_v48  ;;  %v153_v34 = vld [vmem:[#allocation2 + $0x328] sm:$0xff]  ;;  %v1310_v46 = vpack.c.bf16 %v121_v30, %v120_v29  ;;  %v170_v48 = vld [vmem:[#allocation2 + $0x3b0] sm:$0xff]  ;;  %v171_v49 = vld [vmem:[#allocation2 + $0x3b8] sm:$0xff] }
  0x36   :  { %923 = vmatmul.mubr.msk.f32.vlgmr.msra.gmra.mrb[0].mxu0 %vm1475_vm1, %v222_v53  ;;  %v1342_v51 = vpack.c.bf16 %v153_v34, %v152_v33  ;;  %v241_v53 = vrot.slane %v1572_v36, 6  ;;  %v123_v55 = vld [vmem:[#allocation2 + $0x238] sm:$0xff]  ;;  %v154_v56 = vld [vmem:[#allocation2 + $0x330] sm:$0xff]  ;;  %v1584_v61 = vld [vmem:[%s1767_s0 + $0x68] sm:$0xff]  ;;  %v1344_v1 = vpack.c.bf16 %v171_v49, %v170_v48 }
  0x37   :  { %931 = vmatmul.mubr.msk.f32.vlgmr.msra.gmra.mrb[0].mxu1 %vm1475_vm1, %v224_v58  ;;  %1303 = vmatpush3.bf16.msra.mxu0 %v1302_v59  ;;  %v240_v58 = vsel %vm221_vm0, %v233_v8, %v239_v35  ;;  %v1312_v59 = vpack.c.bf16 %v139_v43, %v138_v41  ;;  %v155_v60 = vld [vmem:[#allocation2 + $0x338] sm:$0xff]  ;;  %v1589_v62 = vld [vmem:[%s1767_s0 + $0x60] sm:$0xff]  ;;  %v141_v3 = vld [vmem:[#allocation2 + $0x2c8] sm:$0xff]  ;;  %v1314_v6 = vpack.c.bf16 %v123_v55, %v122_v54  ;;  %v244_v14 = vrot.slane %v1584_v61, 6 }
  0x38   :  { %1335 = vmatpush3.bf16.msra.mxu1 %v1334_v0  ;;  %442 = vmatprep.mubr.f32.mxu0 %v228_v4  ;;  %v311_v0 = vsel %vm294_vm2, %v304_v12, %v310_v39  ;;  %v140_v2 = vld [vmem:[#allocation2 + $0x2c0] sm:$0xff]  ;;  %v173_v8 = vld [vmem:[#allocation2 + $0x3c8] sm:$0xff]  ;;  %v1346_v12 = vpack.c.bf16 %v155_v60, %v154_v56  ;;  %v1608_v15 = vld [vmem:[%s1767_s0 + $0x70] sm:$0xff]  ;;  %v243_v29 = vrot.slane %v1589_v62, 6 }
  0x39   :  { %547 = vmatprep.mubr.f32.mxu1 %v299_v10  ;;  %1305 = vmatprep.subr.bf16.mxu0 %v1304_v5  ;;  %v1595_v4 = vld [vmem:[%s1767_s0 + $0x80] sm:$0xff]  ;;  %v238_v5 = vsel %vm221_vm0, %v231_v21, %v237_v47  ;;  %v1601_v10 = vld [vmem:[%s1767_s0 + $0x78] sm:$0xff]  ;;  %v316_v21 = vrot.slane %v1589_v62, 7  ;;  %v1316_v22 = vpack.c.bf16 %v141_v3, %v140_v2  ;;  %v245_v35 = vrot.slane %v1608_v15, 6  ;;  %v174_v39 = vld [vmem:[#allocation2 + $0x3d0] sm:$0xff] }
  0x3a   :  { %443 = vmatmul.mubr.f32.gmra.mrb[2].mxu0 %v226_v19  ;;  %1337 = vmatprep.subr.bf16.mxu1 %v1336_v11  ;;  %v172_v7 = vld [vmem:[#allocation2 + $0x3c0] sm:$0xff]  ;;  %v242_v11 = vsel %vm221_vm0, %v235_v28, %v241_v53  ;;  %v1615_v28 = vld [vmem:[%s1767_s0 + $0x88] sm:$0xff]  ;;  %v143_v33 = vld [vmem:[#allocation2 + $0x2d8] sm:$0xff] }
  0x3b   :  { %548 = vmatmul.mubr.f32.gmra.mrb[2].mxu1 %v230_v25  ;;  %1307 = vmatpush3.bf16.msra.mxu0 %v1306_v20  ;;  %v124_v19 = vld [vmem:[#allocation2 + $0x240] sm:$0xff]  ;;  %v125_v20 = vld [vmem:[#allocation2 + $0x248] sm:$0xff]  ;;  %v1348_v30 = vpack.c.bf16 %v173_v8, %v172_v7  ;;  %v1622_v34 = vld [vmem:[%s1767_s0 + $0x98] sm:$0xff] }
  0x3c   :  { %1339 = vmatpush3.bf16.msra.mxu1 %v1338_v26  ;;  %447 = vmatprep.mubr.f32.mxu0 %v234_v31  ;;  %v156_v23 = vld [vmem:[#allocation2 + $0x340] sm:$0xff]  ;;  %v157_v25 = vld [vmem:[#allocation2 + $0x348] sm:$0xff]  ;;  %v248_v26 = vrot.slane %v1595_v4, 6  ;;  %v319_v31 = vrot.slane %v1601_v10, 7  ;;  %v175_v41 = vld [vmem:[#allocation2 + $0x3d8] sm:$0xff]  ;;  %v254_v54 = vrot.slane %v1622_v34, 6 }
  0x3d   :  { %552 = vmatprep.mubr.f32.mxu1 %v305_v37  ;;  %1309 = vmatprep.subr.bf16.mxu0 %v1308_v32  ;;  %v142_v32 = vld [vmem:[#allocation2 + $0x2d0] sm:$0xff]  ;;  %v1318_v37 = vpack.c.bf16 %v125_v20, %v124_v19  ;;  %v127_v48 = vld [vmem:[#allocation2 + $0x258] sm:$0xff]  ;;  %v1641_v55 = vld [vmem:[%s1767_s0 + $0xa0] sm:$0xff] }
  0x3e   :  { %448 = vmatmul.mubr.f32.gmra.mrb[4].mxu0 %v232_v45  ;;  %1341 = vmatprep.subr.bf16.mxu1 %v1340_v38  ;;  %v246_v38 = vrot.slane %v1601_v10, 6  ;;  %v1629_v43 = vld [vmem:[%s1767_s0 + $0x90] sm:$0xff]  ;;  %v1350_v45 = vpack.c.bf16 %v157_v25, %v156_v23  ;;  %v249_v49 = vsel %vm221_vm0, %v244_v14, %v248_v26  ;;  %v159_v53 = vld [vmem:[#allocation2 + $0x358] sm:$0xff]  ;;  %v320_v56 = vsel %vm294_vm2, %v316_v21, %v319_v31  ;;  %v144_v60 = vld [vmem:[#allocation2 + $0x2e0] sm:$0xff] }
  0x3f   :  { %553 = vmatmul.mubr.f32.gmra.mrb[4].mxu1 %v236_v50  ;;  %1311 = vmatpush3.bf16.msra.mxu0 %v1310_v46  ;;  %v250_v46 = vrot.slane %v1615_v28, 6  ;;  %v126_v47 = vld [vmem:[#allocation2 + $0x250] sm:$0xff]  ;;  %v1320_v50 = vpack.c.bf16 %v143_v33, %v142_v32  ;;  %v177_v7 = vld [vmem:[#allocation2 + $0x3e8] sm:$0xff]  ;;  %v256_v13 = vrot.slane %v1641_v55, 6  ;;  %v255_v20 = vsel %vm221_vm0, %v248_v26, %v254_v54 }
  0x40   :  { %1343 = vmatpush3.bf16.msra.mxu1 %v1342_v51  ;;  %452 = vmatprep.mubr.f32.mxu0 %v240_v58  ;;  %v158_v51 = vld [vmem:[#allocation2 + $0x350] sm:$0xff]  ;;  %v1352_v58 = vpack.c.bf16 %v175_v41, %v174_v39  ;;  %v247_v2 = vsel %vm221_vm0, %v243_v29, %v246_v38  ;;  %v1322_v3 = vpack.c.bf16 %v127_v48, %v126_v47  ;;  %v1659_v8 = vld [vmem:[%s1767_s0 + $0xa8] sm:$0xff]  ;;  %v179_v47 = vld [vmem:[#allocation2 + $0x3f8] sm:$0xff] }
  0x41   :  { %557 = vmatprep.mubr.f32.mxu1 %v311_v0  ;;  %1313 = vmatprep.subr.bf16.mxu0 %v1312_v59  ;;  %v325_v59 = vrot.slane %v1629_v43, 7  ;;  %v145_v0 = vld [vmem:[#allocation2 + $0x2e8] sm:$0xff]  ;;  %v331_v33 = vrot.slane %v1659_v8, 7  ;;  %v258_v41 = vrot.slane %v1659_v8, 6  ;;  %v257_v48 = vsel %vm221_vm0, %v250_v46, %v256_v13 }
  0x42   :  { %453 = vmatmul.mubr.f32.gmra.mrb[6].mxu0 %v238_v5  ;;  %1345 = vmatprep.subr.bf16.mxu1 %v1344_v1  ;;  %v1650_v1 = vld [vmem:[%s1767_s0 + $0xb0] sm:$0xff]  ;;  %v252_v5 = vrot.slane %v1629_v43, 6  ;;  %v129_v19 = vld [vmem:[#allocation2 + $0x268] sm:$0xff] }
  0x43   :  { %558 = vmatmul.mubr.f32.gmra.mrb[6].mxu1 %v242_v11  ;;  %1315 = vmatpush3.bf16.msra.mxu0 %v1314_v6  ;;  %v176_v6 = vld [vmem:[#allocation2 + $0x3e0] sm:$0xff]  ;;  %v251_v11 = vsel %vm221_vm0, %v245_v35, %v250_v46  ;;  %v161_v23 = vld [vmem:[#allocation2 + $0x368] sm:$0xff]  ;;  %v260_v25 = vrot.slane %v1650_v1, 6 }
  0x44   :  { %1347 = vmatpush3.bf16.msra.mxu1 %v1346_v12  ;;  %925 = vmatprep.mubr.msk.f32.mxu0 %vm1475_vm1, %v244_v14  ;;  %v1354_v12 = vpack.c.bf16 %v159_v53, %v158_v51  ;;  %v128_v14 = vld [vmem:[#allocation2 + $0x260] sm:$0xff]  ;;  %v1356_v32 = vpack.c.bf16 %v177_v7, %v176_v6  ;;  %v253_v26 = vsel %vm221_vm0, %v246_v38, %v252_v5  ;;  %v131_v51 = vld [vmem:[#allocation2 + $0x278] sm:$0xff]  ;;  %v162_v38 = vld [vmem:[#allocation2 + $0x370] sm:$0xff] }
  0x45   :  { %933 = vmatprep.mubr.msk.f32.mxu1 %vm1492_vm3, %v316_v21  ;;  %1317 = vmatprep.subr.bf16.mxu0 %v1316_v22  ;;  %v1324_v21 = vpack.c.bf16 %v145_v0, %v144_v60  ;;  %v160_v22 = vld [vmem:[#allocation2 + $0x360] sm:$0xff]  ;;  %v1326_v39 = vpack.c.bf16 %v129_v19, %v128_v14  ;;  %v261_v53 = vsel %vm221_vm0, %v254_v54, %v260_v25  ;;  %v296_v14 = vrot.slane %v1482_v17, 7  ;;  %v182_v19 = vld [vmem:[#allocation2 + $0x410] sm:$0xff]  ;;  %v185_v25 = vld [vmem:[#allocation2 + $0x428] sm:$0xff] }
  0x46   :  { %927 = vmatmul.mubr.msk.f32.gmra.mrb[8].mxu0 %vm1475_vm1, %v243_v29  ;;  %1349 = vmatprep.subr.bf16.mxu1 %v1348_v30  ;;  %v1668_v29 = vld [vmem:[%s1767_s0 + $0xb8] sm:$0xff]  ;;  %v326_v30 = vsel %vm294_vm2, %v319_v31, %v325_v59  ;;  %v332_v60 = vsel %vm294_vm2, %v325_v59, %v331_v33  ;;  %v259_v46 = vsel %vm221_vm0, %v252_v5, %v258_v41  ;;  %v302_v59 = vrot.slane %v1521_v52, 7 }
  0x47   :  { %935 = vmatmul.mubr.msk.f32.gmra.mrb[8].mxu1 %vm1475_vm1, %v245_v35  ;;  %1319 = vmatpush3.bf16.msra.mxu0 %v1318_v37  ;;  %v146_v35 = vld [vmem:[#allocation2 + $0x2f0] sm:$0xff]  ;;  %v147_v37 = vld [vmem:[#allocation2 + $0x2f8] sm:$0xff]  ;;  %v262_v31 = vrot.slane %v1668_v29, 6  ;;  %v300_v5 = vrot.slane %v1505_v40, 7  ;;  %v335_v27 = vrot.slane %v1668_v29, 7 }
  0x48   :  { %1351 = vmatpush3.bf16.msra.mxu1 %v1350_v45  ;;  %462 = vmatprep.mubr.f32.mxu0 %v249_v49  ;;  %v178_v45 = vld [vmem:[#allocation2 + $0x3f0] sm:$0xff]  ;;  %v1358_v49 = vpack.c.bf16 %v161_v23, %v160_v22  ;;  %v308_v22 = vrot.slane %v1543_v9, 7  ;;  %v184_v23 = vld [vmem:[#allocation2 + $0x420] sm:$0xff] }
  0x49   :  { %567 = vmatprep.mubr.f32.mxu1 %v320_v56  ;;  %1321 = vmatprep.subr.bf16.mxu0 %v1320_v50  ;;  %v130_v50 = vld [vmem:[#allocation2 + $0x270] sm:$0xff]  ;;  %v1328_v56 = vpack.c.bf16 %v147_v37, %v146_v35  ;;  %v1360_v0 = vpack.c.bf16 %v179_v47, %v178_v45  ;;  %v263_v7 = vsel %vm221_vm0, %v256_v13, %v262_v31  ;;  %v314_v35 = vrot.slane %v1572_v36, 7  ;;  %v188_v45 = vld [vmem:[#allocation2 + $0x440] sm:$0xff]  ;;  %v189_v47 = vld [vmem:[#allocation2 + $0x448] sm:$0xff] }
  0x4a   :  { %463 = vmatmul.mubr.f32.gmra.mrb[10].mxu0 %v247_v2  ;;  %1353 = vmatprep.subr.bf16.mxu1 %v1352_v58  ;;  %v163_v58 = vld [vmem:[#allocation2 + $0x378] sm:$0xff]  ;;  %v180_v2 = vld [vmem:[#allocation2 + $0x400] sm:$0xff]  ;;  %v1330_v6 = vpack.c.bf16 %v131_v51, %v130_v50  ;;  %v1372_v33 = vpack.c.bf16 %v185_v25, %v184_v23  ;;  %v186_v37 = vld [vmem:[#allocation2 + $0x430] sm:$0xff]  ;;  %v317_v31 = vrot.slane %v1584_v61, 7 }
  0x4b   :  { %568 = vmatmul.mubr.f32.gmra.mrb[10].mxu1 %v251_v11  ;;  %1323 = vmatpush3.bf16.msra.mxu0 %v1322_v3  ;;  %v181_v3 = vld [vmem:[#allocation2 + $0x408] sm:$0xff]  ;;  %v1362_v54 = vpack.c.bf16 %v163_v58, %v162_v38  ;;  %v297_v11 = vrot.slane %v1515_v44, 7  ;;  %v190_v50 = vld [vmem:[#allocation2 + $0x450] sm:$0xff]  ;;  %v191_v51 = vld [vmem:[#allocation2 + $0x458] sm:$0xff] }
  0x4c   :  { %1355 = vmatpush3.bf16.msra.mxu1 %v1354_v12  ;;  %467 = vmatprep.mubr.f32.mxu0 %v255_v20  ;;  %v1364_v12 = vpack.c.bf16 %v181_v3, %v180_v2  ;;  %v183_v20 = vld [vmem:[#allocation2 + $0x418] sm:$0xff]  ;;  %v193_v38 = vld [vmem:[#allocation2 + $0x468] sm:$0xff]  ;;  %v194_v2 = vld [vmem:[#allocation2 + $0x470] sm:$0xff] }
  0x4d   :  { %572 = vmatprep.mubr.f32.mxu1 %v326_v30  ;;  %1325 = vmatprep.subr.bf16.mxu0 %v1324_v21  ;;  %v303_v13 = vsel %vm294_vm2, %v297_v11, %v302_v59  ;;  %v1368_v21 = vpack.c.bf16 %v183_v20, %v182_v19  ;;  %v301_v30 = vsel %vm294_vm2, %v296_v14, %v300_v5  ;;  %v195_v3 = vld [vmem:[#allocation2 + $0x478] sm:$0xff] }
  0x4e   :  { %468 = vmatmul.mubr.f32.gmra.mrb[12].mxu0 %v253_v26  ;;  %1357 = vmatprep.subr.bf16.mxu1 %v1356_v32  ;;  %v306_v32 = vrot.slane %v1528_v57, 7  ;;  %v187_v26 = vld [vmem:[#allocation2 + $0x438] sm:$0xff] }
  0x4f   :  { %573 = vmatmul.mubr.f32.gmra.mrb[12].mxu1 %v257_v48  ;;  %1327 = vmatpush3.bf16.msra.mxu0 %v1326_v39  ;;  %v312_v39 = vrot.slane %v1554_v16, 7  ;;  %v1376_v41 = vpack.c.bf16 %v187_v26, %v186_v37  ;;  %v318_v48 = vrot.slane %v1608_v15, 7 }
  0x50   :  { %1359 = vmatpush3.bf16.msra.mxu1 %v1358_v49  ;;  %472 = vmatprep.mubr.f32.mxu0 %v261_v53  ;;  %v323_v49 = vrot.slane %v1615_v28, 7  ;;  %v1384_v53 = vpack.c.bf16 %v191_v51, %v190_v50 }
  0x51   :  { %577 = vmatprep.mubr.f32.mxu1 %v332_v60  ;;  %1329 = vmatprep.subr.bf16.mxu0 %v1328_v56  ;;  %v329_v56 = vrot.slane %v1641_v55, 7  ;;  %v327_v60 = vrot.slane %v1622_v34, 7 }
  0x52   :  { %473 = vmatmul.mubr.f32.gmra.mrb[14].mxu0 %v259_v46  ;;  %1361 = vmatprep.subr.bf16.mxu1 %v1360_v0  ;;  %v333_v46 = vrot.slane %v1650_v1, 7 }
  0x53   :  { %578 = vmatmul.mubr.f32.gmra.mrb[14].mxu1 %v263_v7  ;;  %1331 = vmatpush3.bf16.msra.mxu0 %v1330_v6  ;;  %v1392_v6 = vpack.c.bf16 %v195_v3, %v194_v2 }
  0x54   :  { %1363 = vmatpush3.bf16.msra.mxu1 %v1362_v54  ;;  %937 = vmatprep.mubr.msk.f32.mxu0 %vm1492_vm3, %v297_v11 }
  0x55   :  { %752 = vmatprep.mubr.f32.mxu1 %v1482_v17  ;;  %1365 = vmatprep.subr.bf16.mxu0 %v1364_v12  ;;  %v309_v17 = vsel %vm294_vm2, %v302_v59, %v308_v22 }
  0x56   :  { %939 = vmatmul.mubr.msk.f32.vlgmr.msra.gmra.mrb[16].mxu0 %vm1492_vm3, %v296_v14  ;;  %1396 = vmatprep.subr.bf16.mxu1 %v1364_v12 }
  0x57   :  { %753 = vmatmul.mubr.f32.vlgmr.msra.gmra.mrb[16].mxu1 %v1487_v18  ;;  %1367 = vmatpush3.bf16.msra.mxu0 %v1364_v12  ;;  %v307_v18 = vsel %vm294_vm2, %v300_v5, %v306_v32 }
  0x58   :  { %1404 = vmatpush3.bf16.msra.mxu1 %v1364_v12  ;;  %652 = vmatprep.mubr.f32.mxu0 %v303_v13 }
  0x59   :  { %757 = vmatprep.mubr.f32.mxu1 %v1505_v40  ;;  %1369 = vmatprep.subr.bf16.mxu0 %v1368_v21  ;;  %v315_v40 = vsel %vm294_vm2, %v308_v22, %v314_v35 }
  0x5a   :  { %653 = vmatmul.mubr.f32.gmra.mrb[18].mxu0 %v301_v30  ;;  %1397 = vmatprep.subr.bf16.mxu1 %v1368_v21 }
  0x5b   :  { %758 = vmatmul.mubr.f32.gmra.mrb[18].mxu1 %v1510_v42  ;;  %1371 = vmatpush3.bf16.msra.mxu0 %v1368_v21  ;;  %v313_v42 = vsel %vm294_vm2, %v306_v32, %v312_v39 }
  0x5c   :  { %1405 = vmatpush3.bf16.msra.mxu1 %v1368_v21  ;;  %657 = vmatprep.mubr.f32.mxu0 %v309_v17 }
  0x5d   :  { %762 = vmatprep.mubr.f32.mxu1 %v1528_v57  ;;  %1373 = vmatprep.subr.bf16.mxu0 %v1372_v33  ;;  %v1380_v57 = vpack.c.bf16 %v189_v47, %v188_v45 }
  0x5e   :  { %658 = vmatmul.mubr.f32.gmra.mrb[20].mxu0 %v307_v18  ;;  %1398 = vmatprep.subr.bf16.mxu1 %v1372_v33 }
  0x5f   :  { %763 = vmatmul.mubr.f32.gmra.mrb[20].mxu1 %v1535_v63  ;;  %1375 = vmatpush3.bf16.msra.mxu0 %v1372_v33  ;;  %v321_v63 = vrot.slane %v1595_v4, 7 }
  0x60   :  { %1406 = vmatpush3.bf16.msra.mxu1 %v1372_v33  ;;  %662 = vmatprep.mubr.f32.mxu0 %v315_v40 }
  0x61   :  { %767 = vmatprep.mubr.f32.mxu1 %v1554_v16  ;;  %1377 = vmatprep.subr.bf16.mxu0 %v1376_v41  ;;  %v324_v16 = vsel %vm294_vm2, %v318_v48, %v323_v49  ;;  %v322_v58 = vsel %vm294_vm2, %v317_v31, %v321_v63 }
  0x62   :  { %663 = vmatmul.mubr.f32.gmra.mrb[22].mxu0 %v313_v42  ;;  %1399 = vmatprep.subr.bf16.mxu1 %v1376_v41 }
  0x63   :  { %768 = vmatmul.mubr.f32.gmra.mrb[22].mxu1 %v1563_v24  ;;  %1379 = vmatpush3.bf16.msra.mxu0 %v1376_v41  ;;  %v192_v24 = vld [vmem:[#allocation2 + $0x460] sm:$0xff] }
  0x64   :  { %1407 = vmatpush3.bf16.msra.mxu1 %v1376_v41  ;;  %941 = vmatprep.mubr.msk.f32.mxu0 %vm1492_vm3, %v318_v48  ;;  %v1388_v0 = vpack.c.bf16 %v193_v38, %v192_v24 }
  0x65   :  { %772 = vmatprep.mubr.f32.mxu1 %v1584_v61  ;;  %1381 = vmatprep.subr.bf16.mxu0 %v1380_v57  ;;  %v330_v61 = vsel %vm294_vm2, %v323_v49, %v329_v56 }
  0x66   :  { %943 = vmatmul.mubr.msk.f32.gmra.mrb[24].mxu0 %vm1492_vm3, %v317_v31  ;;  %1400 = vmatprep.subr.bf16.mxu1 %v1380_v57 }
  0x67   :  { %773 = vmatmul.mubr.f32.gmra.mrb[24].mxu1 %v1589_v62  ;;  %1383 = vmatpush3.bf16.msra.mxu0 %v1380_v57  ;;  %v328_v62 = vsel %vm294_vm2, %v321_v63, %v327_v60 }
  0x68   :  { %1408 = vmatpush3.bf16.msra.mxu1 %v1380_v57  ;;  %672 = vmatprep.mubr.f32.mxu0 %v324_v16 }
  0x69   :  { %777 = vmatprep.mubr.f32.mxu1 %v1595_v4  ;;  %1385 = vmatprep.subr.bf16.mxu0 %v1384_v53  ;;  %v336_v4 = vsel %vm294_vm2, %v329_v56, %v335_v27 }
  0x6a   :  { %673 = vmatmul.mubr.f32.gmra.mrb[26].mxu0 %v322_v58  ;;  %1401 = vmatprep.subr.bf16.mxu1 %v1384_v53 }
  0x6b   :  { %778 = vmatmul.mubr.f32.gmra.mrb[26].mxu1 %v1601_v10  ;;  %1387 = vmatpush3.bf16.msra.mxu0 %v1384_v53  ;;  %v334_v10 = vsel %vm294_vm2, %v327_v60, %v333_v46 }
  0x6c   :  { %1409 = vmatpush3.bf16.msra.mxu1 %v1384_v53  ;;  %677 = vmatprep.mubr.f32.mxu0 %v330_v61 }
  0x6d   :  { %782 = vmatprep.mubr.f32.mxu1 %v1622_v34  ;;  %1389 = vmatprep.subr.bf16.mxu0 %v1388_v0 }
  0x6e   :  { %678 = vmatmul.mubr.f32.gmra.mrb[28].mxu0 %v328_v62  ;;  %1402 = vmatprep.subr.bf16.mxu1 %v1388_v0 }
  0x6f   :  { %783 = vmatmul.mubr.f32.gmra.mrb[28].mxu1 %v1629_v43  ;;  %1391 = vmatpush3.bf16.msra.mxu0 %v1388_v0 }
  0x70   :  { %1410 = vmatpush3.bf16.msra.mxu1 %v1388_v0  ;;  %682 = vmatprep.mubr.f32.mxu0 %v336_v4 }
  0x71   :  { %787 = vmatprep.mubr.f32.mxu1 %v1650_v1  ;;  %1393 = vmatprep.subr.bf16.mxu0 %v1392_v6 }
  0x72   :  { %683 = vmatmul.mubr.f32.gmra.mrb[30].mxu0 %v334_v10  ;;  %1403 = vmatprep.subr.bf16.mxu1 %v1392_v6 }
  0x73   :  { %788 = vmatmul.mubr.f32.gmra.mrb[30].mxu1 %v1659_v8  ;;  %1395 = vmatpush3.bf16.msra.mxu0 %v1392_v6 }
  0x74   :  { %1411 = vmatpush3.bf16.msra.mxu1 %v1392_v6  ;;  %1224 = vmatprep.mubr.f32.mxu0 %v1515_v44  ;;  %v919_v44 = vld [vmem:[%s1769_s2] ss:$0 sm:$0xff] }
  0x75   :  { %1230 = vmatprep.mubr.f32.mxu1 %v1608_v15 }
  0x76   :  { %1225 = vmatmul.mubr.f32.vlgmr.msra.gmra.mrb[32].mxu0 %v1521_v52 }
  0x77   :  { %1231 = vmatmul.mubr.f32.vlgmr.msra.gmra.mrb[32].mxu1 %v1615_v28  ;;  %1227 = vmatprep.mubr.f32.mxu0 %v1543_v9 }
  0x78   :  { %1233 = vmatprep.mubr.f32.mxu1 %v1641_v55 }
  0x7a   :  { %1228 = vmatmul.mubr.f32.gmra.mrb[34].mxu0 %v1572_v36 }
  0x7b   :  { %1234 = vmatmul.mubr.f32.gmra.mrb[34].mxu1 %v1668_v29 }
 0x109   :  { %v976_v34 = vpop.f32.mrb[0].mxu0 }
 0x10a   :  { %v1032_v43 = vpop.f32.mrb[0].mxu1  ;;  %v977_v1 = vpop.f32.mrb[1].mxu0 }
 0x10b   :  { %v978_v15 = vadd.f32 %v977_v1, %v976_v34  ;;  %v1033_v8 = vpop.f32.mrb[1].mxu1 }
 0x10c   :  { %v1034_v52 = vadd.f32 %v1033_v8, %v1032_v43 }
 0x10d   :  { %v440_v7 = vadd.f32 %v978_v15, %v919_v44  ;;  %v979_v28 = vpop.f32.mrb[2].mxu0 }
 0x10e   :  { %v1035_v54 = vpop.f32.mrb[2].mxu1  ;;  %v980_v9 = vpop.f32.mrb[3].mxu0 }
 0x10f   :  { %v545_v11 = vadd.f32 %v1034_v52, %v440_v7  ;;  %v981_v55 = vadd.f32 %v980_v9, %v979_v28  ;;  %v1036_v12 = vpop.f32.mrb[3].mxu1 }
 0x110   :  { %v1037_v36 = vadd.f32 %v1036_v12, %v1035_v54 }
 0x111   :  { %v445_v59 = vadd.f32 %v981_v55, %v919_v44  ;;  %v982_v29 = vpop.f32.mrb[4].mxu0 }
 0x112   :  { %v1038_v14 = vpop.f32.mrb[4].mxu1  ;;  %v983_v19 = vpop.f32.mrb[5].mxu0 }
 0x113   :  { %v550_v20 = vadd.f32 %v1037_v36, %v445_v59  ;;  %v984_v5 = vadd.f32 %v983_v19, %v982_v29  ;;  %v1039_v13 = vpop.f32.mrb[5].mxu1 }
 0x114   :  { %v1040_v21 = vadd.f32 %v1039_v13, %v1038_v14 }
 0x115   :  { %v450_v22 = vadd.f32 %v984_v5, %v919_v44  ;;  %v985_v23 = vpop.f32.mrb[6].mxu0 }
 0x116   :  { %v1041_v25 = vpop.f32.mrb[6].mxu1  ;;  %v986_v30 = vpop.f32.mrb[7].mxu0 }
 0x117   :  { %v555_v32 = vadd.f32 %v1040_v21, %v450_v22  ;;  %v987_v17 = vadd.f32 %v986_v30, %v985_v23  ;;  %v1042_v33 = vpop.f32.mrb[7].mxu1 }
 0x118   :  { %v1043_v35 = vadd.f32 %v1042_v33, %v1041_v25 }
 0x119   :  { %v455_v37 = vadd.f32 %v987_v17, %v919_v44  ;;  %v988_v26 = vpop.f32.mrb[8].mxu0 }
 0x11a   :  { %v1044_v18 = vpop.f32.mrb[8].mxu1  ;;  %v989_v39 = vpop.f32.mrb[9].mxu0 }
 0x11b   :  { %v560_v40 = vadd.f32 %v1043_v35, %v455_v37  ;;  %v990_v41 = vadd.f32 %v989_v39, %v988_v26  ;;  %v1045_v45 = vpop.f32.mrb[9].mxu1 }
 0x11c   :  { %v1046_v47 = vadd.f32 %v1045_v45, %v1044_v18 }
 0x11d   :  { %v460_v42 = vadd.f32 %v990_v41, %v919_v44  ;;  %v991_v48 = vpop.f32.mrb[10].mxu0 }
 0x11e   :  { %v1047_v57 = vpop.f32.mrb[10].mxu1  ;;  %v992_v49 = vpop.f32.mrb[11].mxu0 }
 0x11f   :  { %v565_v31 = vadd.f32 %v1046_v47, %v460_v42  ;;  %v993_v50 = vadd.f32 %v992_v49, %v991_v48  ;;  %v1048_v51 = vpop.f32.mrb[11].mxu1 }
 0x120   :  { %v1049_v63 = vadd.f32 %v1048_v51, %v1047_v57 }
 0x121   :  { %v465_v16 = vadd.f32 %v993_v50, %v919_v44  ;;  %v994_v53 = vpop.f32.mrb[12].mxu0 }
 0x122   :  { %v1050_v56 = vpop.f32.mrb[12].mxu1  ;;  %v995_v24 = vpop.f32.mrb[13].mxu0 }
 0x123   :  { %v570_v38 = vadd.f32 %v1049_v63, %v465_v16  ;;  %v996_v58 = vadd.f32 %v995_v24, %v994_v53  ;;  %v1051_v60 = vpop.f32.mrb[13].mxu1 }
 0x124   :  { %v1052_v61 = vadd.f32 %v1051_v60, %v1050_v56 }
 0x125   :  { %v470_v0 = vadd.f32 %v996_v58, %v919_v44  ;;  %v997_v27 = vpop.f32.mrb[14].mxu0 }
 0x126   :  { %v1053_v2 = vpop.f32.mrb[14].mxu1  ;;  %v998_v3 = vpop.f32.mrb[15].mxu0 }
 0x127   :  { %v575_v62 = vadd.f32 %v1052_v61, %v470_v0  ;;  %v999_v46 = vadd.f32 %v998_v3, %v997_v27  ;;  %v1054_v4 = vpop.f32.mrb[15].mxu1 }
 0x128   :  { %v1055_v6 = vadd.f32 %v1054_v4, %v1053_v2 }
 0x129   :  { %v475_v10 = vadd.f32 %v999_v46, %v919_v44  ;;  %v1088_v34 = vpop.f32.mrb[16].mxu0 }
 0x12a   :  { %v1144_v43 = vpop.f32.mrb[16].mxu1  ;;  %v1089_v1 = vpop.f32.mrb[17].mxu0 }
 0x12b   :  { %v580_v15 = vadd.f32 %v1055_v6, %v475_v10  ;;  %v1090_v8 = vadd.f32 %v1089_v1, %v1088_v34  ;;  %v1145_v52 = vpop.f32.mrb[17].mxu1 }
 0x12c   :  { %v1146_v7 = vadd.f32 %v1145_v52, %v1144_v43 }
 0x12d   :  { %v650_v28 = vadd.f32 %v1090_v8, %v545_v11  ;;  %v1091_v54 = vpop.f32.mrb[18].mxu0 }
 0x12e   :  { %v1147_v9 = vpop.f32.mrb[18].mxu1  ;;  %v1092_v55 = vpop.f32.mrb[19].mxu0 }
 0x12f   :  { %v1093_v12 = vadd.f32 %v1092_v55, %v1091_v54  ;;  %v1148_v36 = vpop.f32.mrb[19].mxu1  ;;  %v755_v59 = vadd.f32 %v1146_v7, %v650_v28 }
 0x130   :  { %v1149_v29 = vadd.f32 %v1148_v36, %v1147_v9 }
 0x131   :  { %v655_v14 = vadd.f32 %v1093_v12, %v550_v20  ;;  %v1094_v19 = vpop.f32.mrb[20].mxu0 }
 0x132   :  { %v1150_v5 = vpop.f32.mrb[20].mxu1  ;;  %v1095_v13 = vpop.f32.mrb[21].mxu0 }
 0x133   :  { %v1096_v44 = vadd.f32 %v1095_v13, %v1094_v19  ;;  %v1151_v21 = vpop.f32.mrb[21].mxu1  ;;  %v760_v22 = vadd.f32 %v1149_v29, %v655_v14 }
 0x134   :  { %v1152_v23 = vadd.f32 %v1151_v21, %v1150_v5 }
 0x135   :  { %v660_v25 = vadd.f32 %v1096_v44, %v555_v32  ;;  %v1097_v30 = vpop.f32.mrb[22].mxu0 }
 0x136   :  { %v1153_v17 = vpop.f32.mrb[22].mxu1  ;;  %v1098_v33 = vpop.f32.mrb[23].mxu0 }
 0x137   :  { %v1099_v11 = vadd.f32 %v1098_v33, %v1097_v30  ;;  %v1154_v35 = vpop.f32.mrb[23].mxu1  ;;  %v765_v37 = vadd.f32 %v1152_v23, %v660_v25 }
 0x138   :  { %v1155_v26 = vadd.f32 %v1154_v35, %v1153_v17 }
 0x139   :  { %v665_v18 = vadd.f32 %v1099_v11, %v560_v40  ;;  %v1100_v39 = vpop.f32.mrb[24].mxu0 }
 0x13a   :  { %v1156_v41 = vpop.f32.mrb[24].mxu1  ;;  %v1101_v45 = vpop.f32.mrb[25].mxu0 }
 0x13b   :  { %v1102_v20 = vadd.f32 %v1101_v45, %v1100_v39  ;;  %v1157_v47 = vpop.f32.mrb[25].mxu1  ;;  %v770_v42 = vadd.f32 %v1155_v26, %v665_v18 }
 0x13c   :  { %v1158_v48 = vadd.f32 %v1157_v47, %v1156_v41 }
 0x13d   :  { %v670_v57 = vadd.f32 %v1102_v20, %v565_v31  ;;  %v1103_v49 = vpop.f32.mrb[26].mxu0 }
 0x13e   :  { %v1159_v50 = vpop.f32.mrb[26].mxu1  ;;  %v1104_v51 = vpop.f32.mrb[27].mxu0 }
 0x13f   :  { %v1105_v32 = vadd.f32 %v1104_v51, %v1103_v49  ;;  %v1160_v63 = vpop.f32.mrb[27].mxu1  ;;  %v775_v16 = vadd.f32 %v1158_v48, %v670_v57 }
 0x140   :  { %v1161_v53 = vadd.f32 %v1160_v63, %v1159_v50 }
 0x141   :  { %v675_v56 = vadd.f32 %v1105_v32, %v570_v38  ;;  %v1106_v24 = vpop.f32.mrb[28].mxu0 }
 0x142   :  { %v1162_v58 = vpop.f32.mrb[28].mxu1  ;;  %v1107_v60 = vpop.f32.mrb[29].mxu0 }
 0x143   :  { %v1108_v40 = vadd.f32 %v1107_v60, %v1106_v24  ;;  %v1163_v61 = vpop.f32.mrb[29].mxu1  ;;  %v780_v0 = vadd.f32 %v1161_v53, %v675_v56 }
 0x144   :  { %v1164_v27 = vadd.f32 %v1163_v61, %v1162_v58 }
 0x145   :  { %v680_v2 = vadd.f32 %v1108_v40, %v575_v62  ;;  %v1109_v3 = vpop.f32.mrb[30].mxu0 }
 0x146   :  { %v1165_v46 = vpop.f32.mrb[30].mxu1  ;;  %v1110_v4 = vpop.f32.mrb[31].mxu0 }
 0x147   :  { %v1111_v31 = vadd.f32 %v1110_v4, %v1109_v3  ;;  %v1166_v6 = vpop.f32.mrb[31].mxu1  ;;  %v785_v10 = vadd.f32 %v1164_v27, %v680_v2 }
 0x148   :  { %v1167_v34 = vadd.f32 %v1166_v6, %v1165_v46 }
 0x149   :  { %v685_v43 = vadd.f32 %v1111_v31, %v580_v15  ;;  %v1226_v1 = vpop.f32.mrb[32].mxu0 }
 0x14a   :  { %v865_v8 = vadd.f32 %v1226_v1, %v760_v22  ;;  %v1232_v52 = vpop.f32.mrb[32].mxu1  ;;  %v859_v38 = vpop.f32.mrb[33].mxu0 }
 0x14b   :  { %v885_v7 = vadd.f32 %v1232_v52, %v780_v0  ;;  %v860_v28 = vadd.f32 %v859_v38, %v755_v59  ;;  %v879_v54 = vpop.f32.mrb[33].mxu1  ;;  %v790_v9 = vadd.f32 %v1167_v34, %v685_v43 }
 0x14c   :  { %v899_v55 = vmax.f32 %v865_v8, 0.0  ;;  %v880_v12 = vadd.f32 %v879_v54, %v775_v16 }
 0x14d   :  { %v903_v36 = vmax.f32 %v885_v7, 0.0  ;;  %v898_v62 = vmax.f32 %v860_v28, 0.0  ;;  %v1229_v29 = vpop.f32.mrb[34].mxu0 }
 0x14e   :  { %907 = vst [vmem:[%s1770_s3 + $0x8] sm:$0xff] %v899_v55  ;;  %v902_v14 = vmax.f32 %v880_v12, 0.0  ;;  %v875_v19 = vadd.f32 %v1229_v29, %v770_v42  ;;  %v1235_v15 = vpop.f32.mrb[34].mxu1  ;;  %v869_v5 = vpop.f32.mrb[35].mxu0 }
 0x14f   :  { %911 = vst [vmem:[%s1770_s3 + $0x28] sm:$0xff] %v903_v36  ;;  %906 = vst [vmem:[%s1770_s3] sm:$0xff] %v898_v62  ;;  %v895_v59 = vadd.f32 %v1235_v15, %v790_v9  ;;  %v870_v13 = vadd.f32 %v869_v5, %v765_v37  ;;  %v889_v44 = vpop.f32.mrb[35].mxu1 }
 0x150   :  { %910 = vst [vmem:[%s1770_s3 + $0x20] sm:$0xff] %v902_v14  ;;  %v901_v21 = vmax.f32 %v875_v19, 0.0  ;;  %v890_v22 = vadd.f32 %v889_v44, %v785_v10 }
 0x151   :  { %v905_v23 = vmax.f32 %v895_v59, 0.0  ;;  %v900_v25 = vmax.f32 %v870_v13, 0.0 }
 0x152   :  { %909 = vst [vmem:[%s1770_s3 + $0x18] sm:$0xff] %v901_v21  ;;  %v904_v30 = vmax.f32 %v890_v22, 0.0 }
 0x153   :  { %913 = vst [vmem:[%s1770_s3 + $0x38] sm:$0xff] %v905_v23  ;;  %908 = vst [vmem:[%s1770_s3 + $0x10] sm:$0xff] %v900_v25 }
 0x154   :  { %912 = vst [vmem:[%s1770_s3 + $0x30] sm:$0xff] %v904_v30 }
 0x155   :  { %918 = vsyncpa [#allocation3], 1 }

// kernel: forward.7
= control target key start
LH: loop header
LB: loop body
LE: loop exit
PB: predicated region body
PF: predicated region fallthrough
CT: control target
= control target key end

     0   :  { %12 = vsyncpa [#allocation3], 0  ;;  %s3492_s0 = inlined_call_operand.vmem [shape: f32[2,16,256], index: 0, kind: input, shape index: {}]   ;;  %s3493_s1 = inlined_call_operand.vmem [shape: f32[512,128], index: 1, kind: input, shape index: {}]   ;;  %s3494_s2 = inlined_call_operand.vmem [shape: f32[1,128], index: 2, kind: input, shape index: {}]   ;;  %s3495_s3 = inlined_call_operand.vmem [shape: f32[3,384,128], index: 3, kind: input, shape index: {}]   ;;  %s3496_s4 = inlined_call_operand.hbm [shape: f32[3,1,128], index: 4, kind: input, shape index: {}]   ;;  %s3497_s5 = inlined_call_operand.vmem [shape: f32[3,128,128], index: 5, kind: input, shape index: {}]   ;;  %s3498_s6 = inlined_call_operand.hbm [shape: f32[3,1,128], index: 6, kind: input, shape index: {}]   ;;  %s3499_s7 = inlined_call_operand.vmem [shape: f32[2,16,128], index: 7, kind: output, shape index: {}]  }
   0x1   :  { %13 = vsyncpa [#allocation5], 0  ;;  %s2488_s24 = smov [#allocation2]   ;;  %s2440_s28 = scalar_lea.hbm %s3496_s4, 48 }
   0x2   :  { %s27_s25 = sshll.u32 %s2488_s24, 4  ;;  %p2441_p0 = scmp.ne.s32.totalorder %s3496_s4, %s2440_s28  ;;  %s28_s25 = int_to_ptr.vmem [resolvable:$true] %s27_s25 }
   0x3   :  { %p2444_p1 = scmp.lt.u32.totalorder %s2440_s28, %s3496_s4 }
   0x5   :  { %p2446_p2 = pnand %p2444_p1, %p2441_p0 }
   0x7   :  { %2449 = shalt.err (!%p2446_p2)
}
   0x8   :  { %s2450_s10 = scalar_lea.vmem %s28_s25, 48  ;;  %s2454_s11 = scalar_lea.vmem %s28_s25, 64 }
   0x9   :  { %p2451_p3 = scmp.ne.s32.totalorder %s28_s25, %s2450_s10  ;;  %p2455_p4 = scmp.lt.s32.totalorder %s28_s25, %s28_s25 }
   0xa   :  { %p2456_p5 = scmp.lt.s32.totalorder %s2454_s11, %s2450_s10 }
   0xc   :  { %p2457_p6 = por %p2456_p5, %p2455_p4 }
   0xe   :  { %p2458_p7 = pnand %p2457_p6, %p2451_p3 }
  0x10   :  { %2461 = shalt.err (!%p2458_p7)
}
  0x11   :  { %s2489_s12 = smov 16   ;;  %s2490_s13 = smov 1  }
  0x12   :  { %33 = dma.hbm_to_vmem [thread:$0]  %s3496_s4, 48, %s28_s25, [#allocation3], %s2489_s12, %s2489_s12, %s2490_s13  }
  0x13   :  { %s2491_s16 = smov [#allocation4]   ;;  %s2462_s20 = scalar_lea.hbm %s3498_s6, 48 }
  0x14   :  { %s41_s17 = sshll.u32 %s2491_s16, 4  ;;  %p2463_p8 = scmp.ne.s32.totalorder %s3498_s6, %s2462_s20  ;;  %s42_s17 = int_to_ptr.vmem [resolvable:$true] %s41_s17 }
  0x15   :  { %p2466_p9 = scmp.lt.u32.totalorder %s2462_s20, %s3498_s6 }
  0x17   :  { %p2468_p10 = pnand %p2466_p9, %p2463_p8 }
  0x19   :  { %2471 = shalt.err (!%p2468_p10)
}
  0x1a   :  { %s2472_s26 = scalar_lea.vmem %s42_s17, 48  ;;  %s2476_s4 = scalar_lea.vmem %s42_s17, 64 }
  0x1b   :  { %p2473_p11 = scmp.ne.s32.totalorder %s42_s17, %s2472_s26  ;;  %p2477_p12 = scmp.lt.s32.totalorder %s42_s17, %s42_s17 }
  0x1c   :  { %p2478_p13 = scmp.lt.s32.totalorder %s2476_s4, %s2472_s26 }
  0x1e   :  { %p2479_p0 = por %p2478_p13, %p2477_p12 }
  0x20   :  { %p2480_p1 = pnand %p2479_p0, %p2473_p11 }
  0x22   :  { %2483 = shalt.err (!%p2480_p1)
}
  0x23   :  { %47 = dma.hbm_to_vmem [thread:$0]  %s3498_s6, 48, %s42_s17, [#allocation5], %s2489_s12, %s2489_s12, %s2490_s13  }
  0x24   :  { %2484 = dma.done.wait [#allocation3], 48  }
  0x25   :  { %2485 = vsyncadd [#allocation3], 4294967248 }
  0x26   :  { %2486 = dma.done.wait [#allocation5], 48  }
  0x27   :  { %2487 = vsyncadd [#allocation5], 4294967248  ;;  %v78_v0 = vld [vmem:[%s3493_s1 + $0x80] sm:$0xff]  ;;  %v79_v1 = vld [vmem:[%s3493_s1 + $0x88] sm:$0xff]  ;;  %vm346_vm0 = vcmask 1040384   ;;  %vm329_vm2 = vcmask 1041408  }
  0x28   :  { %v62_v2 = vld [vmem:[%s3493_s1] sm:$0xff]  ;;  %v2067_v3 = vpack.c.bf16 %v79_v1, %v78_v0  ;;  %v63_v4 = vld [vmem:[%s3493_s1 + $0x8] sm:$0xff]  ;;  %v80_v11 = vld [vmem:[%s3493_s1 + $0x90] sm:$0xff]  ;;  %vm875_vm4 = vcmask 1042432   ;;  %vm862_vm5 = vcmask 1045504  }
  0x29   :  { %v110_v5 = vld [vmem:[%s3493_s1 + $0x180] sm:$0xff]  ;;  %v111_v6 = vld [vmem:[%s3493_s1 + $0x188] sm:$0xff]  ;;  %v2069_v7 = vpack.c.bf16 %v63_v4, %v62_v2  ;;  %v81_v13 = vld [vmem:[%s3493_s1 + $0x98] sm:$0xff] }
  0x2a   :  { %v2099_v8 = vpack.c.bf16 %v111_v6, %v110_v5  ;;  %v94_v9 = vld [vmem:[%s3493_s1 + $0x100] sm:$0xff]  ;;  %v95_v10 = vld [vmem:[%s3493_s1 + $0x108] sm:$0xff]  ;;  %2068 = vmatprep.subr.bf16.mxu0 %v2067_v3  ;;  %v64_v14 = vld [vmem:[%s3493_s1 + $0x10] sm:$0xff]  ;;  %v2071_v16 = vpack.c.bf16 %v81_v13, %v80_v11 }
  0x2b   :  { %v2101_v12 = vpack.c.bf16 %v95_v10, %v94_v9  ;;  %v65_v15 = vld [vmem:[%s3493_s1 + $0x18] sm:$0xff]  ;;  %2070 = vmatpush3.bf16.msra.mxu0 %v2069_v7  ;;  %v112_v18 = vld [vmem:[%s3493_s1 + $0x190] sm:$0xff]  ;;  %v82_v23 = vld [vmem:[%s3493_s1 + $0xa0] sm:$0xff] }
  0x2c   :  { %2100 = vmatprep.subr.bf16.mxu1 %v2099_v8  ;;  %v2073_v17 = vpack.c.bf16 %v65_v15, %v64_v14  ;;  %v113_v19 = vld [vmem:[%s3493_s1 + $0x198] sm:$0xff]  ;;  %v96_v20 = vld [vmem:[%s3493_s1 + $0x110] sm:$0xff]  ;;  %v83_v24 = vld [vmem:[%s3493_s1 + $0xa8] sm:$0xff]  ;;  %2072 = vmatprep.subr.bf16.mxu0 %v2071_v16 }
  0x2d   :  { %2102 = vmatpush3.bf16.msra.mxu1 %v2101_v12  ;;  %v2103_v21 = vpack.c.bf16 %v113_v19, %v112_v18  ;;  %v97_v22 = vld [vmem:[%s3493_s1 + $0x118] sm:$0xff]  ;;  %v2075_v26 = vpack.c.bf16 %v83_v24, %v82_v23  ;;  %v66_v27 = vld [vmem:[%s3493_s1 + $0x20] sm:$0xff]  ;;  %v67_v28 = vld [vmem:[%s3493_s1 + $0x28] sm:$0xff] }
  0x2e   :  { %v2105_v25 = vpack.c.bf16 %v97_v22, %v96_v20  ;;  %v114_v29 = vld [vmem:[%s3493_s1 + $0x1a0] sm:$0xff]  ;;  %v115_v30 = vld [vmem:[%s3493_s1 + $0x1a8] sm:$0xff]  ;;  %v2077_v33 = vpack.c.bf16 %v67_v28, %v66_v27  ;;  %v84_v35 = vld [vmem:[%s3493_s1 + $0xb0] sm:$0xff] }
  0x2f   :  { %2104 = vmatprep.subr.bf16.mxu1 %v2103_v21  ;;  %v98_v31 = vld [vmem:[%s3493_s1 + $0x120] sm:$0xff]  ;;  %v99_v32 = vld [vmem:[%s3493_s1 + $0x128] sm:$0xff]  ;;  %2074 = vmatpush3.bf16.msra.mxu0 %v2073_v17  ;;  %v2107_v34 = vpack.c.bf16 %v115_v30, %v114_v29  ;;  %v85_v36 = vld [vmem:[%s3493_s1 + $0xb8] sm:$0xff] }
  0x30   :  { %v68_v37 = vld [vmem:[%s3493_s1 + $0x30] sm:$0xff]  ;;  %2076 = vmatprep.subr.bf16.mxu0 %v2075_v26  ;;  %v2109_v38 = vpack.c.bf16 %v99_v32, %v98_v31  ;;  %v2079_v39 = vpack.c.bf16 %v85_v36, %v84_v35  ;;  %v69_v40 = vld [vmem:[%s3493_s1 + $0x38] sm:$0xff]  ;;  %v86_v46 = vld [vmem:[%s3493_s1 + $0xc0] sm:$0xff] }
  0x31   :  { %2106 = vmatpush3.bf16.msra.mxu1 %v2105_v25  ;;  %v116_v41 = vld [vmem:[%s3493_s1 + $0x1b0] sm:$0xff]  ;;  %v117_v42 = vld [vmem:[%s3493_s1 + $0x1b8] sm:$0xff]  ;;  %v87_v47 = vld [vmem:[%s3493_s1 + $0xc8] sm:$0xff]  ;;  %v2081_v48 = vpack.c.bf16 %v69_v40, %v68_v37 }
  0x32   :  { %2108 = vmatprep.subr.bf16.mxu1 %v2107_v34  ;;  %v2111_v43 = vpack.c.bf16 %v117_v42, %v116_v41  ;;  %v100_v44 = vld [vmem:[%s3493_s1 + $0x130] sm:$0xff]  ;;  %v101_v45 = vld [vmem:[%s3493_s1 + $0x138] sm:$0xff]  ;;  %v118_v49 = vld [vmem:[%s3493_s1 + $0x1c0] sm:$0xff]  ;;  %v2083_v52 = vpack.c.bf16 %v87_v47, %v86_v46 }
  0x33   :  { %2078 = vmatpush3.bf16.msra.mxu0 %v2077_v33  ;;  %v119_v50 = vld [vmem:[%s3493_s1 + $0x1c8] sm:$0xff]  ;;  %v2113_v51 = vpack.c.bf16 %v101_v45, %v100_v44  ;;  %v70_v53 = vld [vmem:[%s3493_s1 + $0x40] sm:$0xff]  ;;  %v88_v58 = vld [vmem:[%s3493_s1 + $0xd0] sm:$0xff] }
  0x34   :  { %2080 = vmatprep.subr.bf16.mxu0 %v2079_v39  ;;  %v71_v54 = vld [vmem:[%s3493_s1 + $0x48] sm:$0xff]  ;;  %v102_v55 = vld [vmem:[%s3493_s1 + $0x140] sm:$0xff]  ;;  %v2115_v56 = vpack.c.bf16 %v119_v50, %v118_v49  ;;  %v89_v59 = vld [vmem:[%s3493_s1 + $0xd8] sm:$0xff] }
  0x35   :  { %2110 = vmatpush3.bf16.msra.mxu1 %v2109_v38  ;;  %v103_v57 = vld [vmem:[%s3493_s1 + $0x148] sm:$0xff]  ;;  %v120_v60 = vld [vmem:[%s3493_s1 + $0x1d0] sm:$0xff]  ;;  %v121_v61 = vld [vmem:[%s3493_s1 + $0x1d8] sm:$0xff]  ;;  %v2085_v62 = vpack.c.bf16 %v71_v54, %v70_v53  ;;  %v2087_v0 = vpack.c.bf16 %v89_v59, %v88_v58 }
  0x36   :  { %2112 = vmatprep.subr.bf16.mxu1 %v2111_v43  ;;  %v2117_v63 = vpack.c.bf16 %v103_v57, %v102_v55  ;;  %v72_v1 = vld [vmem:[%s3493_s1 + $0x50] sm:$0xff]  ;;  %v73_v2 = vld [vmem:[%s3493_s1 + $0x58] sm:$0xff]  ;;  %v2119_v4 = vpack.c.bf16 %v121_v61, %v120_v60  ;;  %v90_v6 = vld [vmem:[%s3493_s1 + $0xe0] sm:$0xff] }
  0x37   :  { %2082 = vmatpush3.bf16.msra.mxu0 %v2081_v48  ;;  %v104_v3 = vld [vmem:[%s3493_s1 + $0x150] sm:$0xff]  ;;  %v105_v5 = vld [vmem:[%s3493_s1 + $0x158] sm:$0xff]  ;;  %v91_v7 = vld [vmem:[%s3493_s1 + $0xe8] sm:$0xff]  ;;  %v2089_v10 = vpack.c.bf16 %v73_v2, %v72_v1 }
  0x38   :  { %2084 = vmatprep.subr.bf16.mxu0 %v2083_v52  ;;  %v122_v8 = vld [vmem:[%s3493_s1 + $0x1e0] sm:$0xff]  ;;  %v123_v9 = vld [vmem:[%s3493_s1 + $0x1e8] sm:$0xff]  ;;  %vm2717_vm1 = vmneg %vm346_vm0  ;;  %v2121_v13 = vpack.c.bf16 %v105_v5, %v104_v3  ;;  %v2091_v14 = vpack.c.bf16 %v91_v7, %v90_v6 }
  0x39   :  { %2114 = vmatpush3.bf16.msra.mxu1 %v2113_v51  ;;  %v74_v11 = vld [vmem:[%s3493_s1 + $0x60] sm:$0xff]  ;;  %v75_v15 = vld [vmem:[%s3493_s1 + $0x68] sm:$0xff]  ;;  %v2123_v18 = vpack.c.bf16 %v123_v9, %v122_v8  ;;  %v92_v20 = vld [vmem:[%s3493_s1 + $0xf0] sm:$0xff] }
  0x3a   :  { %2116 = vmatprep.subr.bf16.mxu1 %v2115_v56  ;;  %v106_v16 = vld [vmem:[%s3493_s1 + $0x160] sm:$0xff]  ;;  %v107_v19 = vld [vmem:[%s3493_s1 + $0x168] sm:$0xff]  ;;  %v93_v21 = vld [vmem:[%s3493_s1 + $0xf8] sm:$0xff]  ;;  %v2093_v25 = vpack.c.bf16 %v75_v15, %v74_v11 }
  0x3b   :  { %2086 = vmatpush3.bf16.msra.mxu0 %v2085_v62  ;;  %v54_v17 = vld [vmem:[%s3492_s0] sm:$0xff]  ;;  %v124_v23 = vld [vmem:[%s3493_s1 + $0x1f0] sm:$0xff]  ;;  %v125_v24 = vld [vmem:[%s3493_s1 + $0x1f8] sm:$0xff]  ;;  %v2125_v27 = vpack.c.bf16 %v107_v19, %v106_v16  ;;  %v2095_v28 = vpack.c.bf16 %v93_v21, %v92_v20 }
  0x3c   :  { %2088 = vmatprep.subr.bf16.mxu0 %v2087_v0  ;;  %v347_v22 = vrot.slane %v54_v17, 7  ;;  %526 = vmatprep.mubr.f32.mxu1 %v54_v17  ;;  %v76_v26 = vld [vmem:[%s3493_s1 + $0x70] sm:$0xff]  ;;  %v77_v29 = vld [vmem:[%s3493_s1 + $0x78] sm:$0xff]  ;;  %v2127_v32 = vpack.c.bf16 %v125_v24, %v124_v23  ;;  %v143_v34 = vld [vmem:[%s3495_s3 + $0x80] sm:$0xff] }
  0x3d   :  { %2118 = vmatpush3.bf16.msra.mxu1 %v2117_v63  ;;  %v108_v30 = vld [vmem:[%s3493_s1 + $0x170] sm:$0xff]  ;;  %v109_v31 = vld [vmem:[%s3493_s1 + $0x178] sm:$0xff]  ;;  %v144_v35 = vld [vmem:[%s3495_s3 + $0x88] sm:$0xff]  ;;  %v2097_v38 = vpack.c.bf16 %v77_v29, %v76_v26 }
  0x3e   :  { %2120 = vmatprep.subr.bf16.mxu1 %v2119_v4  ;;  %1462 = vmatprep.mubr.msk.f32.mxu0 %vm2717_vm1, %v347_v22  ;;  %v56_v33 = vld [vmem:[%s3492_s0 + $0x10] sm:$0xff]  ;;  %v159_v36 = vld [vmem:[%s3495_s3 + $0x100] sm:$0xff]  ;;  %v160_v37 = vld [vmem:[%s3495_s3 + $0x108] sm:$0xff]  ;;  %v2129_v40 = vpack.c.bf16 %v109_v31, %v108_v30  ;;  %v2131_v43 = vpack.c.bf16 %v144_v35, %v143_v34 }
  0x3f   :  { %2090 = vmatpush3.bf16.msra.mxu0 %v2089_v10  ;;  %v55_v39 = vld [vmem:[%s3492_s0 + $0x8] sm:$0xff]  ;;  %v348_v41 = vrot.slane %v56_v33, 7  ;;  %v57_v42 = vld [vmem:[%s3492_s0 + $0x18] sm:$0xff]  ;;  %v127_v44 = vld [vmem:[%s3495_s3] sm:$0xff]  ;;  %v2163_v46 = vpack.c.bf16 %v160_v37, %v159_v36 }
  0x40   :  { %2092 = vmatprep.subr.bf16.mxu0 %v2091_v14  ;;  %v128_v45 = vld [vmem:[%s3495_s3 + $0x8] sm:$0xff]  ;;  %v330_v47 = vrot.slane %v55_v39, 6  ;;  %v145_v48 = vld [vmem:[%s3495_s3 + $0x90] sm:$0xff]  ;;  %v146_v49 = vld [vmem:[%s3495_s3 + $0x98] sm:$0xff]  ;;  %v359_v51 = vrot.slane %v55_v39, 7  ;;  %v331_v52 = vrot.slane %v57_v42, 6 }
  0x41   :  { %2122 = vmatpush3.bf16.msra.mxu1 %v2121_v13  ;;  %vm2793_vm3 = vmneg %vm329_vm2  ;;  %v161_v53 = vld [vmem:[%s3495_s3 + $0x110] sm:$0xff]  ;;  %v162_v54 = vld [vmem:[%s3495_s3 + $0x118] sm:$0xff]  ;;  %v349_v55 = vsel %vm346_vm0, %v347_v22, %v348_v41  ;;  %v360_v56 = vrot.slane %v57_v42, 7  ;;  %v2133_v58 = vpack.c.bf16 %v128_v45, %v127_v44  ;;  %v2135_v60 = vpack.c.bf16 %v146_v49, %v145_v48 }
  0x42   :  { %2124 = vmatprep.subr.bf16.mxu1 %v2123_v18  ;;  %v58_v57 = vld [vmem:[%s3492_s0 + $0x20] sm:$0xff]  ;;  %v60_v59 = vld [vmem:[%s3492_s0 + $0x30] sm:$0xff]  ;;  %v130_v62 = vld [vmem:[%s3495_s3 + $0x18] sm:$0xff]  ;;  %v2167_v63 = vpack.c.bf16 %v162_v54, %v161_v53  ;;  %v332_v2 = vsel %vm329_vm2, %v330_v47, %v331_v52 }
  0x43   :  { %2094 = vmatpush3.bf16.msra.mxu0 %v2093_v25  ;;  %v129_v61 = vld [vmem:[%s3495_s3 + $0x10] sm:$0xff]  ;;  %v147_v0 = vld [vmem:[%s3495_s3 + $0xa0] sm:$0xff]  ;;  %v148_v1 = vld [vmem:[%s3495_s3 + $0xa8] sm:$0xff]  ;;  %v350_v3 = vrot.slane %v58_v57, 7  ;;  %v361_v7 = vsel %vm346_vm0, %v359_v51, %v360_v56  ;;  %v351_v8 = vrot.slane %v60_v59, 7 }
  0x44   :  { %2096 = vmatprep.subr.bf16.mxu0 %v2095_v28  ;;  %v59_v4 = vld [vmem:[%s3492_s0 + $0x28] sm:$0xff]  ;;  %v163_v5 = vld [vmem:[%s3495_s3 + $0x120] sm:$0xff]  ;;  %v61_v9 = vld [vmem:[%s3492_s0 + $0x38] sm:$0xff]  ;;  %v2137_v10 = vpack.c.bf16 %v130_v62, %v129_v61  ;;  %v2139_v11 = vpack.c.bf16 %v148_v1, %v147_v0 }
  0x45   :  { %2126 = vmatpush3.bf16.msra.mxu1 %v2125_v27  ;;  %v164_v6 = vld [vmem:[%s3495_s3 + $0x128] sm:$0xff]  ;;  %v131_v13 = vld [vmem:[%s3495_s3 + $0x20] sm:$0xff]  ;;  %v333_v15 = vrot.slane %v59_v4, 6  ;;  %v149_v17 = vld [vmem:[%s3495_s3 + $0xb0] sm:$0xff]  ;;  %v362_v19 = vrot.slane %v59_v4, 7  ;;  %v334_v20 = vrot.slane %v61_v9, 6  ;;  %v352_v23 = vsel %vm346_vm0, %v350_v3, %v351_v8 }
  0x46   :  { %2128 = vmatprep.subr.bf16.mxu1 %v2127_v32  ;;  %v132_v14 = vld [vmem:[%s3495_s3 + $0x28] sm:$0xff]  ;;  %v2171_v16 = vpack.c.bf16 %v164_v6, %v163_v5  ;;  %v150_v18 = vld [vmem:[%s3495_s3 + $0xb8] sm:$0xff]  ;;  %v165_v21 = vld [vmem:[%s3495_s3 + $0x130] sm:$0xff]  ;;  %v363_v24 = vrot.slane %v61_v9, 7 }
  0x47   :  { %2098 = vmatpush3.bf16.msra.mxu0 %v2097_v38  ;;  %v166_v22 = vld [vmem:[%s3495_s3 + $0x138] sm:$0xff]  ;;  %v2141_v25 = vpack.c.bf16 %v132_v14, %v131_v13  ;;  %v2143_v26 = vpack.c.bf16 %v150_v18, %v149_v17  ;;  %v133_v27 = vld [vmem:[%s3495_s3 + $0x30] sm:$0xff]  ;;  %v151_v30 = vld [vmem:[%s3495_s3 + $0xc0] sm:$0xff]  ;;  %v335_v32 = vsel %vm329_vm2, %v333_v15, %v334_v20 }
  0x48   :  { %2132 = vmatprep.subr.bf16.mxu0 %v2131_v43  ;;  %v134_v28 = vld [vmem:[%s3495_s3 + $0x38] sm:$0xff]  ;;  %v2175_v29 = vpack.c.bf16 %v166_v22, %v165_v21  ;;  %v152_v31 = vld [vmem:[%s3495_s3 + $0xc8] sm:$0xff]  ;;  %v364_v35 = vsel %vm346_vm0, %v362_v19, %v363_v24  ;;  %v135_v38 = vld [vmem:[%s3495_s3 + $0x40] sm:$0xff] }
  0x49   :  { %2130 = vmatpush3.bf16.msra.mxu1 %v2129_v40  ;;  %v168_v34 = vld [vmem:[%s3495_s3 + $0x148] sm:$0xff]  ;;  %v2145_v36 = vpack.c.bf16 %v134_v28, %v133_v27  ;;  %v2147_v37 = vpack.c.bf16 %v152_v31, %v151_v30  ;;  %v153_v42 = vld [vmem:[%s3495_s3 + $0xd0] sm:$0xff]  ;;  %v154_v43 = vld [vmem:[%s3495_s3 + $0xd8] sm:$0xff] }
  0x4a   :  { %2164 = vmatprep.subr.bf16.mxu1 %v2163_v46  ;;  %1464 = vmatmul.mubr.msk.f32.vlgmr.msra.gmra.mrb[0].mxu0 %vm2793_vm3, %v330_v47  ;;  %v136_v39 = vld [vmem:[%s3495_s3 + $0x48] sm:$0xff]  ;;  %v2151_v44 = vpack.c.bf16 %v154_v43, %v153_v42  ;;  %v137_v45 = vld [vmem:[%s3495_s3 + $0x50] sm:$0xff]  ;;  %v170_v49 = vld [vmem:[%s3495_s3 + $0x158] sm:$0xff] }
  0x4b   :  { %446 = vmatprep.mubr.f32.mxu0 %v349_v55  ;;  %2134 = vmatpush3.bf16.msra.mxu0 %v2133_v58  ;;  %v2149_v41 = vpack.c.bf16 %v136_v39, %v135_v38  ;;  %v169_v47 = vld [vmem:[%s3495_s3 + $0x150] sm:$0xff]  ;;  %v155_v52 = vld [vmem:[%s3495_s3 + $0xe0] sm:$0xff]  ;;  %v156_v53 = vld [vmem:[%s3495_s3 + $0xe8] sm:$0xff] }
  0x4c   :  { %1470 = vmatmul.mubr.msk.f32.vlgmr.msra.gmra.mrb[0].mxu1 %vm2717_vm1, %v359_v51  ;;  %2136 = vmatprep.subr.bf16.mxu0 %v2135_v60  ;;  %v2183_v51 = vpack.c.bf16 %v170_v49, %v169_v47  ;;  %v2155_v54 = vpack.c.bf16 %v156_v53, %v155_v52  ;;  %v139_v55 = vld [vmem:[%s3495_s3 + $0x60] sm:$0xff]  ;;  %v140_v56 = vld [vmem:[%s3495_s3 + $0x68] sm:$0xff]  ;;  %v157_v61 = vld [vmem:[%s3495_s3 + $0xf0] sm:$0xff] }
  0x4d   :  { %531 = vmatprep.mubr.f32.mxu1 %v56_v33  ;;  %2166 = vmatpush3.bf16.msra.mxu1 %v2163_v46  ;;  %v167_v33 = vld [vmem:[%s3495_s3 + $0x140] sm:$0xff]  ;;  %v138_v46 = vld [vmem:[%s3495_s3 + $0x58] sm:$0xff]  ;;  %v2157_v58 = vpack.c.bf16 %v140_v56, %v139_v55  ;;  %v141_v0 = vld [vmem:[%s3495_s3 + $0x70] sm:$0xff] }
  0x4e   :  { %447 = vmatmul.mubr.f32.gmra.mrb[2].mxu0 %v332_v2  ;;  %2168 = vmatprep.subr.bf16.mxu1 %v2167_v63  ;;  %v2179_v40 = vpack.c.bf16 %v168_v34, %v167_v33  ;;  %v2153_v48 = vpack.c.bf16 %v138_v46, %v137_v45  ;;  %v158_v62 = vld [vmem:[%s3495_s3 + $0xf8] sm:$0xff]  ;;  %v173_v2 = vld [vmem:[%s3495_s3 + $0x170] sm:$0xff]  ;;  %v274_v6 = vld [vmem:[%s3497_s5] sm:$0xff] }
  0x4f   :  { %1466 = vmatprep.mubr.msk.f32.mxu0 %vm2717_vm1, %v350_v3  ;;  %2138 = vmatpush3.bf16.msra.mxu0 %v2137_v10  ;;  %v142_v1 = vld [vmem:[%s3495_s3 + $0x78] sm:$0xff]  ;;  %v1460_v10 = vld [vmem:[%s3494_s2] ss:$0 sm:$0xff]  ;;  %v276_v28 = vld [vmem:[%s3497_s5 + $0x10] sm:$0xff] }
  0x50   :  { %532 = vmatmul.mubr.f32.gmra.mrb[2].mxu1 %v361_v7  ;;  %2140 = vmatprep.subr.bf16.mxu0 %v2139_v11  ;;  %v2161_v3 = vpack.c.bf16 %v142_v1, %v141_v0  ;;  %v174_v4 = vld [vmem:[%s3495_s3 + $0x178] sm:$0xff]  ;;  %v275_v7 = vld [vmem:[%s3497_s5 + $0x8] sm:$0xff]  ;;  %v278_v42 = vld [vmem:[%s3497_s5 + $0x20] sm:$0xff] }
  0x51   :  { %536 = vmatprep.mubr.f32.mxu1 %v58_v57  ;;  %2170 = vmatpush3.bf16.msra.mxu1 %v2167_v63  ;;  %v171_v57 = vld [vmem:[%s3495_s3 + $0x160] sm:$0xff]  ;;  %v2159_v63 = vpack.c.bf16 %v158_v62, %v157_v61  ;;  %v2191_v5 = vpack.c.bf16 %v174_v4, %v173_v2  ;;  %v2195_v8 = vpack.c.bf16 %v275_v7, %v274_v6  ;;  %v279_v43 = vld [vmem:[%s3497_s5 + $0x28] sm:$0xff]  ;;  %v284_v50 = vld [vmem:[%s3497_s5 + $0x50] sm:$0xff] }
  0x52   :  { %1468 = vmatmul.mubr.msk.f32.gmra.mrb[4].mxu0 %vm2793_vm3, %v333_v15  ;;  %2172 = vmatprep.subr.bf16.mxu1 %v2171_v16  ;;  %v2203_v53 = vpack.c.bf16 %v279_v43, %v278_v42  ;;  %v282_v1 = vld [vmem:[%s3497_s5 + $0x40] sm:$0xff]  ;;  %v283_v2 = vld [vmem:[%s3497_s5 + $0x48] sm:$0xff]  ;;  %v181_v43 = vld [vmem:[%s3495_s3 + $0x1b0] sm:$0xff] }
  0x53   :  { %456 = vmatprep.mubr.f32.mxu0 %v352_v23  ;;  %2142 = vmatpush3.bf16.msra.mxu0 %v2141_v25  ;;  %v2211_v7 = vpack.c.bf16 %v283_v2, %v282_v1  ;;  %vm3189_vm6 = vmneg %vm875_vm4 }
  0x54   :  { %1472 = vmatmul.mubr.msk.f32.gmra.mrb[4].mxu1 %vm2717_vm1, %v362_v19  ;;  %2144 = vmatprep.subr.bf16.mxu0 %v2143_v26  ;;  %vm3194_vm7 = vmneg %vm862_vm5 }
  0x55   :  { %541 = vmatprep.mubr.f32.mxu1 %v60_v59  ;;  %2174 = vmatpush3.bf16.msra.mxu1 %v2171_v16  ;;  %v172_v59 = vld [vmem:[%s3495_s3 + $0x168] sm:$0xff] }
  0x56   :  { %457 = vmatmul.mubr.f32.gmra.mrb[6].mxu0 %v335_v32  ;;  %2176 = vmatprep.subr.bf16.mxu1 %v2175_v29  ;;  %v2187_v60 = vpack.c.bf16 %v172_v59, %v171_v57  ;;  %v281_v59 = vld [vmem:[%s3497_s5 + $0x38] sm:$0xff] }
  0x57   :  { %2146 = vmatpush3.bf16.msra.mxu0 %v2145_v36 }
  0x58   :  { %542 = vmatmul.mubr.f32.gmra.mrb[6].mxu1 %v364_v35  ;;  %2148 = vmatprep.subr.bf16.mxu0 %v2147_v37 }
  0x59   :  { %2178 = vmatpush3.bf16.msra.mxu1 %v2175_v29  ;;  %v277_v29 = vld [vmem:[%s3497_s5 + $0x18] sm:$0xff] }
  0x5a   :  { %2180 = vmatprep.subr.bf16.mxu1 %v2179_v40  ;;  %v2199_v38 = vpack.c.bf16 %v277_v29, %v276_v28  ;;  %v194_v28 = vld [vmem:[%s3495_s3 + $0x218] sm:$0xff]  ;;  %v177_v29 = vld [vmem:[%s3495_s3 + $0x190] sm:$0xff] }
  0x5b   :  { %2150 = vmatpush3.bf16.msra.mxu0 %v2149_v41 }
  0x5c   :  { %2152 = vmatprep.subr.bf16.mxu0 %v2151_v44 }
  0x5d   :  { %2182 = vmatpush3.bf16.msra.mxu1 %v2179_v40 }
  0x5e   :  { %2184 = vmatprep.subr.bf16.mxu1 %v2183_v51 }
  0x5f   :  { %2154 = vmatpush3.bf16.msra.mxu0 %v2153_v48 }
  0x60   :  { %2156 = vmatprep.subr.bf16.mxu0 %v2155_v54 }
  0x61   :  { %2186 = vmatpush3.bf16.msra.mxu1 %v2183_v51 }
  0x62   :  { %2188 = vmatprep.subr.bf16.mxu1 %v2187_v60 }
  0x63   :  { %2158 = vmatpush3.bf16.msra.mxu0 %v2157_v58  ;;  %v280_v58 = vld [vmem:[%s3497_s5 + $0x30] sm:$0xff] }
  0x64   :  { %2160 = vmatprep.subr.bf16.mxu0 %v2159_v63  ;;  %v2207_v0 = vpack.c.bf16 %v281_v59, %v280_v58 }
  0x65   :  { %2190 = vmatpush3.bf16.msra.mxu1 %v2187_v60 }
  0x66   :  { %2192 = vmatprep.subr.bf16.mxu1 %v2191_v5 }
  0x67   :  { %2162 = vmatpush3.bf16.msra.mxu0 %v2161_v3 }
  0x68   :  { %2196 = vmatprep.subr.bf16.mxu0 %v2195_v8 }
  0x69   :  { %2194 = vmatpush3.bf16.msra.mxu1 %v2191_v5 }
 0x11d   :  { %v1531_v9 = vpop.f32.mrb[0].mxu0 }
 0x11e   :  { %v1532_v11 = vpop.f32.mrb[1].mxu0 }
 0x11f   :  { %v1575_v13 = vpop.f32.mrb[0].mxu1  ;;  %v1533_v14 = vadd.f32 %v1532_v11, %v1531_v9  ;;  %v287_v11 = vld [vmem:[%s3497_s5 + $0x68] sm:$0xff] }
 0x120   :  { %v1576_v15 = vpop.f32.mrb[1].mxu1 }
 0x121   :  { %v1577_v16 = vadd.f32 %v1576_v15, %v1575_v13  ;;  %v444_v17 = vadd.f32 %v1533_v14, %v1460_v10  ;;  %v1534_v18 = vpop.f32.mrb[2].mxu0  ;;  %v288_v14 = vld [vmem:[%s3497_s5 + $0x70] sm:$0xff]  ;;  %v289_v15 = vld [vmem:[%s3497_s5 + $0x78] sm:$0xff] }
 0x122   :  { %v1535_v19 = vpop.f32.mrb[3].mxu0 }
 0x123   :  { %v1578_v20 = vpop.f32.mrb[2].mxu1  ;;  %v2954_v21 = vadd.f32 %v1577_v16, %v444_v17  ;;  %v1536_v22 = vadd.f32 %v1535_v19, %v1534_v18  ;;  %v2223_v16 = vpack.c.bf16 %v289_v15, %v288_v14  ;;  %v207_v17 = vld [vmem:[%s3495_s3 + $0x280] sm:$0xff]  ;;  %v208_v18 = vld [vmem:[%s3495_s3 + $0x288] sm:$0xff] }
 0x124   :  { %v1579_v23 = vpop.f32.mrb[3].mxu1  ;;  %v191_v19 = vld [vmem:[%s3495_s3 + $0x200] sm:$0xff] }
 0x125   :  { %v1580_v24 = vadd.f32 %v1579_v23, %v1578_v20  ;;  %v449_v25 = vadd.f32 %v1536_v22, %v1460_v10  ;;  %v1537_v26 = vpop.f32.mrb[4].mxu0  ;;  %v547_v27 = vmax.f32 %v2954_v21, 0.0  ;;  %v3029_v20 = vpack.c.bf16 %v208_v18, %v207_v17  ;;  %v192_v22 = vld [vmem:[%s3495_s3 + $0x208] sm:$0xff]  ;;  %v175_v23 = vld [vmem:[%s3495_s3 + $0x180] sm:$0xff] }
 0x126   :  { %v1538_v30 = vpop.f32.mrb[5].mxu0 }
 0x127   :  { %v1581_v31 = vpop.f32.mrb[4].mxu1  ;;  %v2963_v32 = vadd.f32 %v1580_v24, %v449_v25  ;;  %v1539_v33 = vadd.f32 %v1538_v30, %v1537_v26  ;;  %v555_v35 = vrot.slane %v547_v27, 6  ;;  %1871 = vmatprep.mubr.f32.mxu1 %v547_v27  ;;  %v567_v36 = vrot.slane %v547_v27, 7  ;;  %v176_v24 = vld [vmem:[%s3495_s3 + $0x188] sm:$0xff]  ;;  %v193_v27 = vld [vmem:[%s3495_s3 + $0x210] sm:$0xff]  ;;  %v178_v30 = vld [vmem:[%s3495_s3 + $0x198] sm:$0xff] }
 0x128   :  { %v1582_v34 = vpop.f32.mrb[5].mxu1  ;;  %v2227_v25 = vpack.c.bf16 %v192_v22, %v191_v19  ;;  %v2229_v26 = vpack.c.bf16 %v176_v24, %v175_v23  ;;  %v211_v22 = vld [vmem:[%s3495_s3 + $0x2a0] sm:$0xff]  ;;  %v212_v23 = vld [vmem:[%s3495_s3 + $0x2a8] sm:$0xff] }
 0x129   :  { %v1583_v37 = vadd.f32 %v1582_v34, %v1581_v31  ;;  %v548_v39 = vmax.f32 %v2963_v32, 0.0  ;;  %v454_v40 = vadd.f32 %v1539_v33, %v1460_v10  ;;  %v1540_v41 = vpop.f32.mrb[6].mxu0  ;;  %1475 = vmatprep.mubr.msk.f32.mxu0 %vm2717_vm1, %v567_v36  ;;  %v2231_v31 = vpack.c.bf16 %v194_v28, %v193_v27  ;;  %v195_v33 = vld [vmem:[%s3495_s3 + $0x220] sm:$0xff] }
 0x12a   :  { %v1541_v44 = vpop.f32.mrb[7].mxu0  ;;  %1477 = vmatmul.mubr.msk.f32.vlgmr.msra.gmra.mrb[8].mxu0 %vm2793_vm3, %v555_v35  ;;  %2228 = vmatprep.subr.bf16.mxu1 %v2227_v25  ;;  %v2233_v34 = vpack.c.bf16 %v178_v30, %v177_v29  ;;  %v2267_v28 = vpack.c.bf16 %v212_v23, %v211_v22  ;;  %v213_v29 = vld [vmem:[%s3495_s3 + $0x2b0] sm:$0xff]  ;;  %v214_v30 = vld [vmem:[%s3495_s3 + $0x2b8] sm:$0xff] }
 0x12b   :  { %v1584_v45 = vpop.f32.mrb[6].mxu1  ;;  %v2976_v46 = vadd.f32 %v1583_v37, %v454_v40  ;;  %v1542_v47 = vadd.f32 %v1541_v44, %v1540_v41  ;;  %1872 = vmatmul.mubr.f32.vlgmr.msra.gmra.mrb[8].mxu1 %v548_v39  ;;  %v568_v49 = vrot.slane %v548_v39, 7  ;;  %v556_v51 = vrot.slane %v548_v39, 6  ;;  %2198 = vmatpush3.bf16.msra.mxu0 %v2195_v8  ;;  %v285_v8 = vld [vmem:[%s3497_s5 + $0x58] sm:$0xff]  ;;  %v179_v37 = vld [vmem:[%s3495_s3 + $0x1a0] sm:$0xff]  ;;  %v197_v39 = vld [vmem:[%s3495_s3 + $0x230] sm:$0xff] }
 0x12c   :  { %v1585_v48 = vpop.f32.mrb[7].mxu1  ;;  %2200 = vmatprep.subr.bf16.mxu0 %v2199_v38  ;;  %v2215_v9 = vpack.c.bf16 %v285_v8, %v284_v50  ;;  %2230 = vmatpush3.bf16.msra.mxu1 %v2229_v26  ;;  %v198_v40 = vld [vmem:[%s3495_s3 + $0x238] sm:$0xff] }
 0x12d   :  { %v1586_v52 = vadd.f32 %v1585_v48, %v1584_v45  ;;  %v459_v54 = vadd.f32 %v1542_v47, %v1460_v10  ;;  %v569_v55 = vsel %vm346_vm0, %v567_v36, %v568_v49  ;;  %v557_v56 = vsel %vm329_vm2, %v555_v35, %v556_v51  ;;  %v286_v10 = vld [vmem:[%s3497_s5 + $0x60] sm:$0xff]  ;;  %v196_v35 = vld [vmem:[%s3495_s3 + $0x228] sm:$0xff]  ;;  %2232 = vmatprep.subr.bf16.mxu1 %v2231_v31  ;;  %v182_v44 = vld [vmem:[%s3495_s3 + $0x1b8] sm:$0xff] }
 0x12e   :  { %v549_v57 = vmax.f32 %v2976_v46, 0.0  ;;  %654 = vmatprep.mubr.f32.mxu0 %v569_v55  ;;  %v2219_v13 = vpack.c.bf16 %v287_v11, %v286_v10  ;;  %v2235_v36 = vpack.c.bf16 %v196_v35, %v195_v33  ;;  %v2239_v42 = vpack.c.bf16 %v198_v40, %v197_v39  ;;  %v199_v45 = vld [vmem:[%s3495_s3 + $0x240] sm:$0xff]  ;;  %v200_v47 = vld [vmem:[%s3495_s3 + $0x248] sm:$0xff]  ;;  %v209_v10 = vld [vmem:[%s3495_s3 + $0x290] sm:$0xff] }
 0x12f   :  { %v2987_v60 = vadd.f32 %v1586_v52, %v459_v54  ;;  %655 = vmatmul.mubr.f32.gmra.mrb[10].mxu0 %v557_v56  ;;  %v2241_v48 = vpack.c.bf16 %v182_v44, %v181_v43  ;;  %v2243_v49 = vpack.c.bf16 %v200_v47, %v199_v45  ;;  %v183_v51 = vld [vmem:[%s3495_s3 + $0x1c0] sm:$0xff]  ;;  %v184_v52 = vld [vmem:[%s3495_s3 + $0x1c8] sm:$0xff]  ;;  %v202_v54 = vld [vmem:[%s3495_s3 + $0x258] sm:$0xff] }
 0x130   :  { %1874 = vmatprep.mubr.f32.mxu1 %v549_v57  ;;  %v570_v61 = vrot.slane %v549_v57, 7  ;;  %2202 = vmatpush3.bf16.msra.mxu0 %v2199_v38  ;;  %v558_v62 = vrot.slane %v549_v57, 6  ;;  %v180_v38 = vld [vmem:[%s3495_s3 + $0x1a8] sm:$0xff]  ;;  %v2245_v55 = vpack.c.bf16 %v184_v52, %v183_v51  ;;  %v210_v11 = vld [vmem:[%s3495_s3 + $0x298] sm:$0xff]  ;;  %v185_v40 = vld [vmem:[%s3495_s3 + $0x1d0] sm:$0xff] }
 0x131   :  { %v550_v63 = vmax.f32 %v2987_v60, 0.0  ;;  %2204 = vmatprep.subr.bf16.mxu0 %v2203_v53  ;;  %2234 = vmatpush3.bf16.msra.mxu1 %v2233_v34  ;;  %v2237_v41 = vpack.c.bf16 %v180_v38, %v179_v37  ;;  %v2263_v18 = vpack.c.bf16 %v210_v11, %v209_v10  ;;  %v2271_v34 = vpack.c.bf16 %v214_v30, %v213_v29  ;;  %v216_v35 = vld [vmem:[%s3495_s3 + $0x2c8] sm:$0xff]  ;;  %v217_v37 = vld [vmem:[%s3495_s3 + $0x2d0] sm:$0xff]  ;;  %v218_v38 = vld [vmem:[%s3495_s3 + $0x2d8] sm:$0xff] }
 0x132   :  { %1479 = vmatprep.mubr.msk.f32.mxu0 %vm2717_vm1, %v570_v61  ;;  %2236 = vmatprep.subr.bf16.mxu1 %v2235_v36  ;;  %v2279_v39 = vpack.c.bf16 %v218_v38, %v217_v37  ;;  %v219_v43 = vld [vmem:[%s3495_s3 + $0x2e0] sm:$0xff]  ;;  %v220_v44 = vld [vmem:[%s3495_s3 + $0x2e8] sm:$0xff]  ;;  %v292_v11 = vld [vmem:[%s3497_s5 + $0x90] sm:$0xff] }
 0x133   :  { %1481 = vmatmul.mubr.msk.f32.gmra.mrb[12].mxu0 %vm2793_vm3, %v558_v62  ;;  %1875 = vmatmul.mubr.f32.gmra.mrb[10].mxu1 %v550_v63  ;;  %v571_v3 = vrot.slane %v550_v63, 7  ;;  %v559_v4 = vrot.slane %v550_v63, 6  ;;  %v2283_v45 = vpack.c.bf16 %v220_v44, %v219_v43  ;;  %v203_v47 = vld [vmem:[%s3495_s3 + $0x260] sm:$0xff]  ;;  %v188_v52 = vld [vmem:[%s3495_s3 + $0x1e8] sm:$0xff]  ;;  %v300_v44 = vld [vmem:[%s3497_s5 + $0xd0] sm:$0xff] }
 0x134   :  { %2206 = vmatpush3.bf16.msra.mxu0 %v2203_v53  ;;  %v201_v53 = vld [vmem:[%s3495_s3 + $0x250] sm:$0xff]  ;;  %v187_v51 = vld [vmem:[%s3495_s3 + $0x1e0] sm:$0xff] }
 0x135   :  { %v572_v5 = vsel %vm346_vm0, %v570_v61, %v571_v3  ;;  %v560_v6 = vsel %vm329_vm2, %v558_v62, %v559_v4  ;;  %2208 = vmatprep.subr.bf16.mxu0 %v2207_v0  ;;  %2238 = vmatpush3.bf16.msra.mxu1 %v2237_v41  ;;  %v2247_v56 = vpack.c.bf16 %v202_v54, %v201_v53  ;;  %v1473_v61 = vld [vmem:[#allocation2] ss:$0 sm:$0xff]  ;;  %v186_v41 = vld [vmem:[%s3495_s3 + $0x1d8] sm:$0xff]  ;;  %v221_v54 = vld [vmem:[%s3495_s3 + $0x2f0] sm:$0xff] }
 0x136   :  { %664 = vmatprep.mubr.f32.mxu0 %v572_v5  ;;  %2240 = vmatprep.subr.bf16.mxu1 %v2239_v42  ;;  %v2249_v42 = vpack.c.bf16 %v186_v41, %v185_v40  ;;  %v2253_v53 = vpack.c.bf16 %v188_v52, %v187_v51  ;;  %v298_v41 = vld [vmem:[%s3497_s5 + $0xc0] sm:$0xff]  ;;  %v304_v52 = vld [vmem:[%s3497_s5 + $0xf0] sm:$0xff] }
 0x137   :  { %665 = vmatmul.mubr.f32.gmra.mrb[14].mxu0 %v560_v6 }
 0x138   :  { %2210 = vmatpush3.bf16.msra.mxu0 %v2207_v0 }
 0x139   :  { %2212 = vmatprep.subr.bf16.mxu0 %v2211_v7  ;;  %2242 = vmatpush3.bf16.msra.mxu1 %v2241_v48  ;;  %v204_v48 = vld [vmem:[%s3495_s3 + $0x268] sm:$0xff] }
 0x13a   :  { %2244 = vmatprep.subr.bf16.mxu1 %v2243_v49  ;;  %v2251_v49 = vpack.c.bf16 %v204_v48, %v203_v47  ;;  %v302_v48 = vld [vmem:[%s3497_s5 + $0xe0] sm:$0xff] }
 0x13c   :  { %2214 = vmatpush3.bf16.msra.mxu0 %v2211_v7 }
 0x13d   :  { %2216 = vmatprep.subr.bf16.mxu0 %v2215_v9  ;;  %2246 = vmatpush3.bf16.msra.mxu1 %v2245_v55  ;;  %v222_v55 = vld [vmem:[%s3495_s3 + $0x2f8] sm:$0xff] }
 0x13e   :  { %2248 = vmatprep.subr.bf16.mxu1 %v2247_v56  ;;  %v2287_v56 = vpack.c.bf16 %v222_v55, %v221_v54  ;;  %v239_v55 = vld [vmem:[%s3495_s3 + $0x380] sm:$0xff] }
 0x140   :  { %2218 = vmatpush3.bf16.msra.mxu0 %v2215_v9 }
 0x141   :  { %2220 = vmatprep.subr.bf16.mxu0 %v2219_v13  ;;  %2250 = vmatpush3.bf16.msra.mxu1 %v2249_v42  ;;  %v299_v42 = vld [vmem:[%s3497_s5 + $0xc8] sm:$0xff] }
 0x142   :  { %2252 = vmatprep.subr.bf16.mxu1 %v2251_v49  ;;  %v2307_v43 = vpack.c.bf16 %v299_v42, %v298_v41  ;;  %v303_v49 = vld [vmem:[%s3497_s5 + $0xe8] sm:$0xff]  ;;  %v1483_v42 = vld [vmem:[#allocation2 + $0x1] ss:$0 sm:$0xff] }
 0x143   :  { %v2315_v51 = vpack.c.bf16 %v303_v49, %v302_v48 }
 0x144   :  { %2222 = vmatpush3.bf16.msra.mxu0 %v2219_v13 }
 0x145   :  { %2224 = vmatprep.subr.bf16.mxu0 %v2223_v16  ;;  %2254 = vmatpush3.bf16.msra.mxu1 %v2253_v53  ;;  %v305_v53 = vld [vmem:[%s3497_s5 + $0xf8] sm:$0xff] }
 0x146   :  { %v2319_v54 = vpack.c.bf16 %v305_v53, %v304_v52 }
 0x148   :  { %2226 = vmatpush3.bf16.msra.mxu0 %v2223_v16 }
 0x149   :  { %2260 = vmatprep.subr.bf16.mxu0 %v3029_v20 }
 0x1fd   :  { %v1619_v57 = vpop.f32.mrb[8].mxu0 }
 0x1fe   :  { %v1620_v58 = vpop.f32.mrb[9].mxu0  ;;  %v1873_v59 = vpop.f32.mrb[8].mxu1 }
 0x1ff   :  { %v1621_v62 = vadd.f32 %v1620_v58, %v1619_v57  ;;  %v736_v63 = vpop.f32.mrb[9].mxu1  ;;  %v205_v57 = vld [vmem:[%s3495_s3 + $0x270] sm:$0xff]  ;;  %v206_v58 = vld [vmem:[%s3495_s3 + $0x278] sm:$0xff] }
 0x201   :  { %v652_v0 = vadd.f32 %v1621_v62, %v1473_v61  ;;  %v190_v62 = vld [vmem:[%s3495_s3 + $0x1f8] sm:$0xff] }
 0x202   :  { %v1622_v1 = vpop.f32.mrb[10].mxu0 }
 0x203   :  { %v737_v2 = vadd.f32 %v736_v63, %v652_v0  ;;  %v1623_v3 = vpop.f32.mrb[11].mxu0  ;;  %v290_v0 = vld [vmem:[%s3497_s5 + $0x80] sm:$0xff] }
 0x204   :  { %v1624_v4 = vadd.f32 %v1623_v3, %v1622_v1  ;;  %v291_v1 = vld [vmem:[%s3497_s5 + $0x88] sm:$0xff]  ;;  %v1482_v3 = vld [vmem:[#allocation4] ss:$0 sm:$0xff] }
 0x205   :  { %v755_v5 = vmax.f32 %v737_v2, 0.0  ;;  %v2291_v2 = vpack.c.bf16 %v291_v1, %v290_v0  ;;  %v255_v1 = vld [vmem:[%s3495_s3 + $0x400] sm:$0xff] }
 0x206   :  { %v657_v6 = vadd.f32 %v1624_v4, %v1473_v61  ;;  %v1625_v7 = vpop.f32.mrb[12].mxu0  ;;  %v1876_v50 = vpop.f32.mrb[10].mxu1 }
 0x207   :  { %v1626_v8 = vpop.f32.mrb[13].mxu0  ;;  %v746_v9 = vpop.f32.mrb[11].mxu1  ;;  %1909 = vmatprep.mubr.f32.mxu0 %v755_v5 }
 0x208   :  { %v742_v13 = vadd.f32 %v1873_v59, %v657_v6  ;;  %v1627_v14 = vadd.f32 %v1626_v8, %v1625_v7  ;;  %v2255_v59 = vpack.c.bf16 %v206_v58, %v205_v57  ;;  %v223_v57 = vld [vmem:[%s3495_s3 + $0x300] sm:$0xff] }
 0x20a   :  { %v756_v15 = vmax.f32 %v742_v13, 0.0  ;;  %v662_v16 = vadd.f32 %v1627_v14, %v1473_v61  ;;  %v1628_v17 = vpop.f32.mrb[14].mxu0  ;;  %2256 = vmatprep.subr.bf16.mxu1 %v2255_v59  ;;  %v293_v13 = vld [vmem:[%s3497_s5 + $0x98] sm:$0xff]  ;;  %v224_v59 = vld [vmem:[%s3495_s3 + $0x308] sm:$0xff] }
 0x20b   :  { %v1629_v19 = vpop.f32.mrb[15].mxu0  ;;  %v2295_v22 = vpack.c.bf16 %v293_v13, %v292_v11  ;;  %v227_v11 = vld [vmem:[%s3495_s3 + $0x320] sm:$0xff]  ;;  %v228_v13 = vld [vmem:[%s3495_s3 + $0x328] sm:$0xff] }
 0x20c   :  { %v747_v24 = vadd.f32 %v746_v9, %v662_v16  ;;  %v1630_v25 = vadd.f32 %v1629_v19, %v1628_v17  ;;  %1910 = vmatmul.mubr.f32.vlgmr.msra.gmra.mrb[16].mxu0 %v756_v15  ;;  %v230_v17 = vld [vmem:[%s3495_s3 + $0x338] sm:$0xff] }
 0x20d   :  { %2262 = vmatpush3.bf16.msra.mxu0 %v3029_v20  ;;  %v215_v20 = vld [vmem:[%s3495_s3 + $0x2c0] sm:$0xff] }
 0x20e   :  { %v757_v26 = vmax.f32 %v747_v24, 0.0  ;;  %v667_v27 = vadd.f32 %v1630_v25, %v1473_v61  ;;  %2264 = vmatprep.subr.bf16.mxu0 %v2263_v18  ;;  %v2275_v36 = vpack.c.bf16 %v216_v35, %v215_v20  ;;  %v189_v61 = vld [vmem:[%s3495_s3 + $0x1f0] sm:$0xff]  ;;  %v297_v20 = vld [vmem:[%s3497_s5 + $0xb8] sm:$0xff] }
 0x20f   :  { %v2257_v63 = vpack.c.bf16 %v190_v62, %v189_v61  ;;  %v241_v61 = vld [vmem:[%s3495_s3 + $0x390] sm:$0xff]  ;;  %v242_v62 = vld [vmem:[%s3495_s3 + $0x398] sm:$0xff] }
 0x210   :  { %1912 = vmatprep.mubr.f32.mxu0 %v757_v26  ;;  %v752_v31 = vadd.f32 %v1876_v50, %v667_v27  ;;  %v294_v26 = vld [vmem:[%s3497_s5 + $0xa0] sm:$0xff]  ;;  %v295_v27 = vld [vmem:[%s3497_s5 + $0xa8] sm:$0xff]  ;;  %v2327_v0 = vpack.c.bf16 %v242_v62, %v241_v61 }
 0x211   :  { %2266 = vmatpush3.bf16.msra.mxu0 %v2263_v18  ;;  %2258 = vmatpush3.bf16.msra.mxu1 %v2257_v63  ;;  %v2325_v63 = vpack.c.bf16 %v224_v59, %v223_v57  ;;  %v258_v59 = vld [vmem:[%s3495_s3 + $0x418] sm:$0xff] }
 0x212   :  { %v758_v33 = vmax.f32 %v752_v31, 0.0  ;;  %2268 = vmatprep.subr.bf16.mxu0 %v2267_v28  ;;  %2292 = vmatprep.subr.bf16.mxu1 %v2291_v2  ;;  %v2299_v31 = vpack.c.bf16 %v295_v27, %v294_v26  ;;  %v249_v26 = vld [vmem:[%s3495_s3 + $0x3d0] sm:$0xff]  ;;  %v250_v27 = vld [vmem:[%s3495_s3 + $0x3d8] sm:$0xff] }
 0x214   :  { %1913 = vmatmul.mubr.f32.gmra.mrb[18].mxu0 %v758_v33 }
 0x215   :  { %2270 = vmatpush3.bf16.msra.mxu0 %v2267_v28 }
 0x216   :  { %2272 = vmatprep.subr.bf16.mxu0 %v2271_v34 }
 0x219   :  { %2274 = vmatpush3.bf16.msra.mxu0 %v2271_v34 }
 0x21a   :  { %2276 = vmatprep.subr.bf16.mxu0 %v2275_v36 }
 0x21d   :  { %2278 = vmatpush3.bf16.msra.mxu0 %v2275_v36 }
 0x21e   :  { %2280 = vmatprep.subr.bf16.mxu0 %v2279_v39 }
 0x221   :  { %2282 = vmatpush3.bf16.msra.mxu0 %v2279_v39 }
 0x222   :  { %2284 = vmatprep.subr.bf16.mxu0 %v2283_v45 }
 0x225   :  { %2286 = vmatpush3.bf16.msra.mxu0 %v2283_v45  ;;  %v301_v45 = vld [vmem:[%s3497_s5 + $0xd8] sm:$0xff] }
 0x226   :  { %2288 = vmatprep.subr.bf16.mxu0 %v2287_v56  ;;  %v2311_v47 = vpack.c.bf16 %v301_v45, %v300_v44 }
 0x229   :  { %2290 = vmatpush3.bf16.msra.mxu0 %v2287_v56  ;;  %v240_v56 = vld [vmem:[%s3495_s3 + $0x388] sm:$0xff] }
 0x22a   :  { %v2323_v58 = vpack.c.bf16 %v240_v56, %v239_v55 }
 0x22c   :  { %2324 = vmatprep.subr.bf16.mxu0 %v2323_v58  ;;  %v257_v58 = vld [vmem:[%s3495_s3 + $0x410] sm:$0xff] }
 0x2df   :  { %v1911_v4 = vpop.f32.mrb[16].mxu0 }
 0x2e0   :  { %v837_v5 = vadd.f32 %v1911_v4, %v1482_v3  ;;  %v831_v6 = vpop.f32.mrb[17].mxu0 }
 0x2e1   :  { %v832_v7 = vadd.f32 %v1482_v3, %v831_v6  ;;  %v243_v6 = vld [vmem:[%s3495_s3 + $0x3a0] sm:$0xff] }
 0x2e2   :  { %v3175_v50 = vadd.f32 %v837_v5, %v2963_v32  ;;  %v226_v5 = vld [vmem:[%s3495_s3 + $0x318] sm:$0xff]  ;;  %v245_v32 = vld [vmem:[%s3495_s3 + $0x3b0] sm:$0xff] }
 0x2e3   :  { %v3178_v8 = vadd.f32 %v832_v7, %v2954_v21  ;;  %v244_v7 = vld [vmem:[%s3495_s3 + $0x3a8] sm:$0xff] }
 0x2e4   :  { %v855_v9 = vmax.f32 %v3175_v50, 0.0 }
 0x2e5   :  { %v854_v10 = vmax.f32 %v3178_v8, 0.0 }
 0x2e6   :  { %v877_v21 = vrot.slane %v855_v9, 5  ;;  %v864_v25 = vrot.slane %v855_v9, 2 }
 0x2e7   :  { %v1914_v14 = vpop.f32.mrb[18].mxu0  ;;  %v863_v15 = vrot.slane %v854_v10, 2  ;;  %1947 = vmatprep.mubr.f32.mxu0 %v854_v10  ;;  %v876_v16 = vrot.slane %v854_v10, 5  ;;  %v2331_v10 = vpack.c.bf16 %v244_v7, %v243_v6  ;;  %v260_v6 = vld [vmem:[%s3495_s3 + $0x428] sm:$0xff] }
 0x2e8   :  { %v847_v18 = vadd.f32 %v1914_v14, %v1482_v3  ;;  %v841_v19 = vpop.f32.mrb[19].mxu0  ;;  %1948 = vmatmul.mubr.f32.vlgmr.msra.gmra.mrb[20].mxu0 %v855_v9  ;;  %v2333_v14 = vpack.c.bf16 %v228_v13, %v227_v11 }
 0x2e9   :  { %v842_v23 = vadd.f32 %v1482_v3, %v841_v19  ;;  %1485 = vmatprep.mubr.msk.f32.mxu1 %vm3189_vm6, %v876_v16  ;;  %v878_v24 = vsel %vm875_vm4, %v876_v16, %v877_v21  ;;  %v865_v33 = vsel %vm862_vm5, %v863_v15, %v864_v25  ;;  %v225_v3 = vld [vmem:[%s3495_s3 + $0x310] sm:$0xff]  ;;  %2326 = vmatpush3.bf16.msra.mxu0 %v2325_v63  ;;  %v246_v21 = vld [vmem:[%s3495_s3 + $0x3b8] sm:$0xff]  ;;  %v248_v19 = vld [vmem:[%s3495_s3 + $0x3c8] sm:$0xff] }
 0x2ea   :  { %v3208_v28 = vadd.f32 %v847_v18, %v2987_v60  ;;  %1487 = vmatmul.mubr.msk.f32.vlgmr.msra.gmra.mrb[12].mxu1 %vm3194_vm7, %v863_v15  ;;  %v296_v60 = vld [vmem:[%s3497_s5 + $0xb0] sm:$0xff]  ;;  %v2329_v9 = vpack.c.bf16 %v226_v5, %v225_v3  ;;  %2328 = vmatprep.subr.bf16.mxu0 %v2327_v0  ;;  %v2335_v15 = vpack.c.bf16 %v246_v21, %v245_v32  ;;  %v247_v18 = vld [vmem:[%s3495_s3 + $0x3c0] sm:$0xff]  ;;  %v232_v25 = vld [vmem:[%s3495_s3 + $0x348] sm:$0xff] }
 0x2eb   :  { %v3213_v29 = vadd.f32 %v842_v23, %v2976_v46  ;;  %963 = vmatprep.mubr.f32.mxu1 %v878_v24  ;;  %2294 = vmatpush3.bf16.msra.mxu1 %v2291_v2  ;;  %v2303_v37 = vpack.c.bf16 %v297_v20, %v296_v60  ;;  %v256_v2 = vld [vmem:[%s3495_s3 + $0x408] sm:$0xff]  ;;  %v229_v16 = vld [vmem:[%s3495_s3 + $0x330] sm:$0xff]  ;;  %v2339_v23 = vpack.c.bf16 %v248_v19, %v247_v18  ;;  %v231_v24 = vld [vmem:[%s3495_s3 + $0x340] sm:$0xff] }
 0x2ec   :  { %v857_v30 = vmax.f32 %v3208_v28, 0.0  ;;  %2296 = vmatprep.subr.bf16.mxu1 %v2295_v22  ;;  %v3281_v4 = vpack.c.bf16 %v256_v2, %v255_v1  ;;  %v251_v60 = vld [vmem:[%s3495_s3 + $0x3e0] sm:$0xff]  ;;  %v252_v20 = vld [vmem:[%s3495_s3 + $0x3e8] sm:$0xff]  ;;  %v2359_v2 = vpack.c.bf16 %v258_v59, %v257_v58  ;;  %v261_v32 = vld [vmem:[%s3495_s3 + $0x430] sm:$0xff] }
 0x2ed   :  { %v856_v34 = vmax.f32 %v3213_v29, 0.0  ;;  %2330 = vmatpush3.bf16.msra.mxu0 %v2329_v9  ;;  %v259_v5 = vld [vmem:[%s3495_s3 + $0x420] sm:$0xff]  ;;  %v262_v21 = vld [vmem:[%s3495_s3 + $0x438] sm:$0xff]  ;;  %v265_v19 = vld [vmem:[%s3495_s3 + $0x450] sm:$0xff] }
 0x2ee   :  { %964 = vmatmul.mubr.f32.gmra.mrb[14].mxu1 %v865_v33  ;;  %v880_v46 = vrot.slane %v857_v30, 5  ;;  %v867_v39 = vrot.slane %v857_v30, 2  ;;  %2332 = vmatprep.subr.bf16.mxu0 %v2331_v10  ;;  %v233_v33 = vld [vmem:[%s3495_s3 + $0x350] sm:$0xff]  ;;  %v2363_v13 = vpack.c.bf16 %v260_v6, %v259_v5 }
 0x2ef   :  { %1950 = vmatprep.mubr.f32.mxu0 %v856_v34  ;;  %v879_v35 = vrot.slane %v856_v34, 5  ;;  %v866_v36 = vrot.slane %v856_v34, 2  ;;  %2298 = vmatpush3.bf16.msra.mxu1 %v2295_v22  ;;  %v2337_v22 = vpack.c.bf16 %v230_v17, %v229_v16  ;;  %v234_v34 = vld [vmem:[%s3495_s3 + $0x358] sm:$0xff]  ;;  %v2367_v16 = vpack.c.bf16 %v262_v21, %v261_v32  ;;  %v264_v17 = vld [vmem:[%s3495_s3 + $0x448] sm:$0xff]  ;;  %v318_v32 = vld [vmem:[%s3497_s5 + $0x160] sm:$0xff] }
 0x2f0   :  { %1951 = vmatmul.mubr.f32.gmra.mrb[22].mxu0 %v857_v30  ;;  %2300 = vmatprep.subr.bf16.mxu1 %v2299_v31  ;;  %v2341_v30 = vpack.c.bf16 %v232_v25, %v231_v24  ;;  %v253_v24 = vld [vmem:[%s3495_s3 + $0x3f0] sm:$0xff]  ;;  %v254_v25 = vld [vmem:[%s3495_s3 + $0x3f8] sm:$0xff]  ;;  %v319_v21 = vld [vmem:[%s3497_s5 + $0x168] sm:$0xff] }
 0x2f1   :  { %1489 = vmatprep.mubr.msk.f32.mxu1 %vm3189_vm6, %v879_v35  ;;  %v881_v38 = vsel %vm875_vm4, %v879_v35, %v880_v46  ;;  %v868_v40 = vsel %vm862_vm5, %v866_v36, %v867_v39  ;;  %2334 = vmatpush3.bf16.msra.mxu0 %v2333_v14  ;;  %v2345_v46 = vpack.c.bf16 %v234_v34, %v233_v33  ;;  %v238_v33 = vld [vmem:[%s3495_s3 + $0x378] sm:$0xff] }
 0x2f2   :  { %1491 = vmatmul.mubr.msk.f32.gmra.mrb[16].mxu1 %vm3194_vm7, %v866_v36  ;;  %2336 = vmatprep.subr.bf16.mxu0 %v2335_v15  ;;  %v2347_v35 = vpack.c.bf16 %v252_v20, %v251_v60  ;;  %v235_v36 = vld [vmem:[%s3495_s3 + $0x360] sm:$0xff]  ;;  %v269_v20 = vld [vmem:[%s3495_s3 + $0x470] sm:$0xff] }
 0x2f3   :  { %973 = vmatprep.mubr.f32.mxu1 %v881_v38  ;;  %2302 = vmatpush3.bf16.msra.mxu1 %v2299_v31  ;;  %v2343_v31 = vpack.c.bf16 %v250_v27, %v249_v26  ;;  %v267_v26 = vld [vmem:[%s3495_s3 + $0x460] sm:$0xff]  ;;  %v2351_v27 = vpack.c.bf16 %v254_v25, %v253_v24 }
 0x2f4   :  { %2304 = vmatprep.subr.bf16.mxu1 %v2303_v37 }
 0x2f5   :  { %2338 = vmatpush3.bf16.msra.mxu0 %v2337_v22  ;;  %v266_v22 = vld [vmem:[%s3495_s3 + $0x458] sm:$0xff] }
 0x2f6   :  { %974 = vmatmul.mubr.f32.gmra.mrb[18].mxu1 %v868_v40  ;;  %2340 = vmatprep.subr.bf16.mxu0 %v2339_v23  ;;  %v2375_v23 = vpack.c.bf16 %v266_v22, %v265_v19 }
 0x2f7   :  { %2306 = vmatpush3.bf16.msra.mxu1 %v2303_v37  ;;  %v236_v37 = vld [vmem:[%s3495_s3 + $0x368] sm:$0xff] }
 0x2f8   :  { %2308 = vmatprep.subr.bf16.mxu1 %v2307_v43  ;;  %v2349_v38 = vpack.c.bf16 %v236_v37, %v235_v36  ;;  %v2492_v36 = vmov 0.0   ;;  %v306_v37 = vld [vmem:[%s3497_s5 + $0x100] sm:$0xff] }
 0x2f9   :  { %2342 = vmatpush3.bf16.msra.mxu0 %v2341_v30  ;;  %v268_v30 = vld [vmem:[%s3495_s3 + $0x468] sm:$0xff]  ;;  %1245 = vmatprep.mubr.f32.mxu0 %v2492_v36 }
 0x2fa   :  { %2344 = vmatprep.subr.bf16.mxu0 %v2343_v31  ;;  %v237_v31 = vld [vmem:[%s3495_s3 + $0x370] sm:$0xff]  ;;  %v2379_v34 = vpack.c.bf16 %v268_v30, %v267_v26 }
 0x2fb   :  { %2310 = vmatpush3.bf16.msra.mxu1 %v2307_v43  ;;  %v2353_v60 = vpack.c.bf16 %v238_v33, %v237_v31 }
 0x2fc   :  { %2312 = vmatprep.subr.bf16.mxu1 %v2311_v47 }
 0x2fd   :  { %2346 = vmatpush3.bf16.msra.mxu0 %v2345_v46  ;;  %v270_v46 = vld [vmem:[%s3495_s3 + $0x478] sm:$0xff] }
 0x2fe   :  { %2348 = vmatprep.subr.bf16.mxu0 %v2347_v35  ;;  %v2383_v35 = vpack.c.bf16 %v270_v46, %v269_v20 }
 0x2ff   :  { %2314 = vmatpush3.bf16.msra.mxu1 %v2311_v47 }
 0x300   :  { %2316 = vmatprep.subr.bf16.mxu1 %v2315_v51 }
 0x301   :  { %2350 = vmatpush3.bf16.msra.mxu0 %v2349_v38  ;;  %v307_v38 = vld [vmem:[%s3497_s5 + $0x108] sm:$0xff] }
 0x302   :  { %2352 = vmatprep.subr.bf16.mxu0 %v2351_v27 }
 0x303   :  { %2318 = vmatpush3.bf16.msra.mxu1 %v2315_v51 }
 0x304   :  { %2320 = vmatprep.subr.bf16.mxu1 %v2319_v54 }
 0x305   :  { %2354 = vmatpush3.bf16.msra.mxu0 %v2353_v60 }
 0x307   :  { %2322 = vmatpush3.bf16.msra.mxu1 %v2319_v54 }
 0x308   :  { %2356 = vmatprep.subr.bf16.mxu1 %v3281_v4  ;;  %1246 = vmatmul.mubr.f32.vlgmr.msra.gmra.mrb[24].mxu0 %v2492_v36 }
 0x3bb   :  { %v1949_v39 = vpop.f32.mrb[20].mxu0 }
 0x3bc   :  { %v1045_v40 = vpop.f32.mrb[21].mxu0 }
 0x3bd   :  { %v1703_v41 = vpop.f32.mrb[12].mxu1 }
 0x3be   :  { %v1704_v43 = vpop.f32.mrb[13].mxu1 }
 0x3bf   :  { %v1705_v44 = vadd.f32 %v1704_v43, %v1703_v41  ;;  %v309_v41 = vld [vmem:[%s3497_s5 + $0x118] sm:$0xff]  ;;  %v310_v43 = vld [vmem:[%s3497_s5 + $0x120] sm:$0xff] }
 0x3c1   :  { %v961_v45 = vadd.f32 %v1705_v44, %v1483_v42  ;;  %v1706_v47 = vpop.f32.mrb[14].mxu1  ;;  %v311_v44 = vld [vmem:[%s3497_s5 + $0x128] sm:$0xff] }
 0x3c2   :  { %v1707_v48 = vpop.f32.mrb[15].mxu1 }
 0x3c3   :  { %v1708_v49 = vadd.f32 %v1707_v48, %v1706_v47  ;;  %v1952_v51 = vpop.f32.mrb[22].mxu0  ;;  %v1046_v52 = vadd.f32 %v1045_v40, %v961_v45  ;;  %v2387_v40 = vpack.c.bf16 %v307_v38, %v306_v37  ;;  %v2395_v45 = vpack.c.bf16 %v311_v44, %v310_v43  ;;  %v312_v47 = vld [vmem:[%s3497_s5 + $0x130] sm:$0xff]  ;;  %v313_v48 = vld [vmem:[%s3497_s5 + $0x138] sm:$0xff] }
 0x3c4   :  { %v1055_v53 = vpop.f32.mrb[23].mxu0 }
 0x3c5   :  { %v966_v54 = vadd.f32 %v1708_v49, %v1483_v42  ;;  %v1709_v55 = vpop.f32.mrb[16].mxu1  ;;  %v1064_v56 = vmax.f32 %v1046_v52, 0.0  ;;  %2388 = vmatprep.subr.bf16.mxu0 %v2387_v40  ;;  %v2399_v49 = vpack.c.bf16 %v313_v48, %v312_v47  ;;  %v315_v52 = vld [vmem:[%s3497_s5 + $0x148] sm:$0xff] }
 0x3c6   :  { %v1710_v57 = vpop.f32.mrb[17].mxu1  ;;  %2390 = vmatpush3.bf16.msra.mxu0 %v2387_v40 }
 0x3c7   :  { %v1051_v61 = vadd.f32 %v1949_v39, %v966_v54  ;;  %v1711_v62 = vadd.f32 %v1710_v57, %v1709_v55  ;;  %1985 = vmatprep.mubr.f32.mxu1 %v1064_v56  ;;  %v308_v39 = vld [vmem:[%s3497_s5 + $0x110] sm:$0xff]  ;;  %v1492_v54 = vld [vmem:[#allocation4 + $0x1] ss:$0 sm:$0xff] }
 0x3c9   :  { %v1065_v63 = vmax.f32 %v1051_v61, 0.0  ;;  %v971_v0 = vadd.f32 %v1711_v62, %v1483_v42  ;;  %v1712_v1 = vpop.f32.mrb[18].mxu1 }
 0x3ca   :  { %v1713_v3 = vpop.f32.mrb[19].mxu1 }
 0x3cb   :  { %v1714_v7 = vadd.f32 %v1713_v3, %v1712_v1  ;;  %1986 = vmatmul.mubr.f32.vlgmr.msra.gmra.mrb[20].mxu1 %v1065_v63  ;;  %v1056_v9 = vadd.f32 %v1055_v53, %v971_v0 }
 0x3cc   :  { %2358 = vmatpush3.bf16.msra.mxu1 %v3281_v4  ;;  %v263_v4 = vld [vmem:[%s3495_s3 + $0x440] sm:$0xff] }
 0x3cd   :  { %v976_v10 = vadd.f32 %v1714_v7, %v1483_v42  ;;  %v1066_v11 = vmax.f32 %v1056_v9, 0.0  ;;  %2360 = vmatprep.subr.bf16.mxu1 %v2359_v2  ;;  %v2371_v18 = vpack.c.bf16 %v264_v17, %v263_v4  ;;  %v2391_v42 = vpack.c.bf16 %v309_v41, %v308_v39  ;;  %v1493_v17 = vld [vmem:[#allocation2 + $0x2] ss:$0 sm:$0xff] }
 0x3cf   :  { %1988 = vmatprep.mubr.f32.mxu1 %v1066_v11  ;;  %v1061_v14 = vadd.f32 %v1952_v51, %v976_v10  ;;  %2392 = vmatprep.subr.bf16.mxu0 %v2391_v42  ;;  %v314_v51 = vld [vmem:[%s3497_s5 + $0x140] sm:$0xff]  ;;  %v316_v10 = vld [vmem:[%s3497_s5 + $0x150] sm:$0xff]  ;;  %v317_v11 = vld [vmem:[%s3497_s5 + $0x158] sm:$0xff] }
 0x3d0   :  { %2362 = vmatpush3.bf16.msra.mxu1 %v2359_v2  ;;  %2394 = vmatpush3.bf16.msra.mxu0 %v2391_v42  ;;  %v2403_v53 = vpack.c.bf16 %v315_v52, %v314_v51  ;;  %v2407_v12 = vpack.c.bf16 %v317_v11, %v316_v10 }
 0x3d1   :  { %v1067_v15 = vmax.f32 %v1061_v14, 0.0  ;;  %2364 = vmatprep.subr.bf16.mxu1 %v2363_v13  ;;  %2396 = vmatprep.subr.bf16.mxu0 %v2395_v45  ;;  %v2411_v14 = vpack.c.bf16 %v319_v21, %v318_v32 }
 0x3d3   :  { %1989 = vmatmul.mubr.f32.gmra.mrb[22].mxu1 %v1067_v15  ;;  %v320_v15 = vld [vmem:[%s3497_s5 + $0x170] sm:$0xff] }
 0x3d4   :  { %2366 = vmatpush3.bf16.msra.mxu1 %v2363_v13  ;;  %2398 = vmatpush3.bf16.msra.mxu0 %v2395_v45 }
 0x3d5   :  { %2368 = vmatprep.subr.bf16.mxu1 %v2367_v16  ;;  %2400 = vmatprep.subr.bf16.mxu0 %v2399_v49 }
 0x3d8   :  { %2370 = vmatpush3.bf16.msra.mxu1 %v2367_v16  ;;  %2402 = vmatpush3.bf16.msra.mxu0 %v2399_v49  ;;  %v321_v16 = vld [vmem:[%s3497_s5 + $0x178] sm:$0xff] }
 0x3d9   :  { %2372 = vmatprep.subr.bf16.mxu1 %v2371_v18  ;;  %2404 = vmatprep.subr.bf16.mxu0 %v2403_v53  ;;  %v2415_v4 = vpack.c.bf16 %v321_v16, %v320_v15 }
 0x3dc   :  { %2374 = vmatpush3.bf16.msra.mxu1 %v2371_v18  ;;  %2406 = vmatpush3.bf16.msra.mxu0 %v2403_v53 }
 0x3dd   :  { %2376 = vmatprep.subr.bf16.mxu1 %v2375_v23  ;;  %2408 = vmatprep.subr.bf16.mxu0 %v2407_v12 }
 0x3e0   :  { %2378 = vmatpush3.bf16.msra.mxu1 %v2375_v23  ;;  %2410 = vmatpush3.bf16.msra.mxu0 %v2407_v12 }
 0x3e1   :  { %2380 = vmatprep.subr.bf16.mxu1 %v2379_v34  ;;  %2412 = vmatprep.subr.bf16.mxu0 %v2411_v14 }
 0x3e4   :  { %2382 = vmatpush3.bf16.msra.mxu1 %v2379_v34  ;;  %2414 = vmatpush3.bf16.msra.mxu0 %v2411_v14 }
 0x3e5   :  { %2384 = vmatprep.subr.bf16.mxu1 %v2383_v35  ;;  %2416 = vmatprep.subr.bf16.mxu0 %v2415_v4 }
 0x3e8   :  { %2386 = vmatpush3.bf16.msra.mxu1 %v2383_v35  ;;  %2418 = vmatpush3.bf16.msra.mxu0 %v2415_v4 }
 0x3e9   :  { %2419 = vmatprep.subr.bf16.mxu1 %v2387_v40 }
 0x49e   :  { %v1987_v55 = vpop.f32.mrb[20].mxu1 }
 0x49f   :  { %v1146_v56 = vadd.f32 %v1987_v55, %v1492_v54  ;;  %v1140_v57 = vpop.f32.mrb[21].mxu1 }
 0x4a0   :  { %v1141_v58 = vadd.f32 %v1492_v54, %v1140_v57 }
 0x4a1   :  { %v3435_v59 = vadd.f32 %v1146_v56, %v3175_v50 }
 0x4a2   :  { %v3438_v61 = vadd.f32 %v1141_v58, %v3178_v8 }
 0x4a3   :  { %v1164_v63 = vmax.f32 %v3435_v59, 0.0 }
 0x4a4   :  { %v1163_v62 = vmax.f32 %v3438_v61, 0.0 }
 0x4a6   :  { %v1990_v0 = vpop.f32.mrb[22].mxu1  ;;  %v1169_v1 = vrot.slane %v1163_v62, 7  ;;  %2023 = vmatprep.mubr.f32.mxu1 %v1163_v62 }
 0x4a7   :  { %v1156_v2 = vadd.f32 %v1990_v0, %v1492_v54  ;;  %v1150_v3 = vpop.f32.mrb[23].mxu1  ;;  %2024 = vmatmul.mubr.f32.vlgmr.msra.gmra.mrb[24].mxu1 %v1164_v63 }
 0x4a8   :  { %v1151_v5 = vadd.f32 %v1492_v54, %v1150_v3  ;;  %1495 = vmatprep.mubr.msk.f32.mxu0 %vm2717_vm1, %v1169_v1  ;;  %2427 = vmatpush3.bf16.msra.mxu1 %v2387_v40 }
 0x4a9   :  { %v3445_v50 = vadd.f32 %v1156_v2, %v3208_v28  ;;  %1251 = vmatmul.mubr.f32.gmra.mrb[26].mxu0 %v2492_v36  ;;  %2420 = vmatprep.subr.bf16.mxu1 %v2391_v42  ;;  %v1787_v28 = vpop.f32.mrb[24].mxu0 }
 0x4aa   :  { %v3449_v8 = vadd.f32 %v1151_v5, %v3213_v29  ;;  %1255 = vmatprep.mubr.f32.mxu0 %v2492_v36  ;;  %v1788_v29 = vpop.f32.mrb[25].mxu0 }
 0x4ab   :  { %v1166_v7 = vmax.f32 %v3445_v50, 0.0  ;;  %v1789_v13 = vadd.f32 %v1788_v29, %v1787_v28 }
 0x4ac   :  { %v1165_v6 = vmax.f32 %v3449_v8, 0.0  ;;  %2428 = vmatpush3.bf16.msra.mxu1 %v2391_v42 }
 0x4ad   :  { %1256 = vmatmul.mubr.f32.gmra.mrb[28].mxu0 %v2492_v36  ;;  %2421 = vmatprep.subr.bf16.mxu1 %v2395_v45  ;;  %v1248_v18 = vadd.f32 %v1789_v13, %v1493_v17 }
 0x4ae   :  { %v1170_v9 = vrot.slane %v1165_v6, 7  ;;  %2026 = vmatprep.mubr.f32.mxu1 %v1165_v6 }
 0x4af   :  { %2027 = vmatmul.mubr.f32.gmra.mrb[26].mxu1 %v1166_v7 }
 0x4b0   :  { %1497 = vmatprep.mubr.msk.f32.mxu0 %vm2717_vm1, %v1170_v9  ;;  %2429 = vmatpush3.bf16.msra.mxu1 %v2395_v45  ;;  %v1498_v45 = vld [vmem:[#allocation4 + $0x2] ss:$0 sm:$0xff] }
 0x4b1   :  { %1261 = vmatmul.mubr.f32.gmra.mrb[30].mxu0 %v2492_v36  ;;  %2422 = vmatprep.subr.bf16.mxu1 %v2399_v49 }
 0x4b4   :  { %2430 = vmatpush3.bf16.msra.mxu1 %v2399_v49 }
 0x4b5   :  { %2423 = vmatprep.subr.bf16.mxu1 %v2403_v53 }
 0x4b8   :  { %2431 = vmatpush3.bf16.msra.mxu1 %v2403_v53 }
 0x4b9   :  { %2424 = vmatprep.subr.bf16.mxu1 %v2407_v12 }
 0x4bc   :  { %2432 = vmatpush3.bf16.msra.mxu1 %v2407_v12 }
 0x4bd   :  { %2425 = vmatprep.subr.bf16.mxu1 %v2411_v14 }
 0x4c0   :  { %2433 = vmatpush3.bf16.msra.mxu1 %v2411_v14 }
 0x4c1   :  { %2426 = vmatprep.subr.bf16.mxu1 %v2415_v4 }
 0x4c4   :  { %2434 = vmatpush3.bf16.msra.mxu1 %v2415_v4 }
 0x57a   :  { %v2025_v19 = vpop.f32.mrb[24].mxu1 }
 0x57b   :  { %v1332_v22 = vpop.f32.mrb[25].mxu1 }
 0x57c   :  { %v1333_v23 = vadd.f32 %v1332_v22, %v1248_v18  ;;  %v1790_v24 = vpop.f32.mrb[26].mxu0 }
 0x57d   :  { %v1791_v25 = vpop.f32.mrb[27].mxu0 }
 0x57e   :  { %v1351_v26 = vmax.f32 %v1333_v23, 0.0  ;;  %v1792_v27 = vadd.f32 %v1791_v25, %v1790_v24 }
 0x580   :  { %v1253_v30 = vadd.f32 %v1792_v27, %v1493_v17  ;;  %v1793_v31 = vpop.f32.mrb[28].mxu0  ;;  %2061 = vmatprep.mubr.f32.mxu0 %v1351_v26 }
 0x581   :  { %v1794_v33 = vpop.f32.mrb[29].mxu0 }
 0x582   :  { %v1338_v34 = vadd.f32 %v2025_v19, %v1253_v30  ;;  %v1795_v60 = vadd.f32 %v1794_v33, %v1793_v31  ;;  %v2028_v20 = vpop.f32.mrb[26].mxu1 }
 0x583   :  { %v1342_v46 = vpop.f32.mrb[27].mxu1 }
 0x584   :  { %v1352_v35 = vmax.f32 %v1338_v34, 0.0  ;;  %v1258_v36 = vadd.f32 %v1795_v60, %v1493_v17  ;;  %v1796_v37 = vpop.f32.mrb[30].mxu0 }
 0x585   :  { %v1797_v38 = vpop.f32.mrb[31].mxu0 }
 0x586   :  { %v1343_v39 = vadd.f32 %v1342_v46, %v1258_v36  ;;  %v1798_v40 = vadd.f32 %v1797_v38, %v1796_v37  ;;  %2062 = vmatmul.mubr.f32.vlgmr.msra.gmra.mrb[32].mxu0 %v1352_v35 }
 0x588   :  { %v1353_v41 = vmax.f32 %v1343_v39, 0.0  ;;  %v1263_v42 = vadd.f32 %v1798_v40, %v1493_v17 }
 0x58a   :  { %v1348_v43 = vadd.f32 %v2028_v20, %v1263_v42  ;;  %2064 = vmatprep.mubr.f32.mxu1 %v1353_v41 }
 0x58c   :  { %v1354_v44 = vmax.f32 %v1348_v43, 0.0 }
 0x58e   :  { %2065 = vmatmul.mubr.f32.vlgmr.msra.gmra.mrb[28].mxu1 %v1354_v44 }
 0x659   :  { %v2063_v47 = vpop.f32.mrb[32].mxu0 }
 0x65a   :  { %v1433_v48 = vadd.f32 %v2063_v47, %v1498_v45  ;;  %v1427_v49 = vpop.f32.mrb[33].mxu0 }
 0x65b   :  { %v1428_v51 = vadd.f32 %v1498_v45, %v1427_v49 }
 0x65c   :  { %v1447_v52 = vadd.f32 %v1433_v48, %v3435_v59 }
 0x65d   :  { %v1446_v53 = vadd.f32 %v1428_v51, %v3438_v61 }
 0x65e   :  { %1451 = vst [vmem:[%s3499_s7 + $0x8] sm:$0xff] %v1447_v52 }
 0x65f   :  { %1450 = vst [vmem:[%s3499_s7] sm:$0xff] %v1446_v53 }
 0x661   :  { %v2066_v54 = vpop.f32.mrb[28].mxu1 }
 0x662   :  { %v1443_v55 = vadd.f32 %v2066_v54, %v1498_v45  ;;  %v1437_v56 = vpop.f32.mrb[29].mxu1 }
 0x663   :  { %v1438_v57 = vadd.f32 %v1498_v45, %v1437_v56 }
 0x664   :  { %v1449_v58 = vadd.f32 %v1443_v55, %v3445_v50 }
 0x665   :  { %v1448_v62 = vadd.f32 %v1438_v57, %v3449_v8 }
 0x666   :  { %1453 = vst [vmem:[%s3499_s7 + $0x18] sm:$0xff] %v1449_v58 }
 0x667   :  { %1452 = vst [vmem:[%s3499_s7 + $0x10] sm:$0xff] %v1448_v62 }
 0x668   :  { %1458 = vsyncpa [#allocation3], 1 }
 0x669   :  { %1459 = vsyncpa [#allocation5], 1 }

// kernel: forward.8
= control target key start
LH: loop header
LB: loop body
LE: loop exit
PB: predicated region body
PF: predicated region fallthrough
CT: control target
= control target key end

     0   :  { %vm308_vm0 = vcmask 1040384   ;;  %vm299_vm2 = vcmask 1041408   ;;  %vm745_vm4 = vcmask 1042432   ;;  %vm738_vm5 = vcmask 1045504   ;;  %s3034_s1 = inlined_call_operand.vmem [shape: f32[512,128], index: 1, kind: input, shape index: {}]   ;;  %s3035_s0 = inlined_call_operand.vmem [shape: f32[2,8,256], index: 0, kind: input, shape index: {}]   ;;  %s3036_s3 = inlined_call_operand.vmem [shape: f32[3,384,128], index: 3, kind: input, shape index: {}]   ;;  %s3037_s5 = inlined_call_operand.vmem [shape: f32[3,128,128], index: 5, kind: input, shape index: {}]   ;;  %s3038_s2 = inlined_call_operand.vmem [shape: f32[1,128], index: 2, kind: input, shape index: {}]   ;;  %s3039_s4 = inlined_call_operand.vmem [shape: f32[3,1,128], index: 4, kind: input, shape index: {}]   ;;  %s3040_s6 = inlined_call_operand.vmem [shape: f32[3,1,128], index: 6, kind: input, shape index: {}]   ;;  %s3041_s7 = inlined_call_operand.vmem [shape: f32[2,8,128], index: 7, kind: output, shape index: {}]  }
   0x1   :  { %v46_v0 = vld [vmem:[%s3034_s1 + $0x80] sm:$0xff]  ;;  %v47_v1 = vld [vmem:[%s3034_s1 + $0x88] sm:$0xff]  ;;  %v48_v11 = vld [vmem:[%s3034_s1 + $0x90] sm:$0xff] }
   0x2   :  { %v30_v2 = vld [vmem:[%s3034_s1] sm:$0xff]  ;;  %v1781_v3 = vpack.c.bf16 %v47_v1, %v46_v0  ;;  %v31_v4 = vld [vmem:[%s3034_s1 + $0x8] sm:$0xff]  ;;  %v49_v13 = vld [vmem:[%s3034_s1 + $0x98] sm:$0xff] }
   0x3   :  { %v78_v5 = vld [vmem:[%s3034_s1 + $0x180] sm:$0xff]  ;;  %v79_v6 = vld [vmem:[%s3034_s1 + $0x188] sm:$0xff]  ;;  %v1783_v7 = vpack.c.bf16 %v31_v4, %v30_v2  ;;  %v32_v14 = vld [vmem:[%s3034_s1 + $0x10] sm:$0xff]  ;;  %v1785_v16 = vpack.c.bf16 %v49_v13, %v48_v11 }
   0x4   :  { %v1813_v8 = vpack.c.bf16 %v79_v6, %v78_v5  ;;  %v62_v9 = vld [vmem:[%s3034_s1 + $0x100] sm:$0xff]  ;;  %v63_v10 = vld [vmem:[%s3034_s1 + $0x108] sm:$0xff]  ;;  %1782 = vmatprep.subr.bf16.mxu0 %v1781_v3  ;;  %v33_v15 = vld [vmem:[%s3034_s1 + $0x18] sm:$0xff] }
   0x5   :  { %v1815_v12 = vpack.c.bf16 %v63_v10, %v62_v9  ;;  %1784 = vmatpush3.bf16.msra.mxu0 %v1783_v7  ;;  %v1787_v17 = vpack.c.bf16 %v33_v15, %v32_v14  ;;  %v80_v18 = vld [vmem:[%s3034_s1 + $0x190] sm:$0xff]  ;;  %v81_v19 = vld [vmem:[%s3034_s1 + $0x198] sm:$0xff]  ;;  %v50_v23 = vld [vmem:[%s3034_s1 + $0xa0] sm:$0xff] }
   0x6   :  { %1814 = vmatprep.subr.bf16.mxu1 %v1813_v8  ;;  %v64_v20 = vld [vmem:[%s3034_s1 + $0x110] sm:$0xff]  ;;  %v1817_v21 = vpack.c.bf16 %v81_v19, %v80_v18  ;;  %v65_v22 = vld [vmem:[%s3034_s1 + $0x118] sm:$0xff]  ;;  %v51_v24 = vld [vmem:[%s3034_s1 + $0xa8] sm:$0xff]  ;;  %1786 = vmatprep.subr.bf16.mxu0 %v1785_v16 }
   0x7   :  { %1816 = vmatpush3.bf16.msra.mxu1 %v1815_v12  ;;  %v1819_v25 = vpack.c.bf16 %v65_v22, %v64_v20  ;;  %v1789_v26 = vpack.c.bf16 %v51_v24, %v50_v23  ;;  %v34_v27 = vld [vmem:[%s3034_s1 + $0x20] sm:$0xff]  ;;  %v35_v28 = vld [vmem:[%s3034_s1 + $0x28] sm:$0xff]  ;;  %v52_v35 = vld [vmem:[%s3034_s1 + $0xb0] sm:$0xff] }
   0x8   :  { %v82_v29 = vld [vmem:[%s3034_s1 + $0x1a0] sm:$0xff]  ;;  %1818 = vmatprep.subr.bf16.mxu1 %v1817_v21  ;;  %v83_v30 = vld [vmem:[%s3034_s1 + $0x1a8] sm:$0xff]  ;;  %v1791_v33 = vpack.c.bf16 %v35_v28, %v34_v27  ;;  %v53_v36 = vld [vmem:[%s3034_s1 + $0xb8] sm:$0xff] }
   0x9   :  { %v66_v31 = vld [vmem:[%s3034_s1 + $0x120] sm:$0xff]  ;;  %v67_v32 = vld [vmem:[%s3034_s1 + $0x128] sm:$0xff]  ;;  %1788 = vmatpush3.bf16.msra.mxu0 %v1787_v17  ;;  %v1821_v34 = vpack.c.bf16 %v83_v30, %v82_v29  ;;  %v36_v37 = vld [vmem:[%s3034_s1 + $0x30] sm:$0xff]  ;;  %v1793_v39 = vpack.c.bf16 %v53_v36, %v52_v35 }
   0xa   :  { %1790 = vmatprep.subr.bf16.mxu0 %v1789_v26  ;;  %v1823_v38 = vpack.c.bf16 %v67_v32, %v66_v31  ;;  %v37_v40 = vld [vmem:[%s3034_s1 + $0x38] sm:$0xff]  ;;  %v84_v41 = vld [vmem:[%s3034_s1 + $0x1b0] sm:$0xff]  ;;  %v54_v46 = vld [vmem:[%s3034_s1 + $0xc0] sm:$0xff] }
   0xb   :  { %1820 = vmatpush3.bf16.msra.mxu1 %v1819_v25  ;;  %v85_v42 = vld [vmem:[%s3034_s1 + $0x1b8] sm:$0xff]  ;;  %v68_v44 = vld [vmem:[%s3034_s1 + $0x130] sm:$0xff]  ;;  %v55_v47 = vld [vmem:[%s3034_s1 + $0xc8] sm:$0xff]  ;;  %v1795_v48 = vpack.c.bf16 %v37_v40, %v36_v37 }
   0xc   :  { %1822 = vmatprep.subr.bf16.mxu1 %v1821_v34  ;;  %v1825_v43 = vpack.c.bf16 %v85_v42, %v84_v41  ;;  %v69_v45 = vld [vmem:[%s3034_s1 + $0x138] sm:$0xff]  ;;  %v86_v49 = vld [vmem:[%s3034_s1 + $0x1c0] sm:$0xff]  ;;  %v87_v50 = vld [vmem:[%s3034_s1 + $0x1c8] sm:$0xff]  ;;  %v1797_v52 = vpack.c.bf16 %v55_v47, %v54_v46 }
   0xd   :  { %1792 = vmatpush3.bf16.msra.mxu0 %v1791_v33  ;;  %v1827_v51 = vpack.c.bf16 %v69_v45, %v68_v44  ;;  %v38_v53 = vld [vmem:[%s3034_s1 + $0x40] sm:$0xff]  ;;  %v39_v54 = vld [vmem:[%s3034_s1 + $0x48] sm:$0xff]  ;;  %v1829_v56 = vpack.c.bf16 %v87_v50, %v86_v49  ;;  %v56_v58 = vld [vmem:[%s3034_s1 + $0xd0] sm:$0xff] }
   0xe   :  { %1794 = vmatprep.subr.bf16.mxu0 %v1793_v39  ;;  %v70_v55 = vld [vmem:[%s3034_s1 + $0x140] sm:$0xff]  ;;  %v71_v57 = vld [vmem:[%s3034_s1 + $0x148] sm:$0xff]  ;;  %v57_v59 = vld [vmem:[%s3034_s1 + $0xd8] sm:$0xff]  ;;  %v1799_v62 = vpack.c.bf16 %v39_v54, %v38_v53 }
   0xf   :  { %1824 = vmatpush3.bf16.msra.mxu1 %v1823_v38  ;;  %v88_v60 = vld [vmem:[%s3034_s1 + $0x1d0] sm:$0xff]  ;;  %v89_v61 = vld [vmem:[%s3034_s1 + $0x1d8] sm:$0xff]  ;;  %v1831_v63 = vpack.c.bf16 %v71_v57, %v70_v55  ;;  %v1801_v0 = vpack.c.bf16 %v57_v59, %v56_v58  ;;  %v58_v6 = vld [vmem:[%s3034_s1 + $0xe0] sm:$0xff] }
  0x10   :  { %1826 = vmatprep.subr.bf16.mxu1 %v1825_v43  ;;  %v40_v1 = vld [vmem:[%s3034_s1 + $0x50] sm:$0xff]  ;;  %v41_v2 = vld [vmem:[%s3034_s1 + $0x58] sm:$0xff]  ;;  %v1833_v4 = vpack.c.bf16 %v89_v61, %v88_v60  ;;  %v59_v7 = vld [vmem:[%s3034_s1 + $0xe8] sm:$0xff] }
  0x11   :  { %1796 = vmatpush3.bf16.msra.mxu0 %v1795_v48  ;;  %v72_v3 = vld [vmem:[%s3034_s1 + $0x150] sm:$0xff]  ;;  %v73_v5 = vld [vmem:[%s3034_s1 + $0x158] sm:$0xff]  ;;  %v90_v8 = vld [vmem:[%s3034_s1 + $0x1e0] sm:$0xff]  ;;  %v1803_v10 = vpack.c.bf16 %v41_v2, %v40_v1  ;;  %v1805_v14 = vpack.c.bf16 %v59_v7, %v58_v6 }
  0x12   :  { %1798 = vmatprep.subr.bf16.mxu0 %v1797_v52  ;;  %v91_v9 = vld [vmem:[%s3034_s1 + $0x1e8] sm:$0xff]  ;;  %v42_v11 = vld [vmem:[%s3034_s1 + $0x60] sm:$0xff]  ;;  %v1835_v13 = vpack.c.bf16 %v73_v5, %v72_v3  ;;  %vm2343_vm1 = vmneg %vm308_vm0 }
  0x13   :  { %1828 = vmatpush3.bf16.msra.mxu1 %v1827_v51  ;;  %v43_v12 = vld [vmem:[%s3034_s1 + $0x68] sm:$0xff]  ;;  %v74_v15 = vld [vmem:[%s3034_s1 + $0x160] sm:$0xff]  ;;  %v1837_v18 = vpack.c.bf16 %v91_v9, %v90_v8  ;;  %v60_v20 = vld [vmem:[%s3034_s1 + $0xf0] sm:$0xff] }
  0x14   :  { %1830 = vmatprep.subr.bf16.mxu1 %v1829_v56  ;;  %v26_v16 = vld [vmem:[%s3035_s0] sm:$0xff]  ;;  %v75_v19 = vld [vmem:[%s3034_s1 + $0x168] sm:$0xff]  ;;  %v61_v21 = vld [vmem:[%s3034_s1 + $0xf8] sm:$0xff]  ;;  %v1807_v25 = vpack.c.bf16 %v43_v12, %v42_v11 }
  0x15   :  { %1800 = vmatpush3.bf16.msra.mxu0 %v1799_v62  ;;  %v304_v22 = vrot.slane %v26_v16, 7  ;;  %462 = vmatprep.mubr.f32.mxu1 %v26_v16  ;;  %v92_v23 = vld [vmem:[%s3034_s1 + $0x1f0] sm:$0xff]  ;;  %v93_v24 = vld [vmem:[%s3034_s1 + $0x1f8] sm:$0xff]  ;;  %v1839_v26 = vpack.c.bf16 %v75_v19, %v74_v15  ;;  %v1809_v27 = vpack.c.bf16 %v61_v21, %v60_v20  ;;  %v111_v33 = vld [vmem:[%s3036_s3 + $0x80] sm:$0xff] }
  0x16   :  { %1802 = vmatprep.subr.bf16.mxu0 %v1801_v0  ;;  %v44_v28 = vld [vmem:[%s3034_s1 + $0x70] sm:$0xff]  ;;  %v45_v29 = vld [vmem:[%s3034_s1 + $0x78] sm:$0xff]  ;;  %v1841_v31 = vpack.c.bf16 %v93_v24, %v92_v23  ;;  %v112_v34 = vld [vmem:[%s3036_s3 + $0x88] sm:$0xff] }
  0x17   :  { %1832 = vmatpush3.bf16.msra.mxu1 %v1831_v63  ;;  %1240 = vmatprep.mubr.msk.f32.mxu0 %vm2343_vm1, %v304_v22  ;;  %v76_v30 = vld [vmem:[%s3034_s1 + $0x170] sm:$0xff]  ;;  %v77_v32 = vld [vmem:[%s3034_s1 + $0x178] sm:$0xff]  ;;  %v127_v35 = vld [vmem:[%s3036_s3 + $0x100] sm:$0xff]  ;;  %v1811_v37 = vpack.c.bf16 %v45_v29, %v44_v28  ;;  %v1845_v41 = vpack.c.bf16 %v112_v34, %v111_v33 }
  0x18   :  { %1834 = vmatprep.subr.bf16.mxu1 %v1833_v4  ;;  %v128_v36 = vld [vmem:[%s3036_s3 + $0x108] sm:$0xff]  ;;  %v1843_v39 = vpack.c.bf16 %v77_v32, %v76_v30  ;;  %v28_v40 = vld [vmem:[%s3035_s0 + $0x10] sm:$0xff]  ;;  %v95_v42 = vld [vmem:[%s3036_s3] sm:$0xff] }
  0x19   :  { %1804 = vmatpush3.bf16.msra.mxu0 %v1803_v10  ;;  %v27_v38 = vld [vmem:[%s3035_s0 + $0x8] sm:$0xff]  ;;  %v1877_v44 = vpack.c.bf16 %v128_v36, %v127_v35  ;;  %vm2400_vm3 = vmneg %vm299_vm2  ;;  %v113_v47 = vld [vmem:[%s3036_s3 + $0x90] sm:$0xff]  ;;  %v305_v50 = vrot.slane %v28_v40, 7 }
  0x1a   :  { %1806 = vmatprep.subr.bf16.mxu0 %v1805_v14  ;;  %v96_v43 = vld [vmem:[%s3036_s3 + $0x8] sm:$0xff]  ;;  %v295_v45 = vrot.slane %v27_v38, 6  ;;  %v114_v48 = vld [vmem:[%s3036_s3 + $0x98] sm:$0xff]  ;;  %v311_v49 = vrot.slane %v27_v38, 7  ;;  %v129_v52 = vld [vmem:[%s3036_s3 + $0x110] sm:$0xff] }
  0x1b   :  { %1836 = vmatpush3.bf16.msra.mxu1 %v1835_v13  ;;  %v29_v51 = vld [vmem:[%s3035_s0 + $0x18] sm:$0xff]  ;;  %v1847_v54 = vpack.c.bf16 %v96_v43, %v95_v42  ;;  %v1849_v55 = vpack.c.bf16 %v114_v48, %v113_v47  ;;  %v97_v56 = vld [vmem:[%s3036_s3 + $0x10] sm:$0xff]  ;;  %v115_v60 = vld [vmem:[%s3036_s3 + $0xa0] sm:$0xff] }
  0x1c   :  { %1838 = vmatprep.subr.bf16.mxu1 %v1837_v18  ;;  %v130_v53 = vld [vmem:[%s3036_s3 + $0x118] sm:$0xff]  ;;  %v296_v58 = vrot.slane %v29_v51, 6  ;;  %v116_v61 = vld [vmem:[%s3036_s3 + $0xa8] sm:$0xff]  ;;  %v312_v62 = vrot.slane %v29_v51, 7  ;;  %v131_v63 = vld [vmem:[%s3036_s3 + $0x120] sm:$0xff] }
  0x1d   :  { %1808 = vmatpush3.bf16.msra.mxu0 %v1807_v25  ;;  %v98_v57 = vld [vmem:[%s3036_s3 + $0x18] sm:$0xff]  ;;  %v1881_v59 = vpack.c.bf16 %v130_v53, %v129_v52  ;;  %v132_v0 = vld [vmem:[%s3036_s3 + $0x128] sm:$0xff]  ;;  %v1853_v2 = vpack.c.bf16 %v116_v61, %v115_v60  ;;  %v99_v3 = vld [vmem:[%s3036_s3 + $0x20] sm:$0xff] }
  0x1e   :  { %1810 = vmatprep.subr.bf16.mxu0 %v1809_v27  ;;  %v1851_v1 = vpack.c.bf16 %v98_v57, %v97_v56  ;;  %v100_v4 = vld [vmem:[%s3036_s3 + $0x28] sm:$0xff]  ;;  %v1885_v5 = vpack.c.bf16 %v132_v0, %v131_v63  ;;  %v117_v6 = vld [vmem:[%s3036_s3 + $0xb0] sm:$0xff]  ;;  %v118_v7 = vld [vmem:[%s3036_s3 + $0xb8] sm:$0xff] }
  0x1f   :  { %1840 = vmatpush3.bf16.msra.mxu1 %v1839_v26  ;;  %v133_v8 = vld [vmem:[%s3036_s3 + $0x130] sm:$0xff]  ;;  %v134_v9 = vld [vmem:[%s3036_s3 + $0x138] sm:$0xff]  ;;  %v1855_v10 = vpack.c.bf16 %v100_v4, %v99_v3  ;;  %v1857_v11 = vpack.c.bf16 %v118_v7, %v117_v6  ;;  %v119_v15 = vld [vmem:[%s3036_s3 + $0xc0] sm:$0xff] }
  0x20   :  { %1842 = vmatprep.subr.bf16.mxu1 %v1841_v31  ;;  %v101_v12 = vld [vmem:[%s3036_s3 + $0x30] sm:$0xff]  ;;  %v102_v13 = vld [vmem:[%s3036_s3 + $0x38] sm:$0xff]  ;;  %v1889_v14 = vpack.c.bf16 %v134_v9, %v133_v8  ;;  %v120_v16 = vld [vmem:[%s3036_s3 + $0xc8] sm:$0xff] }
  0x21   :  { %1812 = vmatpush3.bf16.msra.mxu0 %v1811_v37  ;;  %v135_v18 = vld [vmem:[%s3036_s3 + $0x140] sm:$0xff]  ;;  %v136_v19 = vld [vmem:[%s3036_s3 + $0x148] sm:$0xff]  ;;  %v1859_v20 = vpack.c.bf16 %v102_v13, %v101_v12  ;;  %v1861_v21 = vpack.c.bf16 %v120_v16, %v119_v15  ;;  %v121_v26 = vld [vmem:[%s3036_s3 + $0xd0] sm:$0xff] }
  0x22   :  { %1846 = vmatprep.subr.bf16.mxu0 %v1845_v41  ;;  %v103_v22 = vld [vmem:[%s3036_s3 + $0x40] sm:$0xff]  ;;  %v104_v23 = vld [vmem:[%s3036_s3 + $0x48] sm:$0xff]  ;;  %v1893_v24 = vpack.c.bf16 %v136_v19, %v135_v18  ;;  %v122_v27 = vld [vmem:[%s3036_s3 + $0xd8] sm:$0xff] }
  0x23   :  { %1844 = vmatpush3.bf16.msra.mxu1 %v1843_v39  ;;  %v1863_v25 = vpack.c.bf16 %v104_v23, %v103_v22  ;;  %v1865_v28 = vpack.c.bf16 %v122_v27, %v121_v26  ;;  %v105_v29 = vld [vmem:[%s3036_s3 + $0x50] sm:$0xff]  ;;  %v106_v30 = vld [vmem:[%s3036_s3 + $0x58] sm:$0xff]  ;;  %v123_v35 = vld [vmem:[%s3036_s3 + $0xe0] sm:$0xff] }
  0x24   :  { %1878 = vmatprep.subr.bf16.mxu1 %v1877_v44  ;;  %1242 = vmatmul.mubr.msk.f32.vlgmr.msra.gmra.mrb[0].mxu0 %vm2400_vm3, %v295_v45  ;;  %v137_v31 = vld [vmem:[%s3036_s3 + $0x150] sm:$0xff]  ;;  %v1867_v32 = vpack.c.bf16 %v106_v30, %v105_v29  ;;  %v138_v33 = vld [vmem:[%s3036_s3 + $0x158] sm:$0xff]  ;;  %v124_v36 = vld [vmem:[%s3036_s3 + $0xe8] sm:$0xff] }
  0x25   :  { %1244 = vmatprep.mubr.msk.f32.mxu0 %vm2343_vm1, %v305_v50  ;;  %1848 = vmatpush3.bf16.msra.mxu0 %v1847_v54  ;;  %v1897_v34 = vpack.c.bf16 %v138_v33, %v137_v31  ;;  %v1869_v37 = vpack.c.bf16 %v124_v36, %v123_v35  ;;  %v107_v38 = vld [vmem:[%s3036_s3 + $0x60] sm:$0xff]  ;;  %v108_v39 = vld [vmem:[%s3036_s3 + $0x68] sm:$0xff]  ;;  %v126_v45 = vld [vmem:[%s3036_s3 + $0xf8] sm:$0xff] }
  0x26   :  { %1248 = vmatmul.mubr.msk.f32.vlgmr.msra.gmra.mrb[0].mxu1 %vm2343_vm1, %v311_v49  ;;  %1850 = vmatprep.subr.bf16.mxu0 %v1849_v55  ;;  %v1871_v41 = vpack.c.bf16 %v108_v39, %v107_v38  ;;  %v140_v42 = vld [vmem:[%s3036_s3 + $0x168] sm:$0xff]  ;;  %v109_v48 = vld [vmem:[%s3036_s3 + $0x70] sm:$0xff]  ;;  %v110_v49 = vld [vmem:[%s3036_s3 + $0x78] sm:$0xff] }
  0x27   :  { %467 = vmatprep.mubr.f32.mxu1 %v28_v40  ;;  %1880 = vmatpush3.bf16.msra.mxu1 %v1877_v44  ;;  %v139_v40 = vld [vmem:[%s3036_s3 + $0x160] sm:$0xff]  ;;  %v125_v44 = vld [vmem:[%s3036_s3 + $0xf0] sm:$0xff]  ;;  %v1875_v51 = vpack.c.bf16 %v110_v49, %v109_v48  ;;  %v142_v52 = vld [vmem:[%s3036_s3 + $0x178] sm:$0xff] }
  0x28   :  { %1246 = vmatmul.mubr.msk.f32.gmra.mrb[2].mxu0 %vm2400_vm3, %v296_v58  ;;  %1882 = vmatprep.subr.bf16.mxu1 %v1881_v59  ;;  %v1901_v43 = vpack.c.bf16 %v140_v42, %v139_v40  ;;  %v1873_v47 = vpack.c.bf16 %v126_v45, %v125_v44  ;;  %v141_v50 = vld [vmem:[%s3036_s3 + $0x170] sm:$0xff]  ;;  %v242_v54 = vld [vmem:[%s3037_s5] sm:$0xff]  ;;  %v243_v55 = vld [vmem:[%s3037_s5 + $0x8] sm:$0xff] }
  0x29   :  { %1852 = vmatpush3.bf16.msra.mxu0 %v1851_v1  ;;  %v1905_v53 = vpack.c.bf16 %v142_v52, %v141_v50  ;;  %v1909_v56 = vpack.c.bf16 %v243_v55, %v242_v54  ;;  %v1238_v58 = vld [vmem:[%s3038_s2] ss:$0 sm:$0xff]  ;;  %v247_v19 = vld [vmem:[%s3037_s5 + $0x28] sm:$0xff]  ;;  %v248_v23 = vld [vmem:[%s3037_s5 + $0x30] sm:$0xff] }
  0x2a   :  { %1250 = vmatmul.mubr.msk.f32.gmra.mrb[2].mxu1 %vm2343_vm1, %v312_v62  ;;  %1854 = vmatprep.subr.bf16.mxu0 %v1853_v2  ;;  %v246_v18 = vld [vmem:[%s3037_s5 + $0x20] sm:$0xff]  ;;  %v251_v17 = vld [vmem:[%s3037_s5 + $0x48] sm:$0xff]  ;;  %v252_v46 = vld [vmem:[%s3037_s5 + $0x50] sm:$0xff] }
  0x2b   :  { %1884 = vmatpush3.bf16.msra.mxu1 %v1881_v59  ;;  %v1917_v22 = vpack.c.bf16 %v247_v19, %v246_v18  ;;  %v250_v26 = vld [vmem:[%s3037_s5 + $0x40] sm:$0xff]  ;;  %v255_v31 = vld [vmem:[%s3037_s5 + $0x68] sm:$0xff]  ;;  %v256_v33 = vld [vmem:[%s3037_s5 + $0x70] sm:$0xff] }
  0x2c   :  { %1886 = vmatprep.subr.bf16.mxu1 %v1885_v5  ;;  %v1925_v27 = vpack.c.bf16 %v251_v17, %v250_v26  ;;  %v254_v30 = vld [vmem:[%s3037_s5 + $0x60] sm:$0xff]  ;;  %v160_v40 = vld [vmem:[%s3036_s3 + $0x208] sm:$0xff]  ;;  %v161_v45 = vld [vmem:[%s3036_s3 + $0x210] sm:$0xff] }
  0x2d   :  { %1856 = vmatpush3.bf16.msra.mxu0 %v1855_v10  ;;  %v244_v10 = vld [vmem:[%s3037_s5 + $0x10] sm:$0xff]  ;;  %v175_v36 = vld [vmem:[%s3036_s3 + $0x280] sm:$0xff]  ;;  %v146_v50 = vld [vmem:[%s3036_s3 + $0x198] sm:$0xff] }
  0x2e   :  { %1858 = vmatprep.subr.bf16.mxu0 %v1857_v11  ;;  %v245_v11 = vld [vmem:[%s3037_s5 + $0x18] sm:$0xff]  ;;  %v159_v39 = vld [vmem:[%s3036_s3 + $0x200] sm:$0xff]  ;;  %v145_v48 = vld [vmem:[%s3036_s3 + $0x190] sm:$0xff] }
  0x2f   :  { %1888 = vmatpush3.bf16.msra.mxu1 %v1885_v5  ;;  %v1913_v15 = vpack.c.bf16 %v245_v11, %v244_v10  ;;  %v1941_v42 = vpack.c.bf16 %v160_v40, %v159_v39  ;;  %v163_v52 = vld [vmem:[%s3036_s3 + $0x220] sm:$0xff]  ;;  %v178_v26 = vld [vmem:[%s3036_s3 + $0x298] sm:$0xff]  ;;  %v153_v40 = vld [vmem:[%s3036_s3 + $0x1d0] sm:$0xff] }
  0x30   :  { %1890 = vmatprep.subr.bf16.mxu1 %v1889_v14  ;;  %v147_v54 = vld [vmem:[%s3036_s3 + $0x1a0] sm:$0xff]  ;;  %vm1262_vm6 = vmneg %vm745_vm4 }
  0x31   :  { %1860 = vmatpush3.bf16.msra.mxu0 %v1859_v20  ;;  %vm1264_vm7 = vmneg %vm738_vm5 }
  0x32   :  { %1862 = vmatprep.subr.bf16.mxu0 %v1861_v21 }
  0x33   :  { %1892 = vmatpush3.bf16.msra.mxu1 %v1889_v14 }
  0x34   :  { %1894 = vmatprep.subr.bf16.mxu1 %v1893_v24 }
  0x35   :  { %1864 = vmatpush3.bf16.msra.mxu0 %v1863_v25 }
  0x36   :  { %1866 = vmatprep.subr.bf16.mxu0 %v1865_v28  ;;  %v253_v28 = vld [vmem:[%s3037_s5 + $0x58] sm:$0xff] }
  0x37   :  { %1896 = vmatpush3.bf16.msra.mxu1 %v1893_v24  ;;  %v249_v24 = vld [vmem:[%s3037_s5 + $0x38] sm:$0xff]  ;;  %v1929_v29 = vpack.c.bf16 %v253_v28, %v252_v46  ;;  %v179_v28 = vld [vmem:[%s3036_s3 + $0x2a0] sm:$0xff] }
  0x38   :  { %1898 = vmatprep.subr.bf16.mxu1 %v1897_v34  ;;  %v1921_v25 = vpack.c.bf16 %v249_v24, %v248_v23 }
  0x39   :  { %1868 = vmatpush3.bf16.msra.mxu0 %v1867_v32  ;;  %v1933_v32 = vpack.c.bf16 %v255_v31, %v254_v30  ;;  %v181_v31 = vld [vmem:[%s3036_s3 + $0x2b0] sm:$0xff] }
  0x3a   :  { %1870 = vmatprep.subr.bf16.mxu0 %v1869_v37  ;;  %v176_v37 = vld [vmem:[%s3036_s3 + $0x288] sm:$0xff] }
  0x3b   :  { %1900 = vmatpush3.bf16.msra.mxu1 %v1897_v34  ;;  %v257_v34 = vld [vmem:[%s3037_s5 + $0x78] sm:$0xff]  ;;  %v2614_v38 = vpack.c.bf16 %v176_v37, %v175_v36  ;;  %v185_v37 = vld [vmem:[%s3036_s3 + $0x2d0] sm:$0xff] }
  0x3c   :  { %1902 = vmatprep.subr.bf16.mxu1 %v1901_v43  ;;  %v1937_v35 = vpack.c.bf16 %v257_v34, %v256_v33  ;;  %v183_v34 = vld [vmem:[%s3036_s3 + $0x2c0] sm:$0xff] }
  0x3d   :  { %1872 = vmatpush3.bf16.msra.mxu0 %v1871_v41  ;;  %v143_v41 = vld [vmem:[%s3036_s3 + $0x180] sm:$0xff] }
  0x3e   :  { %1874 = vmatprep.subr.bf16.mxu0 %v1873_v47  ;;  %v162_v47 = vld [vmem:[%s3036_s3 + $0x218] sm:$0xff] }
  0x3f   :  { %1904 = vmatpush3.bf16.msra.mxu1 %v1901_v43  ;;  %v144_v43 = vld [vmem:[%s3036_s3 + $0x188] sm:$0xff]  ;;  %v1945_v49 = vpack.c.bf16 %v162_v47, %v161_v45  ;;  %v171_v47 = vld [vmem:[%s3036_s3 + $0x260] sm:$0xff] }
  0x40   :  { %1906 = vmatprep.subr.bf16.mxu1 %v1905_v53  ;;  %v1943_v44 = vpack.c.bf16 %v144_v43, %v143_v41  ;;  %v154_v41 = vld [vmem:[%s3036_s3 + $0x1d8] sm:$0xff]  ;;  %v187_v43 = vld [vmem:[%s3036_s3 + $0x2e0] sm:$0xff] }
  0x41   :  { %1876 = vmatpush3.bf16.msra.mxu0 %v1875_v51  ;;  %v1947_v51 = vpack.c.bf16 %v146_v50, %v145_v48  ;;  %v172_v48 = vld [vmem:[%s3036_s3 + $0x268] sm:$0xff]  ;;  %v155_v50 = vld [vmem:[%s3036_s3 + $0x1e0] sm:$0xff] }
  0x42   :  { %1910 = vmatprep.subr.bf16.mxu0 %v1909_v56 }
  0x43   :  { %1908 = vmatpush3.bf16.msra.mxu1 %v1905_v53  ;;  %v164_v53 = vld [vmem:[%s3036_s3 + $0x228] sm:$0xff] }
  0x44   :  { %1942 = vmatprep.subr.bf16.mxu1 %v1941_v42  ;;  %v1949_v55 = vpack.c.bf16 %v164_v53, %v163_v52  ;;  %v1963_v42 = vpack.c.bf16 %v154_v41, %v153_v40  ;;  %v189_v53 = vld [vmem:[%s3036_s3 + $0x2f0] sm:$0xff]  ;;  %v210_v40 = vld [vmem:[%s3036_s3 + $0x398] sm:$0xff] }
  0xf7   :  { %v1305_v57 = vpop.f32.mrb[0].mxu0 }
  0xf8   :  { %v1306_v59 = vpop.f32.mrb[1].mxu0 }
  0xf9   :  { %v1343_v60 = vpop.f32.mrb[0].mxu1  ;;  %v1307_v61 = vadd.f32 %v1306_v59, %v1305_v57  ;;  %v166_v59 = vld [vmem:[%s3036_s3 + $0x238] sm:$0xff] }
  0xfa   :  { %v1344_v62 = vpop.f32.mrb[1].mxu1 }
  0xfb   :  { %v1345_v63 = vadd.f32 %v1344_v62, %v1343_v60  ;;  %v390_v0 = vadd.f32 %v1307_v61, %v1238_v58  ;;  %v1308_v1 = vpop.f32.mrb[2].mxu0  ;;  %v149_v60 = vld [vmem:[%s3036_s3 + $0x1b0] sm:$0xff]  ;;  %v150_v62 = vld [vmem:[%s3036_s3 + $0x1b8] sm:$0xff] }
  0xfc   :  { %v1309_v2 = vpop.f32.mrb[3].mxu0 }
  0xfd   :  { %v1346_v3 = vpop.f32.mrb[2].mxu1  ;;  %v2552_v4 = vadd.f32 %v1345_v63, %v390_v0  ;;  %v1310_v5 = vadd.f32 %v1309_v2, %v1308_v1  ;;  %v1955_v63 = vpack.c.bf16 %v150_v62, %v149_v60  ;;  %v167_v0 = vld [vmem:[%s3036_s3 + $0x240] sm:$0xff]  ;;  %v168_v1 = vld [vmem:[%s3036_s3 + $0x248] sm:$0xff]  ;;  %v158_v60 = vld [vmem:[%s3036_s3 + $0x1f8] sm:$0xff] }
  0xfe   :  { %v1347_v6 = vpop.f32.mrb[3].mxu1  ;;  %v151_v2 = vld [vmem:[%s3036_s3 + $0x1c0] sm:$0xff] }
  0xff   :  { %v1348_v7 = vadd.f32 %v1347_v6, %v1346_v3  ;;  %v395_v8 = vadd.f32 %v1310_v5, %v1238_v58  ;;  %v473_v9 = vmax.f32 %v2552_v4, 0.0  ;;  %v165_v58 = vld [vmem:[%s3036_s3 + $0x230] sm:$0xff]  ;;  %v1957_v3 = vpack.c.bf16 %v168_v1, %v167_v0  ;;  %v152_v5 = vld [vmem:[%s3036_s3 + $0x1c8] sm:$0xff]  ;;  %v258_v62 = vld [vmem:[%s3037_s5 + $0x80] sm:$0xff] }
 0x100   :  { %v1953_v61 = vpack.c.bf16 %v166_v59, %v165_v58  ;;  %v1959_v6 = vpack.c.bf16 %v152_v5, %v151_v2  ;;  %v157_v59 = vld [vmem:[%s3036_s3 + $0x1f0] sm:$0xff]  ;;  %v1260_v1 = vld [vmem:[%s3040_s6] ss:$0 sm:$0xff] }
 0x101   :  { %v2561_v12 = vadd.f32 %v1348_v7, %v395_v8  ;;  %v477_v13 = vrot.slane %v473_v9, 6  ;;  %1603 = vmatprep.mubr.f32.mxu1 %v473_v9  ;;  %v483_v14 = vrot.slane %v473_v9, 7  ;;  %v169_v7 = vld [vmem:[%s3036_s3 + $0x250] sm:$0xff]  ;;  %v170_v8 = vld [vmem:[%s3036_s3 + $0x258] sm:$0xff] }
 0x102   :  { %v1961_v9 = vpack.c.bf16 %v170_v8, %v169_v7 }
 0x103   :  { %v474_v16 = vmax.f32 %v2561_v12, 0.0  ;;  %1253 = vmatprep.mubr.msk.f32.mxu0 %vm2343_vm1, %v483_v14  ;;  %v1251_v14 = vld [vmem:[%s3039_s4] ss:$0 sm:$0xff] }
 0x104   :  { %1255 = vmatmul.mubr.msk.f32.vlgmr.msra.gmra.mrb[4].mxu0 %vm2400_vm3, %v477_v13 }
 0x105   :  { %1604 = vmatmul.mubr.f32.vlgmr.msra.gmra.mrb[4].mxu1 %v474_v16  ;;  %v484_v20 = vrot.slane %v474_v16, 7  ;;  %v478_v21 = vrot.slane %v474_v16, 6  ;;  %1912 = vmatpush3.bf16.msra.mxu0 %v1909_v56  ;;  %v148_v56 = vld [vmem:[%s3036_s3 + $0x1a8] sm:$0xff] }
 0x106   :  { %1914 = vmatprep.subr.bf16.mxu0 %v1913_v15  ;;  %1944 = vmatpush3.bf16.msra.mxu1 %v1943_v44  ;;  %v1951_v57 = vpack.c.bf16 %v148_v56, %v147_v54  ;;  %v188_v44 = vld [vmem:[%s3036_s3 + $0x2e8] sm:$0xff]  ;;  %v190_v54 = vld [vmem:[%s3036_s3 + $0x2f8] sm:$0xff]  ;;  %v173_v56 = vld [vmem:[%s3036_s3 + $0x270] sm:$0xff] }
 0x107   :  { %1257 = vmatprep.mubr.msk.f32.mxu0 %vm2343_vm1, %v484_v20  ;;  %1946 = vmatprep.subr.bf16.mxu1 %v1945_v49  ;;  %v1997_v45 = vpack.c.bf16 %v188_v44, %v187_v43  ;;  %v1965_v49 = vpack.c.bf16 %v172_v48, %v171_v47  ;;  %v193_v43 = vld [vmem:[%s3036_s3 + $0x310] sm:$0xff]  ;;  %v194_v44 = vld [vmem:[%s3036_s3 + $0x318] sm:$0xff]  ;;  %v212_v47 = vld [vmem:[%s3036_s3 + $0x3a8] sm:$0xff] }
 0x108   :  { %1259 = vmatmul.mubr.msk.f32.gmra.mrb[6].mxu0 %vm2400_vm3, %v478_v21  ;;  %v2043_v48 = vpack.c.bf16 %v194_v44, %v193_v43  ;;  %v228_v43 = vld [vmem:[%s3036_s3 + $0x428] sm:$0xff] }
 0x109   :  { %1916 = vmatpush3.bf16.msra.mxu0 %v1913_v15 }
 0x10a   :  { %1918 = vmatprep.subr.bf16.mxu0 %v1917_v22  ;;  %1948 = vmatpush3.bf16.msra.mxu1 %v1947_v51  ;;  %v156_v51 = vld [vmem:[%s3036_s3 + $0x1e8] sm:$0xff] }
 0x10b   :  { %1950 = vmatprep.subr.bf16.mxu1 %v1949_v55  ;;  %v1967_v52 = vpack.c.bf16 %v156_v51, %v155_v50  ;;  %v2001_v55 = vpack.c.bf16 %v190_v54, %v189_v53  ;;  %v224_v50 = vld [vmem:[%s3036_s3 + $0x408] sm:$0xff] }
 0x10c   :  { %v196_v53 = vld [vmem:[%s3036_s3 + $0x328] sm:$0xff] }
 0x10d   :  { %1920 = vmatpush3.bf16.msra.mxu0 %v1917_v22 }
 0x10e   :  { %1922 = vmatprep.subr.bf16.mxu0 %v1921_v25  ;;  %1952 = vmatpush3.bf16.msra.mxu1 %v1951_v57  ;;  %v174_v57 = vld [vmem:[%s3036_s3 + $0x278] sm:$0xff] }
 0x10f   :  { %1954 = vmatprep.subr.bf16.mxu1 %v1953_v61  ;;  %v1969_v58 = vpack.c.bf16 %v174_v57, %v173_v56  ;;  %v1971_v61 = vpack.c.bf16 %v158_v60, %v157_v59  ;;  %v214_v56 = vld [vmem:[%s3036_s3 + $0x3b8] sm:$0xff]  ;;  %v197_v59 = vld [vmem:[%s3036_s3 + $0x330] sm:$0xff] }
 0x110   :  { %v198_v60 = vld [vmem:[%s3036_s3 + $0x338] sm:$0xff] }
 0x111   :  { %1924 = vmatpush3.bf16.msra.mxu0 %v1921_v25  ;;  %v177_v25 = vld [vmem:[%s3036_s3 + $0x290] sm:$0xff] }
 0x112   :  { %1926 = vmatprep.subr.bf16.mxu0 %v1925_v27  ;;  %1956 = vmatpush3.bf16.msra.mxu1 %v1955_v63  ;;  %v1977_v46 = vpack.c.bf16 %v178_v26, %v177_v25  ;;  %v259_v63 = vld [vmem:[%s3037_s5 + $0x88] sm:$0xff] }
 0x113   :  { %1958 = vmatprep.subr.bf16.mxu1 %v1957_v3  ;;  %v2005_v0 = vpack.c.bf16 %v259_v63, %v258_v62  ;;  %v267_v25 = vld [vmem:[%s3037_s5 + $0xc8] sm:$0xff]  ;;  %v2051_v63 = vpack.c.bf16 %v198_v60, %v197_v59  ;;  %v238_v59 = vld [vmem:[%s3036_s3 + $0x478] sm:$0xff] }
 0x114   :  { %v216_v62 = vld [vmem:[%s3036_s3 + $0x3c8] sm:$0xff] }
 0x115   :  { %1928 = vmatpush3.bf16.msra.mxu0 %v1925_v27 }
 0x116   :  { %1930 = vmatprep.subr.bf16.mxu0 %v1929_v29  ;;  %1960 = vmatpush3.bf16.msra.mxu1 %v1959_v6 }
 0x117   :  { %1962 = vmatprep.subr.bf16.mxu1 %v1961_v9 }
 0x119   :  { %1932 = vmatpush3.bf16.msra.mxu0 %v1929_v29  ;;  %v180_v29 = vld [vmem:[%s3036_s3 + $0x2a8] sm:$0xff] }
 0x11a   :  { %1934 = vmatprep.subr.bf16.mxu0 %v1933_v32  ;;  %v1981_v30 = vpack.c.bf16 %v180_v29, %v179_v28  ;;  %1964 = vmatpush3.bf16.msra.mxu1 %v1963_v42  ;;  %v270_v28 = vld [vmem:[%s3037_s5 + $0xe0] sm:$0xff]  ;;  %v271_v29 = vld [vmem:[%s3037_s5 + $0xe8] sm:$0xff] }
 0x11b   :  { %1966 = vmatprep.subr.bf16.mxu1 %v1965_v49  ;;  %v223_v49 = vld [vmem:[%s3036_s3 + $0x400] sm:$0xff] }
 0x11c   :  { %v2860_v54 = vpack.c.bf16 %v224_v50, %v223_v49  ;;  %v231_v49 = vld [vmem:[%s3036_s3 + $0x440] sm:$0xff]  ;;  %v232_v50 = vld [vmem:[%s3036_s3 + $0x448] sm:$0xff] }
 0x11d   :  { %1936 = vmatpush3.bf16.msra.mxu0 %v1933_v32  ;;  %v182_v32 = vld [vmem:[%s3036_s3 + $0x2b8] sm:$0xff] }
 0x11e   :  { %1938 = vmatprep.subr.bf16.mxu0 %v1937_v35  ;;  %v1985_v33 = vpack.c.bf16 %v182_v32, %v181_v31  ;;  %1968 = vmatpush3.bf16.msra.mxu1 %v1967_v52  ;;  %v272_v31 = vld [vmem:[%s3037_s5 + $0xf0] sm:$0xff]  ;;  %v273_v32 = vld [vmem:[%s3037_s5 + $0xf8] sm:$0xff]  ;;  %v195_v52 = vld [vmem:[%s3036_s3 + $0x320] sm:$0xff] }
 0x11f   :  { %1970 = vmatprep.subr.bf16.mxu1 %v1969_v58  ;;  %v2047_v57 = vpack.c.bf16 %v196_v53, %v195_v52  ;;  %v233_v52 = vld [vmem:[%s3036_s3 + $0x450] sm:$0xff]  ;;  %v234_v53 = vld [vmem:[%s3036_s3 + $0x458] sm:$0xff] }
 0x121   :  { %1940 = vmatpush3.bf16.msra.mxu0 %v1937_v35  ;;  %v184_v35 = vld [vmem:[%s3036_s3 + $0x2c8] sm:$0xff] }
 0x122   :  { %1974 = vmatprep.subr.bf16.mxu0 %v2614_v38  ;;  %v1989_v36 = vpack.c.bf16 %v184_v35, %v183_v34  ;;  %1972 = vmatpush3.bf16.msra.mxu1 %v1971_v61  ;;  %v207_v34 = vld [vmem:[%s3036_s3 + $0x380] sm:$0xff]  ;;  %v208_v35 = vld [vmem:[%s3036_s3 + $0x388] sm:$0xff] }
 0x123   :  { %2006 = vmatprep.subr.bf16.mxu1 %v2005_v0  ;;  %v215_v61 = vld [vmem:[%s3036_s3 + $0x3c0] sm:$0xff] }
 0x1d7   :  { %v1381_v10 = vpop.f32.mrb[4].mxu0 }
 0x1d8   :  { %v1382_v11 = vpop.f32.mrb[5].mxu0  ;;  %v1605_v13 = vpop.f32.mrb[4].mxu1 }
 0x1d9   :  { %v1383_v15 = vadd.f32 %v1382_v11, %v1381_v10  ;;  %v636_v16 = vpop.f32.mrb[5].mxu1  ;;  %v260_v11 = vld [vmem:[%s3037_s5 + $0x90] sm:$0xff] }
 0x1db   :  { %v562_v18 = vadd.f32 %v1383_v15, %v1251_v14  ;;  %v1384_v19 = vpop.f32.mrb[6].mxu0 }
 0x1dc   :  { %v1385_v20 = vpop.f32.mrb[7].mxu0 }
 0x1dd   :  { %v637_v21 = vadd.f32 %v636_v16, %v562_v18  ;;  %v1386_v22 = vadd.f32 %v1385_v20, %v1384_v19  ;;  %v262_v16 = vld [vmem:[%s3037_s5 + $0xa0] sm:$0xff]  ;;  %v263_v18 = vld [vmem:[%s3037_s5 + $0xa8] sm:$0xff] }
 0x1de   :  { %v2013_v20 = vpack.c.bf16 %v263_v18, %v262_v16  ;;  %v204_v16 = vld [vmem:[%s3036_s3 + $0x368] sm:$0xff]  ;;  %v221_v18 = vld [vmem:[%s3036_s3 + $0x3f0] sm:$0xff] }
 0x1df   :  { %v645_v23 = vmax.f32 %v637_v21, 0.0  ;;  %v567_v24 = vadd.f32 %v1386_v22, %v1251_v14  ;;  %v264_v21 = vld [vmem:[%s3037_s5 + $0xb0] sm:$0xff]  ;;  %v265_v22 = vld [vmem:[%s3037_s5 + $0xb8] sm:$0xff] }
 0x1e1   :  { %v642_v17 = vadd.f32 %v1605_v13, %v567_v24  ;;  %1638 = vmatprep.mubr.f32.mxu0 %v645_v23  ;;  %v261_v13 = vld [vmem:[%s3037_s5 + $0x98] sm:$0xff]  ;;  %v2017_v23 = vpack.c.bf16 %v265_v22, %v264_v21  ;;  %v266_v24 = vld [vmem:[%s3037_s5 + $0xc0] sm:$0xff] }
 0x1e2   :  { %v2021_v26 = vpack.c.bf16 %v267_v25, %v266_v24  ;;  %v206_v24 = vld [vmem:[%s3036_s3 + $0x378] sm:$0xff] }
 0x1e3   :  { %v646_v27 = vmax.f32 %v642_v17, 0.0  ;;  %v268_v17 = vld [vmem:[%s3037_s5 + $0xd0] sm:$0xff] }
 0x1e5   :  { %1639 = vmatmul.mubr.f32.vlgmr.msra.gmra.mrb[8].mxu0 %v646_v27  ;;  %v269_v27 = vld [vmem:[%s3037_s5 + $0xd8] sm:$0xff] }
 0x1e6   :  { %1976 = vmatpush3.bf16.msra.mxu0 %v2614_v38  ;;  %v186_v38 = vld [vmem:[%s3036_s3 + $0x2d8] sm:$0xff] }
 0x1e7   :  { %1978 = vmatprep.subr.bf16.mxu0 %v1977_v46  ;;  %v1993_v39 = vpack.c.bf16 %v186_v38, %v185_v37  ;;  %v2037_v37 = vpack.c.bf16 %v208_v35, %v207_v34  ;;  %v192_v38 = vld [vmem:[%s3036_s3 + $0x308] sm:$0xff] }
 0x1ea   :  { %1980 = vmatpush3.bf16.msra.mxu0 %v1977_v46  ;;  %v2025_v46 = vpack.c.bf16 %v269_v27, %v268_v17 }
 0x1eb   :  { %1982 = vmatprep.subr.bf16.mxu0 %v1981_v30 }
 0x1ee   :  { %1984 = vmatpush3.bf16.msra.mxu0 %v1981_v30  ;;  %v2029_v30 = vpack.c.bf16 %v271_v29, %v270_v28 }
 0x1ef   :  { %1986 = vmatprep.subr.bf16.mxu0 %v1985_v33 }
 0x1f2   :  { %1988 = vmatpush3.bf16.msra.mxu0 %v1985_v33  ;;  %v2033_v33 = vpack.c.bf16 %v273_v32, %v272_v31 }
 0x1f3   :  { %1990 = vmatprep.subr.bf16.mxu0 %v1989_v36 }
 0x1f6   :  { %1992 = vmatpush3.bf16.msra.mxu0 %v1989_v36  ;;  %v191_v36 = vld [vmem:[%s3036_s3 + $0x300] sm:$0xff] }
 0x1f7   :  { %1994 = vmatprep.subr.bf16.mxu0 %v1993_v39  ;;  %v2039_v41 = vpack.c.bf16 %v192_v38, %v191_v36  ;;  %v226_v38 = vld [vmem:[%s3036_s3 + $0x418] sm:$0xff] }
 0x1fa   :  { %1996 = vmatpush3.bf16.msra.mxu0 %v1993_v39  ;;  %v209_v39 = vld [vmem:[%s3036_s3 + $0x390] sm:$0xff] }
 0x1fb   :  { %1998 = vmatprep.subr.bf16.mxu0 %v1997_v45  ;;  %v2041_v42 = vpack.c.bf16 %v210_v40, %v209_v39 }
 0x1fe   :  { %2000 = vmatpush3.bf16.msra.mxu0 %v1997_v45  ;;  %v211_v45 = vld [vmem:[%s3036_s3 + $0x3a0] sm:$0xff] }
 0x1ff   :  { %2002 = vmatprep.subr.bf16.mxu0 %v2001_v55  ;;  %v2045_v51 = vpack.c.bf16 %v212_v47, %v211_v45  ;;  %v229_v45 = vld [vmem:[%s3036_s3 + $0x430] sm:$0xff]  ;;  %v230_v47 = vld [vmem:[%s3036_s3 + $0x438] sm:$0xff] }
 0x202   :  { %2004 = vmatpush3.bf16.msra.mxu0 %v2001_v55  ;;  %v213_v55 = vld [vmem:[%s3036_s3 + $0x3b0] sm:$0xff] }
 0x203   :  { %2038 = vmatprep.subr.bf16.mxu0 %v2037_v37  ;;  %v2049_v58 = vpack.c.bf16 %v214_v56, %v213_v55  ;;  %v225_v37 = vld [vmem:[%s3036_s3 + $0x410] sm:$0xff]  ;;  %v235_v55 = vld [vmem:[%s3036_s3 + $0x460] sm:$0xff]  ;;  %v236_v56 = vld [vmem:[%s3036_s3 + $0x468] sm:$0xff] }
 0x2b8   :  { %v1640_v2 = vpop.f32.mrb[8].mxu0 }
 0x2b9   :  { %v725_v3 = vadd.f32 %v1640_v2, %v1260_v1  ;;  %v719_v5 = vpop.f32.mrb[9].mxu0  ;;  %v200_v2 = vld [vmem:[%s3036_s3 + $0x348] sm:$0xff] }
 0x2ba   :  { %v720_v6 = vadd.f32 %v1260_v1, %v719_v5  ;;  %v199_v1 = vld [vmem:[%s3036_s3 + $0x340] sm:$0xff]  ;;  %v218_v5 = vld [vmem:[%s3036_s3 + $0x3d8] sm:$0xff] }
 0x2bb   :  { %v2769_v7 = vadd.f32 %v725_v3, %v2561_v12  ;;  %v217_v3 = vld [vmem:[%s3036_s3 + $0x3d0] sm:$0xff] }
 0x2bc   :  { %v2772_v8 = vadd.f32 %v720_v6, %v2552_v4  ;;  %v2009_v4 = vpack.c.bf16 %v261_v13, %v260_v11  ;;  %v2055_v6 = vpack.c.bf16 %v200_v2, %v199_v1  ;;  %v202_v11 = vld [vmem:[%s3036_s3 + $0x358] sm:$0xff]  ;;  %v219_v13 = vld [vmem:[%s3036_s3 + $0x3e0] sm:$0xff] }
 0x2bd   :  { %v731_v9 = vmax.f32 %v2769_v7, 0.0  ;;  %v277_v1 = vld [vmem:[%s3037_s5 + $0x118] sm:$0xff] }
 0x2be   :  { %v730_v10 = vmax.f32 %v2772_v8, 0.0 }
 0x2bf   :  { %v742_v15 = vrot.slane %v731_v9, 5  ;;  %v735_v19 = vrot.slane %v731_v9, 2 }
 0x2c0   :  { %v734_v12 = vrot.slane %v730_v10, 2  ;;  %1673 = vmatprep.mubr.f32.mxu0 %v730_v10  ;;  %v741_v14 = vrot.slane %v730_v10, 5  ;;  %v201_v10 = vld [vmem:[%s3036_s3 + $0x350] sm:$0xff] }
 0x2c1   :  { %1674 = vmatmul.mubr.f32.vlgmr.msra.gmra.mrb[10].mxu0 %v731_v9  ;;  %v2057_v9 = vpack.c.bf16 %v218_v5, %v217_v3  ;;  %v278_v3 = vld [vmem:[%s3037_s5 + $0x120] sm:$0xff]  ;;  %v279_v5 = vld [vmem:[%s3037_s5 + $0x128] sm:$0xff] }
 0x2c2   :  { %1263 = vmatprep.mubr.msk.f32.mxu1 %vm1262_vm6, %v741_v14  ;;  %2040 = vmatpush3.bf16.msra.mxu0 %v2039_v41  ;;  %v2059_v14 = vpack.c.bf16 %v202_v11, %v201_v10  ;;  %v2073_v41 = vpack.c.bf16 %v226_v38, %v225_v37  ;;  %v281_v10 = vld [vmem:[%s3037_s5 + $0x138] sm:$0xff] }
 0x2c3   :  { %1265 = vmatmul.mubr.msk.f32.vlgmr.msra.gmra.mrb[6].mxu1 %vm1264_vm7, %v734_v12  ;;  %2042 = vmatprep.subr.bf16.mxu0 %v2041_v42  ;;  %v220_v12 = vld [vmem:[%s3036_s3 + $0x3e8] sm:$0xff]  ;;  %v227_v42 = vld [vmem:[%s3036_s3 + $0x420] sm:$0xff] }
 0x2c4   :  { %1267 = vmatprep.mubr.msk.f32.mxu1 %vm1262_vm6, %v742_v15  ;;  %2008 = vmatpush3.bf16.msra.mxu1 %v2005_v0  ;;  %v2053_v0 = vpack.c.bf16 %v216_v62, %v215_v61  ;;  %v203_v15 = vld [vmem:[%s3036_s3 + $0x360] sm:$0xff]  ;;  %v2077_v44 = vpack.c.bf16 %v228_v43, %v227_v42  ;;  %v275_v62 = vld [vmem:[%s3037_s5 + $0x108] sm:$0xff] }
 0x2c5   :  { %2010 = vmatprep.subr.bf16.mxu1 %v2009_v4  ;;  %v2063_v21 = vpack.c.bf16 %v204_v16, %v203_v15  ;;  %v274_v61 = vld [vmem:[%s3037_s5 + $0x100] sm:$0xff]  ;;  %v285_v15 = vld [vmem:[%s3037_s5 + $0x158] sm:$0xff] }
 0x2c6   :  { %2044 = vmatpush3.bf16.msra.mxu0 %v2043_v48  ;;  %v2081_v48 = vpack.c.bf16 %v230_v47, %v229_v45 }
 0x2c7   :  { %1269 = vmatmul.mubr.msk.f32.gmra.mrb[8].mxu1 %vm1264_vm7, %v735_v19  ;;  %2046 = vmatprep.subr.bf16.mxu0 %v2045_v51  ;;  %v222_v19 = vld [vmem:[%s3036_s3 + $0x3f8] sm:$0xff]  ;;  %v2085_v51 = vpack.c.bf16 %v232_v50, %v231_v49 }
 0x2c8   :  { %2012 = vmatpush3.bf16.msra.mxu1 %v2009_v4  ;;  %v2061_v4 = vpack.c.bf16 %v220_v12, %v219_v13  ;;  %v2065_v22 = vpack.c.bf16 %v222_v19, %v221_v18  ;;  %v282_v13 = vld [vmem:[%s3037_s5 + $0x140] sm:$0xff]  ;;  %v283_v12 = vld [vmem:[%s3037_s5 + $0x148] sm:$0xff] }
 0x2c9   :  { %2014 = vmatprep.subr.bf16.mxu1 %v2013_v20  ;;  %v286_v18 = vld [vmem:[%s3037_s5 + $0x160] sm:$0xff]  ;;  %v287_v19 = vld [vmem:[%s3037_s5 + $0x168] sm:$0xff] }
 0x2ca   :  { %2048 = vmatpush3.bf16.msra.mxu0 %v2047_v57  ;;  %v2093_v57 = vpack.c.bf16 %v236_v56, %v235_v55 }
 0x2cb   :  { %2050 = vmatprep.subr.bf16.mxu0 %v2049_v58  ;;  %v237_v58 = vld [vmem:[%s3036_s3 + $0x470] sm:$0xff] }
 0x2cc   :  { %2016 = vmatpush3.bf16.msra.mxu1 %v2013_v20  ;;  %v2134_v20 = vmov 0.0   ;;  %v2097_v60 = vpack.c.bf16 %v238_v59, %v237_v58 }
 0x2cd   :  { %2018 = vmatprep.subr.bf16.mxu1 %v2017_v23  ;;  %1061 = vmatprep.mubr.f32.mxu0 %v2134_v20 }
 0x2ce   :  { %2052 = vmatpush3.bf16.msra.mxu0 %v2051_v63  ;;  %v276_v63 = vld [vmem:[%s3037_s5 + $0x110] sm:$0xff] }
 0x2cf   :  { %2054 = vmatprep.subr.bf16.mxu0 %v2053_v0  ;;  %v2101_v0 = vpack.c.bf16 %v275_v62, %v274_v61  ;;  %v2105_v2 = vpack.c.bf16 %v277_v1, %v276_v63 }
 0x2d0   :  { %2020 = vmatpush3.bf16.msra.mxu1 %v2017_v23  ;;  %v205_v23 = vld [vmem:[%s3036_s3 + $0x370] sm:$0xff] }
 0x2d1   :  { %2022 = vmatprep.subr.bf16.mxu1 %v2021_v26  ;;  %v2067_v25 = vpack.c.bf16 %v206_v24, %v205_v23 }
 0x2d2   :  { %2056 = vmatpush3.bf16.msra.mxu0 %v2055_v6  ;;  %v2109_v6 = vpack.c.bf16 %v279_v5, %v278_v3 }
 0x2d3   :  { %2058 = vmatprep.subr.bf16.mxu0 %v2057_v9  ;;  %v280_v9 = vld [vmem:[%s3037_s5 + $0x130] sm:$0xff] }
 0x2d4   :  { %2024 = vmatpush3.bf16.msra.mxu1 %v2021_v26  ;;  %v2113_v11 = vpack.c.bf16 %v281_v10, %v280_v9 }
 0x2d5   :  { %2026 = vmatprep.subr.bf16.mxu1 %v2025_v46 }
 0x2d6   :  { %2060 = vmatpush3.bf16.msra.mxu0 %v2059_v14  ;;  %v2117_v14 = vpack.c.bf16 %v283_v12, %v282_v13 }
 0x2d7   :  { %2062 = vmatprep.subr.bf16.mxu0 %v2061_v4  ;;  %v284_v4 = vld [vmem:[%s3037_s5 + $0x150] sm:$0xff] }
 0x2d8   :  { %2028 = vmatpush3.bf16.msra.mxu1 %v2025_v46  ;;  %v1261_v46 = vld [vmem:[%s3039_s4 + $0x1] ss:$0 sm:$0xff]  ;;  %v2121_v16 = vpack.c.bf16 %v285_v15, %v284_v4 }
 0x2d9   :  { %2030 = vmatprep.subr.bf16.mxu1 %v2029_v30 }
 0x2da   :  { %2064 = vmatpush3.bf16.msra.mxu0 %v2063_v21 }
 0x2db   :  { %2066 = vmatprep.subr.bf16.mxu0 %v2065_v22 }
 0x2dc   :  { %2032 = vmatpush3.bf16.msra.mxu1 %v2029_v30 }
 0x2dd   :  { %2034 = vmatprep.subr.bf16.mxu1 %v2033_v33 }
 0x2de   :  { %2068 = vmatpush3.bf16.msra.mxu0 %v2067_v25 }
 0x2df   :  { %2102 = vmatprep.subr.bf16.mxu0 %v2101_v0 }
 0x2e0   :  { %2036 = vmatpush3.bf16.msra.mxu1 %v2033_v33 }
 0x2e1   :  { %2070 = vmatprep.subr.bf16.mxu1 %v2860_v54  ;;  %1062 = vmatmul.mubr.f32.vlgmr.msra.gmra.mrb[12].mxu0 %v2134_v20 }
 0x2e2   :  { %1066 = vmatprep.mubr.f32.mxu0 %v2134_v20  ;;  %2104 = vmatpush3.bf16.msra.mxu0 %v2101_v0 }
 0x2e3   :  { %2106 = vmatprep.subr.bf16.mxu0 %v2105_v2 }
 0x2e5   :  { %1067 = vmatmul.mubr.f32.gmra.mrb[14].mxu0 %v2134_v20  ;;  %v2125_v20 = vpack.c.bf16 %v287_v19, %v286_v18 }
 0x2e6   :  { %2108 = vmatpush3.bf16.msra.mxu0 %v2105_v2 }
 0x2e7   :  { %2110 = vmatprep.subr.bf16.mxu0 %v2109_v6 }
 0x2ea   :  { %2112 = vmatpush3.bf16.msra.mxu0 %v2109_v6 }
 0x2eb   :  { %2114 = vmatprep.subr.bf16.mxu0 %v2113_v11 }
 0x2ee   :  { %2116 = vmatpush3.bf16.msra.mxu0 %v2113_v11 }
 0x2ef   :  { %2118 = vmatprep.subr.bf16.mxu0 %v2117_v14 }
 0x2f2   :  { %2120 = vmatpush3.bf16.msra.mxu0 %v2117_v14 }
 0x2f3   :  { %2122 = vmatprep.subr.bf16.mxu0 %v2121_v16 }
 0x2f6   :  { %2124 = vmatpush3.bf16.msra.mxu0 %v2121_v16 }
 0x2f7   :  { %2126 = vmatprep.subr.bf16.mxu0 %v2125_v20 }
 0x2fa   :  { %2128 = vmatpush3.bf16.msra.mxu0 %v2125_v20 }
 0x394   :  { %v1675_v26 = vpop.f32.mrb[10].mxu0 }
 0x395   :  { %v895_v17 = vpop.f32.mrb[11].mxu0 }
 0x396   :  { %v1455_v27 = vpop.f32.mrb[6].mxu1 }
 0x397   :  { %v1456_v28 = vpop.f32.mrb[7].mxu1 }
 0x398   :  { %v1457_v29 = vadd.f32 %v1456_v28, %v1455_v27 }
 0x39a   :  { %v821_v30 = vadd.f32 %v1457_v29, %v1261_v46  ;;  %v1458_v31 = vpop.f32.mrb[8].mxu1 }
 0x39b   :  { %v1459_v32 = vpop.f32.mrb[9].mxu1 }
 0x39c   :  { %v1460_v33 = vadd.f32 %v1459_v32, %v1458_v31  ;;  %v896_v34 = vadd.f32 %v895_v17, %v821_v30  ;;  %v1270_v17 = vld [vmem:[%s3040_s6 + $0x1] ss:$0 sm:$0xff] }
 0x39e   :  { %v826_v35 = vadd.f32 %v1460_v33, %v1261_v46  ;;  %v904_v36 = vmax.f32 %v896_v34, 0.0  ;;  %v288_v34 = vld [vmem:[%s3037_s5 + $0x170] sm:$0xff] }
 0x3a0   :  { %v901_v39 = vadd.f32 %v1675_v26, %v826_v35  ;;  %1708 = vmatprep.mubr.f32.mxu1 %v904_v36  ;;  %v289_v35 = vld [vmem:[%s3037_s5 + $0x178] sm:$0xff] }
 0x3a1   :  { %v2129_v36 = vpack.c.bf16 %v289_v35, %v288_v34 }
 0x3a2   :  { %v905_v40 = vmax.f32 %v901_v39, 0.0 }
 0x3a3   :  { %2130 = vmatprep.subr.bf16.mxu0 %v2129_v36 }
 0x3a4   :  { %1709 = vmatmul.mubr.f32.vlgmr.msra.gmra.mrb[10].mxu1 %v905_v40  ;;  %2132 = vmatpush3.bf16.msra.mxu0 %v2129_v36 }
 0x3a5   :  { %2072 = vmatpush3.bf16.msra.mxu1 %v2860_v54  ;;  %v2089_v54 = vpack.c.bf16 %v234_v53, %v233_v52 }
 0x3a6   :  { %2074 = vmatprep.subr.bf16.mxu1 %v2073_v41 }
 0x3a9   :  { %2076 = vmatpush3.bf16.msra.mxu1 %v2073_v41 }
 0x3aa   :  { %2078 = vmatprep.subr.bf16.mxu1 %v2077_v44 }
 0x3ad   :  { %2080 = vmatpush3.bf16.msra.mxu1 %v2077_v44  ;;  %v1272_v44 = vld [vmem:[%s3040_s6 + $0x2] ss:$0 sm:$0xff] }
 0x3ae   :  { %2082 = vmatprep.subr.bf16.mxu1 %v2081_v48 }
 0x3b1   :  { %2084 = vmatpush3.bf16.msra.mxu1 %v2081_v48 }
 0x3b2   :  { %2086 = vmatprep.subr.bf16.mxu1 %v2085_v51 }
 0x3b4   :  { %v1529_v21 = vpop.f32.mrb[12].mxu0 }
 0x3b5   :  { %2088 = vmatpush3.bf16.msra.mxu1 %v2085_v51  ;;  %v1530_v22 = vpop.f32.mrb[13].mxu0 }
 0x3b6   :  { %2090 = vmatprep.subr.bf16.mxu1 %v2089_v54  ;;  %v1531_v23 = vadd.f32 %v1530_v22, %v1529_v21 }
 0x3b8   :  { %v1532_v24 = vpop.f32.mrb[14].mxu0 }
 0x3b9   :  { %2092 = vmatpush3.bf16.msra.mxu1 %v2089_v54  ;;  %v1533_v25 = vpop.f32.mrb[15].mxu0 }
 0x3ba   :  { %2094 = vmatprep.subr.bf16.mxu1 %v2093_v57  ;;  %v1534_v26 = vadd.f32 %v1533_v25, %v1532_v24 }
 0x3bd   :  { %2096 = vmatpush3.bf16.msra.mxu1 %v2093_v57 }
 0x3be   :  { %2098 = vmatprep.subr.bf16.mxu1 %v2097_v60 }
 0x3c1   :  { %2100 = vmatpush3.bf16.msra.mxu1 %v2097_v60 }
 0x477   :  { %v1710_v27 = vpop.f32.mrb[10].mxu1 }
 0x478   :  { %v984_v46 = vadd.f32 %v1710_v27, %v1270_v17  ;;  %v978_v28 = vpop.f32.mrb[11].mxu1 }
 0x479   :  { %v979_v29 = vadd.f32 %v1270_v17, %v978_v28 }
 0x47a   :  { %v988_v30 = vadd.f32 %v984_v46, %v2769_v7  ;;  %v1271_v7 = vld [vmem:[%s3039_s4 + $0x2] ss:$0 sm:$0xff] }
 0x47b   :  { %v987_v31 = vadd.f32 %v979_v29, %v2772_v8  ;;  %v1069_v8 = vadd.f32 %v1534_v26, %v1271_v7  ;;  %v1064_v38 = vadd.f32 %v1531_v23, %v1271_v7 }
 0x47c   :  { %v990_v33 = vmax.f32 %v988_v30, 0.0 }
 0x47d   :  { %v989_v32 = vmax.f32 %v987_v31, 0.0 }
 0x47f   :  { %1743 = vmatprep.mubr.f32.mxu1 %v989_v32 }
 0x480   :  { %1744 = vmatmul.mubr.f32.vlgmr.msra.gmra.mrb[12].mxu1 %v990_v33 }
 0x553   :  { %v1745_v37 = vpop.f32.mrb[12].mxu1 }
 0x554   :  { %v1144_v39 = vadd.f32 %v1745_v37, %v1069_v8  ;;  %v1138_v40 = vpop.f32.mrb[13].mxu1 }
 0x555   :  { %v1139_v41 = vadd.f32 %v1138_v40, %v1064_v38 }
 0x556   :  { %v1148_v43 = vmax.f32 %v1144_v39, 0.0 }
 0x557   :  { %v1147_v42 = vmax.f32 %v1139_v41, 0.0 }
 0x559   :  { %1778 = vmatprep.mubr.f32.mxu0 %v1147_v42 }
 0x55a   :  { %1779 = vmatmul.mubr.f32.vlgmr.msra.gmra.mrb[16].mxu0 %v1148_v43 }
 0x62d   :  { %v1780_v45 = vpop.f32.mrb[16].mxu0 }
 0x62e   :  { %v1227_v47 = vadd.f32 %v1780_v45, %v1272_v44  ;;  %v1221_v48 = vpop.f32.mrb[17].mxu0 }
 0x62f   :  { %v1222_v49 = vadd.f32 %v1272_v44, %v1221_v48 }
 0x630   :  { %v1231_v50 = vadd.f32 %v1227_v47, %v988_v30 }
 0x631   :  { %v1230_v51 = vadd.f32 %v1222_v49, %v987_v31 }
 0x632   :  { %1233 = vst [vmem:[%s3041_s7 + $0x8] sm:$0xff] %v1231_v50 }
 0x633   :  { %1232 = vst [vmem:[%s3041_s7] sm:$0xff] %v1230_v51 }

// kernel: forward.9
= control target key start
LH: loop header
LB: loop body
LE: loop exit
PB: predicated region body
PF: predicated region fallthrough
CT: control target
= control target key end

     0   :  { %vm382_vm0 = vcmask 1040384   ;;  %vm375_vm2 = vcmask 1041408   ;;  %vm1659_vm4 = vcmask 261120   ;;  %vm646_vm5 = vcmask 130048   ;;  %s3989_s2 = inlined_call_operand.vmem [shape: f32[384,128], index: 2, kind: input, shape index: {}]   ;;  %s3990_s0 = inlined_call_operand.vmem [shape: f32[2,8,128], index: 0, kind: input, shape index: {}]   ;;  %s3991_s4 = inlined_call_operand.vmem [shape: f32[128,32], index: 4, kind: input, shape index: {}]   ;;  %s3992_s3 = inlined_call_operand.vmem [shape: f32[1,128], index: 3, kind: input, shape index: {}]   ;;  %s3993_s5 = inlined_call_operand.vmem [shape: f32[1,32], index: 5, kind: input, shape index: {}]   ;;  %s3994_s14 = inlined_call_operand.vmem [shape: f32[2,8,32], index: 14, kind: output, shape index: {0}]   ;;  %s3995_s6 = inlined_call_operand.vmem [shape: f32[16,128], index: 6, kind: input, shape index: {}]   ;;  %s3996_s8 = inlined_call_operand.vmem [shape: f32[384,128], index: 8, kind: input, shape index: {}]   ;;  %s3997_s1 = inlined_call_operand.vmem [shape: f32[2,8,16], index: 1, kind: input, shape index: {}]   ;;  %s3998_s10 = inlined_call_operand.vmem [shape: f32[3,384,128], index: 10, kind: input, shape index: {}]   ;;  %s3999_s7 = inlined_call_operand.vmem [shape: f32[1,128], index: 7, kind: input, shape index: {}]   ;;  %s4000_s12 = inlined_call_operand.vmem [shape: f32[3,128,128], index: 12, kind: input, shape index: {}]   ;;  %s4001_s9 = inlined_call_operand.vmem [shape: f32[1,128], index: 9, kind: input, shape index: {}]   ;;  %s4002_s11 = inlined_call_operand.vmem [shape: f32[3,1,128], index: 11, kind: input, shape index: {}]   ;;  %s4003_s13 = inlined_call_operand.vmem [shape: f32[3,1,128], index: 13, kind: input, shape index: {}]   ;;  %s4004_s15 = inlined_call_operand.vmem [shape: f32[2,8,128], index: 15, kind: output, shape index: {1}]  }
   0x1   :  { %v69_v0 = vld [vmem:[%s3989_s2 + $0x80] sm:$0xff]  ;;  %v70_v1 = vld [vmem:[%s3989_s2 + $0x88] sm:$0xff]  ;;  %v71_v5 = vld [vmem:[%s3989_s2 + $0x90] sm:$0xff]  ;;  %vm1158_vm6 = vcmask 1042432   ;;  %vm1151_vm7 = vcmask 1045504  }
   0x2   :  { %v53_v2 = vld [vmem:[%s3989_s2] sm:$0xff]  ;;  %v2394_v3 = vpack.c.bf16 %v70_v1, %v69_v0  ;;  %v54_v4 = vld [vmem:[%s3989_s2 + $0x8] sm:$0xff]  ;;  %v72_v6 = vld [vmem:[%s3989_s2 + $0x98] sm:$0xff] }
   0x3   :  { %v2396_v7 = vpack.c.bf16 %v54_v4, %v53_v2  ;;  %v2398_v8 = vpack.c.bf16 %v72_v6, %v71_v5  ;;  %v85_v9 = vld [vmem:[%s3989_s2 + $0x100] sm:$0xff]  ;;  %v86_v10 = vld [vmem:[%s3989_s2 + $0x108] sm:$0xff]  ;;  %v55_v11 = vld [vmem:[%s3989_s2 + $0x10] sm:$0xff] }
   0x4   :  { %2395 = vmatprep.subr.bf16.mxu0 %v2394_v3  ;;  %v2426_v12 = vpack.c.bf16 %v86_v10, %v85_v9  ;;  %v56_v13 = vld [vmem:[%s3989_s2 + $0x18] sm:$0xff]  ;;  %v73_v14 = vld [vmem:[%s3989_s2 + $0xa0] sm:$0xff]  ;;  %v74_v15 = vld [vmem:[%s3989_s2 + $0xa8] sm:$0xff] }
   0x5   :  { %2397 = vmatpush3.bf16.msra.mxu0 %v2396_v7  ;;  %v2400_v16 = vpack.c.bf16 %v56_v13, %v55_v11  ;;  %v87_v17 = vld [vmem:[%s3989_s2 + $0x110] sm:$0xff]  ;;  %v88_v18 = vld [vmem:[%s3989_s2 + $0x118] sm:$0xff]  ;;  %v2402_v19 = vpack.c.bf16 %v74_v15, %v73_v14  ;;  %v57_v21 = vld [vmem:[%s3989_s2 + $0x20] sm:$0xff] }
   0x6   :  { %2399 = vmatprep.subr.bf16.mxu0 %v2398_v8  ;;  %2427 = vmatprep.subr.bf16.mxu1 %v2426_v12  ;;  %v2430_v20 = vpack.c.bf16 %v88_v18, %v87_v17  ;;  %v58_v22 = vld [vmem:[%s3989_s2 + $0x28] sm:$0xff]  ;;  %v75_v23 = vld [vmem:[%s3989_s2 + $0xb0] sm:$0xff]  ;;  %v76_v24 = vld [vmem:[%s3989_s2 + $0xb8] sm:$0xff] }
   0x7   :  { %2429 = vmatpush3.bf16.msra.mxu1 %v2426_v12  ;;  %v89_v25 = vld [vmem:[%s3989_s2 + $0x120] sm:$0xff]  ;;  %v90_v26 = vld [vmem:[%s3989_s2 + $0x128] sm:$0xff]  ;;  %v2404_v28 = vpack.c.bf16 %v58_v22, %v57_v21  ;;  %v91_v29 = vld [vmem:[%s3989_s2 + $0x130] sm:$0xff]  ;;  %v2406_v31 = vpack.c.bf16 %v76_v24, %v75_v23 }
   0x8   :  { %2431 = vmatprep.subr.bf16.mxu1 %v2430_v20  ;;  %v2434_v27 = vpack.c.bf16 %v90_v26, %v89_v25  ;;  %v92_v30 = vld [vmem:[%s3989_s2 + $0x138] sm:$0xff]  ;;  %v59_v32 = vld [vmem:[%s3989_s2 + $0x30] sm:$0xff]  ;;  %v77_v34 = vld [vmem:[%s3989_s2 + $0xc0] sm:$0xff] }
   0x9   :  { %2401 = vmatpush3.bf16.msra.mxu0 %v2400_v16  ;;  %v60_v33 = vld [vmem:[%s3989_s2 + $0x38] sm:$0xff]  ;;  %v78_v35 = vld [vmem:[%s3989_s2 + $0xc8] sm:$0xff]  ;;  %v2438_v36 = vpack.c.bf16 %v92_v30, %v91_v29  ;;  %v93_v38 = vld [vmem:[%s3989_s2 + $0x140] sm:$0xff] }
   0xa   :  { %2403 = vmatprep.subr.bf16.mxu0 %v2402_v19  ;;  %v2408_v37 = vpack.c.bf16 %v60_v33, %v59_v32  ;;  %v94_v39 = vld [vmem:[%s3989_s2 + $0x148] sm:$0xff]  ;;  %v2410_v40 = vpack.c.bf16 %v78_v35, %v77_v34  ;;  %v61_v41 = vld [vmem:[%s3989_s2 + $0x40] sm:$0xff]  ;;  %v79_v43 = vld [vmem:[%s3989_s2 + $0xd0] sm:$0xff] }
   0xb   :  { %2433 = vmatpush3.bf16.msra.mxu1 %v2430_v20  ;;  %v62_v42 = vld [vmem:[%s3989_s2 + $0x48] sm:$0xff]  ;;  %v80_v44 = vld [vmem:[%s3989_s2 + $0xd8] sm:$0xff]  ;;  %v2442_v45 = vpack.c.bf16 %v94_v39, %v93_v38  ;;  %v3033_v46 = vld [vmem:[%s3990_s0] sm:$0xff] }
   0xc   :  { %2435 = vmatprep.subr.bf16.mxu1 %v2434_v27  ;;  %v2412_v47 = vpack.c.bf16 %v62_v42, %v61_v41  ;;  %v95_v48 = vld [vmem:[%s3989_s2 + $0x150] sm:$0xff]  ;;  %v96_v49 = vld [vmem:[%s3989_s2 + $0x158] sm:$0xff]  ;;  %v378_v50 = vrot.slane %v3033_v46, 7  ;;  %vm3042_vm1 = vmneg %vm382_vm0  ;;  %2104 = vmatprep.mubr.f32.mxu1 %v3033_v46  ;;  %v2414_v52 = vpack.c.bf16 %v80_v44, %v79_v43  ;;  %v371_v17 = vrot.slane %v3033_v46, 6 }
   0xd   :  { %2405 = vmatpush3.bf16.msra.mxu0 %v2404_v28  ;;  %v63_v53 = vld [vmem:[%s3989_s2 + $0x50] sm:$0xff]  ;;  %v64_v54 = vld [vmem:[%s3989_s2 + $0x58] sm:$0xff]  ;;  %v81_v55 = vld [vmem:[%s3989_s2 + $0xe0] sm:$0xff]  ;;  %v2446_v57 = vpack.c.bf16 %v96_v49, %v95_v48 }
   0xe   :  { %2407 = vmatprep.subr.bf16.mxu0 %v2406_v31  ;;  %v82_v56 = vld [vmem:[%s3989_s2 + $0xe8] sm:$0xff]  ;;  %1674 = vmatprep.mubr.msk.f32.mxu0 %vm3042_vm1, %v378_v50  ;;  %v2416_v58 = vpack.c.bf16 %v64_v54, %v63_v53  ;;  %v97_v59 = vld [vmem:[%s3989_s2 + $0x160] sm:$0xff]  ;;  %v83_v0 = vld [vmem:[%s3989_s2 + $0xf0] sm:$0xff] }
   0xf   :  { %2437 = vmatpush3.bf16.msra.mxu1 %v2434_v27  ;;  %v98_v60 = vld [vmem:[%s3989_s2 + $0x168] sm:$0xff]  ;;  %v2418_v61 = vpack.c.bf16 %v82_v56, %v81_v55  ;;  %v65_v62 = vld [vmem:[%s3989_s2 + $0x60] sm:$0xff]  ;;  %v84_v1 = vld [vmem:[%s3989_s2 + $0xf8] sm:$0xff] }
  0x10   :  { %2439 = vmatprep.subr.bf16.mxu1 %v2438_v36  ;;  %v66_v63 = vld [vmem:[%s3989_s2 + $0x68] sm:$0xff]  ;;  %v2450_v2 = vpack.c.bf16 %v98_v60, %v97_v59  ;;  %v99_v4 = vld [vmem:[%s3989_s2 + $0x170] sm:$0xff]  ;;  %v100_v5 = vld [vmem:[%s3989_s2 + $0x178] sm:$0xff]  ;;  %v2422_v6 = vpack.c.bf16 %v84_v1, %v83_v0 }
  0x11   :  { %2409 = vmatpush3.bf16.msra.mxu0 %v2408_v37  ;;  %v2420_v3 = vpack.c.bf16 %v66_v63, %v65_v62  ;;  %v67_v7 = vld [vmem:[%s3989_s2 + $0x70] sm:$0xff]  ;;  %v68_v8 = vld [vmem:[%s3989_s2 + $0x78] sm:$0xff]  ;;  %v102_v9 = vld [vmem:[%s3991_s4] sm:$0xff]  ;;  %v2454_v11 = vpack.c.bf16 %v100_v5, %v99_v4 }
  0x12   :  { %2411 = vmatprep.subr.bf16.mxu0 %v2410_v40  ;;  %v103_v10 = vld [vmem:[%s3991_s4 + $0x8] sm:$0xff]  ;;  %v2424_v12 = vpack.c.bf16 %v68_v8, %v67_v7  ;;  %v104_v15 = vld [vmem:[%s3991_s4 + $0x10] sm:$0xff]  ;;  %v105_v16 = vld [vmem:[%s3991_s4 + $0x18] sm:$0xff] }
  0x13   :  { %2441 = vmatpush3.bf16.msra.mxu1 %v2438_v36  ;;  %v50_v13 = vld [vmem:[%s3990_s0 + $0x8] sm:$0xff]  ;;  %v2458_v14 = vpack.c.bf16 %v103_v10, %v102_v9  ;;  %vm3107_vm3 = vmneg %vm375_vm2  ;;  %v2462_v20 = vpack.c.bf16 %v105_v16, %v104_v15  ;;  %v106_v21 = vld [vmem:[%s3991_s4 + $0x20] sm:$0xff] }
  0x14   :  { %2443 = vmatprep.subr.bf16.mxu1 %v2442_v45  ;;  %v379_v19 = vrot.slane %v50_v13, 7  ;;  %v107_v22 = vld [vmem:[%s3991_s4 + $0x28] sm:$0xff]  ;;  %v372_v23 = vrot.slane %v50_v13, 6  ;;  %v108_v25 = vld [vmem:[%s3991_s4 + $0x30] sm:$0xff]  ;;  %v109_v26 = vld [vmem:[%s3991_s4 + $0x38] sm:$0xff] }
  0x15   :  { %2413 = vmatpush3.bf16.msra.mxu0 %v2412_v47  ;;  %v2466_v24 = vpack.c.bf16 %v107_v22, %v106_v21  ;;  %v2470_v27 = vpack.c.bf16 %v109_v26, %v108_v25  ;;  %v110_v28 = vld [vmem:[%s3991_s4 + $0x40] sm:$0xff]  ;;  %v111_v29 = vld [vmem:[%s3991_s4 + $0x48] sm:$0xff]  ;;  %v112_v31 = vld [vmem:[%s3991_s4 + $0x50] sm:$0xff] }
  0x16   :  { %2415 = vmatprep.subr.bf16.mxu0 %v2414_v52  ;;  %v2474_v30 = vpack.c.bf16 %v111_v29, %v110_v28  ;;  %v113_v32 = vld [vmem:[%s3991_s4 + $0x58] sm:$0xff]  ;;  %v114_v34 = vld [vmem:[%s3991_s4 + $0x60] sm:$0xff]  ;;  %v115_v35 = vld [vmem:[%s3991_s4 + $0x68] sm:$0xff] }
  0x17   :  { %2445 = vmatpush3.bf16.msra.mxu1 %v2442_v45  ;;  %v2478_v33 = vpack.c.bf16 %v113_v32, %v112_v31  ;;  %v2482_v36 = vpack.c.bf16 %v115_v35, %v114_v34  ;;  %v116_v37 = vld [vmem:[%s3991_s4 + $0x70] sm:$0xff]  ;;  %v117_v38 = vld [vmem:[%s3991_s4 + $0x78] sm:$0xff]  ;;  %v1672_v42 = vld [vmem:[%s3992_s3] ss:$0 sm:$0xff]  ;;  %s2852_s4 = smov 112  }
  0x18   :  { %2447 = vmatprep.subr.bf16.mxu1 %v2446_v57  ;;  %v2486_v39 = vpack.c.bf16 %v117_v38, %v116_v37  ;;  %v1681_v54 = vld [vmem:[%s3993_s5] ss:$0 sm:$0xff]  ;;  %v120_v63 = vld [vmem:[%s3995_s6 + $0x8] sm:$0xff]  ;;  %v156_v8 = vld [vmem:[%s3996_s8 + $0x110] sm:$0xff] }
  0x19   :  { %2417 = vmatpush3.bf16.msra.mxu0 %v2416_v58  ;;  %v119_v62 = vld [vmem:[%s3995_s6] sm:$0xff]  ;;  %v157_v9 = vld [vmem:[%s3996_s8 + $0x118] sm:$0xff]  ;;  %v160_v16 = vld [vmem:[%s3996_s8 + $0x130] sm:$0xff] }
  0x1a   :  { %2419 = vmatprep.subr.bf16.mxu0 %v2418_v61  ;;  %v2490_v1 = vpack.c.bf16 %v120_v63, %v119_v62  ;;  %v138_v4 = vld [vmem:[%s3996_s8 + $0x80] sm:$0xff]  ;;  %v163_v21 = vld [vmem:[%s3996_s8 + $0x148] sm:$0xff]  ;;  %v140_v37 = vld [vmem:[%s3996_s8 + $0x90] sm:$0xff] }
  0x1b   :  { %2449 = vmatpush3.bf16.msra.mxu1 %v2446_v57  ;;  %v166_v26 = vld [vmem:[%s3996_s8 + $0x160] sm:$0xff]  ;;  %v52_v32 = vld [vmem:[%s3997_s1 + $0x8] sm:$0xff]  ;;  %v141_v38 = vld [vmem:[%s3996_s8 + $0x98] sm:$0xff] }
  0x1c   :  { %2451 = vmatprep.subr.bf16.mxu1 %v2450_v2  ;;  %v51_v29 = vld [vmem:[%s3997_s1] sm:$0xff]  ;;  %v123_v35 = vld [vmem:[%s3996_s8 + $0x8] sm:$0xff]  ;;  %vm1697_vm8 = vmneg %vm1158_vm6 }
  0x1d   :  { %2421 = vmatpush3.bf16.msra.mxu0 %v2420_v3  ;;  %v155_v3 = vld [vmem:[%s3996_s8 + $0x108] sm:$0xff]  ;;  %v122_v34 = vld [vmem:[%s3996_s8] sm:$0xff]  ;;  %vm1699_vm9 = vmneg %vm1151_vm7 }
  0x1e   :  { %2423 = vmatprep.subr.bf16.mxu0 %v2422_v6  ;;  %v139_v6 = vld [vmem:[%s3996_s8 + $0x88] sm:$0xff]  ;;  %v130_v62 = vld [vmem:[%s3996_s8 + $0x40] sm:$0xff]  ;;  %v360_v18 = vld [vmem:[%s4000_s12 + $0x150] sm:$0xff] }
  0x1f   :  { %2453 = vmatpush3.bf16.msra.mxu1 %v2450_v2  ;;  %v154_v2 = vld [vmem:[%s3996_s8 + $0x100] sm:$0xff]  ;;  %v2494_v7 = vpack.c.bf16 %v139_v6, %v138_v4  ;;  %v131_v63 = vld [vmem:[%s3996_s8 + $0x48] sm:$0xff]  ;;  %v132_v4 = vld [vmem:[%s3996_s8 + $0x50] sm:$0xff] }
  0x20   :  { %2455 = vmatprep.subr.bf16.mxu1 %v2454_v11  ;;  %v2526_v5 = vpack.c.bf16 %v155_v3, %v154_v2  ;;  %v2512_v2 = vpack.c.bf16 %v131_v63, %v130_v62  ;;  %v150_v6 = vld [vmem:[%s3996_s8 + $0xe0] sm:$0xff]  ;;  %v194_v62 = vld [vmem:[%s3998_s10 + $0xb8] sm:$0xff] }
  0x21   :  { %2425 = vmatpush3.bf16.msra.mxu0 %v2424_v12  ;;  %v158_v12 = vld [vmem:[%s3996_s8 + $0x120] sm:$0xff] }
  0x22   :  { %2459 = vmatprep.subr.bf16.mxu0 %v2458_v14  ;;  %v358_v51 = vld [vmem:[%s4000_s12 + $0x140] sm:$0xff] }
  0x23   :  { %2457 = vmatpush3.bf16.msra.mxu1 %v2454_v11  ;;  %v2530_v11 = vpack.c.bf16 %v157_v9, %v156_v8 }
  0x24   :  { %1676 = vmatmul.mubr.msk.f32.vlgmr.msra.gmra.mrb[0].mxu0 %vm3107_vm3, %v371_v17  ;;  %2491 = vmatprep.subr.bf16.mxu1 %v2490_v1  ;;  %v161_v17 = vld [vmem:[%s3996_s8 + $0x138] sm:$0xff] }
  0x25   :  { %1678 = vmatprep.mubr.msk.f32.mxu0 %vm3042_vm1, %v379_v19  ;;  %2461 = vmatpush3.bf16.msra.mxu0 %v2458_v14  ;;  %v2538_v19 = vpack.c.bf16 %v161_v17, %v160_v16  ;;  %v152_v16 = vld [vmem:[%s3996_s8 + $0xf0] sm:$0xff]  ;;  %v153_v17 = vld [vmem:[%s3996_s8 + $0xf8] sm:$0xff] }
  0x26   :  { %2105 = vmatmul.mubr.f32.vlgmr.msra.gmra.mrb[0].mxu1 %v50_v13  ;;  %2463 = vmatprep.subr.bf16.mxu0 %v2462_v20  ;;  %v159_v13 = vld [vmem:[%s3996_s8 + $0x128] sm:$0xff] }
  0x27   :  { %2493 = vmatpush3.bf16.msra.mxu1 %v2490_v1  ;;  %v2534_v14 = vpack.c.bf16 %v159_v13, %v158_v12  ;;  %v149_v1 = vld [vmem:[%s3996_s8 + $0xd8] sm:$0xff]  ;;  %v168_v13 = vld [vmem:[%s3996_s8 + $0x170] sm:$0xff] }
  0x28   :  { %1680 = vmatmul.mubr.msk.f32.gmra.mrb[2].mxu0 %vm3107_vm3, %v372_v23  ;;  %2495 = vmatprep.subr.bf16.mxu1 %v2494_v7  ;;  %v164_v23 = vld [vmem:[%s3996_s8 + $0x150] sm:$0xff]  ;;  %v151_v7 = vld [vmem:[%s3996_s8 + $0xe8] sm:$0xff] }
  0x29   :  { %2465 = vmatpush3.bf16.msra.mxu0 %v2462_v20  ;;  %v162_v20 = vld [vmem:[%s3996_s8 + $0x140] sm:$0xff]  ;;  %v2518_v9 = vpack.c.bf16 %v151_v7, %v150_v6 }
  0x2a   :  { %2467 = vmatprep.subr.bf16.mxu0 %v2466_v24  ;;  %v2542_v22 = vpack.c.bf16 %v163_v21, %v162_v20  ;;  %v136_v20 = vld [vmem:[%s3996_s8 + $0x70] sm:$0xff]  ;;  %v137_v21 = vld [vmem:[%s3996_s8 + $0x78] sm:$0xff] }
  0x2d   :  { %2469 = vmatpush3.bf16.msra.mxu0 %v2466_v24  ;;  %v165_v24 = vld [vmem:[%s3996_s8 + $0x158] sm:$0xff] }
  0x2e   :  { %2471 = vmatprep.subr.bf16.mxu0 %v2470_v27  ;;  %v2546_v25 = vpack.c.bf16 %v165_v24, %v164_v23  ;;  %v187_v23 = vld [vmem:[%s3998_s10 + $0x80] sm:$0xff]  ;;  %v188_v24 = vld [vmem:[%s3998_s10 + $0x88] sm:$0xff] }
  0x31   :  { %2473 = vmatpush3.bf16.msra.mxu0 %v2470_v27  ;;  %v167_v27 = vld [vmem:[%s3996_s8 + $0x168] sm:$0xff] }
  0x32   :  { %2475 = vmatprep.subr.bf16.mxu0 %v2474_v30  ;;  %v2550_v28 = vpack.c.bf16 %v167_v27, %v166_v26  ;;  %v203_v26 = vld [vmem:[%s3998_s10 + $0x100] sm:$0xff]  ;;  %v204_v27 = vld [vmem:[%s3998_s10 + $0x108] sm:$0xff] }
  0x35   :  { %2477 = vmatpush3.bf16.msra.mxu0 %v2474_v30 }
  0x36   :  { %2479 = vmatprep.subr.bf16.mxu0 %v2478_v33 }
  0x39   :  { %2481 = vmatpush3.bf16.msra.mxu0 %v2478_v33 }
  0x3a   :  { %2483 = vmatprep.subr.bf16.mxu0 %v2482_v36 }
  0x3d   :  { %2485 = vmatpush3.bf16.msra.mxu0 %v2482_v36 }
  0x3e   :  { %2487 = vmatprep.subr.bf16.mxu0 %v2486_v39 }
  0x41   :  { %2489 = vmatpush3.bf16.msra.mxu0 %v2486_v39 }
  0x42   :  { %2527 = vmatprep.subr.bf16.mxu0 %v2526_v5 }
  0xf7   :  { %v1748_v40 = vpop.f32.mrb[0].mxu0 }
  0xf8   :  { %v1749_v41 = vpop.f32.mrb[1].mxu0 }
  0xf9   :  { %v1750_v43 = vadd.f32 %v1749_v41, %v1748_v40  ;;  %v2106_v44 = vpop.f32.mrb[0].mxu1  ;;  %v2496_v40 = vpack.c.bf16 %v123_v35, %v122_v34  ;;  %v171_v34 = vld [vmem:[%s3998_s10] sm:$0xff]  ;;  %v172_v35 = vld [vmem:[%s3998_s10 + $0x8] sm:$0xff] }
  0xfa   :  { %v532_v45 = vpop.f32.mrb[1].mxu1 }
  0xfb   :  { %v1751_v46 = vpop.f32.mrb[2].mxu0  ;;  %v458_v47 = vadd.f32 %v1750_v43, %v1672_v42  ;;  %v124_v43 = vld [vmem:[%s3996_s8 + $0x10] sm:$0xff] }
  0xfc   :  { %v1752_v48 = vpop.f32.mrb[3].mxu0 }
  0xfd   :  { %v1753_v49 = vadd.f32 %v1752_v48, %v1751_v46  ;;  %v533_v50 = vadd.f32 %v532_v45, %v458_v47  ;;  %v142_v45 = vld [vmem:[%s3996_s8 + $0xa0] sm:$0xff]  ;;  %v143_v46 = vld [vmem:[%s3996_s8 + $0xa8] sm:$0xff] }
  0xfe   :  { %v2502_v48 = vpack.c.bf16 %v143_v46, %v142_v45  ;;  %v208_v45 = vld [vmem:[%s3998_s10 + $0x128] sm:$0xff] }
  0xff   :  { %v463_v52 = vadd.f32 %v1753_v49, %v1672_v42  ;;  %2139 = vmatprep.mubr.f32.mxu0 %v533_v50  ;;  %v2498_v42 = vpack.c.bf16 %v141_v38, %v140_v37  ;;  %v126_v49 = vld [vmem:[%s3996_s8 + $0x20] sm:$0xff]  ;;  %v127_v50 = vld [vmem:[%s3996_s8 + $0x28] sm:$0xff]  ;;  %v189_v38 = vld [vmem:[%s3998_s10 + $0x90] sm:$0xff] }
 0x101   :  { %v538_v53 = vadd.f32 %v2106_v44, %v463_v52  ;;  %v125_v44 = vld [vmem:[%s3996_s8 + $0x18] sm:$0xff]  ;;  %v144_v52 = vld [vmem:[%s3996_s8 + $0xb0] sm:$0xff] }
 0x102   :  { %v2500_v47 = vpack.c.bf16 %v125_v44, %v124_v43  ;;  %v2560_v43 = vpack.c.bf16 %v172_v35, %v171_v34  ;;  %v207_v44 = vld [vmem:[%s3998_s10 + $0x120] sm:$0xff]  ;;  %v214_v34 = vld [vmem:[%s3998_s10 + $0x158] sm:$0xff] }
 0x103   :  { %2140 = vmatmul.mubr.f32.vlgmr.msra.gmra.mrb[4].mxu0 %v538_v53  ;;  %v145_v53 = vld [vmem:[%s3996_s8 + $0xb8] sm:$0xff] }
 0x104   :  { %2529 = vmatpush3.bf16.msra.mxu0 %v2526_v5  ;;  %v133_v5 = vld [vmem:[%s3996_s8 + $0x58] sm:$0xff] }
 0x105   :  { %2531 = vmatprep.subr.bf16.mxu0 %v2530_v11  ;;  %v2516_v8 = vpack.c.bf16 %v133_v5, %v132_v4  ;;  %v195_v4 = vld [vmem:[%s3998_s10 + $0xc0] sm:$0xff]  ;;  %v196_v5 = vld [vmem:[%s3998_s10 + $0xc8] sm:$0xff] }
 0x106   :  { %v2574_v7 = vpack.c.bf16 %v196_v5, %v195_v4  ;;  %v1685_v4 = vld [vmem:[%s4001_s9] ss:$0 sm:$0xff] }
 0x108   :  { %2533 = vmatpush3.bf16.msra.mxu0 %v2530_v11  ;;  %v135_v11 = vld [vmem:[%s3996_s8 + $0x68] sm:$0xff] }
 0x109   :  { %2535 = vmatprep.subr.bf16.mxu0 %v2534_v14 }
 0x10c   :  { %2537 = vmatpush3.bf16.msra.mxu0 %v2534_v14  ;;  %v169_v14 = vld [vmem:[%s3996_s8 + $0x178] sm:$0xff] }
 0x10d   :  { %2539 = vmatprep.subr.bf16.mxu0 %v2538_v19 }
 0x110   :  { %2541 = vmatpush3.bf16.msra.mxu0 %v2538_v19  ;;  %v2522_v19 = vpack.c.bf16 %v153_v17, %v152_v16  ;;  %v199_v17 = vld [vmem:[%s3998_s10 + $0xe0] sm:$0xff] }
 0x111   :  { %2543 = vmatprep.subr.bf16.mxu0 %v2542_v22 }
 0x114   :  { %2545 = vmatpush3.bf16.msra.mxu0 %v2542_v22  ;;  %v2524_v22 = vpack.c.bf16 %v137_v21, %v136_v20  ;;  %v183_v21 = vld [vmem:[%s3998_s10 + $0x60] sm:$0xff] }
 0x115   :  { %2547 = vmatprep.subr.bf16.mxu0 %v2546_v25 }
 0x118   :  { %2549 = vmatpush3.bf16.msra.mxu0 %v2546_v25  ;;  %v2558_v25 = vpack.c.bf16 %v188_v24, %v187_v23  ;;  %v211_v23 = vld [vmem:[%s3998_s10 + $0x140] sm:$0xff] }
 0x119   :  { %2551 = vmatprep.subr.bf16.mxu0 %v2550_v28 }
 0x11c   :  { %2553 = vmatpush3.bf16.msra.mxu0 %v2550_v28  ;;  %v2590_v28 = vpack.c.bf16 %v204_v27, %v203_v26  ;;  %v201_v27 = vld [vmem:[%s3998_s10 + $0xf0] sm:$0xff] }
 0x1d6   :  { %v2141_v55 = vpop.f32.mrb[4].mxu0 }
 0x1d7   :  { %v3159_v56 = vadd.f32 %v2141_v55, %v1681_v54  ;;  %v613_v57 = vpop.f32.mrb[5].mxu0  ;;  %v2506_v55 = vpack.c.bf16 %v145_v53, %v144_v52  ;;  %v192_v52 = vld [vmem:[%s3998_s10 + $0xa8] sm:$0xff]  ;;  %v2598_v53 = vpack.c.bf16 %v208_v45, %v207_v44  ;;  %v320_v45 = vld [vmem:[%s4000_s12 + $0x10] sm:$0xff] }
 0x1d8   :  { %v3161_v58 = vadd.f32 %v1681_v54, %v613_v57  ;;  %v2504_v54 = vpack.c.bf16 %v127_v50, %v126_v49  ;;  %v129_v57 = vld [vmem:[%s3996_s8 + $0x38] sm:$0xff]  ;;  %v191_v50 = vld [vmem:[%s3998_s10 + $0xa0] sm:$0xff]  ;;  %v319_v44 = vld [vmem:[%s4000_s12 + $0x8] sm:$0xff] }
 0x1d9   :  { %1661 = vst.msk [vmem:[%s3994_s14 + $0x8] sm:$0xff] %vm1659_vm4, %v3159_v56  ;;  %v623_v59 = vmul.f32 0.5, %v3159_v56 }
 0x1da   :  { %v622_v60 = vmul.f32 0.5, %v3161_v58  ;;  %1660 = vst.msk [vmem:[%s3994_s14] sm:$0xff] %vm1659_vm4, %v3161_v58 }
 0x1db   :  { %v626_v0 = vmul.f32 1.442695, %v623_v59  ;;  %v147_v59 = vld [vmem:[%s3996_s8 + $0xc8] sm:$0xff] }
 0x1dc   :  { %v624_v61 = vmul.f32 1.442695, %v622_v60 }
 0x1de   :  { %2848 = vpow2.f32 %v624_v61 }
 0x1df   :  { %2850 = vpow2.f32 %v626_v0  ;;  %v148_v0 = vld [vmem:[%s3996_s8 + $0xd0] sm:$0xff] }
 0x1e0   :  { %v2514_v3 = vpack.c.bf16 %v149_v1, %v148_v0 }
 0x1e8   :  { %v2849_v10 = vpop.eup %2848 }
 0x1e9   :  { %630 = vrot.lane.b32.xlu0 %v2849_v10, %s2852_s4  ;;  %v2851_v15 = vpop.eup %2850  ;;  %v134_v10 = vld [vmem:[%s3996_s8 + $0x60] sm:$0xff] }
 0x1ea   :  { %v2520_v12 = vpack.c.bf16 %v135_v11, %v134_v10  ;;  %v197_v10 = vld [vmem:[%s3998_s10 + $0xd0] sm:$0xff]  ;;  %v198_v11 = vld [vmem:[%s3998_s10 + $0xd8] sm:$0xff] }
 0x1ed   :  { %632 = vrot.lane.b32.xlu0 %v2851_v15, %s2852_s4  ;;  %v2554_v15 = vpack.c.bf16 %v169_v14, %v168_v13  ;;  %v2578_v13 = vpack.c.bf16 %v198_v11, %v197_v10  ;;  %v181_v14 = vld [vmem:[%s3998_s10 + $0x50] sm:$0xff] }
 0x1ef   :  { %2555 = vmatprep.subr.bf16.mxu0 %v2554_v15 }
 0x1f0   :  { %2557 = vmatpush3.bf16.msra.mxu0 %v2554_v15  ;;  %v182_v15 = vld [vmem:[%s3998_s10 + $0x58] sm:$0xff] }
 0x1f1   :  { %2591 = vmatprep.subr.bf16.mxu0 %v2590_v28  ;;  %v2580_v16 = vpack.c.bf16 %v182_v15, %v181_v14 }
 0x25b   :  { %v631_v30 = vpop.permute.xlu0 %630 }
 0x25c   :  { %v636_v31 = vmul.f32 %v631_v30, %v51_v29  ;;  %v1682_v29 = vld [vmem:[%s3999_s7] ss:$0 sm:$0xff] }
 0x25e   :  { %v638_v33 = vadd.f32 %v636_v31, %v3161_v58  ;;  %v146_v58 = vld [vmem:[%s3996_s8 + $0xc0] sm:$0xff]  ;;  %v205_v31 = vld [vmem:[%s3998_s10 + $0x110] sm:$0xff] }
 0x25f   :  { %v633_v36 = vpop.permute.xlu0 %632  ;;  %v2510_v61 = vpack.c.bf16 %v147_v59, %v146_v58  ;;  %v2566_v58 = vpack.c.bf16 %v192_v52, %v191_v50  ;;  %v175_v59 = vld [vmem:[%s3998_s10 + $0x20] sm:$0xff]  ;;  %v323_v50 = vld [vmem:[%s4000_s12 + $0x28] sm:$0xff] }
 0x260   :  { %v637_v39 = vmul.f32 %v633_v36, %v52_v32  ;;  %2146 = vmatprep.mubr.msk.f32.mxu1 %vm646_vm5, %v638_v33  ;;  %v206_v32 = vld [vmem:[%s3998_s10 + $0x118] sm:$0xff] }
 0x262   :  { %v639_v41 = vadd.f32 %v637_v39, %v3159_v56  ;;  %v128_v56 = vld [vmem:[%s3996_s8 + $0x30] sm:$0xff]  ;;  %v190_v39 = vld [vmem:[%s3998_s10 + $0x98] sm:$0xff] }
 0x263   :  { %v2508_v60 = vpack.c.bf16 %v129_v57, %v128_v56  ;;  %v2562_v46 = vpack.c.bf16 %v190_v39, %v189_v38  ;;  %v210_v56 = vld [vmem:[%s3998_s10 + $0x138] sm:$0xff]  ;;  %v2853_v38 = vmov 0.0  }
 0x264   :  { %2147 = vmatmul.mubr.msk.f32.vlgmr.msra.gmra.mrb[2].mxu1 %vm646_vm5, %v639_v41 }
 0x265   :  { %2497 = vmatpush3.bf16.msra.mxu1 %v2496_v40  ;;  %v2594_v40 = vpack.c.bf16 %v206_v32, %v205_v31  ;;  %v186_v31 = vld [vmem:[%s3998_s10 + $0x78] sm:$0xff] }
 0x266   :  { %2499 = vmatprep.subr.bf16.mxu1 %v2498_v42 }
 0x269   :  { %2501 = vmatpush3.bf16.msra.mxu1 %v2500_v47  ;;  %v173_v47 = vld [vmem:[%s3998_s10 + $0x10] sm:$0xff] }
 0x26a   :  { %2503 = vmatprep.subr.bf16.mxu1 %v2502_v48  ;;  %v174_v48 = vld [vmem:[%s3998_s10 + $0x18] sm:$0xff] }
 0x26d   :  { %2505 = vmatpush3.bf16.msra.mxu1 %v2504_v54  ;;  %v2564_v54 = vpack.c.bf16 %v174_v48, %v173_v47  ;;  %v321_v47 = vld [vmem:[%s4000_s12 + $0x18] sm:$0xff] }
 0x26e   :  { %2507 = vmatprep.subr.bf16.mxu1 %v2506_v55  ;;  %v209_v55 = vld [vmem:[%s3998_s10 + $0x130] sm:$0xff]  ;;  %v2626_v48 = vpack.c.bf16 %v321_v47, %v320_v45  ;;  %v223_v45 = vld [vmem:[%s3998_s10 + $0x1a0] sm:$0xff]  ;;  %v224_v47 = vld [vmem:[%s3998_s10 + $0x1a8] sm:$0xff] }
 0x26f   :  { %v2602_v63 = vpack.c.bf16 %v210_v56, %v209_v55  ;;  %v326_v56 = vld [vmem:[%s4000_s12 + $0x40] sm:$0xff] }
 0x271   :  { %2509 = vmatpush3.bf16.msra.mxu1 %v2508_v60  ;;  %v176_v60 = vld [vmem:[%s3998_s10 + $0x28] sm:$0xff] }
 0x272   :  { %2511 = vmatprep.subr.bf16.mxu1 %v2510_v61  ;;  %v193_v61 = vld [vmem:[%s3998_s10 + $0xb0] sm:$0xff]  ;;  %v2568_v0 = vpack.c.bf16 %v176_v60, %v175_v59  ;;  %v329_v60 = vld [vmem:[%s4000_s12 + $0x58] sm:$0xff] }
 0x273   :  { %v2570_v1 = vpack.c.bf16 %v194_v62, %v193_v61  ;;  %v328_v59 = vld [vmem:[%s4000_s12 + $0x50] sm:$0xff]  ;;  %v330_v62 = vld [vmem:[%s4000_s12 + $0x60] sm:$0xff] }
 0x274   :  { %v2642_v61 = vpack.c.bf16 %v329_v60, %v328_v59  ;;  %v228_v60 = vld [vmem:[%s3998_s10 + $0x1c8] sm:$0xff] }
 0x275   :  { %2513 = vmatpush3.bf16.msra.mxu1 %v2512_v2  ;;  %v177_v2 = vld [vmem:[%s3998_s10 + $0x30] sm:$0xff] }
 0x276   :  { %2515 = vmatprep.subr.bf16.mxu1 %v2514_v3  ;;  %v178_v3 = vld [vmem:[%s3998_s10 + $0x38] sm:$0xff] }
 0x277   :  { %v2572_v6 = vpack.c.bf16 %v178_v3, %v177_v2 }
 0x279   :  { %2517 = vmatpush3.bf16.msra.mxu1 %v2516_v8  ;;  %v179_v8 = vld [vmem:[%s3998_s10 + $0x40] sm:$0xff] }
 0x27a   :  { %2519 = vmatprep.subr.bf16.mxu1 %v2518_v9  ;;  %v180_v9 = vld [vmem:[%s3998_s10 + $0x48] sm:$0xff] }
 0x27d   :  { %2521 = vmatpush3.bf16.msra.mxu1 %v2520_v12  ;;  %v2576_v12 = vpack.c.bf16 %v180_v9, %v179_v8 }
 0x27e   :  { %2523 = vmatprep.subr.bf16.mxu1 %v2522_v19  ;;  %v200_v19 = vld [vmem:[%s3998_s10 + $0xe8] sm:$0xff] }
 0x27f   :  { %v2582_v20 = vpack.c.bf16 %v200_v19, %v199_v17 }
 0x281   :  { %2525 = vmatpush3.bf16.msra.mxu1 %v2524_v22  ;;  %v184_v22 = vld [vmem:[%s3998_s10 + $0x68] sm:$0xff] }
 0x282   :  { %2559 = vmatprep.subr.bf16.mxu1 %v2558_v25  ;;  %v2584_v24 = vpack.c.bf16 %v184_v22, %v183_v21  ;;  %v212_v25 = vld [vmem:[%s3998_s10 + $0x148] sm:$0xff] }
 0x283   :  { %v2606_v26 = vpack.c.bf16 %v212_v25, %v211_v23  ;;  %v332_v25 = vld [vmem:[%s4000_s12 + $0x70] sm:$0xff] }
 0x337   :  { %v2148_v30 = vpop.f32.mrb[2].mxu1 }
 0x338   :  { %v719_v33 = vpop.f32.mrb[3].mxu1  ;;  %v725_v36 = vadd.f32 %v2148_v30, %v1682_v29  ;;  %v185_v30 = vld [vmem:[%s3998_s10 + $0x70] sm:$0xff] }
 0x339   :  { %v720_v37 = vadd.f32 %v1682_v29, %v719_v33  ;;  %v2588_v32 = vpack.c.bf16 %v186_v31, %v185_v30  ;;  %v213_v33 = vld [vmem:[%s3998_s10 + $0x150] sm:$0xff]  ;;  %v235_v31 = vld [vmem:[%s3998_s10 + $0x200] sm:$0xff] }
 0x33a   :  { %v737_v49 = vrot.slane %v725_v36, 7  ;;  %v731_v57 = vrot.slane %v725_v36, 6  ;;  %v2610_v35 = vpack.c.bf16 %v214_v34, %v213_v33  ;;  %v219_v33 = vld [vmem:[%s3998_s10 + $0x180] sm:$0xff] }
 0x33b   :  { %v730_v41 = vrot.slane %v720_v37, 6  ;;  %v736_v42 = vrot.slane %v720_v37, 7  ;;  %2181 = vmatprep.mubr.f32.mxu0 %v720_v37  ;;  %v216_v37 = vld [vmem:[%s3998_s10 + $0x168] sm:$0xff] }
 0x33c   :  { %2182 = vmatmul.mubr.f32.vlgmr.msra.gmra.mrb[6].mxu0 %v725_v36  ;;  %v215_v36 = vld [vmem:[%s3998_s10 + $0x160] sm:$0xff] }
 0x33d   :  { %1687 = vmatprep.mubr.msk.f32.mxu1 %vm3042_vm1, %v736_v42  ;;  %2593 = vmatpush3.bf16.msra.mxu0 %v2590_v28  ;;  %v202_v28 = vld [vmem:[%s3998_s10 + $0xf8] sm:$0xff]  ;;  %v2614_v39 = vpack.c.bf16 %v216_v37, %v215_v36  ;;  %v237_v37 = vld [vmem:[%s3998_s10 + $0x210] sm:$0xff] }
 0x33e   :  { %1689 = vmatmul.mubr.msk.f32.vlgmr.msra.gmra.mrb[4].mxu1 %vm3107_vm3, %v730_v41  ;;  %2595 = vmatprep.subr.bf16.mxu0 %v2594_v40  ;;  %v2586_v29 = vpack.c.bf16 %v202_v28, %v201_v27  ;;  %v218_v41 = vld [vmem:[%s3998_s10 + $0x178] sm:$0xff]  ;;  %v251_v28 = vld [vmem:[%s3998_s10 + $0x280] sm:$0xff] }
 0x33f   :  { %1691 = vmatprep.mubr.msk.f32.mxu1 %vm3042_vm1, %v737_v49  ;;  %2561 = vmatpush3.bf16.msra.mxu1 %v2560_v43  ;;  %v318_v43 = vld [vmem:[%s4000_s12] sm:$0xff] }
 0x340   :  { %2563 = vmatprep.subr.bf16.mxu1 %v2562_v46  ;;  %v2622_v46 = vpack.c.bf16 %v319_v44, %v318_v43  ;;  %v322_v49 = vld [vmem:[%s4000_s12 + $0x20] sm:$0xff]  ;;  %v240_v44 = vld [vmem:[%s3998_s10 + $0x228] sm:$0xff] }
 0x341   :  { %2597 = vmatpush3.bf16.msra.mxu0 %v2594_v40  ;;  %v217_v40 = vld [vmem:[%s3998_s10 + $0x170] sm:$0xff]  ;;  %v2630_v52 = vpack.c.bf16 %v323_v50, %v322_v49  ;;  %v239_v43 = vld [vmem:[%s3998_s10 + $0x220] sm:$0xff]  ;;  %v242_v50 = vld [vmem:[%s3998_s10 + $0x238] sm:$0xff] }
 0x342   :  { %1693 = vmatmul.mubr.msk.f32.gmra.mrb[6].mxu1 %vm3107_vm3, %v731_v57  ;;  %2599 = vmatprep.subr.bf16.mxu0 %v2598_v53  ;;  %v2618_v42 = vpack.c.bf16 %v218_v41, %v217_v40  ;;  %v327_v57 = vld [vmem:[%s4000_s12 + $0x48] sm:$0xff]  ;;  %v222_v41 = vld [vmem:[%s3998_s10 + $0x198] sm:$0xff]  ;;  %v241_v49 = vld [vmem:[%s3998_s10 + $0x230] sm:$0xff] }
 0x343   :  { %2565 = vmatpush3.bf16.msra.mxu1 %v2564_v54  ;;  %972 = vmatprep.mubr.f32.mxu1 %v2853_v38  ;;  %v325_v54 = vld [vmem:[%s4000_s12 + $0x38] sm:$0xff] }
 0x344   :  { %2567 = vmatprep.subr.bf16.mxu1 %v2566_v58  ;;  %v2638_v58 = vpack.c.bf16 %v327_v57, %v326_v56  ;;  %v243_v56 = vld [vmem:[%s3998_s10 + $0x240] sm:$0xff]  ;;  %v244_v57 = vld [vmem:[%s3998_s10 + $0x248] sm:$0xff] }
 0x345   :  { %2601 = vmatpush3.bf16.msra.mxu0 %v2598_v53  ;;  %v324_v53 = vld [vmem:[%s4000_s12 + $0x30] sm:$0xff]  ;;  %v2670_v59 = vpack.c.bf16 %v244_v57, %v243_v56 }
 0x346   :  { %2603 = vmatprep.subr.bf16.mxu0 %v2602_v63  ;;  %v2634_v55 = vpack.c.bf16 %v325_v54, %v324_v53  ;;  %v2666_v53 = vpack.c.bf16 %v242_v50, %v241_v49  ;;  %v226_v54 = vld [vmem:[%s3998_s10 + $0x1b8] sm:$0xff] }
 0x347   :  { %2569 = vmatpush3.bf16.msra.mxu1 %v2568_v0  ;;  %v234_v49 = vld [vmem:[%s3998_s10 + $0x1f8] sm:$0xff] }
 0x348   :  { %2571 = vmatprep.subr.bf16.mxu1 %v2570_v1 }
 0x349   :  { %2605 = vmatpush3.bf16.msra.mxu0 %v2602_v63  ;;  %v331_v63 = vld [vmem:[%s4000_s12 + $0x68] sm:$0xff] }
 0x34a   :  { %2607 = vmatprep.subr.bf16.mxu0 %v2606_v26  ;;  %v2646_v0 = vpack.c.bf16 %v331_v63, %v330_v62  ;;  %v245_v62 = vld [vmem:[%s3998_s10 + $0x250] sm:$0xff]  ;;  %v246_v63 = vld [vmem:[%s3998_s10 + $0x258] sm:$0xff] }
 0x34b   :  { %2573 = vmatpush3.bf16.msra.mxu1 %v2572_v6 }
 0x34c   :  { %2575 = vmatprep.subr.bf16.mxu1 %v2574_v7 }
 0x34d   :  { %2609 = vmatpush3.bf16.msra.mxu0 %v2606_v26  ;;  %v333_v26 = vld [vmem:[%s4000_s12 + $0x78] sm:$0xff] }
 0x34e   :  { %2611 = vmatprep.subr.bf16.mxu0 %v2610_v35  ;;  %v2650_v27 = vpack.c.bf16 %v333_v26, %v332_v25  ;;  %v260_v25 = vld [vmem:[%s3998_s10 + $0x2c8] sm:$0xff] }
 0x34f   :  { %2577 = vmatpush3.bf16.msra.mxu1 %v2576_v12 }
 0x350   :  { %2579 = vmatprep.subr.bf16.mxu1 %v2578_v13 }
 0x351   :  { %2613 = vmatpush3.bf16.msra.mxu0 %v2610_v35  ;;  %v220_v35 = vld [vmem:[%s3998_s10 + $0x188] sm:$0xff] }
 0x352   :  { %2615 = vmatprep.subr.bf16.mxu0 %v2614_v39  ;;  %v2656_v36 = vpack.c.bf16 %v220_v35, %v219_v33  ;;  %v263_v33 = vld [vmem:[%s3998_s10 + $0x2e0] sm:$0xff] }
 0x353   :  { %2581 = vmatpush3.bf16.msra.mxu1 %v2580_v16 }
 0x354   :  { %2583 = vmatprep.subr.bf16.mxu1 %v2582_v20 }
 0x355   :  { %2617 = vmatpush3.bf16.msra.mxu0 %v2614_v39  ;;  %v221_v39 = vld [vmem:[%s3998_s10 + $0x190] sm:$0xff] }
 0x356   :  { %2619 = vmatprep.subr.bf16.mxu0 %v2618_v42 }
 0x357   :  { %2585 = vmatpush3.bf16.msra.mxu1 %v2584_v24 }
 0x358   :  { %2587 = vmatprep.subr.bf16.mxu1 %v2586_v29  ;;  %v252_v29 = vld [vmem:[%s3998_s10 + $0x288] sm:$0xff] }
 0x359   :  { %2621 = vmatpush3.bf16.msra.mxu0 %v2618_v42  ;;  %v2686_v30 = vpack.c.bf16 %v252_v29, %v251_v28  ;;  %v2660_v42 = vpack.c.bf16 %v222_v41, %v221_v39  ;;  %v262_v28 = vld [vmem:[%s3998_s10 + $0x2d8] sm:$0xff]  ;;  %v231_v39 = vld [vmem:[%s3998_s10 + $0x1e0] sm:$0xff] }
 0x35b   :  { %2589 = vmatpush3.bf16.msra.mxu1 %v2588_v32  ;;  %v236_v32 = vld [vmem:[%s3998_s10 + $0x208] sm:$0xff] }
 0x35c   :  { %2623 = vmatprep.subr.bf16.mxu1 %v2622_v46  ;;  %v2654_v34 = vpack.c.bf16 %v236_v32, %v235_v31  ;;  %v230_v31 = vld [vmem:[%s3998_s10 + $0x1d8] sm:$0xff] }
 0x35e   :  { %973 = vmatmul.mubr.f32.vlgmr.msra.gmra.mrb[8].mxu1 %v2853_v38  ;;  %2655 = vmatprep.subr.bf16.mxu0 %v2654_v34  ;;  %v264_v34 = vld [vmem:[%s3998_s10 + $0x2e8] sm:$0xff] }
 0x35f   :  { %977 = vmatprep.mubr.f32.mxu1 %v2853_v38  ;;  %2625 = vmatpush3.bf16.msra.mxu1 %v2622_v46  ;;  %v2662_v46 = vpack.c.bf16 %v240_v44, %v239_v43  ;;  %v2710_v35 = vpack.c.bf16 %v264_v34, %v263_v33  ;;  %v266_v43 = vld [vmem:[%s3998_s10 + $0x2f8] sm:$0xff]  ;;  %v268_v33 = vld [vmem:[%s3998_s10 + $0x308] sm:$0xff] }
 0x360   :  { %2627 = vmatprep.subr.bf16.mxu1 %v2626_v48 }
 0x362   :  { %978 = vmatmul.mubr.f32.gmra.mrb[10].mxu1 %v2853_v38  ;;  %v238_v38 = vld [vmem:[%s3998_s10 + $0x218] sm:$0xff] }
 0x363   :  { %2629 = vmatpush3.bf16.msra.mxu1 %v2626_v48  ;;  %v2658_v40 = vpack.c.bf16 %v238_v38, %v237_v37  ;;  %v2664_v48 = vpack.c.bf16 %v224_v47, %v223_v45  ;;  %v248_v37 = vld [vmem:[%s3998_s10 + $0x268] sm:$0xff]  ;;  %v249_v45 = vld [vmem:[%s3998_s10 + $0x270] sm:$0xff] }
 0x364   :  { %2631 = vmatprep.subr.bf16.mxu1 %v2630_v52 }
 0x367   :  { %2633 = vmatpush3.bf16.msra.mxu1 %v2630_v52  ;;  %v225_v52 = vld [vmem:[%s3998_s10 + $0x1b0] sm:$0xff] }
 0x368   :  { %2635 = vmatprep.subr.bf16.mxu1 %v2634_v55 }
 0x36b   :  { %2637 = vmatpush3.bf16.msra.mxu1 %v2634_v55  ;;  %v2668_v55 = vpack.c.bf16 %v226_v54, %v225_v52  ;;  %v334_v52 = vld [vmem:[%s4000_s12 + $0x80] sm:$0xff] }
 0x36c   :  { %2639 = vmatprep.subr.bf16.mxu1 %v2638_v58 }
 0x36f   :  { %2641 = vmatpush3.bf16.msra.mxu1 %v2638_v58  ;;  %v227_v58 = vld [vmem:[%s3998_s10 + $0x1c0] sm:$0xff] }
 0x370   :  { %2643 = vmatprep.subr.bf16.mxu1 %v2642_v61 }
 0x373   :  { %2645 = vmatpush3.bf16.msra.mxu1 %v2642_v61  ;;  %v2672_v61 = vpack.c.bf16 %v228_v60, %v227_v58 }
 0x374   :  { %2647 = vmatprep.subr.bf16.mxu1 %v2646_v0 }
 0x377   :  { %2649 = vmatpush3.bf16.msra.mxu1 %v2646_v0  ;;  %v2674_v0 = vpack.c.bf16 %v246_v63, %v245_v62 }
 0x378   :  { %2651 = vmatprep.subr.bf16.mxu1 %v2650_v27 }
 0x37b   :  { %2653 = vmatpush3.bf16.msra.mxu1 %v2650_v27  ;;  %v261_v27 = vld [vmem:[%s3998_s10 + $0x2d0] sm:$0xff] }
 0x37c   :  { %2687 = vmatprep.subr.bf16.mxu1 %v2686_v30  ;;  %v2706_v29 = vpack.c.bf16 %v262_v28, %v261_v27  ;;  %v300_v27 = vld [vmem:[%s3998_s10 + $0x408] sm:$0xff] }
 0x40f   :  { %v2183_v1 = vpop.f32.mrb[6].mxu0 }
 0x410   :  { %v889_v2 = vpop.f32.mrb[7].mxu0 }
 0x411   :  { %v1826_v3 = vpop.f32.mrb[4].mxu1 }
 0x412   :  { %v1827_v5 = vpop.f32.mrb[5].mxu1 }
 0x413   :  { %v1828_v6 = vadd.f32 %v1827_v5, %v1826_v3 }
 0x415   :  { %v815_v7 = vadd.f32 %v1828_v6, %v1685_v4  ;;  %v1829_v8 = vpop.f32.mrb[6].mxu1 }
 0x416   :  { %v1830_v9 = vpop.f32.mrb[7].mxu1 }
 0x417   :  { %v3533_v10 = vadd.f32 %v889_v2, %v815_v7  ;;  %v1831_v11 = vadd.f32 %v1830_v9, %v1829_v8  ;;  %v253_v8 = vld [vmem:[%s3998_s10 + $0x290] sm:$0xff]  ;;  %v254_v9 = vld [vmem:[%s3998_s10 + $0x298] sm:$0xff] }
 0x419   :  { %v898_v12 = vmax.f32 %v3533_v10, 0.0  ;;  %v820_v13 = vadd.f32 %v1831_v11, %v1685_v4 }
 0x41b   :  { %v3536_v14 = vadd.f32 %v2183_v1, %v820_v13  ;;  %v900_v15 = vmax.f32 %v898_v12, 0.0  ;;  %v1694_v1 = vld [vmem:[%s4002_s11] ss:$0 sm:$0xff] }
 0x41d   :  { %v899_v16 = vmax.f32 %v3536_v14, 0.0  ;;  %2216 = vmatprep.mubr.f32.mxu0 %v900_v15  ;;  %v2690_v15 = vpack.c.bf16 %v254_v9, %v253_v8  ;;  %v337_v14 = vld [vmem:[%s4000_s12 + $0x98] sm:$0xff]  ;;  %v342_v9 = vld [vmem:[%s4000_s12 + $0xc0] sm:$0xff] }
 0x41f   :  { %v901_v17 = vmax.f32 %v899_v16, 0.0 }
 0x421   :  { %2217 = vmatmul.mubr.f32.vlgmr.msra.gmra.mrb[8].mxu0 %v901_v17  ;;  %v255_v17 = vld [vmem:[%s3998_s10 + $0x2a0] sm:$0xff] }
 0x422   :  { %2657 = vmatpush3.bf16.msra.mxu0 %v2656_v36  ;;  %v247_v36 = vld [vmem:[%s3998_s10 + $0x260] sm:$0xff] }
 0x423   :  { %2659 = vmatprep.subr.bf16.mxu0 %v2658_v40  ;;  %v2678_v38 = vpack.c.bf16 %v248_v37, %v247_v36  ;;  %v232_v40 = vld [vmem:[%s3998_s10 + $0x1e8] sm:$0xff]  ;;  %v286_v36 = vld [vmem:[%s3998_s10 + $0x398] sm:$0xff]  ;;  %v269_v37 = vld [vmem:[%s3998_s10 + $0x310] sm:$0xff] }
 0x424   :  { %v2680_v41 = vpack.c.bf16 %v232_v40, %v231_v39  ;;  %v270_v39 = vld [vmem:[%s3998_s10 + $0x318] sm:$0xff] }
 0x425   :  { %v2756_v40 = vpack.c.bf16 %v270_v39, %v269_v37  ;;  %v296_v39 = vld [vmem:[%s3998_s10 + $0x3e8] sm:$0xff] }
 0x426   :  { %2661 = vmatpush3.bf16.msra.mxu0 %v2660_v42  ;;  %v265_v42 = vld [vmem:[%s3998_s10 + $0x2f0] sm:$0xff] }
 0x427   :  { %2663 = vmatprep.subr.bf16.mxu0 %v2662_v46  ;;  %v2714_v44 = vpack.c.bf16 %v266_v43, %v265_v42  ;;  %v250_v46 = vld [vmem:[%s3998_s10 + $0x278] sm:$0xff]  ;;  %v288_v42 = vld [vmem:[%s3998_s10 + $0x3a8] sm:$0xff]  ;;  %v271_v43 = vld [vmem:[%s3998_s10 + $0x320] sm:$0xff] }
 0x428   :  { %v2682_v47 = vpack.c.bf16 %v250_v46, %v249_v45  ;;  %v272_v45 = vld [vmem:[%s3998_s10 + $0x328] sm:$0xff] }
 0x429   :  { %v2760_v46 = vpack.c.bf16 %v272_v45, %v271_v43  ;;  %v314_v45 = vld [vmem:[%s3998_s10 + $0x478] sm:$0xff] }
 0x42a   :  { %2665 = vmatpush3.bf16.msra.mxu0 %v2664_v48  ;;  %v233_v48 = vld [vmem:[%s3998_s10 + $0x1f0] sm:$0xff] }
 0x42b   :  { %2667 = vmatprep.subr.bf16.mxu0 %v2666_v53  ;;  %v2684_v50 = vpack.c.bf16 %v234_v49, %v233_v48  ;;  %v335_v53 = vld [vmem:[%s4000_s12 + $0x88] sm:$0xff]  ;;  %v290_v48 = vld [vmem:[%s3998_s10 + $0x3b8] sm:$0xff]  ;;  %v273_v49 = vld [vmem:[%s3998_s10 + $0x330] sm:$0xff] }
 0x42c   :  { %v2718_v54 = vpack.c.bf16 %v335_v53, %v334_v52  ;;  %v274_v52 = vld [vmem:[%s3998_s10 + $0x338] sm:$0xff] }
 0x42d   :  { %v2764_v53 = vpack.c.bf16 %v274_v52, %v273_v49  ;;  %v282_v52 = vld [vmem:[%s3998_s10 + $0x378] sm:$0xff] }
 0x42e   :  { %2669 = vmatpush3.bf16.msra.mxu0 %v2668_v55  ;;  %v1695_v55 = vld [vmem:[%s4003_s13] ss:$0 sm:$0xff] }
 0x42f   :  { %2671 = vmatprep.subr.bf16.mxu0 %v2670_v59 }
 0x431   :  { %v1882_v19 = vpop.f32.mrb[8].mxu1 }
 0x432   :  { %v1883_v20 = vpop.f32.mrb[9].mxu1  ;;  %2673 = vmatpush3.bf16.msra.mxu0 %v2672_v61 }
 0x433   :  { %v1884_v21 = vadd.f32 %v1883_v20, %v1882_v19  ;;  %2675 = vmatprep.subr.bf16.mxu0 %v2674_v0  ;;  %v256_v19 = vld [vmem:[%s3998_s10 + $0x2a8] sm:$0xff]  ;;  %v336_v0 = vld [vmem:[%s4000_s12 + $0x90] sm:$0xff] }
 0x434   :  { %v2694_v20 = vpack.c.bf16 %v256_v19, %v255_v17  ;;  %v345_v17 = vld [vmem:[%s4000_s12 + $0xd8] sm:$0xff] }
 0x435   :  { %v1885_v22 = vpop.f32.mrb[10].mxu1  ;;  %v975_v4 = vadd.f32 %v1884_v21, %v1694_v1  ;;  %v257_v21 = vld [vmem:[%s3998_s10 + $0x2b0] sm:$0xff] }
 0x436   :  { %v1886_v23 = vpop.f32.mrb[11].mxu1 }
 0x437   :  { %v1887_v24 = vadd.f32 %v1886_v23, %v1885_v22  ;;  %v258_v22 = vld [vmem:[%s3998_s10 + $0x2b8] sm:$0xff] }
 0x438   :  { %v2698_v23 = vpack.c.bf16 %v258_v22, %v257_v21  ;;  %v347_v21 = vld [vmem:[%s4000_s12 + $0xe8] sm:$0xff] }
 0x439   :  { %v980_v2 = vadd.f32 %v1887_v24, %v1694_v1  ;;  %v259_v24 = vld [vmem:[%s3998_s10 + $0x2c0] sm:$0xff] }
 0x43a   :  { %v2702_v26 = vpack.c.bf16 %v260_v25, %v259_v24  ;;  %v349_v24 = vld [vmem:[%s4000_s12 + $0xf8] sm:$0xff] }
 0x4f4   :  { %v2218_v3 = vpop.f32.mrb[8].mxu0 }
 0x4f5   :  { %v1055_v5 = vadd.f32 %v2218_v3, %v980_v2  ;;  %v1049_v6 = vpop.f32.mrb[9].mxu0  ;;  %v338_v2 = vld [vmem:[%s4000_s12 + $0xa0] sm:$0xff]  ;;  %v339_v3 = vld [vmem:[%s4000_s12 + $0xa8] sm:$0xff] }
 0x4f6   :  { %v1050_v7 = vadd.f32 %v1049_v6, %v975_v4  ;;  %v340_v6 = vld [vmem:[%s4000_s12 + $0xb0] sm:$0xff] }
 0x4f7   :  { %v1059_v13 = vmax.f32 %v1055_v5, 0.0  ;;  %v2726_v5 = vpack.c.bf16 %v339_v3, %v338_v2 }
 0x4f8   :  { %v1058_v11 = vmax.f32 %v1050_v7, 0.0  ;;  %v341_v7 = vld [vmem:[%s4000_s12 + $0xb8] sm:$0xff] }
 0x4f9   :  { %v2730_v8 = vpack.c.bf16 %v341_v7, %v340_v6 }
 0x4fa   :  { %2251 = vmatprep.mubr.f32.mxu1 %v1058_v11  ;;  %v343_v11 = vld [vmem:[%s4000_s12 + $0xc8] sm:$0xff] }
 0x4fb   :  { %2252 = vmatmul.mubr.f32.vlgmr.msra.gmra.mrb[12].mxu1 %v1059_v13  ;;  %v2734_v13 = vpack.c.bf16 %v343_v11, %v342_v9  ;;  %v301_v11 = vld [vmem:[%s3998_s10 + $0x410] sm:$0xff] }
 0x4fc   :  { %2689 = vmatpush3.bf16.msra.mxu1 %v2686_v30  ;;  %v229_v30 = vld [vmem:[%s3998_s10 + $0x1d0] sm:$0xff] }
 0x4fd   :  { %2691 = vmatprep.subr.bf16.mxu1 %v2690_v15  ;;  %v2676_v32 = vpack.c.bf16 %v230_v31, %v229_v30  ;;  %v284_v30 = vld [vmem:[%s3998_s10 + $0x388] sm:$0xff]  ;;  %v267_v31 = vld [vmem:[%s3998_s10 + $0x300] sm:$0xff] }
 0x4fe   :  { %v2752_v34 = vpack.c.bf16 %v268_v33, %v267_v31  ;;  %v278_v33 = vld [vmem:[%s3998_s10 + $0x358] sm:$0xff] }
 0x4ff   :  { %2677 = vmatpush3.bf16.msra.mxu0 %v2676_v32 }
 0x500   :  { %2693 = vmatpush3.bf16.msra.mxu1 %v2690_v15  ;;  %2679 = vmatprep.subr.bf16.mxu0 %v2678_v38  ;;  %v344_v15 = vld [vmem:[%s4000_s12 + $0xd0] sm:$0xff] }
 0x501   :  { %2695 = vmatprep.subr.bf16.mxu1 %v2694_v20  ;;  %v2738_v19 = vpack.c.bf16 %v345_v17, %v344_v15 }
 0x503   :  { %2681 = vmatpush3.bf16.msra.mxu0 %v2680_v41  ;;  %v287_v41 = vld [vmem:[%s3998_s10 + $0x3a0] sm:$0xff] }
 0x504   :  { %2697 = vmatpush3.bf16.msra.mxu1 %v2694_v20  ;;  %2683 = vmatprep.subr.bf16.mxu0 %v2682_v47  ;;  %v346_v20 = vld [vmem:[%s4000_s12 + $0xe0] sm:$0xff]  ;;  %v289_v47 = vld [vmem:[%s3998_s10 + $0x3b0] sm:$0xff] }
 0x505   :  { %2699 = vmatprep.subr.bf16.mxu1 %v2698_v23  ;;  %v2742_v22 = vpack.c.bf16 %v347_v21, %v346_v20  ;;  %v303_v20 = vld [vmem:[%s3998_s10 + $0x420] sm:$0xff]  ;;  %v304_v21 = vld [vmem:[%s3998_s10 + $0x428] sm:$0xff] }
 0x507   :  { %2685 = vmatpush3.bf16.msra.mxu0 %v2684_v50  ;;  %v2762_v50 = vpack.c.bf16 %v290_v48, %v289_v47  ;;  %v297_v47 = vld [vmem:[%s3998_s10 + $0x3f0] sm:$0xff]  ;;  %v298_v48 = vld [vmem:[%s3998_s10 + $0x3f8] sm:$0xff] }
 0x508   :  { %2701 = vmatpush3.bf16.msra.mxu1 %v2698_v23  ;;  %2719 = vmatprep.subr.bf16.mxu0 %v2718_v54  ;;  %v348_v23 = vld [vmem:[%s4000_s12 + $0xf0] sm:$0xff]  ;;  %v2778_v49 = vpack.c.bf16 %v298_v48, %v297_v47 }
 0x509   :  { %2703 = vmatprep.subr.bf16.mxu1 %v2702_v26  ;;  %v2746_v25 = vpack.c.bf16 %v349_v24, %v348_v23  ;;  %v305_v23 = vld [vmem:[%s3998_s10 + $0x430] sm:$0xff]  ;;  %v306_v24 = vld [vmem:[%s3998_s10 + $0x438] sm:$0xff] }
 0x50c   :  { %2705 = vmatpush3.bf16.msra.mxu1 %v2702_v26  ;;  %v299_v26 = vld [vmem:[%s3998_s10 + $0x400] sm:$0xff] }
 0x50d   :  { %2707 = vmatprep.subr.bf16.mxu1 %v2706_v29  ;;  %v3763_v28 = vpack.c.bf16 %v300_v27, %v299_v26  ;;  %v307_v26 = vld [vmem:[%s3998_s10 + $0x440] sm:$0xff]  ;;  %v308_v27 = vld [vmem:[%s3998_s10 + $0x448] sm:$0xff] }
 0x510   :  { %2709 = vmatpush3.bf16.msra.mxu1 %v2706_v29  ;;  %v283_v29 = vld [vmem:[%s3998_s10 + $0x380] sm:$0xff] }
 0x511   :  { %2711 = vmatprep.subr.bf16.mxu1 %v2710_v35  ;;  %v2750_v32 = vpack.c.bf16 %v284_v30, %v283_v29  ;;  %v309_v29 = vld [vmem:[%s3998_s10 + $0x450] sm:$0xff]  ;;  %v310_v30 = vld [vmem:[%s3998_s10 + $0x458] sm:$0xff] }
 0x512   :  { %v2802_v31 = vpack.c.bf16 %v310_v30, %v309_v29  ;;  %v1706_v29 = vld [vmem:[%s4002_s11 + $0x2] ss:$0 sm:$0xff] }
 0x514   :  { %2713 = vmatpush3.bf16.msra.mxu1 %v2710_v35  ;;  %v285_v35 = vld [vmem:[%s3998_s10 + $0x390] sm:$0xff] }
 0x515   :  { %2715 = vmatprep.subr.bf16.mxu1 %v2714_v44  ;;  %v2754_v38 = vpack.c.bf16 %v286_v36, %v285_v35  ;;  %v311_v35 = vld [vmem:[%s3998_s10 + $0x460] sm:$0xff]  ;;  %v312_v36 = vld [vmem:[%s3998_s10 + $0x468] sm:$0xff] }
 0x516   :  { %v2806_v37 = vpack.c.bf16 %v312_v36, %v311_v35 }
 0x518   :  { %2717 = vmatpush3.bf16.msra.mxu1 %v2714_v44  ;;  %v2758_v44 = vpack.c.bf16 %v288_v42, %v287_v41  ;;  %v279_v41 = vld [vmem:[%s3998_s10 + $0x360] sm:$0xff]  ;;  %v280_v42 = vld [vmem:[%s3998_s10 + $0x368] sm:$0xff] }
 0x519   :  { %2751 = vmatprep.subr.bf16.mxu1 %v2750_v32  ;;  %v277_v32 = vld [vmem:[%s3998_s10 + $0x350] sm:$0xff]  ;;  %v2776_v43 = vpack.c.bf16 %v280_v42, %v279_v41  ;;  %v1715_v41 = vld [vmem:[%s4003_s13 + $0x2] ss:$0 sm:$0xff] }
 0x5ce   :  { %v2253_v56 = vpop.f32.mrb[12].mxu1 }
 0x5cf   :  { %v1138_v57 = vadd.f32 %v2253_v56, %v1695_v55  ;;  %v1132_v58 = vpop.f32.mrb[13].mxu1  ;;  %v275_v56 = vld [vmem:[%s3998_s10 + $0x340] sm:$0xff] }
 0x5d0   :  { %v1133_v59 = vadd.f32 %v1695_v55, %v1132_v58  ;;  %v292_v55 = vld [vmem:[%s3998_s10 + $0x3c8] sm:$0xff] }
 0x5d1   :  { %v3707_v60 = vadd.f32 %v1138_v57, %v899_v16  ;;  %v276_v58 = vld [vmem:[%s3998_s10 + $0x348] sm:$0xff] }
 0x5d2   :  { %v3711_v61 = vadd.f32 %v1133_v59, %v898_v12  ;;  %v2722_v12 = vpack.c.bf16 %v337_v14, %v336_v0  ;;  %v2768_v59 = vpack.c.bf16 %v276_v58, %v275_v56 }
 0x5d3   :  { %v1144_v62 = vmax.f32 %v3707_v60, 0.0 }
 0x5d4   :  { %v1143_v63 = vmax.f32 %v3711_v61, 0.0 }
 0x5d5   :  { %v1155_v1 = vrot.slane %v1144_v62, 5  ;;  %v1148_v4 = vrot.slane %v1144_v62, 2 }
 0x5d6   :  { %v1147_v16 = vrot.slane %v1143_v63, 2  ;;  %2286 = vmatprep.mubr.f32.mxu1 %v1143_v63  ;;  %v1154_v10 = vrot.slane %v1143_v63, 5  ;;  %v294_v63 = vld [vmem:[%s3998_s10 + $0x3d8] sm:$0xff] }
 0x5d7   :  { %2287 = vmatmul.mubr.f32.vlgmr.msra.gmra.mrb[14].mxu1 %v1144_v62  ;;  %v293_v62 = vld [vmem:[%s3998_s10 + $0x3d0] sm:$0xff] }
 0x5d8   :  { %1698 = vmatprep.mubr.msk.f32.mxu0 %vm1697_vm8, %v1154_v10  ;;  %2753 = vmatpush3.bf16.msra.mxu1 %v2752_v34  ;;  %v2770_v0 = vpack.c.bf16 %v294_v63, %v293_v62  ;;  %v2772_v34 = vpack.c.bf16 %v278_v33, %v277_v32 }
 0x5d9   :  { %1700 = vmatmul.mubr.msk.f32.vlgmr.msra.gmra.mrb[10].mxu0 %vm1699_vm9, %v1147_v16  ;;  %2755 = vmatprep.subr.bf16.mxu1 %v2754_v38  ;;  %v295_v38 = vld [vmem:[%s3998_s10 + $0x3e0] sm:$0xff] }
 0x5da   :  { %1702 = vmatprep.mubr.msk.f32.mxu0 %vm1697_vm8, %v1155_v1  ;;  %2721 = vmatpush3.bf16.msra.mxu0 %v2718_v54  ;;  %v291_v54 = vld [vmem:[%s3998_s10 + $0x3c0] sm:$0xff] }
 0x5db   :  { %2723 = vmatprep.subr.bf16.mxu0 %v2722_v12  ;;  %v2766_v57 = vpack.c.bf16 %v292_v55, %v291_v54  ;;  %v350_v54 = vld [vmem:[%s4000_s12 + $0x100] sm:$0xff]  ;;  %v351_v55 = vld [vmem:[%s4000_s12 + $0x108] sm:$0xff] }
 0x5dc   :  { %2757 = vmatpush3.bf16.msra.mxu1 %v2756_v40  ;;  %v2774_v40 = vpack.c.bf16 %v296_v39, %v295_v38  ;;  %v2814_v56 = vpack.c.bf16 %v351_v55, %v350_v54 }
 0x5dd   :  { %1704 = vmatmul.mubr.msk.f32.gmra.mrb[12].mxu0 %vm1699_vm9, %v1148_v4  ;;  %2759 = vmatprep.subr.bf16.mxu1 %v2758_v44  ;;  %v313_v44 = vld [vmem:[%s3998_s10 + $0x470] sm:$0xff] }
 0x5de   :  { %2725 = vmatpush3.bf16.msra.mxu0 %v2722_v12  ;;  %v1696_v12 = vld [vmem:[%s4002_s11 + $0x1] ss:$0 sm:$0xff] }
 0x5df   :  { %2727 = vmatprep.subr.bf16.mxu0 %v2726_v5 }
 0x5e0   :  { %2761 = vmatpush3.bf16.msra.mxu1 %v2760_v46  ;;  %v2810_v46 = vpack.c.bf16 %v314_v45, %v313_v44 }
 0x5e1   :  { %2763 = vmatprep.subr.bf16.mxu1 %v2762_v50  ;;  %v281_v50 = vld [vmem:[%s3998_s10 + $0x370] sm:$0xff] }
 0x5e2   :  { %2729 = vmatpush3.bf16.msra.mxu0 %v2726_v5 }
 0x5e3   :  { %2731 = vmatprep.subr.bf16.mxu0 %v2730_v8 }
 0x5e4   :  { %2765 = vmatpush3.bf16.msra.mxu1 %v2764_v53  ;;  %v2780_v53 = vpack.c.bf16 %v282_v52, %v281_v50 }
 0x5e5   :  { %2767 = vmatprep.subr.bf16.mxu1 %v2766_v57  ;;  %v1705_v57 = vld [vmem:[%s4003_s13 + $0x1] ss:$0 sm:$0xff] }
 0x5e6   :  { %2733 = vmatpush3.bf16.msra.mxu0 %v2730_v8 }
 0x5e7   :  { %2735 = vmatprep.subr.bf16.mxu0 %v2734_v13 }
 0x5e8   :  { %2769 = vmatpush3.bf16.msra.mxu1 %v2768_v59 }
 0x5e9   :  { %2771 = vmatprep.subr.bf16.mxu1 %v2770_v0 }
 0x5ea   :  { %2737 = vmatpush3.bf16.msra.mxu0 %v2734_v13  ;;  %v302_v13 = vld [vmem:[%s3998_s10 + $0x418] sm:$0xff] }
 0x5eb   :  { %2739 = vmatprep.subr.bf16.mxu0 %v2738_v19 }
 0x5ec   :  { %2773 = vmatpush3.bf16.msra.mxu1 %v2772_v34 }
 0x5ed   :  { %2775 = vmatprep.subr.bf16.mxu1 %v2774_v40 }
 0x5ee   :  { %2741 = vmatpush3.bf16.msra.mxu0 %v2738_v19  ;;  %v2786_v19 = vpack.c.bf16 %v302_v13, %v301_v11  ;;  %v359_v13 = vld [vmem:[%s4000_s12 + $0x148] sm:$0xff] }
 0x5ef   :  { %2743 = vmatprep.subr.bf16.mxu0 %v2742_v22 }
 0x5f0   :  { %2777 = vmatpush3.bf16.msra.mxu1 %v2776_v43 }
 0x5f1   :  { %2779 = vmatprep.subr.bf16.mxu1 %v2778_v49 }
 0x5f2   :  { %2745 = vmatpush3.bf16.msra.mxu0 %v2742_v22  ;;  %v2790_v22 = vpack.c.bf16 %v304_v21, %v303_v20  ;;  %v362_v20 = vld [vmem:[%s4000_s12 + $0x160] sm:$0xff]  ;;  %v363_v21 = vld [vmem:[%s4000_s12 + $0x168] sm:$0xff] }
 0x5f3   :  { %2747 = vmatprep.subr.bf16.mxu0 %v2746_v25 }
 0x5f4   :  { %2781 = vmatpush3.bf16.msra.mxu1 %v2780_v53 }
 0x5f5   :  { %2815 = vmatprep.subr.bf16.mxu1 %v2814_v56 }
 0x5f6   :  { %2749 = vmatpush3.bf16.msra.mxu0 %v2746_v25  ;;  %v2794_v25 = vpack.c.bf16 %v306_v24, %v305_v23  ;;  %v364_v23 = vld [vmem:[%s4000_s12 + $0x170] sm:$0xff]  ;;  %v365_v24 = vld [vmem:[%s4000_s12 + $0x178] sm:$0xff] }
 0x5f7   :  { %2783 = vmatprep.subr.bf16.mxu0 %v3763_v28 }
 0x6aa   :  { %v2288_v14 = vpop.f32.mrb[14].mxu1 }
 0x6ab   :  { %v1308_v16 = vpop.f32.mrb[15].mxu1 }
 0x6ac   :  { %v1956_v10 = vpop.f32.mrb[10].mxu0 }
 0x6ad   :  { %v1957_v1 = vpop.f32.mrb[11].mxu0 }
 0x6ae   :  { %v1958_v2 = vadd.f32 %v1957_v1, %v1956_v10  ;;  %v353_v1 = vld [vmem:[%s4000_s12 + $0x118] sm:$0xff] }
 0x6b0   :  { %v1234_v3 = vadd.f32 %v1958_v2, %v1696_v12  ;;  %v1959_v4 = vpop.f32.mrb[12].mxu0 }
 0x6b1   :  { %v1960_v5 = vpop.f32.mrb[13].mxu0 }
 0x6b2   :  { %v1961_v6 = vadd.f32 %v1960_v5, %v1959_v4  ;;  %v1309_v7 = vadd.f32 %v1308_v16, %v1234_v3  ;;  %v354_v4 = vld [vmem:[%s4000_s12 + $0x120] sm:$0xff]  ;;  %v355_v5 = vld [vmem:[%s4000_s12 + $0x128] sm:$0xff] }
 0x6b4   :  { %v1239_v8 = vadd.f32 %v1961_v6, %v1696_v12  ;;  %v1317_v9 = vmax.f32 %v1309_v7, 0.0  ;;  %v352_v12 = vld [vmem:[%s4000_s12 + $0x110] sm:$0xff]  ;;  %v2822_v7 = vpack.c.bf16 %v355_v5, %v354_v4 }
 0x6b6   :  { %v1314_v15 = vadd.f32 %v2288_v14, %v1239_v8  ;;  %2321 = vmatprep.mubr.f32.mxu0 %v1317_v9  ;;  %v356_v8 = vld [vmem:[%s4000_s12 + $0x130] sm:$0xff]  ;;  %v357_v9 = vld [vmem:[%s4000_s12 + $0x138] sm:$0xff] }
 0x6b7   :  { %v2826_v11 = vpack.c.bf16 %v357_v9, %v356_v8 }
 0x6b8   :  { %v1318_v17 = vmax.f32 %v1314_v15, 0.0  ;;  %v2830_v15 = vpack.c.bf16 %v359_v13, %v358_v51 }
 0x6ba   :  { %2322 = vmatmul.mubr.f32.vlgmr.msra.gmra.mrb[14].mxu0 %v1318_v17  ;;  %v361_v17 = vld [vmem:[%s4000_s12 + $0x158] sm:$0xff] }
 0x6bb   :  { %2785 = vmatpush3.bf16.msra.mxu0 %v3763_v28  ;;  %v2798_v28 = vpack.c.bf16 %v308_v27, %v307_v26 }
 0x6bc   :  { %2787 = vmatprep.subr.bf16.mxu0 %v2786_v19 }
 0x6bf   :  { %2789 = vmatpush3.bf16.msra.mxu0 %v2786_v19  ;;  %v2834_v19 = vpack.c.bf16 %v361_v17, %v360_v18 }
 0x6c0   :  { %2791 = vmatprep.subr.bf16.mxu0 %v2790_v22 }
 0x6c3   :  { %2793 = vmatpush3.bf16.msra.mxu0 %v2790_v22  ;;  %v2838_v22 = vpack.c.bf16 %v363_v21, %v362_v20 }
 0x6c4   :  { %2795 = vmatprep.subr.bf16.mxu0 %v2794_v25 }
 0x6c7   :  { %2797 = vmatpush3.bf16.msra.mxu0 %v2794_v25  ;;  %v2842_v25 = vpack.c.bf16 %v365_v24, %v364_v23 }
 0x6c8   :  { %2799 = vmatprep.subr.bf16.mxu0 %v2798_v28 }
 0x6cb   :  { %2801 = vmatpush3.bf16.msra.mxu0 %v2798_v28 }
 0x6cc   :  { %2803 = vmatprep.subr.bf16.mxu0 %v2802_v31 }
 0x6cf   :  { %2805 = vmatpush3.bf16.msra.mxu0 %v2802_v31 }
 0x6d0   :  { %2807 = vmatprep.subr.bf16.mxu0 %v2806_v37 }
 0x6d3   :  { %2809 = vmatpush3.bf16.msra.mxu0 %v2806_v37 }
 0x6d4   :  { %2811 = vmatprep.subr.bf16.mxu0 %v2810_v46 }
 0x6d7   :  { %2813 = vmatpush3.bf16.msra.mxu0 %v2810_v46 }
 0x78d   :  { %v2323_v58 = vpop.f32.mrb[14].mxu0 }
 0x78e   :  { %v1397_v59 = vadd.f32 %v2323_v58, %v1705_v57  ;;  %v1391_v62 = vpop.f32.mrb[15].mxu0 }
 0x78f   :  { %v1392_v63 = vadd.f32 %v1705_v57, %v1391_v62 }
 0x790   :  { %v3918_v0 = vadd.f32 %v1397_v59, %v3707_v60  ;;  %v2818_v60 = vpack.c.bf16 %v353_v1, %v352_v12 }
 0x791   :  { %v3921_v14 = vadd.f32 %v1392_v63, %v3711_v61 }
 0x792   :  { %v1403_v16 = vmax.f32 %v3918_v0, 0.0 }
 0x793   :  { %v1402_v10 = vmax.f32 %v3921_v14, 0.0 }
 0x794   :  { %v1413_v61 = vrot.slane %v1403_v16, 7  ;;  %v1407_v6 = vrot.slane %v1403_v16, 6 }
 0x795   :  { %v1406_v2 = vrot.slane %v1402_v10, 6  ;;  %2356 = vmatprep.mubr.f32.mxu0 %v1402_v10  ;;  %v1412_v3 = vrot.slane %v1402_v10, 7 }
 0x796   :  { %2357 = vmatmul.mubr.f32.vlgmr.msra.gmra.mrb[16].mxu0 %v1403_v16 }
 0x797   :  { %1708 = vmatprep.mubr.msk.f32.mxu1 %vm3042_vm1, %v1412_v3 }
 0x798   :  { %1710 = vmatmul.mubr.msk.f32.vlgmr.msra.gmra.mrb[16].mxu1 %vm3107_vm3, %v1406_v2 }
 0x799   :  { %1712 = vmatprep.mubr.msk.f32.mxu1 %vm3042_vm1, %v1413_v61  ;;  %2817 = vmatpush3.bf16.msra.mxu1 %v2814_v56 }
 0x79a   :  { %2819 = vmatprep.subr.bf16.mxu1 %v2818_v60 }
 0x79c   :  { %1714 = vmatmul.mubr.msk.f32.gmra.mrb[18].mxu1 %vm3107_vm3, %v1407_v6 }
 0x79d   :  { %2821 = vmatpush3.bf16.msra.mxu1 %v2818_v60 }
 0x79e   :  { %2823 = vmatprep.subr.bf16.mxu1 %v2822_v7 }
 0x7a1   :  { %2825 = vmatpush3.bf16.msra.mxu1 %v2822_v7 }
 0x7a2   :  { %2827 = vmatprep.subr.bf16.mxu1 %v2826_v11 }
 0x7a5   :  { %2829 = vmatpush3.bf16.msra.mxu1 %v2826_v11 }
 0x7a6   :  { %2831 = vmatprep.subr.bf16.mxu1 %v2830_v15 }
 0x7a9   :  { %2833 = vmatpush3.bf16.msra.mxu1 %v2830_v15 }
 0x7aa   :  { %2835 = vmatprep.subr.bf16.mxu1 %v2834_v19 }
 0x7ad   :  { %2837 = vmatpush3.bf16.msra.mxu1 %v2834_v19 }
 0x7ae   :  { %2839 = vmatprep.subr.bf16.mxu1 %v2838_v22 }
 0x7b1   :  { %2841 = vmatpush3.bf16.msra.mxu1 %v2838_v22 }
 0x7b2   :  { %2843 = vmatprep.subr.bf16.mxu1 %v2842_v25 }
 0x7b5   :  { %2845 = vmatpush3.bf16.msra.mxu1 %v2842_v25 }
 0x869   :  { %v2358_v26 = vpop.f32.mrb[16].mxu0 }
 0x86a   :  { %v1565_v27 = vpop.f32.mrb[17].mxu0 }
 0x86b   :  { %v2030_v28 = vpop.f32.mrb[16].mxu1 }
 0x86c   :  { %v2031_v30 = vpop.f32.mrb[17].mxu1 }
 0x86d   :  { %v2032_v31 = vadd.f32 %v2031_v30, %v2030_v28 }
 0x86f   :  { %v1491_v32 = vadd.f32 %v2032_v31, %v1706_v29  ;;  %v2033_v33 = vpop.f32.mrb[18].mxu1 }
 0x870   :  { %v2034_v34 = vpop.f32.mrb[19].mxu1 }
 0x871   :  { %v2035_v35 = vadd.f32 %v2034_v34, %v2033_v33  ;;  %v1566_v36 = vadd.f32 %v1565_v27, %v1491_v32 }
 0x873   :  { %v1496_v37 = vadd.f32 %v2035_v35, %v1706_v29  ;;  %v1574_v38 = vmax.f32 %v1566_v36, 0.0 }
 0x875   :  { %v1571_v39 = vadd.f32 %v2358_v26, %v1496_v37  ;;  %2391 = vmatprep.mubr.f32.mxu1 %v1574_v38 }
 0x877   :  { %v1575_v40 = vmax.f32 %v1571_v39, 0.0 }
 0x879   :  { %2392 = vmatmul.mubr.f32.vlgmr.msra.gmra.mrb[20].mxu1 %v1575_v40 }
 0x94c   :  { %v2393_v42 = vpop.f32.mrb[20].mxu1 }
 0x94d   :  { %v1654_v43 = vadd.f32 %v2393_v42, %v1715_v41  ;;  %v1648_v44 = vpop.f32.mrb[21].mxu1 }
 0x94e   :  { %v1649_v45 = vadd.f32 %v1715_v41, %v1648_v44 }
 0x94f   :  { %v1658_v46 = vadd.f32 %v1654_v43, %v3918_v0 }
 0x950   :  { %v1657_v47 = vadd.f32 %v1649_v45, %v3921_v14 }
 0x951   :  { %1663 = vst [vmem:[%s4004_s15 + $0x8] sm:$0xff] %v1658_v46 }
 0x952   :  { %1662 = vst [vmem:[%s4004_s15] sm:$0xff] %v1657_v47 }

// kernel: forward.10
= control target key start
LH: loop header
LB: loop body
LE: loop exit
PB: predicated region body
PF: predicated region fallthrough
CT: control target
= control target key end

     0   :  { %vm294_vm0 = vcmask 1040384   ;;  %vm281_vm2 = vcmask 1041408   ;;  %vm791_vm4 = vcmask 1042432   ;;  %vm778_vm5 = vcmask 1045504   ;;  %s3320_s1 = inlined_call_operand.vmem [shape: f32[384,128], index: 1, kind: input, shape index: {}]   ;;  %s3321_s0 = inlined_call_operand.vmem [shape: f32[2,16,128], index: 0, kind: input, shape index: {}]   ;;  %s3322_s3 = inlined_call_operand.vmem [shape: f32[3,384,128], index: 3, kind: input, shape index: {}]   ;;  %s3323_s5 = inlined_call_operand.vmem [shape: f32[3,128,128], index: 5, kind: input, shape index: {}]   ;;  %s3324_s2 = inlined_call_operand.vmem [shape: f32[1,128], index: 2, kind: input, shape index: {}]   ;;  %s3325_s4 = inlined_call_operand.vmem [shape: f32[3,1,128], index: 4, kind: input, shape index: {}]   ;;  %s3326_s6 = inlined_call_operand.vmem [shape: f32[3,1,128], index: 6, kind: input, shape index: {}]   ;;  %s3327_s7 = inlined_call_operand.vmem [shape: f32[2,16,128], index: 7, kind: output, shape index: {}]  }
   0x1   :  { %v46_v0 = vld [vmem:[%s3320_s1 + $0x80] sm:$0xff]  ;;  %v47_v1 = vld [vmem:[%s3320_s1 + $0x88] sm:$0xff]  ;;  %v48_v9 = vld [vmem:[%s3320_s1 + $0x90] sm:$0xff] }
   0x2   :  { %v30_v2 = vld [vmem:[%s3320_s1] sm:$0xff]  ;;  %v2011_v3 = vpack.c.bf16 %v47_v1, %v46_v0  ;;  %v31_v4 = vld [vmem:[%s3320_s1 + $0x8] sm:$0xff]  ;;  %v49_v10 = vld [vmem:[%s3320_s1 + $0x98] sm:$0xff] }
   0x3   :  { %v62_v5 = vld [vmem:[%s3320_s1 + $0x100] sm:$0xff]  ;;  %v63_v6 = vld [vmem:[%s3320_s1 + $0x108] sm:$0xff]  ;;  %v2013_v7 = vpack.c.bf16 %v31_v4, %v30_v2  ;;  %v32_v11 = vld [vmem:[%s3320_s1 + $0x10] sm:$0xff]  ;;  %v2015_v12 = vpack.c.bf16 %v49_v10, %v48_v9 }
   0x4   :  { %v2043_v8 = vpack.c.bf16 %v63_v6, %v62_v5  ;;  %2012 = vmatprep.subr.bf16.mxu0 %v2011_v3  ;;  %v33_v13 = vld [vmem:[%s3320_s1 + $0x18] sm:$0xff]  ;;  %v64_v14 = vld [vmem:[%s3320_s1 + $0x110] sm:$0xff]  ;;  %v50_v18 = vld [vmem:[%s3320_s1 + $0xa0] sm:$0xff] }
   0x5   :  { %v65_v15 = vld [vmem:[%s3320_s1 + $0x118] sm:$0xff]  ;;  %2014 = vmatpush3.bf16.msra.mxu0 %v2013_v7  ;;  %v2017_v16 = vpack.c.bf16 %v33_v13, %v32_v11  ;;  %v51_v19 = vld [vmem:[%s3320_s1 + $0xa8] sm:$0xff]  ;;  %v34_v20 = vld [vmem:[%s3320_s1 + $0x20] sm:$0xff] }
   0x6   :  { %2044 = vmatprep.subr.bf16.mxu1 %v2043_v8  ;;  %v2047_v17 = vpack.c.bf16 %v65_v15, %v64_v14  ;;  %2016 = vmatprep.subr.bf16.mxu0 %v2015_v12  ;;  %v2019_v21 = vpack.c.bf16 %v51_v19, %v50_v18  ;;  %v35_v22 = vld [vmem:[%s3320_s1 + $0x28] sm:$0xff]  ;;  %v66_v23 = vld [vmem:[%s3320_s1 + $0x120] sm:$0xff]  ;;  %v52_v26 = vld [vmem:[%s3320_s1 + $0xb0] sm:$0xff] }
   0x7   :  { %2046 = vmatpush3.bf16.msra.mxu1 %v2043_v8  ;;  %v67_v24 = vld [vmem:[%s3320_s1 + $0x128] sm:$0xff]  ;;  %v53_v27 = vld [vmem:[%s3320_s1 + $0xb8] sm:$0xff]  ;;  %v68_v28 = vld [vmem:[%s3320_s1 + $0x130] sm:$0xff]  ;;  %v2021_v30 = vpack.c.bf16 %v35_v22, %v34_v20 }
   0x8   :  { %2048 = vmatprep.subr.bf16.mxu1 %v2047_v17  ;;  %v2051_v25 = vpack.c.bf16 %v67_v24, %v66_v23  ;;  %v69_v29 = vld [vmem:[%s3320_s1 + $0x138] sm:$0xff]  ;;  %v2023_v31 = vpack.c.bf16 %v53_v27, %v52_v26  ;;  %v36_v32 = vld [vmem:[%s3320_s1 + $0x30] sm:$0xff]  ;;  %v54_v35 = vld [vmem:[%s3320_s1 + $0xc0] sm:$0xff] }
   0x9   :  { %2018 = vmatpush3.bf16.msra.mxu0 %v2017_v16  ;;  %v37_v33 = vld [vmem:[%s3320_s1 + $0x38] sm:$0xff]  ;;  %v2055_v34 = vpack.c.bf16 %v69_v29, %v68_v28  ;;  %v55_v36 = vld [vmem:[%s3320_s1 + $0xc8] sm:$0xff]  ;;  %v70_v37 = vld [vmem:[%s3320_s1 + $0x140] sm:$0xff] }
   0xa   :  { %2020 = vmatprep.subr.bf16.mxu0 %v2019_v21  ;;  %v71_v38 = vld [vmem:[%s3320_s1 + $0x148] sm:$0xff]  ;;  %v2025_v39 = vpack.c.bf16 %v37_v33, %v36_v32  ;;  %v2027_v40 = vpack.c.bf16 %v55_v36, %v54_v35  ;;  %v38_v41 = vld [vmem:[%s3320_s1 + $0x40] sm:$0xff]  ;;  %v56_v44 = vld [vmem:[%s3320_s1 + $0xd0] sm:$0xff] }
   0xb   :  { %2050 = vmatpush3.bf16.msra.mxu1 %v2047_v17  ;;  %v39_v42 = vld [vmem:[%s3320_s1 + $0x48] sm:$0xff]  ;;  %v2059_v43 = vpack.c.bf16 %v71_v38, %v70_v37  ;;  %v57_v45 = vld [vmem:[%s3320_s1 + $0xd8] sm:$0xff]  ;;  %v72_v46 = vld [vmem:[%s3320_s1 + $0x150] sm:$0xff] }
   0xc   :  { %2052 = vmatprep.subr.bf16.mxu1 %v2051_v25  ;;  %v73_v47 = vld [vmem:[%s3320_s1 + $0x158] sm:$0xff]  ;;  %v2526_v48 = vld [vmem:[%s3321_s0] sm:$0xff]  ;;  %vm2529_vm1 = vmneg %vm294_vm0  ;;  %v2029_v50 = vpack.c.bf16 %v39_v42, %v38_v41  ;;  %v2031_v52 = vpack.c.bf16 %v57_v45, %v56_v44 }
   0xd   :  { %2022 = vmatpush3.bf16.msra.mxu0 %v2021_v30  ;;  %v295_v51 = vrot.slane %v2526_v48, 7  ;;  %1777 = vmatprep.mubr.f32.mxu1 %v2526_v48  ;;  %v40_v53 = vld [vmem:[%s3320_s1 + $0x50] sm:$0xff]  ;;  %v41_v54 = vld [vmem:[%s3320_s1 + $0x58] sm:$0xff]  ;;  %v2063_v55 = vpack.c.bf16 %v73_v47, %v72_v46  ;;  %v58_v56 = vld [vmem:[%s3320_s1 + $0xe0] sm:$0xff]  ;;  %v282_v21 = vrot.slane %v2526_v48, 6 }
   0xe   :  { %2024 = vmatprep.subr.bf16.mxu0 %v2023_v31  ;;  %v59_v57 = vld [vmem:[%s3320_s1 + $0xe8] sm:$0xff]  ;;  %v74_v58 = vld [vmem:[%s3320_s1 + $0x160] sm:$0xff]  ;;  %v2033_v60 = vpack.c.bf16 %v41_v54, %v40_v53  ;;  %v60_v1 = vld [vmem:[%s3320_s1 + $0xf0] sm:$0xff] }
   0xf   :  { %2054 = vmatpush3.bf16.msra.mxu1 %v2051_v25  ;;  %1396 = vmatprep.mubr.msk.f32.mxu0 %vm2529_vm1, %v295_v51  ;;  %v75_v59 = vld [vmem:[%s3320_s1 + $0x168] sm:$0xff]  ;;  %v2035_v61 = vpack.c.bf16 %v59_v57, %v58_v56  ;;  %v42_v62 = vld [vmem:[%s3320_s1 + $0x60] sm:$0xff]  ;;  %v61_v2 = vld [vmem:[%s3320_s1 + $0xf8] sm:$0xff] }
  0x10   :  { %2056 = vmatprep.subr.bf16.mxu1 %v2055_v34  ;;  %v43_v63 = vld [vmem:[%s3320_s1 + $0x68] sm:$0xff]  ;;  %v2067_v0 = vpack.c.bf16 %v75_v59, %v74_v58  ;;  %v76_v3 = vld [vmem:[%s3320_s1 + $0x170] sm:$0xff]  ;;  %v77_v4 = vld [vmem:[%s3320_s1 + $0x178] sm:$0xff]  ;;  %v2039_v6 = vpack.c.bf16 %v61_v2, %v60_v1 }
  0x11   :  { %2026 = vmatpush3.bf16.msra.mxu0 %v2025_v39  ;;  %v2037_v5 = vpack.c.bf16 %v43_v63, %v42_v62  ;;  %v44_v7 = vld [vmem:[%s3320_s1 + $0x70] sm:$0xff]  ;;  %v45_v8 = vld [vmem:[%s3320_s1 + $0x78] sm:$0xff]  ;;  %v2071_v9 = vpack.c.bf16 %v77_v4, %v76_v3  ;;  %v27_v10 = vld [vmem:[%s3321_s0 + $0x8] sm:$0xff] }
  0x12   :  { %2028 = vmatprep.subr.bf16.mxu0 %v2027_v40  ;;  %v95_v11 = vld [vmem:[%s3322_s3 + $0x80] sm:$0xff]  ;;  %v96_v12 = vld [vmem:[%s3322_s3 + $0x88] sm:$0xff]  ;;  %v2041_v15 = vpack.c.bf16 %v45_v8, %v44_v7  ;;  %v296_v16 = vrot.slane %v27_v10, 7  ;;  %v97_v22 = vld [vmem:[%s3322_s3 + $0x90] sm:$0xff]  ;;  %v283_v25 = vrot.slane %v27_v10, 6 }
  0x13   :  { %2058 = vmatpush3.bf16.msra.mxu1 %v2055_v34  ;;  %v111_v13 = vld [vmem:[%s3322_s3 + $0x100] sm:$0xff]  ;;  %v112_v14 = vld [vmem:[%s3322_s3 + $0x108] sm:$0xff]  ;;  %v2075_v17 = vpack.c.bf16 %v96_v12, %v95_v11  ;;  %v98_v23 = vld [vmem:[%s3322_s3 + $0x98] sm:$0xff] }
  0x14   :  { %2060 = vmatprep.subr.bf16.mxu1 %v2059_v43  ;;  %v79_v18 = vld [vmem:[%s3322_s3] sm:$0xff]  ;;  %v80_v19 = vld [vmem:[%s3322_s3 + $0x8] sm:$0xff]  ;;  %v2107_v20 = vpack.c.bf16 %v112_v14, %v111_v13  ;;  %vm2610_vm3 = vmneg %vm281_vm2  ;;  %v297_v28 = vsel %vm294_vm0, %v295_v51, %v296_v16  ;;  %v2079_v32 = vpack.c.bf16 %v98_v23, %v97_v22  ;;  %v284_v38 = vsel %vm281_vm2, %v282_v21, %v283_v25 }
  0x15   :  { %2030 = vmatpush3.bf16.msra.mxu0 %v2029_v50  ;;  %v113_v26 = vld [vmem:[%s3322_s3 + $0x110] sm:$0xff]  ;;  %v114_v27 = vld [vmem:[%s3322_s3 + $0x118] sm:$0xff]  ;;  %v2077_v30 = vpack.c.bf16 %v80_v19, %v79_v18  ;;  %v99_v35 = vld [vmem:[%s3322_s3 + $0xa0] sm:$0xff] }
  0x16   :  { %2032 = vmatprep.subr.bf16.mxu0 %v2031_v52  ;;  %v28_v29 = vld [vmem:[%s3321_s0 + $0x10] sm:$0xff]  ;;  %v29_v31 = vld [vmem:[%s3321_s0 + $0x18] sm:$0xff]  ;;  %v100_v36 = vld [vmem:[%s3322_s3 + $0xa8] sm:$0xff]  ;;  %v2111_v37 = vpack.c.bf16 %v114_v27, %v113_v26 }
  0x17   :  { %2062 = vmatpush3.bf16.msra.mxu1 %v2059_v43  ;;  %v81_v33 = vld [vmem:[%s3322_s3 + $0x10] sm:$0xff]  ;;  %v82_v34 = vld [vmem:[%s3322_s3 + $0x18] sm:$0xff]  ;;  %v298_v39 = vrot.slane %v28_v29, 7  ;;  %v115_v40 = vld [vmem:[%s3322_s3 + $0x120] sm:$0xff]  ;;  %v299_v42 = vrot.slane %v29_v31, 7  ;;  %v2083_v44 = vpack.c.bf16 %v100_v36, %v99_v35  ;;  %v285_v47 = vrot.slane %v28_v29, 6 }
  0x18   :  { %2064 = vmatprep.subr.bf16.mxu1 %v2063_v55  ;;  %v116_v41 = vld [vmem:[%s3322_s3 + $0x128] sm:$0xff]  ;;  %v2081_v43 = vpack.c.bf16 %v82_v34, %v81_v33  ;;  %v83_v45 = vld [vmem:[%s3322_s3 + $0x20] sm:$0xff]  ;;  %v101_v48 = vld [vmem:[%s3322_s3 + $0xb0] sm:$0xff]  ;;  %v286_v52 = vrot.slane %v29_v31, 6  ;;  %v2380_v33 = vmov 0.0  }
  0x19   :  { %2034 = vmatpush3.bf16.msra.mxu0 %v2033_v60  ;;  %v84_v46 = vld [vmem:[%s3322_s3 + $0x28] sm:$0xff]  ;;  %v102_v50 = vld [vmem:[%s3322_s3 + $0xb8] sm:$0xff]  ;;  %v2115_v51 = vpack.c.bf16 %v116_v41, %v115_v40  ;;  %v117_v53 = vld [vmem:[%s3322_s3 + $0x130] sm:$0xff] }
  0x1a   :  { %2036 = vmatprep.subr.bf16.mxu0 %v2035_v61  ;;  %v118_v54 = vld [vmem:[%s3322_s3 + $0x138] sm:$0xff]  ;;  %v2085_v56 = vpack.c.bf16 %v84_v46, %v83_v45  ;;  %v2087_v57 = vpack.c.bf16 %v102_v50, %v101_v48  ;;  %v85_v58 = vld [vmem:[%s3322_s3 + $0x30] sm:$0xff]  ;;  %v103_v60 = vld [vmem:[%s3322_s3 + $0xc0] sm:$0xff]  ;;  %v287_v63 = vsel %vm281_vm2, %v285_v47, %v286_v52 }
  0x1b   :  { %2066 = vmatpush3.bf16.msra.mxu1 %v2063_v55  ;;  %v300_v55 = vsel %vm294_vm0, %v298_v39, %v299_v42  ;;  %v86_v59 = vld [vmem:[%s3322_s3 + $0x38] sm:$0xff]  ;;  %v104_v61 = vld [vmem:[%s3322_s3 + $0xc8] sm:$0xff]  ;;  %v2119_v62 = vpack.c.bf16 %v118_v54, %v117_v53  ;;  %v87_v4 = vld [vmem:[%s3322_s3 + $0x40] sm:$0xff] }
  0x1c   :  { %2068 = vmatprep.subr.bf16.mxu1 %v2067_v0  ;;  %v120_v1 = vld [vmem:[%s3322_s3 + $0x148] sm:$0xff]  ;;  %v2089_v2 = vpack.c.bf16 %v86_v59, %v85_v58  ;;  %v2091_v3 = vpack.c.bf16 %v104_v61, %v103_v60  ;;  %v106_v7 = vld [vmem:[%s3322_s3 + $0xd8] sm:$0xff]  ;;  %v89_v11 = vld [vmem:[%s3322_s3 + $0x50] sm:$0xff] }
  0x1d   :  { %2038 = vmatpush3.bf16.msra.mxu0 %v2037_v5  ;;  %v88_v5 = vld [vmem:[%s3322_s3 + $0x48] sm:$0xff]  ;;  %v90_v12 = vld [vmem:[%s3322_s3 + $0x58] sm:$0xff]  ;;  %v107_v14 = vld [vmem:[%s3322_s3 + $0xe0] sm:$0xff] }
  0x1e   :  { %2040 = vmatprep.subr.bf16.mxu0 %v2039_v6  ;;  %v105_v6 = vld [vmem:[%s3322_s3 + $0xd0] sm:$0xff]  ;;  %v2097_v13 = vpack.c.bf16 %v90_v12, %v89_v11  ;;  %v92_v18 = vld [vmem:[%s3322_s3 + $0x68] sm:$0xff]  ;;  %v110_v25 = vld [vmem:[%s3322_s3 + $0xf8] sm:$0xff] }
  0x1f   :  { %2070 = vmatpush3.bf16.msra.mxu1 %v2067_v0  ;;  %v119_v0 = vld [vmem:[%s3322_s3 + $0x140] sm:$0xff]  ;;  %v109_v23 = vld [vmem:[%s3322_s3 + $0xf0] sm:$0xff]  ;;  %v126_v35 = vld [vmem:[%s3322_s3 + $0x178] sm:$0xff] }
  0x20   :  { %2072 = vmatprep.subr.bf16.mxu1 %v2071_v9  ;;  %v2123_v8 = vpack.c.bf16 %v120_v1, %v119_v0  ;;  %v2103_v26 = vpack.c.bf16 %v110_v25, %v109_v23  ;;  %v93_v27 = vld [vmem:[%s3322_s3 + $0x70] sm:$0xff]  ;;  %v229_v41 = vld [vmem:[%s3323_s5 + $0x18] sm:$0xff]  ;;  %v234_v50 = vld [vmem:[%s3323_s5 + $0x40] sm:$0xff] }
  0x21   :  { %2042 = vmatpush3.bf16.msra.mxu0 %v2041_v15  ;;  %v108_v15 = vld [vmem:[%s3322_s3 + $0xe8] sm:$0xff]  ;;  %v125_v34 = vld [vmem:[%s3322_s3 + $0x170] sm:$0xff]  ;;  %v237_v54 = vld [vmem:[%s3323_s5 + $0x58] sm:$0xff] }
  0x22   :  { %2076 = vmatprep.subr.bf16.mxu0 %v2075_v17  ;;  %v2099_v16 = vpack.c.bf16 %v108_v15, %v107_v14  ;;  %v91_v17 = vld [vmem:[%s3322_s3 + $0x60] sm:$0xff]  ;;  %v2135_v36 = vpack.c.bf16 %v126_v35, %v125_v34  ;;  %v232_v46 = vld [vmem:[%s3323_s5 + $0x30] sm:$0xff]  ;;  %v160_v34 = vld [vmem:[%s3322_s3 + $0x288] sm:$0xff] }
  0x23   :  { %2074 = vmatpush3.bf16.msra.mxu1 %v2071_v9  ;;  %v2093_v9 = vpack.c.bf16 %v88_v5, %v87_v4  ;;  %v2101_v19 = vpack.c.bf16 %v92_v18, %v91_v17  ;;  %v236_v53 = vld [vmem:[%s3323_s5 + $0x50] sm:$0xff]  ;;  %v1394_v59 = vld [vmem:[%s3324_s2] ss:$0 sm:$0xff]  ;;  %vm3003_vm6 = vmneg %vm791_vm4 }
  0x24   :  { %2108 = vmatprep.subr.bf16.mxu1 %v2107_v20  ;;  %1398 = vmatmul.mubr.msk.f32.vlgmr.msra.gmra.mrb[0].mxu0 %vm2610_vm3, %v282_v21  ;;  %v122_v21 = vld [vmem:[%s3322_s3 + $0x158] sm:$0xff]  ;;  %v143_v35 = vld [vmem:[%s3322_s3 + $0x200] sm:$0xff]  ;;  %vm3008_vm7 = vmneg %vm778_vm5 }
  0x25   :  { %382 = vmatprep.mubr.f32.mxu0 %v297_v28  ;;  %2078 = vmatpush3.bf16.msra.mxu0 %v2077_v30  ;;  %v94_v28 = vld [vmem:[%s3322_s3 + $0x78] sm:$0xff]  ;;  %v123_v30 = vld [vmem:[%s3322_s3 + $0x160] sm:$0xff]  ;;  %v268_v24 = vld [vmem:[%s3323_s5 + $0x150] sm:$0xff] }
  0x26   :  { %1778 = vmatmul.mubr.f32.vlgmr.msra.gmra.mrb[0].mxu1 %v27_v10  ;;  %2080 = vmatprep.subr.bf16.mxu0 %v2079_v32  ;;  %v2095_v10 = vpack.c.bf16 %v106_v7, %v105_v6  ;;  %v266_v49 = vld [vmem:[%s3323_s5 + $0x140] sm:$0xff] }
  0x27   :  { %1780 = vmatprep.mubr.f32.mxu1 %v28_v29  ;;  %2110 = vmatpush3.bf16.msra.mxu1 %v2107_v20  ;;  %v121_v20 = vld [vmem:[%s3322_s3 + $0x150] sm:$0xff]  ;;  %v2105_v29 = vpack.c.bf16 %v94_v28, %v93_v27  ;;  %v238_v27 = vld [vmem:[%s3323_s5 + $0x60] sm:$0xff]  ;;  %v239_v28 = vld [vmem:[%s3323_s5 + $0x68] sm:$0xff] }
  0x28   :  { %383 = vmatmul.mubr.f32.gmra.mrb[2].mxu0 %v284_v38  ;;  %2112 = vmatprep.subr.bf16.mxu1 %v2111_v37  ;;  %v2127_v22 = vpack.c.bf16 %v122_v21, %v121_v20  ;;  %v227_v38 = vld [vmem:[%s3323_s5 + $0x8] sm:$0xff] }
  0x29   :  { %1400 = vmatprep.mubr.msk.f32.mxu0 %vm2529_vm1, %v298_v39  ;;  %2082 = vmatpush3.bf16.msra.mxu0 %v2081_v43  ;;  %v228_v39 = vld [vmem:[%s3323_s5 + $0x10] sm:$0xff]  ;;  %v230_v43 = vld [vmem:[%s3323_s5 + $0x20] sm:$0xff] }
  0x2a   :  { %1781 = vmatmul.mubr.f32.gmra.mrb[2].mxu1 %v29_v31  ;;  %2084 = vmatprep.subr.bf16.mxu0 %v2083_v44  ;;  %v124_v31 = vld [vmem:[%s3322_s3 + $0x168] sm:$0xff]  ;;  %v2143_v42 = vpack.c.bf16 %v229_v41, %v228_v39 }
  0x2b   :  { %2114 = vmatpush3.bf16.msra.mxu1 %v2111_v37  ;;  %v2131_v32 = vpack.c.bf16 %v124_v31, %v123_v30  ;;  %v226_v37 = vld [vmem:[%s3323_s5] sm:$0xff]  ;;  %v231_v44 = vld [vmem:[%s3323_s5 + $0x28] sm:$0xff]  ;;  %v240_v30 = vld [vmem:[%s3323_s5 + $0x70] sm:$0xff] }
  0x2c   :  { %1402 = vmatmul.mubr.msk.f32.gmra.mrb[4].mxu0 %vm2610_vm3, %v285_v47  ;;  %2116 = vmatprep.subr.bf16.mxu1 %v2115_v51  ;;  %v2139_v40 = vpack.c.bf16 %v227_v38, %v226_v37  ;;  %v2147_v45 = vpack.c.bf16 %v231_v44, %v230_v43  ;;  %v233_v47 = vld [vmem:[%s3323_s5 + $0x38] sm:$0xff]  ;;  %v144_v37 = vld [vmem:[%s3322_s3 + $0x208] sm:$0xff]  ;;  %v127_v38 = vld [vmem:[%s3322_s3 + $0x180] sm:$0xff] }
  0x2d   :  { %392 = vmatprep.mubr.f32.mxu0 %v300_v55  ;;  %2086 = vmatpush3.bf16.msra.mxu0 %v2085_v56  ;;  %v2151_v48 = vpack.c.bf16 %v233_v47, %v232_v46  ;;  %v2159_v55 = vpack.c.bf16 %v237_v54, %v236_v53  ;;  %v241_v31 = vld [vmem:[%s3323_s5 + $0x78] sm:$0xff]  ;;  %v128_v39 = vld [vmem:[%s3322_s3 + $0x188] sm:$0xff]  ;;  %v129_v44 = vld [vmem:[%s3322_s3 + $0x190] sm:$0xff] }
  0x2e   :  { %2088 = vmatprep.subr.bf16.mxu0 %v2087_v57  ;;  %v2173_v41 = vpack.c.bf16 %v128_v39, %v127_v38  ;;  %v146_v43 = vld [vmem:[%s3322_s3 + $0x218] sm:$0xff]  ;;  %v147_v47 = vld [vmem:[%s3322_s3 + $0x220] sm:$0xff]  ;;  %v132_v53 = vld [vmem:[%s3322_s3 + $0x1a8] sm:$0xff] }
  0x2f   :  { %2118 = vmatpush3.bf16.msra.mxu1 %v2115_v51  ;;  %v235_v51 = vld [vmem:[%s3323_s5 + $0x48] sm:$0xff]  ;;  %v149_v54 = vld [vmem:[%s3322_s3 + $0x230] sm:$0xff] }
  0x30   :  { %393 = vmatmul.mubr.f32.gmra.mrb[6].mxu0 %v287_v63  ;;  %2120 = vmatprep.subr.bf16.mxu1 %v2119_v62  ;;  %v2155_v52 = vpack.c.bf16 %v235_v51, %v234_v50  ;;  %v148_v50 = vld [vmem:[%s3322_s3 + $0x228] sm:$0xff] }
  0x31   :  { %2090 = vmatpush3.bf16.msra.mxu0 %v2089_v2  ;;  %565 = vmatprep.mubr.f32.mxu0 %v2380_v33  ;;  %v2179_v51 = vpack.c.bf16 %v148_v50, %v147_v47  ;;  %v168_v47 = vld [vmem:[%s3322_s3 + $0x2c8] sm:$0xff]  ;;  %v169_v50 = vld [vmem:[%s3322_s3 + $0x2d0] sm:$0xff] }
  0x32   :  { %2092 = vmatprep.subr.bf16.mxu0 %v2091_v3 }
  0x33   :  { %2122 = vmatpush3.bf16.msra.mxu1 %v2119_v62 }
  0x34   :  { %2124 = vmatprep.subr.bf16.mxu1 %v2123_v8 }
  0x35   :  { %2094 = vmatpush3.bf16.msra.mxu0 %v2093_v9 }
  0x36   :  { %2096 = vmatprep.subr.bf16.mxu0 %v2095_v10 }
  0x37   :  { %2126 = vmatpush3.bf16.msra.mxu1 %v2123_v8 }
  0x38   :  { %2128 = vmatprep.subr.bf16.mxu1 %v2127_v22 }
  0x39   :  { %2098 = vmatpush3.bf16.msra.mxu0 %v2097_v13 }
  0x3a   :  { %2100 = vmatprep.subr.bf16.mxu0 %v2099_v16 }
  0x3b   :  { %2130 = vmatpush3.bf16.msra.mxu1 %v2127_v22 }
  0x3c   :  { %2132 = vmatprep.subr.bf16.mxu1 %v2131_v32 }
  0x3d   :  { %2102 = vmatpush3.bf16.msra.mxu0 %v2101_v19 }
  0x3e   :  { %2104 = vmatprep.subr.bf16.mxu0 %v2103_v26 }
  0x3f   :  { %2134 = vmatpush3.bf16.msra.mxu1 %v2131_v32  ;;  %v2167_v32 = vpack.c.bf16 %v241_v31, %v240_v30 }
  0x40   :  { %2136 = vmatprep.subr.bf16.mxu1 %v2135_v36 }
  0x41   :  { %2106 = vmatpush3.bf16.msra.mxu0 %v2105_v29  ;;  %v2163_v29 = vpack.c.bf16 %v239_v28, %v238_v27 }
  0x42   :  { %2140 = vmatprep.subr.bf16.mxu0 %v2139_v40 }
  0x43   :  { %2138 = vmatpush3.bf16.msra.mxu1 %v2135_v36 }
  0x44   :  { %566 = vmatmul.mubr.f32.vlgmr.msra.gmra.mrb[8].mxu0 %v2380_v33 }
  0x45   :  { %2142 = vmatpush3.bf16.msra.mxu0 %v2139_v40  ;;  %v2171_v40 = vpack.c.bf16 %v144_v37, %v143_v35 }
  0x46   :  { %2144 = vmatprep.subr.bf16.mxu0 %v2143_v42 }
  0x47   :  { %2172 = vmatprep.subr.bf16.mxu1 %v2171_v40 }
  0x49   :  { %2146 = vmatpush3.bf16.msra.mxu0 %v2143_v42  ;;  %v145_v42 = vld [vmem:[%s3322_s3 + $0x210] sm:$0xff] }
  0x4a   :  { %2148 = vmatprep.subr.bf16.mxu0 %v2147_v45  ;;  %v2175_v46 = vpack.c.bf16 %v146_v43, %v145_v42  ;;  %v165_v42 = vld [vmem:[%s3322_s3 + $0x2b0] sm:$0xff]  ;;  %v166_v43 = vld [vmem:[%s3322_s3 + $0x2b8] sm:$0xff] }
  0x4d   :  { %2150 = vmatpush3.bf16.msra.mxu0 %v2147_v45  ;;  %v130_v45 = vld [vmem:[%s3322_s3 + $0x198] sm:$0xff] }
  0x4e   :  { %2152 = vmatprep.subr.bf16.mxu0 %v2151_v48 }
  0x51   :  { %2154 = vmatpush3.bf16.msra.mxu0 %v2151_v48  ;;  %v2177_v48 = vpack.c.bf16 %v130_v45, %v129_v44 }
  0x52   :  { %2156 = vmatprep.subr.bf16.mxu0 %v2155_v52 }
  0x55   :  { %2158 = vmatpush3.bf16.msra.mxu0 %v2155_v52  ;;  %v131_v52 = vld [vmem:[%s3322_s3 + $0x1a0] sm:$0xff] }
  0x56   :  { %2160 = vmatprep.subr.bf16.mxu0 %v2159_v55 }
  0x59   :  { %2162 = vmatpush3.bf16.msra.mxu0 %v2159_v55  ;;  %v150_v55 = vld [vmem:[%s3322_s3 + $0x238] sm:$0xff] }
  0x5a   :  { %2164 = vmatprep.subr.bf16.mxu0 %v2163_v29 }
  0x5d   :  { %2166 = vmatpush3.bf16.msra.mxu0 %v2163_v29 }
  0x5e   :  { %2168 = vmatprep.subr.bf16.mxu0 %v2167_v32 }
  0x61   :  { %2170 = vmatpush3.bf16.msra.mxu0 %v2167_v32 }
  0xf7   :  { %v1461_v56 = vpop.f32.mrb[0].mxu0 }
  0xf8   :  { %v1462_v57 = vpop.f32.mrb[1].mxu0 }
  0xf9   :  { %v1779_v58 = vpop.f32.mrb[0].mxu1  ;;  %v1463_v60 = vadd.f32 %v1462_v57, %v1461_v56  ;;  %v2181_v56 = vpack.c.bf16 %v132_v53, %v131_v52  ;;  %v2183_v57 = vpack.c.bf16 %v150_v55, %v149_v54  ;;  %v137_v53 = vld [vmem:[%s3322_s3 + $0x1d0] sm:$0xff]  ;;  %v138_v54 = vld [vmem:[%s3322_s3 + $0x1d8] sm:$0xff] }
  0xfa   :  { %v464_v61 = vpop.f32.mrb[1].mxu1  ;;  %v2193_v55 = vpack.c.bf16 %v138_v54, %v137_v53 }
  0xfb   :  { %v1464_v62 = vpop.f32.mrb[2].mxu0  ;;  %v380_v63 = vadd.f32 %v1463_v60, %v1394_v59  ;;  %v151_v60 = vld [vmem:[%s3322_s3 + $0x240] sm:$0xff] }
  0xfc   :  { %v1465_v0 = vpop.f32.mrb[3].mxu0 }
  0xfd   :  { %v1782_v1 = vpop.f32.mrb[2].mxu1  ;;  %v2793_v2 = vadd.f32 %v464_v61, %v380_v63  ;;  %v1466_v3 = vadd.f32 %v1465_v0, %v1464_v62  ;;  %v152_v61 = vld [vmem:[%s3322_s3 + $0x248] sm:$0xff]  ;;  %v135_v0 = vld [vmem:[%s3322_s3 + $0x1c0] sm:$0xff] }
  0xfe   :  { %v474_v4 = vpop.f32.mrb[3].mxu1  ;;  %v2187_v63 = vpack.c.bf16 %v152_v61, %v151_v60  ;;  %v156_v60 = vld [vmem:[%s3322_s3 + $0x268] sm:$0xff] }
  0xff   :  { %v483_v5 = vmax.f32 %v2793_v2, 0.0  ;;  %v385_v6 = vadd.f32 %v1466_v3, %v1394_v59  ;;  %v1467_v7 = vpop.f32.mrb[4].mxu0  ;;  %v153_v3 = vld [vmem:[%s3322_s3 + $0x250] sm:$0xff] }
 0x100   :  { %v1468_v8 = vpop.f32.mrb[5].mxu0 }
 0x101   :  { %v489_v9 = vrot.slane %v483_v5, 7  ;;  %v2796_v10 = vadd.f32 %v1779_v58, %v385_v6  ;;  %v1469_v11 = vadd.f32 %v1468_v8, %v1467_v7  ;;  %1815 = vmatprep.mubr.f32.mxu1 %v483_v5  ;;  %v133_v58 = vld [vmem:[%s3322_s3 + $0x1b0] sm:$0xff]  ;;  %v1403_v7 = vld [vmem:[%s3325_s4] ss:$0 sm:$0xff] }
 0x103   :  { %v484_v12 = vmax.f32 %v2796_v10, 0.0  ;;  %v1470_v13 = vpop.f32.mrb[6].mxu0  ;;  %v390_v14 = vadd.f32 %v1469_v11, %v1394_v59  ;;  %1405 = vmatprep.mubr.msk.f32.mxu0 %vm2529_vm1, %v489_v9 }
 0x104   :  { %v1471_v15 = vpop.f32.mrb[7].mxu0  ;;  %571 = vmatmul.mubr.f32.gmra.mrb[10].mxu0 %v2380_v33 }
 0x105   :  { %v2802_v16 = vadd.f32 %v474_v4, %v390_v14  ;;  %v1472_v17 = vadd.f32 %v1471_v15, %v1470_v13  ;;  %1816 = vmatmul.mubr.f32.vlgmr.msra.gmra.mrb[4].mxu1 %v484_v12  ;;  %575 = vmatprep.mubr.f32.mxu0 %v2380_v33  ;;  %v154_v4 = vld [vmem:[%s3322_s3 + $0x258] sm:$0xff] }
 0x106   :  { %2174 = vmatpush3.bf16.msra.mxu1 %v2173_v41  ;;  %v2191_v6 = vpack.c.bf16 %v154_v4, %v153_v3  ;;  %v174_v3 = vld [vmem:[%s3322_s3 + $0x2f8] sm:$0xff] }
 0x107   :  { %v485_v18 = vmax.f32 %v2802_v16, 0.0  ;;  %v395_v19 = vadd.f32 %v1472_v17, %v1394_v59  ;;  %2176 = vmatprep.subr.bf16.mxu1 %v2175_v46  ;;  %v134_v59 = vld [vmem:[%s3322_s3 + $0x1b8] sm:$0xff]  ;;  %v2215_v46 = vpack.c.bf16 %v166_v43, %v165_v42 }
 0x108   :  { %576 = vmatmul.mubr.f32.gmra.mrb[12].mxu0 %v2380_v33  ;;  %v2185_v62 = vpack.c.bf16 %v134_v59, %v133_v58  ;;  %v155_v59 = vld [vmem:[%s3322_s3 + $0x260] sm:$0xff] }
 0x109   :  { %v490_v20 = vrot.slane %v485_v18, 7  ;;  %v2807_v21 = vadd.f32 %v1782_v1, %v395_v19  ;;  %1818 = vmatprep.mubr.f32.mxu1 %v485_v18  ;;  %v136_v1 = vld [vmem:[%s3322_s3 + $0x1c8] sm:$0xff]  ;;  %v2195_v61 = vpack.c.bf16 %v156_v60, %v155_v59  ;;  %v253_v59 = vld [vmem:[%s3323_s5 + $0xd8] sm:$0xff] }
 0x10a   :  { %2178 = vmatpush3.bf16.msra.mxu1 %v2177_v48  ;;  %v2189_v5 = vpack.c.bf16 %v136_v1, %v135_v0  ;;  %v173_v1 = vld [vmem:[%s3322_s3 + $0x2f0] sm:$0xff] }
 0x10b   :  { %1407 = vmatprep.mubr.msk.f32.mxu0 %vm2529_vm1, %v490_v20  ;;  %v486_v22 = vmax.f32 %v2807_v21, 0.0  ;;  %2180 = vmatprep.subr.bf16.mxu1 %v2179_v51  ;;  %v170_v51 = vld [vmem:[%s3322_s3 + $0x2d8] sm:$0xff]  ;;  %v2231_v4 = vpack.c.bf16 %v174_v3, %v173_v1 }
 0x10c   :  { %581 = vmatmul.mubr.f32.gmra.mrb[14].mxu0 %v2380_v33  ;;  %v159_v33 = vld [vmem:[%s3322_s3 + $0x280] sm:$0xff]  ;;  %v2223_v52 = vpack.c.bf16 %v170_v51, %v169_v50  ;;  %v257_v1 = vld [vmem:[%s3323_s5 + $0xf8] sm:$0xff] }
 0x10d   :  { %1819 = vmatmul.mubr.f32.gmra.mrb[6].mxu1 %v486_v22  ;;  %v2836_v36 = vpack.c.bf16 %v160_v34, %v159_v33  ;;  %v161_v22 = vld [vmem:[%s3322_s3 + $0x290] sm:$0xff]  ;;  %v163_v33 = vld [vmem:[%s3322_s3 + $0x2a0] sm:$0xff]  ;;  %v164_v34 = vld [vmem:[%s3322_s3 + $0x2a8] sm:$0xff] }
 0x10e   :  { %2182 = vmatpush3.bf16.msra.mxu1 %v2181_v56  ;;  %v2211_v40 = vpack.c.bf16 %v164_v34, %v163_v33  ;;  %v171_v56 = vld [vmem:[%s3322_s3 + $0x2e0] sm:$0xff] }
 0x10f   :  { %2204 = vmatprep.subr.bf16.mxu0 %v2836_v36  ;;  %2184 = vmatprep.subr.bf16.mxu1 %v2183_v57  ;;  %v172_v57 = vld [vmem:[%s3322_s3 + $0x2e8] sm:$0xff] }
 0x110   :  { %v2227_v58 = vpack.c.bf16 %v172_v57, %v171_v56  ;;  %v251_v56 = vld [vmem:[%s3323_s5 + $0xc8] sm:$0xff] }
 0x112   :  { %2186 = vmatpush3.bf16.msra.mxu1 %v2185_v62  ;;  %v139_v62 = vld [vmem:[%s3322_s3 + $0x1e0] sm:$0xff] }
 0x113   :  { %2188 = vmatprep.subr.bf16.mxu1 %v2187_v63  ;;  %v140_v63 = vld [vmem:[%s3322_s3 + $0x1e8] sm:$0xff] }
 0x114   :  { %v2197_v0 = vpack.c.bf16 %v140_v63, %v139_v62  ;;  %v255_v62 = vld [vmem:[%s3323_s5 + $0xe8] sm:$0xff] }
 0x116   :  { %2190 = vmatpush3.bf16.msra.mxu1 %v2189_v5  ;;  %v157_v5 = vld [vmem:[%s3322_s3 + $0x270] sm:$0xff] }
 0x117   :  { %v1525_v23 = vpop.f32.mrb[8].mxu0  ;;  %2192 = vmatprep.subr.bf16.mxu1 %v2191_v6  ;;  %v158_v6 = vld [vmem:[%s3322_s3 + $0x278] sm:$0xff] }
 0x118   :  { %v1526_v25 = vpop.f32.mrb[9].mxu0 }
 0x119   :  { %v2813_v26 = vadd.f32 %v1526_v25, %v1525_v23  ;;  %v162_v23 = vld [vmem:[%s3322_s3 + $0x298] sm:$0xff] }
 0x11a   :  { %v2207_v30 = vpack.c.bf16 %v162_v23, %v161_v22  ;;  %2194 = vmatpush3.bf16.msra.mxu1 %v2193_v55  ;;  %v250_v55 = vld [vmem:[%s3323_s5 + $0xc0] sm:$0xff] }
 0x11b   :  { %v568_v12 = vadd.f32 %v2813_v26, %v1403_v7  ;;  %2196 = vmatprep.subr.bf16.mxu1 %v2195_v61  ;;  %v2251_v57 = vpack.c.bf16 %v251_v56, %v250_v55  ;;  %v254_v61 = vld [vmem:[%s3323_s5 + $0xe0] sm:$0xff] }
 0x11c   :  { %v2259_v63 = vpack.c.bf16 %v255_v62, %v254_v61  ;;  %v209_v62 = vld [vmem:[%s3322_s3 + $0x410] sm:$0xff] }
 0x11e   :  { %2198 = vmatpush3.bf16.msra.mxu1 %v2197_v0  ;;  %v256_v0 = vld [vmem:[%s3323_s5 + $0xf0] sm:$0xff] }
 0x11f   :  { %v2263_v3 = vpack.c.bf16 %v257_v1, %v256_v0 }
 0x1d7   :  { %v1528_v8 = vpop.f32.mrb[10].mxu0 }
 0x1d8   :  { %v1529_v9 = vpop.f32.mrb[11].mxu0  ;;  %v1817_v11 = vpop.f32.mrb[4].mxu1 }
 0x1d9   :  { %v1530_v13 = vadd.f32 %v1529_v9, %v1528_v8  ;;  %v652_v14 = vpop.f32.mrb[5].mxu1  ;;  %v141_v8 = vld [vmem:[%s3322_s3 + $0x1f0] sm:$0xff]  ;;  %v142_v9 = vld [vmem:[%s3322_s3 + $0x1f8] sm:$0xff] }
 0x1da   :  { %v653_v15 = vadd.f32 %v652_v14, %v568_v12  ;;  %v242_v12 = vld [vmem:[%s3323_s5 + $0x80] sm:$0xff] }
 0x1db   :  { %v573_v17 = vadd.f32 %v1530_v13, %v1403_v7  ;;  %v1531_v18 = vpop.f32.mrb[12].mxu0  ;;  %v243_v13 = vld [vmem:[%s3323_s5 + $0x88] sm:$0xff] }
 0x1dc   :  { %v671_v19 = vmax.f32 %v653_v15, 0.0  ;;  %v1532_v20 = vpop.f32.mrb[13].mxu0  ;;  %v2235_v14 = vpack.c.bf16 %v243_v13, %v242_v12  ;;  %v1408_v15 = vld [vmem:[%s3326_s6] ss:$0 sm:$0xff] }
 0x1dd   :  { %v658_v25 = vadd.f32 %v1817_v11, %v573_v17  ;;  %v1533_v27 = vadd.f32 %v1532_v20, %v1531_v18  ;;  %v2201_v11 = vpack.c.bf16 %v142_v9, %v141_v8  ;;  %v192_v8 = vld [vmem:[%s3322_s3 + $0x388] sm:$0xff]  ;;  %v175_v9 = vld [vmem:[%s3322_s3 + $0x300] sm:$0xff] }
 0x1de   :  { %1853 = vmatprep.mubr.f32.mxu0 %v671_v19 }
 0x1df   :  { %v672_v28 = vmax.f32 %v658_v25, 0.0  ;;  %v1534_v26 = vpop.f32.mrb[14].mxu0  ;;  %v578_v29 = vadd.f32 %v1533_v27, %v1403_v7 }
 0x1e0   :  { %v1535_v31 = vpop.f32.mrb[15].mxu0  ;;  %v1820_v32 = vpop.f32.mrb[6].mxu1 }
 0x1e1   :  { %v1536_v35 = vadd.f32 %v1535_v31, %v1534_v26  ;;  %v662_v37 = vpop.f32.mrb[7].mxu1  ;;  %1854 = vmatmul.mubr.f32.vlgmr.msra.gmra.mrb[16].mxu0 %v672_v28  ;;  %v244_v28 = vld [vmem:[%s3323_s5 + $0x90] sm:$0xff]  ;;  %v245_v26 = vld [vmem:[%s3323_s5 + $0x98] sm:$0xff] }
 0x1e2   :  { %v663_v38 = vadd.f32 %v662_v37, %v578_v29  ;;  %2206 = vmatpush3.bf16.msra.mxu0 %v2836_v36  ;;  %v167_v36 = vld [vmem:[%s3322_s3 + $0x2c0] sm:$0xff] }
 0x1e3   :  { %v583_v39 = vadd.f32 %v1536_v35, %v1403_v7  ;;  %2208 = vmatprep.subr.bf16.mxu0 %v2207_v30  ;;  %v2219_v48 = vpack.c.bf16 %v168_v47, %v167_v36  ;;  %v2199_v7 = vpack.c.bf16 %v158_v6, %v157_v5  ;;  %v2239_v35 = vpack.c.bf16 %v245_v26, %v244_v28  ;;  %v249_v47 = vld [vmem:[%s3323_s5 + $0xb8] sm:$0xff]  ;;  %v208_v5 = vld [vmem:[%s3322_s3 + $0x408] sm:$0xff]  ;;  %v191_v6 = vld [vmem:[%s3322_s3 + $0x380] sm:$0xff] }
 0x1e4   :  { %v673_v41 = vmax.f32 %v663_v38, 0.0  ;;  %v2267_v12 = vpack.c.bf16 %v192_v8, %v191_v6  ;;  %v179_v26 = vld [vmem:[%s3322_s3 + $0x320] sm:$0xff] }
 0x1e5   :  { %v668_v44 = vadd.f32 %v1820_v32, %v583_v39  ;;  %2200 = vmatprep.subr.bf16.mxu1 %v2199_v7  ;;  %v181_v32 = vld [vmem:[%s3322_s3 + $0x330] sm:$0xff] }
 0x1e6   :  { %1856 = vmatprep.mubr.f32.mxu0 %v673_v41  ;;  %2210 = vmatpush3.bf16.msra.mxu0 %v2207_v30  ;;  %v247_v41 = vld [vmem:[%s3323_s5 + $0xa8] sm:$0xff] }
 0x1e7   :  { %v674_v45 = vmax.f32 %v668_v44, 0.0  ;;  %2212 = vmatprep.subr.bf16.mxu0 %v2211_v40  ;;  %2202 = vmatpush3.bf16.msra.mxu1 %v2201_v11  ;;  %v176_v11 = vld [vmem:[%s3322_s3 + $0x308] sm:$0xff] }
 0x1e8   :  { %2236 = vmatprep.subr.bf16.mxu1 %v2235_v14  ;;  %v2269_v13 = vpack.c.bf16 %v176_v11, %v175_v9  ;;  %v211_v9 = vld [vmem:[%s3322_s3 + $0x420] sm:$0xff]  ;;  %v212_v11 = vld [vmem:[%s3322_s3 + $0x428] sm:$0xff] }
 0x1e9   :  { %1857 = vmatmul.mubr.f32.gmra.mrb[18].mxu0 %v674_v45 }
 0x1ea   :  { %2214 = vmatpush3.bf16.msra.mxu0 %v2211_v40  ;;  %v246_v40 = vld [vmem:[%s3323_s5 + $0xa0] sm:$0xff] }
 0x1eb   :  { %2216 = vmatprep.subr.bf16.mxu0 %v2215_v46  ;;  %v2243_v45 = vpack.c.bf16 %v247_v41, %v246_v40  ;;  %v184_v40 = vld [vmem:[%s3322_s3 + $0x348] sm:$0xff]  ;;  %v201_v41 = vld [vmem:[%s3322_s3 + $0x3d0] sm:$0xff] }
 0x1ee   :  { %2218 = vmatpush3.bf16.msra.mxu0 %v2215_v46 }
 0x1ef   :  { %2220 = vmatprep.subr.bf16.mxu0 %v2219_v48 }
 0x1f2   :  { %2222 = vmatpush3.bf16.msra.mxu0 %v2219_v48 }
 0x1f3   :  { %2224 = vmatprep.subr.bf16.mxu0 %v2223_v52 }
 0x1f6   :  { %2226 = vmatpush3.bf16.msra.mxu0 %v2223_v52 }
 0x1f7   :  { %2228 = vmatprep.subr.bf16.mxu0 %v2227_v58 }
 0x1fa   :  { %2230 = vmatpush3.bf16.msra.mxu0 %v2227_v58  ;;  %v252_v58 = vld [vmem:[%s3323_s5 + $0xd0] sm:$0xff] }
 0x1fb   :  { %2232 = vmatprep.subr.bf16.mxu0 %v2231_v4  ;;  %v2255_v60 = vpack.c.bf16 %v253_v59, %v252_v58 }
 0x1fe   :  { %2234 = vmatpush3.bf16.msra.mxu0 %v2231_v4  ;;  %v207_v4 = vld [vmem:[%s3322_s3 + $0x400] sm:$0xff] }
 0x1ff   :  { %v3077_v7 = vpack.c.bf16 %v208_v5, %v207_v4  ;;  %2268 = vmatprep.subr.bf16.mxu0 %v2267_v12 }
 0x2b4   :  { %v1855_v17 = vpop.f32.mrb[16].mxu0 }
 0x2b5   :  { %v753_v18 = vadd.f32 %v1855_v17, %v1408_v15  ;;  %v747_v19 = vpop.f32.mrb[17].mxu0  ;;  %v177_v17 = vld [vmem:[%s3322_s3 + $0x310] sm:$0xff] }
 0x2b6   :  { %v748_v20 = vadd.f32 %v1408_v15, %v747_v19 }
 0x2b7   :  { %v2989_v22 = vadd.f32 %v753_v18, %v2796_v10  ;;  %v178_v18 = vld [vmem:[%s3322_s3 + $0x318] sm:$0xff]  ;;  %v180_v10 = vld [vmem:[%s3322_s3 + $0x328] sm:$0xff] }
 0x2b8   :  { %v2992_v23 = vadd.f32 %v748_v20, %v2793_v2  ;;  %v195_v20 = vld [vmem:[%s3322_s3 + $0x3a0] sm:$0xff] }
 0x2b9   :  { %v771_v25 = vmax.f32 %v2989_v22, 0.0 }
 0x2ba   :  { %v770_v27 = vmax.f32 %v2992_v23, 0.0 }
 0x2bb   :  { %v793_v2 = vrot.slane %v771_v25, 5  ;;  %v780_v39 = vrot.slane %v771_v25, 2 }
 0x2bc   :  { %v1858_v29 = vpop.f32.mrb[18].mxu0  ;;  %v779_v30 = vrot.slane %v770_v27, 2  ;;  %1891 = vmatprep.mubr.f32.mxu0 %v770_v27  ;;  %v792_v31 = vrot.slane %v770_v27, 5  ;;  %v196_v27 = vld [vmem:[%s3322_s3 + $0x3a8] sm:$0xff] }
 0x2bd   :  { %v763_v33 = vadd.f32 %v1858_v29, %v1408_v15  ;;  %v757_v34 = vpop.f32.mrb[19].mxu0  ;;  %1892 = vmatmul.mubr.f32.vlgmr.msra.gmra.mrb[20].mxu0 %v771_v25  ;;  %v2273_v25 = vpack.c.bf16 %v178_v18, %v177_v17  ;;  %v2275_v28 = vpack.c.bf16 %v196_v27, %v195_v20  ;;  %v198_v29 = vld [vmem:[%s3322_s3 + $0x3b8] sm:$0xff]  ;;  %v2307_v17 = vpack.c.bf16 %v212_v11, %v211_v9  ;;  %v213_v18 = vld [vmem:[%s3322_s3 + $0x430] sm:$0xff] }
 0x2be   :  { %v758_v37 = vadd.f32 %v1408_v15, %v757_v34  ;;  %1411 = vmatprep.mubr.msk.f32.mxu1 %vm3003_vm6, %v792_v31  ;;  %v794_v38 = vsel %vm791_vm4, %v792_v31, %v793_v2  ;;  %v781_v46 = vsel %vm778_vm5, %v779_v30, %v780_v39  ;;  %v194_v15 = vld [vmem:[%s3322_s3 + $0x398] sm:$0xff]  ;;  %2270 = vmatpush3.bf16.msra.mxu0 %v2269_v13  ;;  %v197_v2 = vld [vmem:[%s3322_s3 + $0x3b0] sm:$0xff]  ;;  %v199_v34 = vld [vmem:[%s3322_s3 + $0x3c0] sm:$0xff] }
 0x2bf   :  { %v3022_v42 = vadd.f32 %v763_v33, %v2807_v21  ;;  %1413 = vmatmul.mubr.msk.f32.vlgmr.msra.gmra.mrb[8].mxu1 %vm3008_vm7, %v779_v30  ;;  %v248_v21 = vld [vmem:[%s3323_s5 + $0xb0] sm:$0xff]  ;;  %v2277_v30 = vpack.c.bf16 %v180_v10, %v179_v26  ;;  %v2279_v31 = vpack.c.bf16 %v198_v29, %v197_v2  ;;  %v182_v33 = vld [vmem:[%s3322_s3 + $0x338] sm:$0xff]  ;;  %v183_v39 = vld [vmem:[%s3322_s3 + $0x340] sm:$0xff] }
 0x2c0   :  { %v3027_v43 = vadd.f32 %v758_v37, %v2802_v16  ;;  %879 = vmatprep.mubr.f32.mxu1 %v794_v38  ;;  %2238 = vmatpush3.bf16.msra.mxu1 %v2235_v14  ;;  %v2247_v51 = vpack.c.bf16 %v249_v47, %v248_v21  ;;  %v193_v14 = vld [vmem:[%s3322_s3 + $0x390] sm:$0xff]  ;;  %v2281_v37 = vpack.c.bf16 %v182_v33, %v181_v32  ;;  %v218_v2 = vld [vmem:[%s3322_s3 + $0x458] sm:$0xff]  ;;  %v219_v33 = vld [vmem:[%s3322_s3 + $0x460] sm:$0xff] }
 0x2c1   :  { %v773_v44 = vmax.f32 %v3022_v42, 0.0  ;;  %2240 = vmatprep.subr.bf16.mxu1 %v2239_v35  ;;  %v2271_v19 = vpack.c.bf16 %v194_v15, %v193_v14  ;;  %v217_v10 = vld [vmem:[%s3322_s3 + $0x450] sm:$0xff] }
 0x2c2   :  { %v772_v36 = vmax.f32 %v3027_v43, 0.0  ;;  %v2319_v29 = vpack.c.bf16 %v218_v2, %v217_v10 }
 0x2c3   :  { %880 = vmatmul.mubr.f32.gmra.mrb[10].mxu1 %v781_v46  ;;  %v796_v16 = vrot.slane %v773_v44, 5  ;;  %v783_v53 = vrot.slane %v773_v44, 2  ;;  %2272 = vmatprep.subr.bf16.mxu0 %v2271_v19  ;;  %v214_v19 = vld [vmem:[%s3322_s3 + $0x438] sm:$0xff] }
 0x2c4   :  { %1894 = vmatprep.mubr.f32.mxu0 %v772_v36  ;;  %v795_v48 = vrot.slane %v772_v36, 5  ;;  %v782_v50 = vrot.slane %v772_v36, 2  ;;  %2242 = vmatpush3.bf16.msra.mxu1 %v2239_v35  ;;  %v200_v35 = vld [vmem:[%s3322_s3 + $0x3c8] sm:$0xff]  ;;  %v2311_v27 = vpack.c.bf16 %v214_v19, %v213_v18 }
 0x2c5   :  { %1895 = vmatmul.mubr.f32.gmra.mrb[22].mxu0 %v773_v44  ;;  %2244 = vmatprep.subr.bf16.mxu1 %v2243_v45  ;;  %v2283_v38 = vpack.c.bf16 %v200_v35, %v199_v34  ;;  %v202_v44 = vld [vmem:[%s3322_s3 + $0x3d8] sm:$0xff]  ;;  %v220_v34 = vld [vmem:[%s3322_s3 + $0x468] sm:$0xff] }
 0x2c6   :  { %1415 = vmatprep.mubr.msk.f32.mxu1 %vm3003_vm6, %v795_v48  ;;  %v797_v52 = vsel %vm791_vm4, %v795_v48, %v796_v16  ;;  %v784_v54 = vsel %vm778_vm5, %v782_v50, %v783_v53  ;;  %2274 = vmatpush3.bf16.msra.mxu0 %v2273_v25  ;;  %v2287_v46 = vpack.c.bf16 %v202_v44, %v201_v41  ;;  %v1409_v16 = vld [vmem:[%s3325_s4 + $0x1] ss:$0 sm:$0xff]  ;;  %v188_v41 = vld [vmem:[%s3322_s3 + $0x368] sm:$0xff] }
 0x2c7   :  { %1417 = vmatmul.mubr.msk.f32.gmra.mrb[12].mxu1 %vm3008_vm7, %v782_v50  ;;  %2276 = vmatprep.subr.bf16.mxu0 %v2275_v28  ;;  %v216_v28 = vld [vmem:[%s3322_s3 + $0x448] sm:$0xff]  ;;  %v2323_v35 = vpack.c.bf16 %v220_v34, %v219_v33  ;;  %v270_v34 = vld [vmem:[%s3323_s5 + $0x160] sm:$0xff] }
 0x2c8   :  { %889 = vmatprep.mubr.f32.mxu1 %v797_v52  ;;  %2246 = vmatpush3.bf16.msra.mxu1 %v2243_v45  ;;  %v2285_v45 = vpack.c.bf16 %v184_v40, %v183_v39  ;;  %v187_v40 = vld [vmem:[%s3322_s3 + $0x360] sm:$0xff] }
 0x2c9   :  { %2248 = vmatprep.subr.bf16.mxu1 %v2247_v51  ;;  %v2293_v44 = vpack.c.bf16 %v188_v41, %v187_v40 }
 0x2ca   :  { %2278 = vmatpush3.bf16.msra.mxu0 %v2277_v30  ;;  %v185_v30 = vld [vmem:[%s3322_s3 + $0x350] sm:$0xff] }
 0x2cb   :  { %890 = vmatmul.mubr.f32.gmra.mrb[14].mxu1 %v784_v54  ;;  %2280 = vmatprep.subr.bf16.mxu0 %v2279_v31  ;;  %v186_v31 = vld [vmem:[%s3322_s3 + $0x358] sm:$0xff] }
 0x2cc   :  { %2250 = vmatpush3.bf16.msra.mxu1 %v2247_v51  ;;  %v2289_v32 = vpack.c.bf16 %v186_v31, %v185_v30  ;;  %v267_v30 = vld [vmem:[%s3323_s5 + $0x148] sm:$0xff] }
 0x2cd   :  { %2252 = vmatprep.subr.bf16.mxu1 %v2251_v57  ;;  %v2347_v31 = vpack.c.bf16 %v267_v30, %v266_v49 }
 0x2ce   :  { %2282 = vmatpush3.bf16.msra.mxu0 %v2281_v37  ;;  %v203_v37 = vld [vmem:[%s3322_s3 + $0x3e0] sm:$0xff] }
 0x2cf   :  { %2284 = vmatprep.subr.bf16.mxu0 %v2283_v38  ;;  %v204_v38 = vld [vmem:[%s3322_s3 + $0x3e8] sm:$0xff] }
 0x2d0   :  { %2254 = vmatpush3.bf16.msra.mxu1 %v2251_v57  ;;  %v2291_v39 = vpack.c.bf16 %v204_v38, %v203_v37  ;;  %v272_v38 = vld [vmem:[%s3323_s5 + $0x170] sm:$0xff] }
 0x2d1   :  { %2256 = vmatprep.subr.bf16.mxu1 %v2255_v60 }
 0x2d2   :  { %2286 = vmatpush3.bf16.msra.mxu0 %v2285_v45  ;;  %v221_v45 = vld [vmem:[%s3322_s3 + $0x470] sm:$0xff] }
 0x2d3   :  { %2288 = vmatprep.subr.bf16.mxu0 %v2287_v46  ;;  %v222_v46 = vld [vmem:[%s3322_s3 + $0x478] sm:$0xff] }
 0x2d4   :  { %2258 = vmatpush3.bf16.msra.mxu1 %v2255_v60 }
 0x2d5   :  { %2260 = vmatprep.subr.bf16.mxu1 %v2259_v63 }
 0x2d6   :  { %2290 = vmatpush3.bf16.msra.mxu0 %v2289_v32  ;;  %v269_v32 = vld [vmem:[%s3323_s5 + $0x158] sm:$0xff] }
 0x2d7   :  { %2292 = vmatprep.subr.bf16.mxu0 %v2291_v39  ;;  %v2351_v33 = vpack.c.bf16 %v269_v32, %v268_v24  ;;  %v273_v39 = vld [vmem:[%s3323_s5 + $0x178] sm:$0xff] }
 0x2d8   :  { %2262 = vmatpush3.bf16.msra.mxu1 %v2259_v63  ;;  %v210_v63 = vld [vmem:[%s3322_s3 + $0x418] sm:$0xff]  ;;  %v2359_v40 = vpack.c.bf16 %v273_v39, %v272_v38 }
 0x2d9   :  { %2264 = vmatprep.subr.bf16.mxu1 %v2263_v3  ;;  %v2303_v6 = vpack.c.bf16 %v210_v63, %v209_v62 }
 0x2da   :  { %2294 = vmatpush3.bf16.msra.mxu0 %v2293_v44 }
 0x2dc   :  { %2266 = vmatpush3.bf16.msra.mxu1 %v2263_v3 }
 0x2dd   :  { %2300 = vmatprep.subr.bf16.mxu1 %v3077_v7 }
 0x390   :  { %v1893_v36 = vpop.f32.mrb[20].mxu0 }
 0x391   :  { %v961_v21 = vpop.f32.mrb[21].mxu0 }
 0x392   :  { %v1609_v47 = vpop.f32.mrb[8].mxu1 }
 0x393   :  { %v1610_v48 = vpop.f32.mrb[9].mxu1 }
 0x394   :  { %v1611_v50 = vadd.f32 %v1610_v48, %v1609_v47  ;;  %v206_v47 = vld [vmem:[%s3322_s3 + $0x3f8] sm:$0xff]  ;;  %v189_v48 = vld [vmem:[%s3322_s3 + $0x370] sm:$0xff] }
 0x396   :  { %v877_v51 = vadd.f32 %v1611_v50, %v1409_v16  ;;  %v1612_v52 = vpop.f32.mrb[10].mxu1  ;;  %v190_v50 = vld [vmem:[%s3322_s3 + $0x378] sm:$0xff] }
 0x397   :  { %v1613_v53 = vpop.f32.mrb[11].mxu1 }
 0x398   :  { %v1614_v54 = vadd.f32 %v1613_v53, %v1612_v52  ;;  %v1896_v55 = vpop.f32.mrb[22].mxu0  ;;  %v962_v56 = vadd.f32 %v961_v21, %v877_v51  ;;  %v205_v21 = vld [vmem:[%s3322_s3 + $0x3f0] sm:$0xff]  ;;  %v2297_v51 = vpack.c.bf16 %v190_v50, %v189_v48  ;;  %v258_v52 = vld [vmem:[%s3323_s5 + $0x100] sm:$0xff]  ;;  %v259_v53 = vld [vmem:[%s3323_s5 + $0x108] sm:$0xff] }
 0x399   :  { %v971_v57 = vpop.f32.mrb[23].mxu0 }
 0x39a   :  { %v882_v58 = vadd.f32 %v1614_v54, %v1409_v16  ;;  %v1615_v59 = vpop.f32.mrb[12].mxu1  ;;  %v980_v60 = vmax.f32 %v962_v56, 0.0  ;;  %v2331_v54 = vpack.c.bf16 %v259_v53, %v258_v52 }
 0x39b   :  { %v1616_v61 = vpop.f32.mrb[13].mxu1 }
 0x39c   :  { %v967_v0 = vadd.f32 %v1893_v36, %v882_v58  ;;  %v1617_v1 = vadd.f32 %v1616_v61, %v1615_v59  ;;  %1929 = vmatprep.mubr.f32.mxu1 %v980_v60  ;;  %v2327_v36 = vpack.c.bf16 %v222_v46, %v221_v45  ;;  %v1419_v46 = vld [vmem:[%s3325_s4 + $0x2] ss:$0 sm:$0xff] }
 0x39e   :  { %v981_v3 = vmax.f32 %v967_v0, 0.0  ;;  %v887_v4 = vadd.f32 %v1617_v1, %v1409_v16  ;;  %v1618_v5 = vpop.f32.mrb[14].mxu1  ;;  %v260_v0 = vld [vmem:[%s3323_s5 + $0x110] sm:$0xff]  ;;  %v261_v1 = vld [vmem:[%s3323_s5 + $0x118] sm:$0xff] }
 0x39f   :  { %v1619_v8 = vpop.f32.mrb[15].mxu1 }
 0x3a0   :  { %v1620_v12 = vadd.f32 %v1619_v8, %v1618_v5  ;;  %1930 = vmatmul.mubr.f32.vlgmr.msra.gmra.mrb[16].mxu1 %v981_v3  ;;  %v972_v13 = vadd.f32 %v971_v57, %v887_v4  ;;  %v2335_v8 = vpack.c.bf16 %v261_v1, %v260_v0 }
 0x3a1   :  { %2302 = vmatpush3.bf16.msra.mxu1 %v3077_v7  ;;  %v215_v7 = vld [vmem:[%s3322_s3 + $0x440] sm:$0xff] }
 0x3a2   :  { %v892_v14 = vadd.f32 %v1620_v12, %v1409_v16  ;;  %v982_v15 = vmax.f32 %v972_v13, 0.0  ;;  %2304 = vmatprep.subr.bf16.mxu1 %v2303_v6  ;;  %v2315_v26 = vpack.c.bf16 %v216_v28, %v215_v7  ;;  %v2295_v16 = vpack.c.bf16 %v206_v47, %v205_v21  ;;  %v262_v13 = vld [vmem:[%s3323_s5 + $0x120] sm:$0xff] }
 0x3a4   :  { %1932 = vmatprep.mubr.f32.mxu1 %v982_v15  ;;  %v977_v20 = vadd.f32 %v1896_v55, %v892_v14  ;;  %2296 = vmatprep.subr.bf16.mxu0 %v2295_v16  ;;  %v1418_v55 = vld [vmem:[%s3326_s6 + $0x1] ss:$0 sm:$0xff]  ;;  %v263_v14 = vld [vmem:[%s3323_s5 + $0x128] sm:$0xff] }
 0x3a5   :  { %2306 = vmatpush3.bf16.msra.mxu1 %v2303_v6  ;;  %2298 = vmatpush3.bf16.msra.mxu0 %v2297_v51  ;;  %v2339_v19 = vpack.c.bf16 %v263_v14, %v262_v13 }
 0x3a6   :  { %v983_v25 = vmax.f32 %v977_v20, 0.0  ;;  %2308 = vmatprep.subr.bf16.mxu1 %v2307_v17  ;;  %2332 = vmatprep.subr.bf16.mxu0 %v2331_v54 }
 0x3a8   :  { %1933 = vmatmul.mubr.f32.gmra.mrb[18].mxu1 %v983_v25 }
 0x3a9   :  { %2310 = vmatpush3.bf16.msra.mxu1 %v2307_v17 }
 0x3aa   :  { %2312 = vmatprep.subr.bf16.mxu1 %v2311_v27 }
 0x3ad   :  { %2314 = vmatpush3.bf16.msra.mxu1 %v2311_v27  ;;  %v265_v27 = vld [vmem:[%s3323_s5 + $0x138] sm:$0xff] }
 0x3ae   :  { %2316 = vmatprep.subr.bf16.mxu1 %v2315_v26 }
 0x3b1   :  { %2318 = vmatpush3.bf16.msra.mxu1 %v2315_v26 }
 0x3b2   :  { %2320 = vmatprep.subr.bf16.mxu1 %v2319_v29 }
 0x3b5   :  { %2322 = vmatpush3.bf16.msra.mxu1 %v2319_v29 }
 0x3b6   :  { %2324 = vmatprep.subr.bf16.mxu1 %v2323_v35 }
 0x3b9   :  { %2326 = vmatpush3.bf16.msra.mxu1 %v2323_v35  ;;  %v271_v35 = vld [vmem:[%s3323_s5 + $0x168] sm:$0xff] }
 0x3ba   :  { %2328 = vmatprep.subr.bf16.mxu1 %v2327_v36  ;;  %v2355_v37 = vpack.c.bf16 %v271_v35, %v270_v34 }
 0x3bd   :  { %2330 = vmatpush3.bf16.msra.mxu1 %v2327_v36 }
 0x3be   :  { %2363 = vmatprep.subr.bf16.mxu1 %v2331_v54 }
 0x473   :  { %v1931_v56 = vpop.f32.mrb[16].mxu1 }
 0x474   :  { %v1062_v57 = vadd.f32 %v1931_v56, %v1418_v55  ;;  %v1056_v58 = vpop.f32.mrb[17].mxu1 }
 0x475   :  { %v1057_v59 = vadd.f32 %v1418_v55, %v1056_v58 }
 0x476   :  { %v3229_v60 = vadd.f32 %v1062_v57, %v2989_v22 }
 0x477   :  { %v3232_v61 = vadd.f32 %v1057_v59, %v2992_v23 }
 0x478   :  { %v1080_v62 = vmax.f32 %v3229_v60, 0.0 }
 0x479   :  { %v1079_v63 = vmax.f32 %v3232_v61, 0.0 }
 0x47a   :  { %v1100_v3 = vrot.slane %v1080_v62, 7  ;;  %v1088_v12 = vrot.slane %v1080_v62, 6 }
 0x47b   :  { %v1934_v4 = vpop.f32.mrb[18].mxu1  ;;  %v1087_v5 = vrot.slane %v1079_v63, 6  ;;  %1967 = vmatprep.mubr.f32.mxu1 %v1079_v63  ;;  %v1099_v22 = vrot.slane %v1079_v63, 7 }
 0x47c   :  { %v1072_v6 = vadd.f32 %v1934_v4, %v1418_v55  ;;  %v1066_v23 = vpop.f32.mrb[19].mxu1  ;;  %1968 = vmatmul.mubr.f32.vlgmr.msra.gmra.mrb[20].mxu1 %v1080_v62 }
 0x47d   :  { %v1067_v9 = vadd.f32 %v1418_v55, %v1066_v23  ;;  %1421 = vmatprep.mubr.msk.f32.mxu0 %vm2529_vm1, %v1099_v22  ;;  %v1101_v11 = vsel %vm294_vm0, %v1099_v22, %v1100_v3  ;;  %2371 = vmatpush3.bf16.msra.mxu1 %v2331_v54  ;;  %v1089_v20 = vsel %vm281_vm2, %v1087_v5, %v1088_v12 }
 0x47e   :  { %v3252_v15 = vadd.f32 %v1072_v6, %v3022_v42  ;;  %1423 = vmatmul.mubr.msk.f32.vlgmr.msra.gmra.mrb[24].mxu0 %vm2610_vm3, %v1087_v5  ;;  %2364 = vmatprep.subr.bf16.mxu1 %v2335_v8  ;;  %v264_v42 = vld [vmem:[%s3323_s5 + $0x130] sm:$0xff] }
 0x47f   :  { %v3257_v17 = vadd.f32 %v1067_v9, %v3027_v43  ;;  %1186 = vmatprep.mubr.f32.mxu0 %v1101_v11  ;;  %2334 = vmatpush3.bf16.msra.mxu0 %v2331_v54  ;;  %v2343_v26 = vpack.c.bf16 %v265_v27, %v264_v42 }
 0x480   :  { %v1082_v18 = vmax.f32 %v3252_v15, 0.0  ;;  %2336 = vmatprep.subr.bf16.mxu0 %v2335_v8 }
 0x481   :  { %v1081_v25 = vmax.f32 %v3257_v17, 0.0  ;;  %2372 = vmatpush3.bf16.msra.mxu1 %v2335_v8 }
 0x482   :  { %1187 = vmatmul.mubr.f32.gmra.mrb[26].mxu0 %v1089_v20  ;;  %v1103_v43 = vrot.slane %v1082_v18, 7  ;;  %2365 = vmatprep.subr.bf16.mxu1 %v2339_v19  ;;  %v1091_v2 = vrot.slane %v1082_v18, 6 }
 0x483   :  { %1970 = vmatprep.mubr.f32.mxu1 %v1081_v25  ;;  %v1102_v7 = vrot.slane %v1081_v25, 7  ;;  %v1090_v28 = vrot.slane %v1081_v25, 6  ;;  %2338 = vmatpush3.bf16.msra.mxu0 %v2335_v8  ;;  %v1428_v8 = vld [vmem:[%s3326_s6 + $0x2] ss:$0 sm:$0xff] }
 0x484   :  { %1971 = vmatmul.mubr.f32.gmra.mrb[22].mxu1 %v1082_v18  ;;  %2340 = vmatprep.subr.bf16.mxu0 %v2339_v19 }
 0x485   :  { %1425 = vmatprep.mubr.msk.f32.mxu0 %vm2529_vm1, %v1102_v7  ;;  %v1104_v10 = vsel %vm294_vm0, %v1102_v7, %v1103_v43  ;;  %2373 = vmatpush3.bf16.msra.mxu1 %v2339_v19  ;;  %v1092_v29 = vsel %vm281_vm2, %v1090_v28, %v1091_v2 }
 0x486   :  { %1427 = vmatmul.mubr.msk.f32.gmra.mrb[28].mxu0 %vm2610_vm3, %v1090_v28  ;;  %2366 = vmatprep.subr.bf16.mxu1 %v2343_v26 }
 0x487   :  { %1196 = vmatprep.mubr.f32.mxu0 %v1104_v10  ;;  %2342 = vmatpush3.bf16.msra.mxu0 %v2339_v19 }
 0x488   :  { %2344 = vmatprep.subr.bf16.mxu0 %v2343_v26 }
 0x489   :  { %2374 = vmatpush3.bf16.msra.mxu1 %v2343_v26 }
 0x48a   :  { %1197 = vmatmul.mubr.f32.gmra.mrb[30].mxu0 %v1092_v29  ;;  %2367 = vmatprep.subr.bf16.mxu1 %v2347_v31 }
 0x48b   :  { %2346 = vmatpush3.bf16.msra.mxu0 %v2343_v26 }
 0x48c   :  { %2348 = vmatprep.subr.bf16.mxu0 %v2347_v31 }
 0x48d   :  { %2375 = vmatpush3.bf16.msra.mxu1 %v2347_v31 }
 0x48e   :  { %2368 = vmatprep.subr.bf16.mxu1 %v2351_v33 }
 0x48f   :  { %2350 = vmatpush3.bf16.msra.mxu0 %v2347_v31 }
 0x490   :  { %2352 = vmatprep.subr.bf16.mxu0 %v2351_v33 }
 0x491   :  { %2376 = vmatpush3.bf16.msra.mxu1 %v2351_v33 }
 0x492   :  { %2369 = vmatprep.subr.bf16.mxu1 %v2355_v37 }
 0x493   :  { %2354 = vmatpush3.bf16.msra.mxu0 %v2351_v33 }
 0x494   :  { %2356 = vmatprep.subr.bf16.mxu0 %v2355_v37 }
 0x495   :  { %2377 = vmatpush3.bf16.msra.mxu1 %v2355_v37 }
 0x496   :  { %2370 = vmatprep.subr.bf16.mxu1 %v2359_v40 }
 0x497   :  { %2358 = vmatpush3.bf16.msra.mxu0 %v2355_v37 }
 0x498   :  { %2360 = vmatprep.subr.bf16.mxu0 %v2359_v40 }
 0x499   :  { %2378 = vmatpush3.bf16.msra.mxu1 %v2359_v40 }
 0x49b   :  { %2362 = vmatpush3.bf16.msra.mxu0 %v2359_v40 }
 0x54f   :  { %v1969_v41 = vpop.f32.mrb[20].mxu1 }
 0x550   :  { %v1268_v44 = vpop.f32.mrb[21].mxu1 }
 0x551   :  { %v1693_v45 = vpop.f32.mrb[24].mxu0 }
 0x552   :  { %v1694_v36 = vpop.f32.mrb[25].mxu0 }
 0x553   :  { %v1695_v21 = vadd.f32 %v1694_v36, %v1693_v45 }
 0x555   :  { %v1184_v47 = vadd.f32 %v1695_v21, %v1419_v46  ;;  %v1696_v16 = vpop.f32.mrb[26].mxu0 }
 0x556   :  { %v1697_v48 = vpop.f32.mrb[27].mxu0 }
 0x557   :  { %v1698_v50 = vadd.f32 %v1697_v48, %v1696_v16  ;;  %v1972_v51 = vpop.f32.mrb[22].mxu1  ;;  %v1269_v52 = vadd.f32 %v1268_v44, %v1184_v47 }
 0x558   :  { %v1278_v53 = vpop.f32.mrb[23].mxu1 }
 0x559   :  { %v1189_v54 = vadd.f32 %v1698_v50, %v1419_v46  ;;  %v1699_v55 = vpop.f32.mrb[28].mxu0  ;;  %v1287_v56 = vmax.f32 %v1269_v52, 0.0 }
 0x55a   :  { %v1700_v57 = vpop.f32.mrb[29].mxu0 }
 0x55b   :  { %v1274_v58 = vadd.f32 %v1969_v41, %v1189_v54  ;;  %v1701_v59 = vadd.f32 %v1700_v57, %v1699_v55  ;;  %2005 = vmatprep.mubr.f32.mxu0 %v1287_v56 }
 0x55d   :  { %v1288_v62 = vmax.f32 %v1274_v58, 0.0  ;;  %v1194_v63 = vadd.f32 %v1701_v59, %v1419_v46  ;;  %v1702_v0 = vpop.f32.mrb[30].mxu0 }
 0x55e   :  { %v1703_v1 = vpop.f32.mrb[31].mxu0 }
 0x55f   :  { %v1704_v3 = vadd.f32 %v1703_v1, %v1702_v0  ;;  %2006 = vmatmul.mubr.f32.vlgmr.msra.gmra.mrb[32].mxu0 %v1288_v62  ;;  %v1279_v4 = vadd.f32 %v1278_v53, %v1194_v63 }
 0x561   :  { %v1199_v5 = vadd.f32 %v1704_v3, %v1419_v46  ;;  %v1289_v22 = vmax.f32 %v1279_v4, 0.0 }
 0x563   :  { %v1284_v6 = vadd.f32 %v1972_v51, %v1199_v5  ;;  %2008 = vmatprep.mubr.f32.mxu1 %v1289_v22 }
 0x565   :  { %v1290_v23 = vmax.f32 %v1284_v6, 0.0 }
 0x567   :  { %2009 = vmatmul.mubr.f32.vlgmr.msra.gmra.mrb[24].mxu1 %v1290_v23 }
 0x632   :  { %v2007_v9 = vpop.f32.mrb[32].mxu0 }
 0x633   :  { %v1369_v11 = vadd.f32 %v2007_v9, %v1428_v8  ;;  %v1363_v12 = vpop.f32.mrb[33].mxu0 }
 0x634   :  { %v1364_v13 = vadd.f32 %v1428_v8, %v1363_v12 }
 0x635   :  { %v1383_v14 = vadd.f32 %v1369_v11, %v3229_v60 }
 0x636   :  { %v1382_v18 = vadd.f32 %v1364_v13, %v3232_v61 }
 0x637   :  { %1387 = vst [vmem:[%s3327_s7 + $0x8] sm:$0xff] %v1383_v14 }
 0x638   :  { %1386 = vst [vmem:[%s3327_s7] sm:$0xff] %v1382_v18 }
 0x63a   :  { %v2010_v19 = vpop.f32.mrb[24].mxu1 }
 0x63b   :  { %v1379_v20 = vadd.f32 %v2010_v19, %v1428_v8  ;;  %v1373_v25 = vpop.f32.mrb[25].mxu1 }
 0x63c   :  { %v1374_v42 = vadd.f32 %v1428_v8, %v1373_v25 }
 0x63d   :  { %v1385_v27 = vadd.f32 %v1379_v20, %v3252_v15 }
 0x63e   :  { %v1384_v43 = vadd.f32 %v1374_v42, %v3257_v17 }
 0x63f   :  { %1389 = vst [vmem:[%s3327_s7 + $0x18] sm:$0xff] %v1385_v27 }
 0x640   :  { %1388 = vst [vmem:[%s3327_s7 + $0x10] sm:$0xff] %v1384_v43 }

// kernel: forward.11
= control target key start
LH: loop header
LB: loop body
LE: loop exit
PB: predicated region body
PF: predicated region fallthrough
CT: control target
= control target key end

     0   :  { %vm311_vm0 = vcmask 1040384   ;;  %s3248_s0 = inlined_call_operand.vmem [shape: f32[2,32,128], index: 0, kind: input, shape index: {}]   ;;  %s3249_s1 = inlined_call_operand.vmem [shape: f32[384,128], index: 1, kind: input, shape index: {}]   ;;  %s3250_s2 = inlined_call_operand.vmem [shape: f32[1,128], index: 2, kind: input, shape index: {}]   ;;  %s3251_s3 = inlined_call_operand.vmem [shape: f32[384,128], index: 3, kind: input, shape index: {}]   ;;  %s3252_s4 = inlined_call_operand.vmem [shape: f32[1,128], index: 4, kind: input, shape index: {}]   ;;  %s3253_s5 = inlined_call_operand.vmem [shape: f32[384,384], index: 5, kind: input, shape index: {}]   ;;  %s3254_s6 = inlined_call_operand.vmem [shape: f32[1,384], index: 6, kind: input, shape index: {}]   ;;  %s3255_s7 = inlined_call_operand.hbm [shape: f32[2,32,384], index: 7, kind: output, shape index: {}]  }
   0x1   :  { %v51_v0 = vld [vmem:[%s3249_s1 + $0x80] sm:$0xff]  ;;  %v52_v1 = vld [vmem:[%s3249_s1 + $0x88] sm:$0xff]  ;;  %v53_v5 = vld [vmem:[%s3249_s1 + $0x90] sm:$0xff] }
   0x2   :  { %v35_v2 = vld [vmem:[%s3249_s1] sm:$0xff]  ;;  %v1786_v3 = vpack.c.bf16 %v52_v1, %v51_v0  ;;  %v36_v4 = vld [vmem:[%s3249_s1 + $0x8] sm:$0xff]  ;;  %v54_v6 = vld [vmem:[%s3249_s1 + $0x98] sm:$0xff] }
   0x3   :  { %v1788_v7 = vpack.c.bf16 %v36_v4, %v35_v2  ;;  %v1790_v8 = vpack.c.bf16 %v54_v6, %v53_v5  ;;  %v37_v9 = vld [vmem:[%s3249_s1 + $0x10] sm:$0xff]  ;;  %v38_v10 = vld [vmem:[%s3249_s1 + $0x18] sm:$0xff]  ;;  %v55_v11 = vld [vmem:[%s3249_s1 + $0xa0] sm:$0xff] }
   0x4   :  { %1787 = vmatprep.subr.bf16.mxu1 %v1786_v3  ;;  %v56_v12 = vld [vmem:[%s3249_s1 + $0xa8] sm:$0xff]  ;;  %v1792_v13 = vpack.c.bf16 %v38_v10, %v37_v9  ;;  %v39_v15 = vld [vmem:[%s3249_s1 + $0x20] sm:$0xff]  ;;  %v57_v17 = vld [vmem:[%s3249_s1 + $0xb0] sm:$0xff] }
   0x5   :  { %1789 = vmatpush3.bf16.msra.mxu1 %v1788_v7  ;;  %v1794_v14 = vpack.c.bf16 %v56_v12, %v55_v11  ;;  %v40_v16 = vld [vmem:[%s3249_s1 + $0x28] sm:$0xff]  ;;  %v58_v18 = vld [vmem:[%s3249_s1 + $0xb8] sm:$0xff]  ;;  %v41_v21 = vld [vmem:[%s3249_s1 + $0x30] sm:$0xff] }
   0x6   :  { %1791 = vmatprep.subr.bf16.mxu1 %v1790_v8  ;;  %v1796_v19 = vpack.c.bf16 %v40_v16, %v39_v15  ;;  %v1798_v20 = vpack.c.bf16 %v58_v18, %v57_v17  ;;  %v42_v22 = vld [vmem:[%s3249_s1 + $0x38] sm:$0xff]  ;;  %v59_v23 = vld [vmem:[%s3249_s1 + $0xc0] sm:$0xff]  ;;  %v60_v24 = vld [vmem:[%s3249_s1 + $0xc8] sm:$0xff] }
   0x7   :  { %v2251_v25 = vld [vmem:[%s3248_s0] sm:$0xff]  ;;  %vm2255_vm1 = vmneg %vm311_vm0  ;;  %v1800_v28 = vpack.c.bf16 %v42_v22, %v41_v21  ;;  %v1802_v29 = vpack.c.bf16 %v60_v24, %v59_v23  ;;  %v44_v31 = vld [vmem:[%s3249_s1 + $0x48] sm:$0xff] }
   0x8   :  { %v312_v26 = vrot.slane %v2251_v25, 7  ;;  %v43_v30 = vld [vmem:[%s3249_s1 + $0x40] sm:$0xff]  ;;  %v61_v32 = vld [vmem:[%s3249_s1 + $0xd0] sm:$0xff]  ;;  %v62_v33 = vld [vmem:[%s3249_s1 + $0xd8] sm:$0xff] }
   0x9   :  { %1793 = vmatpush3.bf16.msra.mxu1 %v1792_v13  ;;  %v1804_v34 = vpack.c.bf16 %v44_v31, %v43_v30  ;;  %v1806_v35 = vpack.c.bf16 %v62_v33, %v61_v32  ;;  %v45_v36 = vld [vmem:[%s3249_s1 + $0x50] sm:$0xff]  ;;  %v46_v37 = vld [vmem:[%s3249_s1 + $0x58] sm:$0xff]  ;;  %v63_v38 = vld [vmem:[%s3249_s1 + $0xe0] sm:$0xff] }
   0xa   :  { %1795 = vmatprep.subr.bf16.mxu1 %v1794_v14  ;;  %1382 = vmatprep.mubr.msk.f32.mxu1 %vm2255_vm1, %v312_v26  ;;  %v64_v39 = vld [vmem:[%s3249_s1 + $0xe8] sm:$0xff] }
   0xd   :  { %1797 = vmatpush3.bf16.msra.mxu1 %v1796_v19 }
   0xe   :  { %1799 = vmatprep.subr.bf16.mxu1 %v1798_v20 }
  0x11   :  { %1801 = vmatpush3.bf16.msra.mxu1 %v1800_v28 }
  0x12   :  { %1803 = vmatprep.subr.bf16.mxu1 %v1802_v29 }
  0x13   :  { %12 = vsyncpa [#allocation3], 0  ;;  %v1808_v40 = vpack.c.bf16 %v46_v37, %v45_v36  ;;  %v1810_v41 = vpack.c.bf16 %v64_v39, %v63_v38  ;;  %v47_v42 = vld [vmem:[%s3249_s1 + $0x60] sm:$0xff]  ;;  %v48_v43 = vld [vmem:[%s3249_s1 + $0x68] sm:$0xff]  ;;  %vm286_vm2 = vcmask 1041408   ;;  %v287_v59 = vrot.slane %v2251_v25, 6 }
  0x14   :  { %v65_v44 = vld [vmem:[%s3249_s1 + $0xf0] sm:$0xff]  ;;  %v66_v45 = vld [vmem:[%s3249_s1 + $0xf8] sm:$0xff]  ;;  %v1812_v46 = vpack.c.bf16 %v48_v43, %v47_v42  ;;  %v67_v50 = vld [vmem:[%s3249_s1 + $0x100] sm:$0xff] }
  0x15   :  { %1805 = vmatpush3.bf16.msra.mxu1 %v1804_v34  ;;  %v1814_v47 = vpack.c.bf16 %v66_v45, %v65_v44  ;;  %v49_v48 = vld [vmem:[%s3249_s1 + $0x70] sm:$0xff]  ;;  %v50_v49 = vld [vmem:[%s3249_s1 + $0x78] sm:$0xff]  ;;  %v68_v51 = vld [vmem:[%s3249_s1 + $0x108] sm:$0xff] }
  0x16   :  { %1807 = vmatprep.subr.bf16.mxu1 %v1806_v35  ;;  %v2312_v52 = vld [vmem:[%s3248_s0 + $0x8] sm:$0xff]  ;;  %v1816_v53 = vpack.c.bf16 %v50_v49, %v49_v48  ;;  %v1818_v54 = vpack.c.bf16 %v68_v51, %v67_v50  ;;  %v69_v56 = vld [vmem:[%s3249_s1 + $0x110] sm:$0xff]  ;;  %v70_v57 = vld [vmem:[%s3249_s1 + $0x118] sm:$0xff] }
  0x17   :  { %v313_v55 = vrot.slane %v2312_v52, 7  ;;  %v2324_v58 = vld [vmem:[%s3248_s0 + $0x10] sm:$0xff]  ;;  %vm2328_vm3 = vmneg %vm286_vm2  ;;  %v288_v61 = vrot.slane %v2312_v52, 6  ;;  %v1822_v63 = vpack.c.bf16 %v70_v57, %v69_v56  ;;  %v71_v1 = vld [vmem:[%s3249_s1 + $0x120] sm:$0xff] }
  0x18   :  { %v315_v0 = vrot.slane %v2324_v58, 7  ;;  %v72_v2 = vld [vmem:[%s3249_s1 + $0x128] sm:$0xff]  ;;  %v2344_v3 = vld [vmem:[%s3248_s0 + $0x18] sm:$0xff]  ;;  %v290_v5 = vrot.slane %v2324_v58, 6  ;;  %v73_v9 = vld [vmem:[%s3249_s1 + $0x130] sm:$0xff] }
  0x19   :  { %1809 = vmatpush3.bf16.msra.mxu1 %v1808_v40  ;;  %v314_v62 = vsel %vm311_vm0, %v312_v26, %v313_v55  ;;  %v289_v4 = vsel %vm286_vm2, %v287_v59, %v288_v61  ;;  %v1826_v7 = vpack.c.bf16 %v72_v2, %v71_v1  ;;  %v317_v8 = vrot.slane %v2344_v3, 7  ;;  %v74_v10 = vld [vmem:[%s3249_s1 + $0x138] sm:$0xff]  ;;  %v31_v15 = vld [vmem:[%s3248_s0 + $0x20] sm:$0xff]  ;;  %v76_v17 = vld [vmem:[%s3249_s1 + $0x148] sm:$0xff] }
  0x1a   :  { %1811 = vmatprep.subr.bf16.mxu1 %v1810_v41  ;;  %v316_v6 = vsel %vm311_vm0, %v313_v55, %v315_v0  ;;  %v291_v11 = vsel %vm286_vm2, %v288_v61, %v290_v5  ;;  %v292_v12 = vrot.slane %v2344_v3, 6  ;;  %v1830_v14 = vpack.c.bf16 %v74_v10, %v73_v9  ;;  %v75_v16 = vld [vmem:[%s3249_s1 + $0x140] sm:$0xff]  ;;  %v32_v18 = vld [vmem:[%s3248_s0 + $0x28] sm:$0xff]  ;;  %v77_v23 = vld [vmem:[%s3249_s1 + $0x150] sm:$0xff] }
  0x1b   :  { %v318_v13 = vsel %vm311_vm0, %v315_v0, %v317_v8  ;;  %v319_v20 = vrot.slane %v31_v15, 7  ;;  %v1834_v21 = vpack.c.bf16 %v76_v17, %v75_v16  ;;  %v320_v22 = vrot.slane %v32_v18, 7  ;;  %v78_v24 = vld [vmem:[%s3249_s1 + $0x158] sm:$0xff]  ;;  %v33_v26 = vld [vmem:[%s3248_s0 + $0x30] sm:$0xff]  ;;  %v79_v33 = vld [vmem:[%s3249_s1 + $0x160] sm:$0xff] }
  0x1c   :  { %v293_v19 = vsel %vm286_vm2, %v290_v5, %v292_v12  ;;  %v294_v28 = vrot.slane %v31_v15, 6  ;;  %v295_v29 = vrot.slane %v32_v18, 6  ;;  %v1838_v31 = vpack.c.bf16 %v78_v24, %v77_v23  ;;  %v80_v34 = vld [vmem:[%s3249_s1 + $0x168] sm:$0xff]  ;;  %v34_v35 = vld [vmem:[%s3248_s0 + $0x38] sm:$0xff]  ;;  %v81_v41 = vld [vmem:[%s3249_s1 + $0x170] sm:$0xff] }
  0x1d   :  { %1813 = vmatpush3.bf16.msra.mxu1 %v1812_v46  ;;  %v321_v30 = vsel %vm311_vm0, %v319_v20, %v320_v22  ;;  %v322_v32 = vrot.slane %v33_v26, 7  ;;  %v297_v37 = vrot.slane %v33_v26, 6  ;;  %v1842_v39 = vpack.c.bf16 %v80_v34, %v79_v33  ;;  %v82_v42 = vld [vmem:[%s3249_s1 + $0x178] sm:$0xff]  ;;  %v116_v48 = vld [vmem:[%s3251_s3 + $0x100] sm:$0xff]  ;;  %v117_v49 = vld [vmem:[%s3251_s3 + $0x108] sm:$0xff] }
  0x1e   :  { %1815 = vmatprep.subr.bf16.mxu1 %v1814_v47  ;;  %v296_v36 = vsel %vm286_vm2, %v294_v28, %v295_v29  ;;  %v324_v40 = vrot.slane %v34_v35, 7  ;;  %v299_v44 = vrot.slane %v34_v35, 6  ;;  %v1846_v46 = vpack.c.bf16 %v82_v42, %v81_v41  ;;  %v101_v51 = vld [vmem:[%s3251_s3 + $0x88] sm:$0xff]  ;;  %v118_v56 = vld [vmem:[%s3251_s3 + $0x110] sm:$0xff]  ;;  %v119_v57 = vld [vmem:[%s3251_s3 + $0x118] sm:$0xff] }
  0x1f   :  { %v323_v38 = vsel %vm311_vm0, %v320_v22, %v322_v32  ;;  %v298_v43 = vsel %vm286_vm2, %v295_v29, %v297_v37  ;;  %v1882_v50 = vpack.c.bf16 %v117_v49, %v116_v48  ;;  %v103_v61 = vld [vmem:[%s3251_s3 + $0x98] sm:$0xff]  ;;  %v120_v2 = vld [vmem:[%s3251_s3 + $0x120] sm:$0xff]  ;;  %v89_v9 = vld [vmem:[%s3251_s3 + $0x28] sm:$0xff] }
  0x20   :  { %v325_v45 = vsel %vm311_vm0, %v322_v32, %v324_v40  ;;  %v300_v47 = vsel %vm286_vm2, %v297_v37, %v299_v44  ;;  %v87_v0 = vld [vmem:[%s3251_s3 + $0x18] sm:$0xff]  ;;  %v104_v5 = vld [vmem:[%s3251_s3 + $0xa0] sm:$0xff]  ;;  %v90_v17 = vld [vmem:[%s3251_s3 + $0x30] sm:$0xff] }
  0x21   :  { %1817 = vmatpush3.bf16.msra.mxu1 %v1816_v53  ;;  %v84_v53 = vld [vmem:[%s3251_s3] sm:$0xff]  ;;  %v123_v12 = vld [vmem:[%s3251_s3 + $0x138] sm:$0xff]  ;;  %v109_v24 = vld [vmem:[%s3251_s3 + $0xc8] sm:$0xff] }
  0x22   :  { %1819 = vmatprep.subr.bf16.mxu1 %v1818_v54  ;;  %v88_v8 = vld [vmem:[%s3251_s3 + $0x20] sm:$0xff]  ;;  %v93_v29 = vld [vmem:[%s3251_s3 + $0x48] sm:$0xff]  ;;  %v127_v32 = vld [vmem:[%s3251_s3 + $0x158] sm:$0xff] }
  0x23   :  { %v1860_v10 = vpack.c.bf16 %v89_v9, %v88_v8  ;;  %v108_v23 = vld [vmem:[%s3251_s3 + $0xc0] sm:$0xff]  ;;  %v110_v34 = vld [vmem:[%s3251_s3 + $0xd0] sm:$0xff]  ;;  %v129_v41 = vld [vmem:[%s3251_s3 + $0x168] sm:$0xff] }
  0x24   :  { %1384 = vmatmul.mubr.msk.f32.vlgmr.msra.gmra.mrb[0].mxu1 %vm2328_vm3, %v287_v59  ;;  %v102_v59 = vld [vmem:[%s3251_s3 + $0x90] sm:$0xff]  ;;  %v128_v40 = vld [vmem:[%s3251_s3 + $0x160] sm:$0xff]  ;;  %v113_v44 = vld [vmem:[%s3251_s3 + $0xe8] sm:$0xff] }
  0x25   :  { %1821 = vmatpush3.bf16.msra.mxu1 %v1818_v54  ;;  %411 = vmatprep.mubr.f32.mxu1 %v314_v62  ;;  %v85_v54 = vld [vmem:[%s3251_s3 + $0x8] sm:$0xff]  ;;  %v1854_v62 = vpack.c.bf16 %v103_v61, %v102_v59  ;;  %v94_v37 = vld [vmem:[%s3251_s3 + $0x50] sm:$0xff]  ;;  %v1906_v42 = vpack.c.bf16 %v129_v41, %v128_v40 }
  0x26   :  { %1823 = vmatprep.subr.bf16.mxu1 %v1822_v63  ;;  %v1852_v55 = vpack.c.bf16 %v85_v54, %v84_v53  ;;  %v130_v49 = vld [vmem:[%s3251_s3 + $0x170] sm:$0xff] }
  0x27   :  { %v98_v54 = vld [vmem:[%s3251_s3 + $0x70] sm:$0xff] }
  0x28   :  { %412 = vmatmul.mubr.f32.gmra.mrb[2].mxu1 %v289_v4  ;;  %v183_v61 = vld [vmem:[%s3253_s5 + $0x190] sm:$0xff] }
  0x29   :  { %1825 = vmatpush3.bf16.msra.mxu1 %v1822_v63  ;;  %416 = vmatprep.mubr.f32.mxu1 %v316_v6  ;;  %v86_v63 = vld [vmem:[%s3251_s3 + $0x10] sm:$0xff]  ;;  %v105_v6 = vld [vmem:[%s3251_s3 + $0xa8] sm:$0xff] }
  0x2a   :  { %1827 = vmatprep.subr.bf16.mxu1 %v1826_v7  ;;  %v1856_v1 = vpack.c.bf16 %v87_v0, %v86_v63  ;;  %v143_v40 = vld [vmem:[%s3253_s5 + $0x50] sm:$0xff] }
  0x2b   :  { %v2608_v41 = vld [vmem:[%s3253_s5 + $0x30] sm:$0xff] }
  0x2c   :  { %417 = vmatmul.mubr.f32.gmra.mrb[4].mxu1 %v291_v11  ;;  %v122_v11 = vld [vmem:[%s3251_s3 + $0x130] sm:$0xff] }
  0x2d   :  { %1829 = vmatpush3.bf16.msra.mxu1 %v1826_v7  ;;  %421 = vmatprep.mubr.f32.mxu1 %v318_v13  ;;  %v1858_v7 = vpack.c.bf16 %v105_v6, %v104_v5  ;;  %v1894_v13 = vpack.c.bf16 %v123_v12, %v122_v11 }
  0x2e   :  { %1831 = vmatprep.subr.bf16.mxu1 %v1830_v14 }
  0x30   :  { %422 = vmatmul.mubr.f32.gmra.mrb[6].mxu1 %v293_v19 }
  0x31   :  { %1833 = vmatpush3.bf16.msra.mxu1 %v1830_v14  ;;  %1386 = vmatprep.mubr.msk.f32.mxu1 %vm2255_vm1, %v319_v20  ;;  %v106_v14 = vld [vmem:[%s3251_s3 + $0xb0] sm:$0xff]  ;;  %v124_v20 = vld [vmem:[%s3251_s3 + $0x140] sm:$0xff] }
  0x32   :  { %1835 = vmatprep.subr.bf16.mxu1 %v1834_v21 }
  0x34   :  { %1388 = vmatmul.mubr.msk.f32.gmra.mrb[8].mxu1 %vm2328_vm3, %v294_v28  ;;  %v92_v28 = vld [vmem:[%s3251_s3 + $0x40] sm:$0xff] }
  0x35   :  { %1837 = vmatpush3.bf16.msra.mxu1 %v1834_v21  ;;  %431 = vmatprep.mubr.f32.mxu1 %v321_v30  ;;  %v125_v21 = vld [vmem:[%s3251_s3 + $0x148] sm:$0xff]  ;;  %v1868_v30 = vpack.c.bf16 %v93_v29, %v92_v28  ;;  %v135_v28 = vld [vmem:[%s3253_s5 + $0x10] sm:$0xff] }
  0x36   :  { %1839 = vmatprep.subr.bf16.mxu1 %v1838_v31  ;;  %v1898_v22 = vpack.c.bf16 %v125_v21, %v124_v20  ;;  %v138_v29 = vld [vmem:[%s3253_s5 + $0x28] sm:$0xff] }
  0x38   :  { %432 = vmatmul.mubr.f32.gmra.mrb[10].mxu1 %v296_v36 }
  0x39   :  { %1841 = vmatpush3.bf16.msra.mxu1 %v1838_v31  ;;  %436 = vmatprep.mubr.f32.mxu1 %v323_v38  ;;  %v126_v31 = vld [vmem:[%s3251_s3 + $0x150] sm:$0xff]  ;;  %v95_v38 = vld [vmem:[%s3251_s3 + $0x58] sm:$0xff] }
  0x3a   :  { %1843 = vmatprep.subr.bf16.mxu1 %v1842_v39  ;;  %v1902_v33 = vpack.c.bf16 %v127_v32, %v126_v31  ;;  %v189_v32 = vld [vmem:[%s3253_s5 + $0x1c0] sm:$0xff] }
  0x3c   :  { %437 = vmatmul.mubr.f32.gmra.mrb[12].mxu1 %v298_v43  ;;  %v112_v43 = vld [vmem:[%s3251_s3 + $0xe0] sm:$0xff] }
  0x3d   :  { %1845 = vmatpush3.bf16.msra.mxu1 %v1842_v39  ;;  %441 = vmatprep.mubr.f32.mxu1 %v325_v45  ;;  %v1872_v39 = vpack.c.bf16 %v95_v38, %v94_v37  ;;  %v1874_v45 = vpack.c.bf16 %v113_v44, %v112_v43  ;;  %v136_v37 = vld [vmem:[%s3253_s5 + $0x18] sm:$0xff]  ;;  %v2012_v43 = vpack.c.bf16 %v138_v29, %v135_v28  ;;  %v155_v29 = vld [vmem:[%s3253_s5 + $0xb0] sm:$0xff] }
  0x3e   :  { %1847 = vmatprep.subr.bf16.mxu1 %v1846_v46  ;;  %v140_v38 = vld [vmem:[%s3253_s5 + $0x38] sm:$0xff] }
  0x3f   :  { %v152_v28 = vld [vmem:[%s3253_s5 + $0x98] sm:$0xff] }
  0x40   :  { %442 = vmatmul.mubr.f32.gmra.mrb[14].mxu1 %v300_v47  ;;  %v97_v47 = vld [vmem:[%s3251_s3 + $0x68] sm:$0xff] }
  0x41   :  { %1849 = vmatpush3.bf16.msra.mxu1 %v1846_v46  ;;  %1686 = vmatprep.mubr.f32.mxu1 %v2251_v25  ;;  %v100_v25 = vld [vmem:[%s3251_s3 + $0x80] sm:$0xff] }
  0x42   :  { %1883 = vmatprep.subr.bf16.mxu1 %v1882_v50  ;;  %v96_v46 = vld [vmem:[%s3251_s3 + $0x60] sm:$0xff] }
  0x43   :  { %v1876_v48 = vpack.c.bf16 %v97_v47, %v96_v46 }
  0x44   :  { %1687 = vmatmul.mubr.f32.vlgmr.msra.gmra.mrb[16].mxu1 %v2312_v52  ;;  %v1850_v52 = vpack.c.bf16 %v101_v51, %v100_v25  ;;  %v114_v51 = vld [vmem:[%s3251_s3 + $0xf0] sm:$0xff] }
  0x45   :  { %1689 = vmatprep.mubr.f32.mxu1 %v2324_v58  ;;  %1885 = vmatpush3.bf16.msra.mxu1 %v1882_v50  ;;  %v1886_v58 = vpack.c.bf16 %v119_v57, %v118_v56  ;;  %v131_v50 = vld [vmem:[%s3251_s3 + $0x178] sm:$0xff]  ;;  %v134_v57 = vld [vmem:[%s3253_s5 + $0x8] sm:$0xff] }
  0x46   :  { %1851 = vmatprep.subr.bf16.mxu0 %v1850_v52  ;;  %v1910_v25 = vpack.c.bf16 %v131_v50, %v130_v49  ;;  %v115_v52 = vld [vmem:[%s3251_s3 + $0xf8] sm:$0xff] }
  0x47   :  { %1853 = vmatpush3.bf16.msra.mxu0 %v1852_v55  ;;  %1887 = vmatprep.subr.bf16.mxu1 %v1886_v58  ;;  %v1878_v53 = vpack.c.bf16 %v115_v52, %v114_v51  ;;  %v99_v55 = vld [vmem:[%s3251_s3 + $0x78] sm:$0xff]  ;;  %v141_v51 = vld [vmem:[%s3253_s5 + $0x40] sm:$0xff] }
  0x48   :  { %1690 = vmatmul.mubr.f32.gmra.mrb[18].mxu1 %v2344_v3  ;;  %v121_v3 = vld [vmem:[%s3251_s3 + $0x128] sm:$0xff]  ;;  %1855 = vmatprep.subr.bf16.mxu0 %v1854_v62  ;;  %v1880_v56 = vpack.c.bf16 %v99_v55, %v98_v54  ;;  %v144_v52 = vld [vmem:[%s3253_s5 + $0x58] sm:$0xff] }
  0x49   :  { %1692 = vmatprep.mubr.f32.mxu1 %v31_v15  ;;  %1889 = vmatpush3.bf16.msra.mxu1 %v1886_v58  ;;  %v1890_v4 = vpack.c.bf16 %v121_v3, %v120_v2  ;;  %v107_v15 = vld [vmem:[%s3251_s3 + $0xb8] sm:$0xff]  ;;  %v137_v58 = vld [vmem:[%s3253_s5 + $0x20] sm:$0xff]  ;;  %v186_v62 = vld [vmem:[%s3253_s5 + $0x1a8] sm:$0xff] }
  0x4a   :  { %v1862_v16 = vpack.c.bf16 %v107_v15, %v106_v14  ;;  %v1914_v59 = vpack.c.bf16 %v137_v58, %v134_v57  ;;  %v2010_v63 = vpack.c.bf16 %v186_v62, %v183_v61  ;;  %v2628_v58 = vld [vmem:[%s3253_s5 + $0x68] sm:$0xff]  ;;  %v2638_v61 = vld [vmem:[%s3253_s5 + $0x1f0] sm:$0xff] }
  0x4b   :  { %1857 = vmatpush3.bf16.msra.mxu0 %v1856_v1  ;;  %1891 = vmatprep.subr.bf16.mxu1 %v1890_v4 }
  0x4c   :  { %1693 = vmatmul.mubr.f32.gmra.mrb[20].mxu1 %v32_v18  ;;  %1859 = vmatprep.subr.bf16.mxu0 %v1858_v7  ;;  %v91_v18 = vld [vmem:[%s3251_s3 + $0x38] sm:$0xff] }
  0x4d   :  { %1695 = vmatprep.mubr.f32.mxu1 %v33_v26  ;;  %1893 = vmatpush3.bf16.msra.mxu1 %v1890_v4  ;;  %v1864_v19 = vpack.c.bf16 %v91_v18, %v90_v17  ;;  %v1866_v26 = vpack.c.bf16 %v109_v24, %v108_v23  ;;  %v2575_v23 = vld [vmem:[%s3250_s2] ss:$0 sm:$0xff] }
  0x4e   :  { %1895 = vmatprep.subr.bf16.mxu1 %v1894_v13 }
  0x4f   :  { %1861 = vmatpush3.bf16.msra.mxu0 %v1860_v10 }
  0x50   :  { %1696 = vmatmul.mubr.f32.gmra.mrb[22].mxu1 %v34_v35  ;;  %1863 = vmatprep.subr.bf16.mxu0 %v1862_v16  ;;  %v111_v35 = vld [vmem:[%s3251_s3 + $0xd8] sm:$0xff] }
  0x51   :  { %1897 = vmatpush3.bf16.msra.mxu1 %v1894_v13  ;;  %v1870_v36 = vpack.c.bf16 %v111_v35, %v110_v34 }
  0x52   :  { %1899 = vmatprep.subr.bf16.mxu1 %v1898_v22 }
  0x53   :  { %1865 = vmatpush3.bf16.msra.mxu0 %v1864_v19 }
  0x54   :  { %1867 = vmatprep.subr.bf16.mxu0 %v1866_v26 }
  0x55   :  { %1901 = vmatpush3.bf16.msra.mxu1 %v1898_v22 }
  0x56   :  { %1903 = vmatprep.subr.bf16.mxu1 %v1902_v33 }
  0x57   :  { %1869 = vmatpush3.bf16.msra.mxu0 %v1868_v30 }
  0x58   :  { %1871 = vmatprep.subr.bf16.mxu0 %v1870_v36  ;;  %v133_v36 = vld [vmem:[%s3253_s5] sm:$0xff] }
  0x59   :  { %1905 = vmatpush3.bf16.msra.mxu1 %v1902_v33  ;;  %v192_v33 = vld [vmem:[%s3253_s5 + $0x1d8] sm:$0xff]  ;;  %v1916_v55 = vpack.c.bf16 %v136_v37, %v133_v36 }
  0x5a   :  { %1907 = vmatprep.subr.bf16.mxu1 %v1906_v42  ;;  %v2014_v47 = vpack.c.bf16 %v192_v33, %v189_v32 }
  0x5b   :  { %1873 = vmatpush3.bf16.msra.mxu0 %v1872_v39 }
  0x5c   :  { %1875 = vmatprep.subr.bf16.mxu0 %v1874_v45 }
  0x5d   :  { %1909 = vmatpush3.bf16.msra.mxu1 %v1906_v42  ;;  %v2613_v42 = vld [vmem:[%s3253_s5 + $0x48] sm:$0xff] }
  0x5e   :  { %1911 = vmatprep.subr.bf16.mxu1 %v1910_v25  ;;  %v1920_v57 = vpack.c.bf16 %v2613_v42, %v2608_v41 }
  0x5f   :  { %1877 = vmatpush3.bf16.msra.mxu0 %v1876_v48 }
  0x60   :  { %1879 = vmatprep.subr.bf16.mxu0 %v1878_v53 }
  0x61   :  { %1913 = vmatpush3.bf16.msra.mxu1 %v1910_v25 }
  0x62   :  { %2011 = vmatprep.subr.bf16.mxu1 %v2010_v63 }
  0x63   :  { %1881 = vmatpush3.bf16.msra.mxu0 %v1880_v56  ;;  %v1918_v56 = vpack.c.bf16 %v143_v40, %v140_v38  ;;  %v151_v38 = vld [vmem:[%s3253_s5 + $0x90] sm:$0xff]  ;;  %v204_v40 = vld [vmem:[%s3253_s5 + $0x238] sm:$0xff] }
  0x64   :  { %1915 = vmatprep.subr.bf16.mxu0 %v1914_v59  ;;  %v2633_v59 = vld [vmem:[%s3253_s5 + $0x80] sm:$0xff] }
  0xf7   :  { %v1446_v0 = vpop.f32.mrb[0].mxu1 }
  0xf8   :  { %v1447_v1 = vpop.f32.mrb[1].mxu1 }
  0xf9   :  { %v1448_v2 = vadd.f32 %v1447_v1, %v1446_v0  ;;  %v198_v1 = vld [vmem:[%s3253_s5 + $0x208] sm:$0xff] }
  0xfb   :  { %v1449_v3 = vpop.f32.mrb[2].mxu1  ;;  %v409_v31 = vadd.f32 %v1448_v2, %v2575_v23  ;;  %v2650_v2 = vld [vmem:[%s3253_s5 + $0x70] sm:$0xff] }
  0xfc   :  { %v1450_v4 = vpop.f32.mrb[3].mxu1 }
  0xfd   :  { %v1451_v5 = vadd.f32 %v1450_v4, %v1449_v3  ;;  %v2655_v3 = vld [vmem:[%s3253_s5 + $0x88] sm:$0xff] }
  0xff   :  { %v1452_v6 = vpop.f32.mrb[4].mxu1  ;;  %v414_v26 = vadd.f32 %v1451_v5, %v2575_v23 }
 0x100   :  { %v1453_v7 = vpop.f32.mrb[5].mxu1 }
 0x101   :  { %v1454_v8 = vadd.f32 %v1453_v7, %v1452_v6  ;;  %v2016_v7 = vpack.c.bf16 %v144_v52, %v141_v51 }
 0x103   :  { %v1455_v9 = vpop.f32.mrb[6].mxu1  ;;  %v419_v50 = vadd.f32 %v1454_v8, %v2575_v23 }
 0x104   :  { %v1456_v10 = vpop.f32.mrb[7].mxu1 }
 0x105   :  { %v1457_v11 = vadd.f32 %v1456_v10, %v1455_v9 }
 0x107   :  { %v1458_v12 = vpop.f32.mrb[8].mxu1  ;;  %v424_v46 = vadd.f32 %v1457_v11, %v2575_v23 }
 0x108   :  { %v1459_v13 = vpop.f32.mrb[9].mxu1 }
 0x109   :  { %v2568_v14 = vadd.f32 %v1459_v13, %v1458_v12  ;;  %v1922_v12 = vpack.c.bf16 %v2633_v59, %v2628_v58 }
 0x10b   :  { %v1461_v15 = vpop.f32.mrb[10].mxu1  ;;  %v429_v11 = vadd.f32 %v2568_v14, %v2575_v23 }
 0x10c   :  { %v1462_v16 = vpop.f32.mrb[11].mxu1 }
 0x10d   :  { %v1463_v17 = vadd.f32 %v1462_v16, %v1461_v15  ;;  %v145_v16 = vld [vmem:[%s3253_s5 + $0x60] sm:$0xff] }
 0x10f   :  { %v1464_v18 = vpop.f32.mrb[12].mxu1  ;;  %v434_v6 = vadd.f32 %v1463_v17, %v2575_v23  ;;  %v2018_v17 = vpack.c.bf16 %v198_v1, %v2638_v61  ;;  %v157_v1 = vld [vmem:[%s3253_s5 + $0xc0] sm:$0xff] }
 0x110   :  { %v1465_v19 = vpop.f32.mrb[13].mxu1 }
 0x111   :  { %v2570_v20 = vadd.f32 %v1465_v19, %v1464_v18  ;;  %v2020_v18 = vpack.c.bf16 %v2655_v3, %v2650_v2  ;;  %v160_v2 = vld [vmem:[%s3253_s5 + $0xd8] sm:$0xff] }
 0x112   :  { %v164_v3 = vld [vmem:[%s3253_s5 + $0xf8] sm:$0xff] }
 0x113   :  { %v1467_v21 = vpop.f32.mrb[14].mxu1  ;;  %v439_v37 = vadd.f32 %v2570_v20, %v2575_v23 }
 0x114   :  { %v1468_v22 = vpop.f32.mrb[15].mxu1 }
 0x115   :  { %v2577_v24 = vadd.f32 %v1468_v22, %v1467_v21 }
 0x117   :  { %v1688_v30 = vpop.f32.mrb[16].mxu1  ;;  %v444_v32 = vadd.f32 %v2577_v24, %v2575_v23  ;;  %v154_v24 = vld [vmem:[%s3253_s5 + $0xa8] sm:$0xff]  ;;  %v1926_v23 = vpack.c.bf16 %v155_v29, %v152_v28 }
 0x118   :  { %v519_v34 = vadd.f32 %v1688_v30, %v414_v26  ;;  %v513_v35 = vpop.f32.mrb[17].mxu1  ;;  %v148_v26 = vld [vmem:[%s3253_s5 + $0x78] sm:$0xff] }
 0x119   :  { %v514_v39 = vadd.f32 %v513_v35, %v409_v31  ;;  %v1924_v20 = vpack.c.bf16 %v148_v26, %v145_v16  ;;  %v176_v16 = vld [vmem:[%s3253_s5 + $0x158] sm:$0xff]  ;;  %v185_v26 = vld [vmem:[%s3253_s5 + $0x1a0] sm:$0xff] }
 0x11a   :  { %v561_v44 = vrot.slane %v519_v34, 6  ;;  %v585_v45 = vrot.slane %v519_v34, 7 }
 0x11b   :  { %v560_v48 = vrot.slane %v514_v39, 6  ;;  %v1691_v49 = vpop.f32.mrb[18].mxu1  ;;  %1730 = vmatprep.mubr.f32.mxu1 %v514_v39  ;;  %v584_v25 = vrot.slane %v514_v39, 7  ;;  %v201_v39 = vld [vmem:[%s3253_s5 + $0x220] sm:$0xff] }
 0x11c   :  { %v529_v53 = vadd.f32 %v1691_v49, %v424_v46  ;;  %v523_v54 = vpop.f32.mrb[19].mxu1  ;;  %1731 = vmatmul.mubr.f32.vlgmr.msra.gmra.mrb[24].mxu1 %v519_v34  ;;  %v161_v49 = vld [vmem:[%s3253_s5 + $0xe0] sm:$0xff] }
 0x11d   :  { %v524_v62 = vadd.f32 %v523_v54, %v419_v50  ;;  %1391 = vmatprep.mubr.msk.f32.mxu0 %vm2255_vm1, %v584_v25  ;;  %v586_v63 = vsel %vm311_vm0, %v584_v25, %v585_v45  ;;  %v562_v0 = vsel %vm286_vm2, %v560_v48, %v561_v44  ;;  %2013 = vmatpush3.bf16.msra.mxu1 %v2012_v43  ;;  %v158_v43 = vld [vmem:[%s3253_s5 + $0xc8] sm:$0xff]  ;;  %v207_v50 = vld [vmem:[%s3253_s5 + $0x250] sm:$0xff] }
 0x11e   :  { %v565_v4 = vrot.slane %v529_v53, 6  ;;  %v589_v5 = vrot.slane %v529_v53, 7  ;;  %1393 = vmatmul.mubr.msk.f32.vlgmr.msra.gmra.mrb[0].mxu0 %vm2328_vm3, %v560_v48  ;;  %2015 = vmatprep.subr.bf16.mxu1 %v2014_v47  ;;  %v210_v25 = vld [vmem:[%s3253_s5 + $0x268] sm:$0xff]  ;;  %v1930_v58 = vpack.c.bf16 %v161_v49, %v158_v43 }
 0x11f   :  { %v563_v8 = vrot.slane %v524_v62, 6  ;;  %v587_v9 = vrot.slane %v524_v62, 7  ;;  %v1694_v10 = vpop.f32.mrb[20].mxu1  ;;  %683 = vmatprep.mubr.f32.mxu0 %v586_v63  ;;  %1733 = vmatprep.mubr.f32.mxu1 %v524_v62  ;;  %v2026_v59 = vpack.c.bf16 %v210_v25, %v207_v50  ;;  %v205_v25 = vld [vmem:[%s3253_s5 + $0x240] sm:$0xff] }
 0x120   :  { %v2664_v13 = vadd.f32 %v1694_v10, %v434_v6  ;;  %v533_v15 = vpop.f32.mrb[21].mxu1  ;;  %1734 = vmatmul.mubr.f32.gmra.mrb[26].mxu1 %v529_v53  ;;  %1917 = vmatpush1.bf16.msra.mxu0 %v1916_v55  ;;  %v2022_v53 = vpack.c.bf16 %v204_v40, %v201_v39  ;;  %v173_v10 = vld [vmem:[%s3253_s5 + $0x140] sm:$0xff] }
 0x121   :  { %v2672_v19 = vadd.f32 %v533_v15, %v429_v11  ;;  %v588_v14 = vsel %vm311_vm0, %v585_v45, %v587_v9  ;;  %v564_v21 = vsel %vm286_vm2, %v561_v44, %v563_v8  ;;  %v590_v22 = vsel %vm311_vm0, %v587_v9, %v589_v5  ;;  %1919 = vmatprep.subr.bf16.mxu0 %v1918_v56  ;;  %v153_v44 = vld [vmem:[%s3253_s5 + $0xa0] sm:$0xff]  ;;  %v156_v45 = vld [vmem:[%s3253_s5 + $0xb8] sm:$0xff]  ;;  %v170_v9 = vld [vmem:[%s3253_s5 + $0x128] sm:$0xff] }
 0x122   :  { %v568_v30 = vrot.slane %v2664_v13, 6  ;;  %v592_v31 = vrot.slane %v2664_v13, 7  ;;  %684 = vmatmul.mubr.f32.gmra.mrb[2].mxu0 %v562_v0  ;;  %v566_v33 = vsel %vm286_vm2, %v563_v8, %v565_v4  ;;  %2017 = vmatpush3.bf16.msra.mxu1 %v2016_v7  ;;  %v2024_v56 = vpack.c.bf16 %v156_v45, %v153_v44  ;;  %v167_v4 = vld [vmem:[%s3253_s5 + $0x110] sm:$0xff]  ;;  %v166_v8 = vld [vmem:[%s3253_s5 + $0x108] sm:$0xff]  ;;  %v172_v15 = vld [vmem:[%s3253_s5 + $0x138] sm:$0xff] }
 0x123   :  { %v567_v34 = vrot.slane %v2672_v19, 6  ;;  %v591_v35 = vrot.slane %v2672_v19, 7  ;;  %v1697_v36 = vpop.f32.mrb[22].mxu1  ;;  %688 = vmatprep.mubr.f32.mxu0 %v588_v14  ;;  %1736 = vmatprep.mubr.f32.mxu1 %v2672_v19  ;;  %v1932_v5 = vpack.c.bf16 %v160_v2, %v157_v1  ;;  %v1934_v6 = vpack.c.bf16 %v167_v4, %v164_v3  ;;  %v163_v7 = vld [vmem:[%s3253_s5 + $0xf0] sm:$0xff]  ;;  %v165_v1 = vld [vmem:[%s3253_s5 + $0x100] sm:$0xff]  ;;  %v168_v2 = vld [vmem:[%s3253_s5 + $0x118] sm:$0xff] }
 0x124   :  { %v549_v41 = vadd.f32 %v1697_v36, %v444_v32  ;;  %v543_v42 = vpop.f32.mrb[23].mxu1  ;;  %1737 = vmatmul.mubr.f32.gmra.mrb[28].mxu1 %v2664_v13  ;;  %1921 = vmatpush1.bf16.msra.mxu0 %v1920_v57  ;;  %v1928_v57 = vpack.c.bf16 %v154_v24, %v151_v38  ;;  %v1936_v11 = vpack.c.bf16 %v166_v8, %v163_v7  ;;  %v169_v13 = vld [vmem:[%s3253_s5 + $0x120] sm:$0xff]  ;;  %v175_v14 = vld [vmem:[%s3253_s5 + $0x150] sm:$0xff]  ;;  %v188_v32 = vld [vmem:[%s3253_s5 + $0x1b8] sm:$0xff] }
 0x125   :  { %v544_v46 = vadd.f32 %v543_v42, %v439_v37  ;;  %v593_v47 = vsel %vm311_vm0, %v591_v35, %v592_v31  ;;  %v569_v48 = vsel %vm286_vm2, %v567_v34, %v568_v30  ;;  %1923 = vmatprep.subr.bf16.mxu0 %v1922_v12  ;;  %2019 = vmatprep.subr.bf16.mxu1 %v2018_v17  ;;  %v179_v17 = vld [vmem:[%s3253_s5 + $0x170] sm:$0xff]  ;;  %v190_v37 = vld [vmem:[%s3253_s5 + $0x1c8] sm:$0xff]  ;;  %v197_v24 = vld [vmem:[%s3253_s5 + $0x200] sm:$0xff] }
 0x126   :  { %v572_v51 = vrot.slane %v549_v41, 6  ;;  %v596_v52 = vrot.slane %v549_v41, 7  ;;  %689 = vmatmul.mubr.f32.gmra.mrb[4].mxu0 %v564_v21  ;;  %2021 = vmatpush3.bf16.msra.mxu1 %v2020_v18  ;;  %v1938_v12 = vpack.c.bf16 %v173_v10, %v170_v9  ;;  %v1940_v18 = vpack.c.bf16 %v172_v15, %v169_v13  ;;  %v178_v21 = vld [vmem:[%s3253_s5 + $0x168] sm:$0xff]  ;;  %v187_v36 = vld [vmem:[%s3253_s5 + $0x1b0] sm:$0xff]  ;;  %v196_v42 = vld [vmem:[%s3253_s5 + $0x1f8] sm:$0xff] }
 0x127   :  { %v570_v54 = vrot.slane %v544_v46, 6  ;;  %v594_v55 = vrot.slane %v544_v46, 7  ;;  %693 = vmatprep.mubr.f32.mxu0 %v590_v22  ;;  %1739 = vmatprep.mubr.f32.mxu1 %v544_v46  ;;  %v1942_v19 = vpack.c.bf16 %v179_v17, %v176_v16  ;;  %v182_v22 = vld [vmem:[%s3253_s5 + $0x188] sm:$0xff]  ;;  %v1944_v28 = vpack.c.bf16 %v178_v21, %v175_v14  ;;  %v199_v45 = vld [vmem:[%s3253_s5 + $0x210] sm:$0xff]  ;;  %v217_v10 = vld [vmem:[%s3253_s5 + $0x2a0] sm:$0xff] }
 0x128   :  { %1740 = vmatmul.mubr.f32.gmra.mrb[30].mxu1 %v549_v41  ;;  %1925 = vmatpush1.bf16.msra.mxu0 %v1924_v20  ;;  %v1946_v29 = vpack.c.bf16 %v185_v26, %v182_v22  ;;  %v194_v38 = vld [vmem:[%s3253_s5 + $0x1e8] sm:$0xff]  ;;  %v1952_v39 = vpack.c.bf16 %v190_v37, %v187_v36  ;;  %v193_v41 = vld [vmem:[%s3253_s5 + $0x1e0] sm:$0xff]  ;;  %v200_v20 = vld [vmem:[%s3253_s5 + $0x218] sm:$0xff]  ;;  %v2032_v4 = vpack.c.bf16 %v168_v2, %v165_v1 }
 0x129   :  { %v595_v61 = vsel %vm311_vm0, %v592_v31, %v594_v55  ;;  %v571_v62 = vsel %vm286_vm2, %v568_v30, %v570_v54  ;;  %v597_v63 = vsel %vm311_vm0, %v594_v55, %v596_v52  ;;  %v573_v0 = vsel %vm286_vm2, %v570_v54, %v572_v51  ;;  %1927 = vmatprep.subr.bf16.mxu0 %v1926_v23  ;;  %v181_v30 = vld [vmem:[%s3253_s5 + $0x180] sm:$0xff]  ;;  %v184_v31 = vld [vmem:[%s3253_s5 + $0x198] sm:$0xff]  ;;  %v203_v23 = vld [vmem:[%s3253_s5 + $0x230] sm:$0xff] }
 0x12a   :  { %694 = vmatmul.mubr.f32.gmra.mrb[6].mxu0 %v566_v33  ;;  %2023 = vmatprep.subr.bf16.mxu1 %v2022_v53  ;;  %v191_v33 = vld [vmem:[%s3253_s5 + $0x1d0] sm:$0xff]  ;;  %v1954_v40 = vpack.c.bf16 %v197_v24, %v194_v38  ;;  %v1956_v43 = vpack.c.bf16 %v196_v42, %v193_v41  ;;  %v1958_v44 = vpack.c.bf16 %v203_v23, %v200_v20  ;;  %v202_v46 = vld [vmem:[%s3253_s5 + $0x228] sm:$0xff]  ;;  %v208_v51 = vld [vmem:[%s3253_s5 + $0x258] sm:$0xff] }
 0x12b   :  { %1395 = vmatprep.mubr.msk.f32.mxu0 %vm2255_vm1, %v591_v35  ;;  %2025 = vmatpush3.bf16.msra.mxu1 %v2024_v56  ;;  %v1950_v35 = vpack.c.bf16 %v191_v33, %v188_v32  ;;  %v1960_v49 = vpack.c.bf16 %v202_v46, %v199_v45  ;;  %v159_v52 = vld [vmem:[%s3253_s5 + $0xd0] sm:$0xff]  ;;  %v1964_v53 = vpack.c.bf16 %v208_v51, %v205_v25  ;;  %v162_v54 = vld [vmem:[%s3253_s5 + $0xe8] sm:$0xff]  ;;  %v212_v56 = vld [vmem:[%s3253_s5 + $0x278] sm:$0xff] }
 0x12c   :  { %1929 = vmatpush1.bf16.msra.mxu0 %v1928_v57  ;;  %2027 = vmatprep.subr.bf16.mxu1 %v2026_v59  ;;  %v2028_v55 = vpack.c.bf16 %v162_v54, %v159_v52  ;;  %v215_v57 = vld [vmem:[%s3253_s5 + $0x290] sm:$0xff]  ;;  %v222_v9 = vld [vmem:[%s3253_s5 + $0x2c8] sm:$0xff]  ;;  %v225_v14 = vld [vmem:[%s3253_s5 + $0x2e0] sm:$0xff] }
 0x12d   :  { %1931 = vmatprep.subr.bf16.mxu0 %v1930_v58  ;;  %v213_v58 = vld [vmem:[%s3253_s5 + $0x280] sm:$0xff]  ;;  %v1966_v59 = vpack.c.bf16 %v215_v57, %v212_v56  ;;  %v219_v7 = vld [vmem:[%s3253_s5 + $0x2b0] sm:$0xff]  ;;  %v174_v16 = vld [vmem:[%s3253_s5 + $0x148] sm:$0xff] }
 0x12e   :  { %1397 = vmatmul.mubr.msk.f32.gmra.mrb[8].mxu0 %vm2328_vm3, %v567_v34  ;;  %v1948_v34 = vpack.c.bf16 %v184_v31, %v181_v30  ;;  %v171_v15 = vld [vmem:[%s3253_s5 + $0x130] sm:$0xff]  ;;  %v228_v22 = vld [vmem:[%s3253_s5 + $0x2f8] sm:$0xff]  ;;  %v177_v31 = vld [vmem:[%s3253_s5 + $0x160] sm:$0xff] }
 0x12f   :  { %703 = vmatprep.mubr.f32.mxu0 %v593_v47  ;;  %v206_v47 = vld [vmem:[%s3253_s5 + $0x248] sm:$0xff]  ;;  %2029 = vmatpush3.bf16.msra.mxu1 %v2028_v55  ;;  %v2036_v17 = vpack.c.bf16 %v174_v16, %v171_v15  ;;  %v223_v26 = vld [vmem:[%s3253_s5 + $0x2d0] sm:$0xff]  ;;  %v180_v32 = vld [vmem:[%s3253_s5 + $0x178] sm:$0xff] }
 0x130   :  { %1933 = vmatpush1.bf16.msra.mxu0 %v1932_v5  ;;  %v218_v5 = vld [vmem:[%s3253_s5 + $0x2a8] sm:$0xff]  ;;  %v2040_v33 = vpack.c.bf16 %v180_v32, %v177_v31  ;;  %v231_v36 = vld [vmem:[%s3253_s5 + $0x310] sm:$0xff]  ;;  %v2935_v42 = vld [vmem:[%s3252_s4] ss:$0 sm:$0xff] }
 0x131   :  { %1935 = vmatprep.subr.bf16.mxu0 %v1934_v6  ;;  %v221_v6 = vld [vmem:[%s3253_s5 + $0x2c0] sm:$0xff]  ;;  %v234_v38 = vld [vmem:[%s3253_s5 + $0x328] sm:$0xff]  ;;  %v232_v51 = vld [vmem:[%s3253_s5 + $0x318] sm:$0xff] }
 0x132   :  { %704 = vmatmul.mubr.f32.gmra.mrb[10].mxu0 %v569_v48  ;;  %v209_v48 = vld [vmem:[%s3253_s5 + $0x260] sm:$0xff]  ;;  %v1970_v8 = vpack.c.bf16 %v221_v6, %v218_v5  ;;  %v2929_v24 = vpack.c.bf16 %v234_v38, %v231_v36  ;;  %v239_v57 = vld [vmem:[%s3253_s5 + $0x350] sm:$0xff]  ;;  %v246_v16 = vld [vmem:[%s3253_s5 + $0x388] sm:$0xff] }
 0x133   :  { %708 = vmatprep.mubr.f32.mxu0 %v595_v61  ;;  %v1962_v50 = vpack.c.bf16 %v209_v48, %v206_v47  ;;  %v216_v61 = vld [vmem:[%s3253_s5 + $0x298] sm:$0xff]  ;;  %v229_v25 = vld [vmem:[%s3253_s5 + $0x300] sm:$0xff]  ;;  %v243_v15 = vld [vmem:[%s3253_s5 + $0x370] sm:$0xff] }
 0x134   :  { %1937 = vmatpush1.bf16.msra.mxu0 %v1936_v11  ;;  %v220_v11 = vld [vmem:[%s3253_s5 + $0x2b8] sm:$0xff]  ;;  %v249_v38 = vld [vmem:[%s3253_s5 + $0x3a0] sm:$0xff] }
 0x135   :  { %1939 = vmatprep.subr.bf16.mxu0 %v1938_v12  ;;  %v2034_v12 = vpack.c.bf16 %v222_v9, %v219_v7  ;;  %v1972_v13 = vpack.c.bf16 %v220_v11, %v217_v10  ;;  %v235_v7 = vld [vmem:[%s3253_s5 + $0x330] sm:$0xff]  ;;  %v242_v9 = vld [vmem:[%s3253_s5 + $0x368] sm:$0xff]  ;;  %v248_v31 = vld [vmem:[%s3253_s5 + $0x398] sm:$0xff] }
 0x136   :  { %709 = vmatmul.mubr.f32.gmra.mrb[12].mxu0 %v571_v62  ;;  %v211_v62 = vld [vmem:[%s3253_s5 + $0x270] sm:$0xff] }
 0x137   :  { %713 = vmatprep.mubr.f32.mxu0 %v597_v63  ;;  %v2030_v63 = vpack.c.bf16 %v216_v61, %v213_v58  ;;  %v237_v58 = vld [vmem:[%s3253_s5 + $0x340] sm:$0xff] }
 0x138   :  { %1941 = vmatpush1.bf16.msra.mxu0 %v1940_v18  ;;  %v224_v18 = vld [vmem:[%s3253_s5 + $0x2d8] sm:$0xff] }
 0x139   :  { %1943 = vmatprep.subr.bf16.mxu0 %v1942_v19  ;;  %2031 = vmatprep.subr.bf16.mxu1 %v2030_v63  ;;  %v227_v19 = vld [vmem:[%s3253_s5 + $0x2f0] sm:$0xff] }
 0x13a   :  { %714 = vmatmul.mubr.f32.gmra.mrb[14].mxu0 %v573_v0  ;;  %v214_v0 = vld [vmem:[%s3253_s5 + $0x288] sm:$0xff]  ;;  %2033 = vmatpush3.bf16.msra.mxu1 %v2032_v4  ;;  %v1974_v21 = vpack.c.bf16 %v227_v19, %v224_v18 }
 0x13b   :  { %v1968_v3 = vpack.c.bf16 %v214_v0, %v211_v62  ;;  %2035 = vmatprep.subr.bf16.mxu1 %v2034_v12  ;;  %v1980_v62 = vpack.c.bf16 %v232_v51, %v229_v25 }
 0x13c   :  { %1945 = vmatpush1.bf16.msra.mxu0 %v1944_v28  ;;  %v226_v28 = vld [vmem:[%s3253_s5 + $0x2e8] sm:$0xff] }
 0x13d   :  { %1947 = vmatprep.subr.bf16.mxu0 %v1946_v29  ;;  %v2038_v29 = vpack.c.bf16 %v228_v22, %v225_v14  ;;  %v1976_v30 = vpack.c.bf16 %v226_v28, %v223_v26  ;;  %v3006_v28 = vpack.c.bf16 %v246_v16, %v243_v15  ;;  %v263_v15 = vld [vmem:[%s3253_s5 + $0x410] sm:$0xff] }
 0x13e   :  { %2037 = vmatpush3.bf16.msra.mxu1 %v2036_v17 }
 0x13f   :  { %2039 = vmatprep.subr.bf16.mxu1 %v2038_v29  ;;  %v241_v29 = vld [vmem:[%s3253_s5 + $0x360] sm:$0xff] }
 0x140   :  { %1949 = vmatpush1.bf16.msra.mxu0 %v1948_v34  ;;  %v230_v34 = vld [vmem:[%s3253_s5 + $0x308] sm:$0xff] }
 0x141   :  { %1951 = vmatprep.subr.bf16.mxu0 %v1950_v35  ;;  %v233_v35 = vld [vmem:[%s3253_s5 + $0x320] sm:$0xff] }
 0x142   :  { %2041 = vmatpush3.bf16.msra.mxu1 %v2040_v33  ;;  %v1978_v37 = vpack.c.bf16 %v233_v35, %v230_v34 }
 0x143   :  { %2074 = vmatprep.subr.bf16.mxu1 %v2929_v24 }
 0x144   :  { %1953 = vmatpush1.bf16.msra.mxu0 %v1952_v39 }
 0x145   :  { %1955 = vmatprep.subr.bf16.mxu0 %v1954_v40 }
 0x148   :  { %1957 = vmatpush1.bf16.msra.mxu0 %v1956_v43 }
 0x149   :  { %1959 = vmatprep.subr.bf16.mxu0 %v1958_v44 }
 0x14c   :  { %1961 = vmatpush1.bf16.msra.mxu0 %v1960_v49 }
 0x14d   :  { %1963 = vmatprep.subr.bf16.mxu0 %v1962_v50 }
 0x150   :  { %1965 = vmatpush1.bf16.msra.mxu0 %v1964_v53  ;;  %v236_v53 = vld [vmem:[%s3253_s5 + $0x338] sm:$0xff] }
 0x151   :  { %1967 = vmatprep.subr.bf16.mxu0 %v1966_v59  ;;  %v240_v59 = vld [vmem:[%s3253_s5 + $0x358] sm:$0xff]  ;;  %v1982_v5 = vpack.c.bf16 %v239_v57, %v236_v53  ;;  %v247_v53 = vld [vmem:[%s3253_s5 + $0x390] sm:$0xff]  ;;  %v254_v57 = vld [vmem:[%s3253_s5 + $0x3c8] sm:$0xff] }
 0x152   :  { %v2971_v6 = vpack.c.bf16 %v240_v59, %v237_v58 }
 0x154   :  { %1969 = vmatpush1.bf16.msra.mxu0 %v1968_v3 }
 0x155   :  { %1971 = vmatprep.subr.bf16.mxu0 %v1970_v8  ;;  %v238_v8 = vld [vmem:[%s3253_s5 + $0x348] sm:$0xff] }
 0x156   :  { %v1984_v22 = vpack.c.bf16 %v238_v8, %v235_v7 }
 0x158   :  { %1973 = vmatpush1.bf16.msra.mxu0 %v1972_v13  ;;  %v245_v13 = vld [vmem:[%s3253_s5 + $0x380] sm:$0xff] }
 0x159   :  { %1975 = vmatprep.subr.bf16.mxu0 %v1974_v21  ;;  %v1986_v26 = vpack.c.bf16 %v245_v13, %v242_v9  ;;  %v260_v13 = vld [vmem:[%s3253_s5 + $0x3f8] sm:$0xff] }
 0x15c   :  { %1977 = vmatpush1.bf16.msra.mxu0 %v1976_v30  ;;  %v244_v30 = vld [vmem:[%s3253_s5 + $0x378] sm:$0xff] }
 0x15d   :  { %1979 = vmatprep.subr.bf16.mxu0 %v1978_v37  ;;  %v251_v37 = vld [vmem:[%s3253_s5 + $0x3b0] sm:$0xff] }
 0x1ef   :  { %v1732_v39 = vpop.f32.mrb[24].mxu1 }
 0x1f0   :  { %v785_v40 = vpop.f32.mrb[25].mxu1 }
 0x1f1   :  { %v1526_v41 = vpop.f32.mrb[0].mxu0 }
 0x1f2   :  { %v1527_v20 = vpop.f32.mrb[1].mxu0 }
 0x1f3   :  { %v1528_v23 = vadd.f32 %v1527_v20, %v1526_v41  ;;  %v2937_v43 = vpop.f32.mrb[26].mxu1 }
 0x1f4   :  { %v795_v44 = vpop.f32.mrb[27].mxu1 }
 0x1f5   :  { %v681_v45 = vadd.f32 %v1528_v23, %v2935_v42  ;;  %v1529_v46 = vpop.f32.mrb[2].mxu0 }
 0x1f6   :  { %v1530_v47 = vpop.f32.mrb[3].mxu0 }
 0x1f7   :  { %v786_v48 = vadd.f32 %v785_v40, %v681_v45  ;;  %v1531_v49 = vadd.f32 %v1530_v47, %v1529_v46  ;;  %v2940_v50 = vpop.f32.mrb[28].mxu1  ;;  %v1988_v45 = vpack.c.bf16 %v244_v30, %v241_v29  ;;  %v1990_v46 = vpack.c.bf16 %v251_v37, %v248_v31  ;;  %v259_v31 = vld [vmem:[%s3253_s5 + $0x3f0] sm:$0xff] }
 0x1f8   :  { %v2948_v52 = vpop.f32.mrb[29].mxu1  ;;  %v1998_v30 = vpack.c.bf16 %v263_v15, %v260_v13 }
 0x1f9   :  { %v2953_v54 = vmax.f32 %v786_v48, 0.0  ;;  %v686_v55 = vadd.f32 %v1531_v49, %v2935_v42  ;;  %v1532_v56 = vpop.f32.mrb[4].mxu0 }
 0x1fa   :  { %v1533_v61 = vpop.f32.mrb[5].mxu0 }
 0x1fb   :  { %v840_v63 = vrot.slane %v2953_v54, 6  ;;  %v791_v0 = vadd.f32 %v1732_v39, %v686_v55  ;;  %v1534_v1 = vadd.f32 %v1533_v61, %v1532_v56  ;;  %v2966_v2 = vpop.f32.mrb[30].mxu1  ;;  %v864_v3 = vrot.slane %v2953_v54, 7  ;;  %v252_v39 = vld [vmem:[%s3253_s5 + $0x3b8] sm:$0xff]  ;;  %v250_v55 = vld [vmem:[%s3253_s5 + $0x3a8] sm:$0xff] }
 0x1fc   :  { %v2969_v4 = vpop.f32.mrb[31].mxu1  ;;  %v3035_v47 = vpack.c.bf16 %v252_v39, %v249_v38  ;;  %v269_v39 = vld [vmem:[%s3253_s5 + $0x440] sm:$0xff] }
 0x1fd   :  { %v2982_v10 = vmax.f32 %v791_v0, 0.0  ;;  %v691_v11 = vadd.f32 %v1534_v1, %v2935_v42  ;;  %v1535_v12 = vpop.f32.mrb[6].mxu0  ;;  %1399 = vmatprep.mubr.msk.f32.mxu0 %vm2255_vm1, %v864_v3  ;;  %1407 = vmatprep.mubr.msk.f32.mxu1 %vm2255_vm1, %v864_v3  ;;  %v255_v0 = vld [vmem:[%s3253_s5 + $0x3d0] sm:$0xff]  ;;  %v258_v1 = vld [vmem:[%s3253_s5 + $0x3e8] sm:$0xff] }
 0x1fe   :  { %v1536_v17 = vpop.f32.mrb[7].mxu0  ;;  %1401 = vmatmul.mubr.msk.f32.vlgmr.msra.gmra.mrb[16].mxu0 %vm2328_vm3, %v840_v63  ;;  %1409 = vmatmul.mubr.msk.f32.vlgmr.msra.gmra.mrb[32].mxu1 %vm2328_vm3, %v840_v63 }
 0x1ff   :  { %v796_v18 = vadd.f32 %v795_v44, %v691_v11  ;;  %v1537_v19 = vadd.f32 %v1536_v17, %v1535_v12  ;;  %1981 = vmatpush1.bf16.msra.mxu0 %v1980_v62  ;;  %2082 = vmatpush3.bf16.msra.mxu1 %v2929_v24  ;;  %v865_v14 = vrot.slane %v2982_v10, 7  ;;  %v841_v21 = vrot.slane %v2982_v10, 6  ;;  %v256_v12 = vld [vmem:[%s3253_s5 + $0x3d8] sm:$0xff] }
 0x200   :  { %1983 = vmatprep.subr.bf16.mxu0 %v1982_v5  ;;  %2075 = vmatprep.subr.bf16.mxu1 %v2971_v6 }
 0x201   :  { %v3017_v32 = vmax.f32 %v796_v18, 0.0  ;;  %v696_v33 = vadd.f32 %v1537_v19, %v2935_v42  ;;  %v1538_v34 = vpop.f32.mrb[8].mxu0  ;;  %v866_v35 = vsel %vm311_vm0, %v864_v3, %v865_v14  ;;  %v842_v36 = vsel %vm286_vm2, %v840_v63, %v841_v21  ;;  %v257_v63 = vld [vmem:[%s3253_s5 + $0x3e0] sm:$0xff] }
 0x202   :  { %v1539_v40 = vpop.f32.mrb[9].mxu0  ;;  %974 = vmatprep.mubr.f32.mxu0 %v866_v35  ;;  %1199 = vmatprep.mubr.f32.mxu1 %v866_v35  ;;  %v253_v3 = vld [vmem:[%s3253_s5 + $0x3c0] sm:$0xff]  ;;  %v1994_v17 = vpack.c.bf16 %v257_v63, %v254_v57  ;;  %v3083_v18 = vpack.c.bf16 %v258_v1, %v255_v0  ;;  %v275_v57 = vld [vmem:[%s3253_s5 + $0x470] sm:$0xff] }
 0x203   :  { %v801_v41 = vadd.f32 %v2937_v43, %v696_v33  ;;  %v1540_v20 = vadd.f32 %v1539_v40, %v1538_v34  ;;  %975 = vmatmul.mubr.f32.gmra.mrb[18].mxu0 %v842_v36  ;;  %1200 = vmatmul.mubr.f32.gmra.mrb[34].mxu1 %v842_v36  ;;  %v867_v23 = vrot.slane %v3017_v32, 7  ;;  %v843_v44 = vrot.slane %v3017_v32, 6  ;;  %v261_v19 = vld [vmem:[%s3253_s5 + $0x400] sm:$0xff]  ;;  %v262_v33 = vld [vmem:[%s3253_s5 + $0x408] sm:$0xff]  ;;  %v267_v40 = vld [vmem:[%s3253_s5 + $0x430] sm:$0xff] }
 0x204   :  { %1985 = vmatpush1.bf16.msra.mxu0 %v1984_v22  ;;  %2083 = vmatpush3.bf16.msra.mxu1 %v2971_v6  ;;  %v1996_v29 = vpack.c.bf16 %v256_v12, %v253_v3 }
 0x205   :  { %v3037_v48 = vmax.f32 %v801_v41, 0.0  ;;  %v701_v49 = vadd.f32 %v1540_v20, %v2935_v42  ;;  %v1541_v25 = vpop.f32.mrb[10].mxu0  ;;  %v868_v43 = vsel %vm311_vm0, %v865_v14, %v867_v23  ;;  %v844_v51 = vsel %vm286_vm2, %v841_v21, %v843_v44  ;;  %1987 = vmatprep.subr.bf16.mxu0 %v1986_v26  ;;  %2076 = vmatprep.subr.bf16.mxu1 %v3006_v28  ;;  %v264_v14 = vld [vmem:[%s3253_s5 + $0x418] sm:$0xff]  ;;  %v270_v41 = vld [vmem:[%s3253_s5 + $0x448] sm:$0xff] }
 0x206   :  { %v1542_v56 = vpop.f32.mrb[11].mxu0  ;;  %980 = vmatprep.mubr.f32.mxu0 %v868_v43  ;;  %1204 = vmatprep.mubr.f32.mxu1 %v868_v43  ;;  %v3111_v38 = vpack.c.bf16 %v264_v14, %v261_v19 }
 0x207   :  { %v806_v58 = vadd.f32 %v2948_v52, %v701_v49  ;;  %v1543_v59 = vadd.f32 %v1542_v56, %v1541_v25  ;;  %981 = vmatmul.mubr.f32.gmra.mrb[20].mxu0 %v844_v51  ;;  %1205 = vmatmul.mubr.f32.gmra.mrb[36].mxu1 %v844_v51  ;;  %v869_v61 = vrot.slane %v3037_v48, 7  ;;  %v845_v62 = vrot.slane %v3037_v48, 6  ;;  %v272_v56 = vld [vmem:[%s3253_s5 + $0x458] sm:$0xff] }
 0x208   :  { %1989 = vmatpush1.bf16.msra.mxu0 %v1988_v45  ;;  %2084 = vmatpush3.bf16.msra.mxu1 %v3006_v28  ;;  %v1992_v52 = vpack.c.bf16 %v250_v55, %v247_v53  ;;  %v3131_v25 = vpack.c.bf16 %v270_v41, %v267_v40  ;;  %v268_v55 = vld [vmem:[%s3253_s5 + $0x438] sm:$0xff]  ;;  %v2006_v0 = vpack.c.bf16 %v275_v57, %v272_v56 }
 0x209   :  { %v3068_v5 = vmax.f32 %v806_v58, 0.0  ;;  %v706_v7 = vadd.f32 %v1543_v59, %v2935_v42  ;;  %v1544_v8 = vpop.f32.mrb[12].mxu0  ;;  %v870_v9 = vsel %vm311_vm0, %v867_v23, %v869_v61  ;;  %v846_v11 = vsel %vm286_vm2, %v843_v44, %v845_v62  ;;  %1991 = vmatprep.subr.bf16.mxu0 %v1990_v46  ;;  %2077 = vmatprep.subr.bf16.mxu1 %v3035_v47  ;;  %v276_v58 = vld [vmem:[%s3253_s5 + $0x478] sm:$0xff] }
 0x20a   :  { %v1545_v16 = vpop.f32.mrb[13].mxu0  ;;  %986 = vmatprep.mubr.f32.mxu0 %v870_v9  ;;  %1209 = vmatprep.mubr.f32.mxu1 %v870_v9  ;;  %v2000_v46 = vpack.c.bf16 %v262_v33, %v259_v31 }
 0x20b   :  { %v811_v21 = vadd.f32 %v2940_v50, %v706_v7  ;;  %v1546_v22 = vadd.f32 %v1545_v16, %v1544_v8  ;;  %987 = vmatmul.mubr.f32.gmra.mrb[22].mxu0 %v846_v11  ;;  %1210 = vmatmul.mubr.f32.gmra.mrb[38].mxu1 %v846_v11  ;;  %v871_v26 = vrot.slane %v3068_v5, 7  ;;  %v266_v50 = vld [vmem:[%s3253_s5 + $0x428] sm:$0xff]  ;;  %v847_v37 = vrot.slane %v3068_v5, 6  ;;  %v271_v7 = vld [vmem:[%s3253_s5 + $0x450] sm:$0xff] }
 0x20c   :  { %1993 = vmatpush1.bf16.msra.mxu0 %v1992_v52  ;;  %2085 = vmatpush3.bf16.msra.mxu1 %v3035_v47  ;;  %v2002_v49 = vpack.c.bf16 %v269_v39, %v266_v50  ;;  %v274_v8 = vld [vmem:[%s3253_s5 + $0x468] sm:$0xff]  ;;  %v2150_v16 = vmov 0.0  }
 0x20d   :  { %v3103_v34 = vmax.f32 %v811_v21, 0.0  ;;  %v711_v35 = vadd.f32 %v1546_v22, %v2935_v42  ;;  %v1547_v36 = vpop.f32.mrb[14].mxu0  ;;  %1403 = vmatprep.mubr.msk.f32.mxu0 %vm2255_vm1, %v871_v26  ;;  %1411 = vmatprep.mubr.msk.f32.mxu1 %vm2255_vm1, %v871_v26  ;;  %v2008_v12 = vpack.c.bf16 %v274_v8, %v271_v7 }
 0x20e   :  { %v1548_v20 = vpop.f32.mrb[15].mxu0  ;;  %1995 = vmatprep.subr.bf16.mxu0 %v1994_v17  ;;  %2078 = vmatprep.subr.bf16.mxu1 %v3083_v18 }
 0x20f   :  { %v816_v27 = vadd.f32 %v2969_v4, %v711_v35  ;;  %v1549_v23 = vadd.f32 %v1548_v20, %v1547_v36  ;;  %1405 = vmatmul.mubr.msk.f32.gmra.mrb[24].mxu0 %vm2328_vm3, %v847_v37  ;;  %1413 = vmatmul.mubr.msk.f32.gmra.mrb[40].mxu1 %vm2328_vm3, %v847_v37  ;;  %v872_v44 = vrot.slane %v3103_v34, 7  ;;  %v848_v45 = vrot.slane %v3103_v34, 6  ;;  %v265_v4 = vld [vmem:[%s3253_s5 + $0x420] sm:$0xff] }
 0x210   :  { %1997 = vmatpush1.bf16.msra.mxu0 %v1996_v29  ;;  %2086 = vmatpush3.bf16.msra.mxu1 %v3083_v18  ;;  %v2004_v63 = vpack.c.bf16 %v268_v55, %v265_v4 }
 0x211   :  { %v3136_v43 = vmax.f32 %v816_v27, 0.0  ;;  %v716_v60 = vadd.f32 %v1549_v23, %v2935_v42  ;;  %v873_v51 = vsel %vm311_vm0, %v871_v26, %v872_v44  ;;  %v849_v53 = vsel %vm286_vm2, %v847_v37, %v848_v45  ;;  %1999 = vmatprep.subr.bf16.mxu0 %v1998_v30  ;;  %2079 = vmatprep.subr.bf16.mxu1 %v3111_v38  ;;  %v273_v42 = vld [vmem:[%s3253_s5 + $0x460] sm:$0xff] }
 0x212   :  { %998 = vmatprep.mubr.f32.mxu0 %v873_v51  ;;  %1219 = vmatprep.mubr.f32.mxu1 %v873_v51  ;;  %v889_v26 = vlaneseq }
 0x213   :  { %v821_v59 = vadd.f32 %v2966_v2, %v716_v60  ;;  %999 = vmatmul.mubr.f32.gmra.mrb[26].mxu0 %v849_v53  ;;  %1220 = vmatmul.mubr.f32.gmra.mrb[42].mxu1 %v849_v53  ;;  %v874_v61 = vrot.slane %v3136_v43, 7  ;;  %v850_v62 = vrot.slane %v3136_v43, 6  ;;  %v2070_v2 = vpack.c.bf16 %v276_v58, %v273_v42 }
 0x214   :  { %2001 = vmatpush1.bf16.msra.mxu0 %v2000_v46  ;;  %2087 = vmatpush3.bf16.msra.mxu1 %v3111_v38  ;;  %v890_v31 = vshrl.u32 %v889_v26, 7 }
 0x215   :  { %v831_v1 = vmax.f32 %v821_v59, 0.0  ;;  %v875_v52 = vsel %vm311_vm0, %v872_v44, %v874_v61  ;;  %v851_v3 = vsel %vm286_vm2, %v848_v45, %v850_v62  ;;  %2003 = vmatprep.subr.bf16.mxu0 %v2002_v49  ;;  %2080 = vmatprep.subr.bf16.mxu1 %v3131_v25 }
 0x216   :  { %1004 = vmatprep.mubr.f32.mxu0 %v875_v52  ;;  %1224 = vmatprep.mubr.f32.mxu1 %v875_v52  ;;  %v891_v35 = vsub.s32 0, %v890_v31  ;;  %v899_v36 = vsub.s32 2, %v890_v31  ;;  %v895_v39 = vsub.s32 1, %v890_v31 }
 0x217   :  { %1005 = vmatmul.mubr.f32.gmra.mrb[28].mxu0 %v851_v3  ;;  %1225 = vmatmul.mubr.f32.gmra.mrb[44].mxu1 %v851_v3  ;;  %v876_v9 = vrot.slane %v831_v1, 7  ;;  %v852_v11 = vrot.slane %v831_v1, 6 }
 0x218   :  { %2005 = vmatpush1.bf16.msra.mxu0 %v2004_v63  ;;  %2088 = vmatpush3.bf16.msra.mxu1 %v3131_v25 }
 0x219   :  { %v877_v13 = vsel %vm311_vm0, %v874_v61, %v876_v9  ;;  %v853_v15 = vsel %vm286_vm2, %v850_v62, %v852_v11  ;;  %2007 = vmatprep.subr.bf16.mxu0 %v2006_v0  ;;  %2081 = vmatprep.subr.bf16.mxu1 %v2070_v2 }
 0x21a   :  { %1010 = vmatprep.mubr.f32.mxu0 %v877_v13  ;;  %1229 = vmatprep.mubr.f32.mxu1 %v877_v13 }
 0x21b   :  { %1011 = vmatmul.mubr.f32.gmra.mrb[30].mxu0 %v853_v15  ;;  %1230 = vmatmul.mubr.f32.gmra.mrb[46].mxu1 %v853_v15 }
 0x21c   :  { %2009 = vmatpush1.bf16.msra.mxu0 %v2008_v12  ;;  %2089 = vmatpush3.bf16.msra.mxu1 %v2070_v2 }
 0x21d   :  { %1780 = vmatprep.mubr.f32.mxu1 %v3068_v5  ;;  %1081 = vmatprep.mubr.f32.mxu0 %v2150_v16 }
 0x21e   :  { %2043 = vmatprep.subr.bf16.mxu0 %v2929_v24 }
 0x21f   :  { %1082 = vmatmul.mubr.f32.vlgmr.msra.gmra.mrb[16].mxu0 %v2953_v54  ;;  %1781 = vmatmul.mubr.f32.vlgmr.msra.gmra.mrb[48].mxu1 %v3103_v34 }
 0x220   :  { %2045 = vmatpush3.bf16.msra.mxu0 %v2929_v24  ;;  %1783 = vmatprep.mubr.f32.mxu1 %v3136_v43 }
 0x221   :  { %1087 = vmatprep.mubr.f32.mxu0 %v2150_v16  ;;  %2047 = vmatprep.subr.bf16.mxu0 %v2971_v6 }
 0x223   :  { %1088 = vmatmul.mubr.f32.gmra.mrb[18].mxu0 %v2982_v10  ;;  %1784 = vmatmul.mubr.f32.gmra.mrb[50].mxu1 %v831_v1 }
 0x224   :  { %2049 = vmatpush3.bf16.msra.mxu0 %v2971_v6  ;;  %1093 = vmatprep.mubr.f32.mxu0 %v2150_v16 }
 0x225   :  { %2051 = vmatprep.subr.bf16.mxu0 %v3006_v28 }
 0x227   :  { %1094 = vmatmul.mubr.f32.gmra.mrb[20].mxu0 %v3017_v32 }
 0x228   :  { %2053 = vmatpush3.bf16.msra.mxu0 %v3006_v28  ;;  %1099 = vmatprep.mubr.f32.mxu0 %v2150_v16 }
 0x229   :  { %2055 = vmatprep.subr.bf16.mxu0 %v3035_v47 }
 0x22b   :  { %1100 = vmatmul.mubr.f32.gmra.mrb[22].mxu0 %v3037_v48 }
 0x22c   :  { %2057 = vmatpush3.bf16.msra.mxu0 %v3035_v47  ;;  %1105 = vmatprep.mubr.f32.mxu0 %v2150_v16 }
 0x22d   :  { %2059 = vmatprep.subr.bf16.mxu0 %v3083_v18 }
 0x22f   :  { %1106 = vmatmul.mubr.f32.gmra.mrb[24].mxu0 %v3068_v5 }
 0x230   :  { %2061 = vmatpush3.bf16.msra.mxu0 %v3083_v18  ;;  %1111 = vmatprep.mubr.f32.mxu0 %v2150_v16 }
 0x231   :  { %2063 = vmatprep.subr.bf16.mxu0 %v3111_v38 }
 0x233   :  { %1112 = vmatmul.mubr.f32.gmra.mrb[26].mxu0 %v3103_v34 }
 0x234   :  { %2065 = vmatpush3.bf16.msra.mxu0 %v3111_v38  ;;  %1117 = vmatprep.mubr.f32.mxu0 %v2150_v16  ;;  %v277_v38 = vld [vmem:[%s3254_s6] sm:$0x7]  ;;  %s2151_s6 = smov [#allocation2]  }
 0x235   :  { %2067 = vmatprep.subr.bf16.mxu0 %v3131_v25  ;;  %v3212_v20 = vrot.slane %v277_v38, %v891_v35  ;;  %v3214_v27 = vrot.slane %v277_v38, %v899_v36  ;;  %v896_v44 = vrot.slane %v277_v38, %v895_v39  ;;  %s1369_s9 = sshll.u32 %s2151_s6, 4  ;;  %s1370_s9 = int_to_ptr.vmem [resolvable:$true] %s1369_s9 }
 0x236   :  { %s2126_s10 = scalar_lea.vmem %s1370_s9, 3072  ;;  %p2131_p1 = scmp.lt.s32.totalorder %s1370_s9, %s1370_s9 }
 0x237   :  { %1118 = vmatmul.mubr.f32.gmra.mrb[28].mxu0 %v3136_v43  ;;  %p2127_p0 = scmp.ne.s32.totalorder %s1370_s9, %s2126_s10  ;;  %p2132_p2 = scmp.lt.s32.totalorder %s2126_s10, %s2126_s10 }
 0x238   :  { %2069 = vmatpush3.bf16.msra.mxu0 %v3131_v25  ;;  %1123 = vmatprep.mubr.f32.mxu0 %v2150_v16 }
 0x239   :  { %2071 = vmatprep.subr.bf16.mxu0 %v2070_v2  ;;  %p2133_p3 = por %p2132_p2, %p2131_p1 }
 0x23b   :  { %1124 = vmatmul.mubr.f32.gmra.mrb[30].mxu0 %v831_v1  ;;  %p2134_p4 = pnand %p2133_p3, %p2127_p0 }
 0x23c   :  { %2073 = vmatpush3.bf16.msra.mxu0 %v2070_v2  ;;  %1774 = vmatprep.mubr.f32.mxu0 %v2953_v54 }
 0x23f   :  { %1775 = vmatmul.mubr.f32.vlgmr.msra.gmra.mrb[32].mxu0 %v2982_v10 }
 0x240   :  { %1777 = vmatprep.mubr.f32.mxu0 %v3017_v32 }
 0x243   :  { %1778 = vmatmul.mubr.f32.gmra.mrb[34].mxu0 %v3037_v48 }
 0x2d1   :  { %v1606_v24 = vpop.f32.mrb[32].mxu1 }
 0x2d2   :  { %v1607_v6 = vpop.f32.mrb[33].mxu1 }
 0x2d3   :  { %v3201_v28 = vadd.f32 %v1607_v6, %v1606_v24 }
 0x2d6   :  { %v1609_v47 = vpop.f32.mrb[34].mxu1 }
 0x2d7   :  { %v1610_v5 = vpop.f32.mrb[35].mxu1 }
 0x2d8   :  { %v3203_v17 = vadd.f32 %v1610_v5, %v1609_v47 }
 0x2da   :  { %v1612_v18 = vpop.f32.mrb[36].mxu1 }
 0x2db   :  { %v1613_v19 = vpop.f32.mrb[37].mxu1 }
 0x2dc   :  { %v3205_v14 = vadd.f32 %v1613_v19, %v1612_v18 }
 0x2de   :  { %v1615_v21 = vpop.f32.mrb[38].mxu1  ;;  %v1207_v38 = vadd.f32 %v3205_v14, %v3214_v27 }
 0x2df   :  { %v1616_v54 = vpop.f32.mrb[39].mxu1 }
 0x2e0   :  { %v3207_v22 = vadd.f32 %v1616_v54, %v1615_v21 }
 0x2e2   :  { %v1618_v10 = vpop.f32.mrb[40].mxu1  ;;  %v1212_v36 = vadd.f32 %v3207_v22, %v3214_v27 }
 0x2e3   :  { %v1619_v32 = vpop.f32.mrb[41].mxu1 }
 0x2e4   :  { %v1620_v48 = vadd.f32 %v1619_v32, %v1618_v10 }
 0x2e6   :  { %v1621_v29 = vpop.f32.mrb[42].mxu1  ;;  %v1217_v25 = vadd.f32 %v1620_v48, %v3214_v27 }
 0x2e7   :  { %v1622_v30 = vpop.f32.mrb[43].mxu1 }
 0x2e8   :  { %v1623_v33 = vadd.f32 %v1622_v30, %v1621_v29  ;;  %v1202_v30 = vadd.f32 %v3203_v17, %v3214_v27 }
 0x2ea   :  { %v1624_v50 = vpop.f32.mrb[44].mxu1  ;;  %v1222_v45 = vadd.f32 %v1623_v33, %v3214_v27  ;;  %v1197_v33 = vadd.f32 %v3201_v28, %v3214_v27 }
 0x2eb   :  { %v1625_v34 = vpop.f32.mrb[45].mxu1 }
 0x2ec   :  { %v1626_v37 = vadd.f32 %v1625_v34, %v1624_v50 }
 0x2ee   :  { %v1627_v40 = vpop.f32.mrb[46].mxu1  ;;  %v1227_v58 = vadd.f32 %v1626_v37, %v3214_v27 }
 0x2ef   :  { %v1628_v41 = vpop.f32.mrb[47].mxu1 }
 0x2f0   :  { %v1629_v23 = vadd.f32 %v1628_v41, %v1627_v40 }
 0x2f2   :  { %v1083_v46 = vpop.f32.mrb[16].mxu0  ;;  %v1782_v49 = vpop.f32.mrb[48].mxu1  ;;  %v1232_v56 = vadd.f32 %v1629_v23, %v3214_v27 }
 0x2f3   :  { %v2090_v4 = vadd.f32 %v1083_v46, %v3212_v20  ;;  %v1327_v43 = vadd.f32 %v1782_v49, %v1222_v45  ;;  %v1085_v60 = vpop.f32.mrb[17].mxu0  ;;  %v1321_v51 = vpop.f32.mrb[49].mxu1 }
 0x2f4   :  { %v2091_v53 = vadd.f32 %v1085_v60, %v896_v44  ;;  %v1322_v55 = vadd.f32 %v1321_v51, %v1217_v25 }
 0x2f5   :  { %1340 = vst [vmem:[#allocation2] sm:$0xff] %v2090_v4  ;;  %1357 = vst [vmem:[#allocation2 + $0x88] sm:$0xff] %v1327_v43 }
 0x2f6   :  { %1341 = vst [vmem:[#allocation2 + $0x8] sm:$0xff] %v2091_v53  ;;  %1354 = vst [vmem:[#allocation2 + $0x70] sm:$0xff] %v1322_v55  ;;  %v1089_v57 = vpop.f32.mrb[18].mxu0  ;;  %v1785_v42 = vpop.f32.mrb[50].mxu1 }
 0x2f7   :  { %v2092_v59 = vadd.f32 %v1089_v57, %v3212_v20  ;;  %v1337_v61 = vadd.f32 %v1785_v42, %v1232_v56  ;;  %v1091_v62 = vpop.f32.mrb[19].mxu0  ;;  %v1331_v63 = vpop.f32.mrb[51].mxu1 }
 0x2f8   :  { %v2093_v0 = vadd.f32 %v1091_v62, %v896_v44  ;;  %v1332_v1 = vadd.f32 %v1331_v63, %v1227_v58 }
 0x2f9   :  { %1343 = vst [vmem:[#allocation2 + $0x18] sm:$0xff] %v2092_v59  ;;  %1363 = vst [vmem:[#allocation2 + $0xb8] sm:$0xff] %v1337_v61 }
 0x2fa   :  { %1344 = vst [vmem:[#allocation2 + $0x20] sm:$0xff] %v2093_v0  ;;  %1360 = vst [vmem:[#allocation2 + $0xa0] sm:$0xff] %v1332_v1  ;;  %v1095_v52 = vpop.f32.mrb[20].mxu0 }
 0x2fb   :  { %v2094_v3 = vadd.f32 %v1095_v52, %v3212_v20  ;;  %v1097_v2 = vpop.f32.mrb[21].mxu0 }
 0x2fc   :  { %v2095_v7 = vadd.f32 %v1097_v2, %v896_v44 }
 0x2fd   :  { %1346 = vst [vmem:[#allocation2 + $0x30] sm:$0xff] %v2094_v3 }
 0x2fe   :  { %1347 = vst [vmem:[#allocation2 + $0x38] sm:$0xff] %v2095_v7  ;;  %v1101_v8 = vpop.f32.mrb[22].mxu0 }
 0x2ff   :  { %v2096_v9 = vadd.f32 %v1101_v8, %v3212_v20  ;;  %v1103_v11 = vpop.f32.mrb[23].mxu0 }
 0x300   :  { %v2097_v12 = vadd.f32 %v1103_v11, %v896_v44 }
 0x301   :  { %1349 = vst [vmem:[#allocation2 + $0x48] sm:$0xff] %v2096_v9 }
 0x302   :  { %1350 = vst [vmem:[#allocation2 + $0x50] sm:$0xff] %v2097_v12  ;;  %v1107_v13 = vpop.f32.mrb[24].mxu0 }
 0x303   :  { %v2098_v15 = vadd.f32 %v1107_v13, %v3212_v20  ;;  %v1109_v16 = vpop.f32.mrb[25].mxu0 }
 0x304   :  { %v2099_v24 = vadd.f32 %v1109_v16, %v896_v44 }
 0x305   :  { %1352 = vst [vmem:[#allocation2 + $0x60] sm:$0xff] %v2098_v15 }
 0x306   :  { %1353 = vst [vmem:[#allocation2 + $0x68] sm:$0xff] %v2099_v24  ;;  %v1113_v6 = vpop.f32.mrb[26].mxu0 }
 0x307   :  { %v2100_v47 = vadd.f32 %v1113_v6, %v3212_v20  ;;  %v1115_v5 = vpop.f32.mrb[27].mxu0 }
 0x308   :  { %v2101_v18 = vadd.f32 %v1115_v5, %v896_v44 }
 0x309   :  { %1355 = vst [vmem:[#allocation2 + $0x78] sm:$0xff] %v2100_v47 }
 0x30a   :  { %1356 = vst [vmem:[#allocation2 + $0x80] sm:$0xff] %v2101_v18  ;;  %v1119_v19 = vpop.f32.mrb[28].mxu0 }
 0x30b   :  { %v2102_v21 = vadd.f32 %v1119_v19, %v3212_v20  ;;  %v1121_v54 = vpop.f32.mrb[29].mxu0 }
 0x30c   :  { %v2103_v10 = vadd.f32 %v1121_v54, %v896_v44 }
 0x30d   :  { %1358 = vst [vmem:[#allocation2 + $0x90] sm:$0xff] %v2102_v21 }
 0x30e   :  { %1359 = vst [vmem:[#allocation2 + $0x98] sm:$0xff] %v2103_v10  ;;  %v1125_v32 = vpop.f32.mrb[30].mxu0 }
 0x30f   :  { %v2104_v26 = vadd.f32 %v1125_v32, %v3212_v20  ;;  %v1127_v48 = vpop.f32.mrb[31].mxu0 }
 0x310   :  { %v2105_v29 = vadd.f32 %v1127_v48, %v896_v44 }
 0x311   :  { %1361 = vst [vmem:[#allocation2 + $0xa8] sm:$0xff] %v2104_v26 }
 0x312   :  { %1362 = vst [vmem:[#allocation2 + $0xb0] sm:$0xff] %v2105_v29  ;;  %v1776_v31 = vpop.f32.mrb[32].mxu0 }
 0x313   :  { %v1307_v50 = vadd.f32 %v1776_v31, %v1202_v30  ;;  %v1301_v34 = vpop.f32.mrb[33].mxu0 }
 0x314   :  { %v1302_v35 = vadd.f32 %v1301_v34, %v1197_v33 }
 0x315   :  { %1345 = vst [vmem:[#allocation2 + $0x28] sm:$0xff] %v1307_v50 }
 0x316   :  { %1342 = vst [vmem:[#allocation2 + $0x10] sm:$0xff] %v1302_v35  ;;  %v1779_v37 = vpop.f32.mrb[34].mxu0 }
 0x317   :  { %v1317_v17 = vadd.f32 %v1779_v37, %v1212_v36  ;;  %v1311_v39 = vpop.f32.mrb[35].mxu0 }
 0x318   :  { %v1312_v40 = vadd.f32 %v1311_v39, %v1207_v38 }
 0x319   :  { %1351 = vst [vmem:[#allocation2 + $0x58] sm:$0xff] %v1317_v17 }
 0x31a   :  { %1348 = vst [vmem:[#allocation2 + $0x40] sm:$0xff] %v1312_v40 }
 0x31b   :  { %2137 = shalt.err (!%p2134_p4)
}
 0x31c   :  { %s2138_s13 = scalar_lea.hbm %s3255_s7, 3072 }
 0x31d   :  { %p2139_p5 = scmp.ne.s32.totalorder %s3255_s7, %s2138_s13  ;;  %p2142_p6 = scmp.lt.u32.totalorder %s2138_s13, %s3255_s7 }
 0x31f   :  { %p2144_p7 = pnand %p2142_p6, %p2139_p5 }
 0x321   :  { %2147 = shalt.err (!%p2144_p7)
}
 0x322   :  { %s2152_s18 = smov 384   ;;  %s2153_s19 = smov 24  }
 0x323   :  { %1375 = dma.vmem_to_hbm [thread:$0]  %s1370_s9, 3072, %s3255_s7, [#allocation3], %s2152_s18, %s2152_s18, %s2153_s19  }
 0x324   :  { %2148 = dma.done.wait [#allocation3], 3072  }
 0x325   :  { %2149 = vsyncadd [#allocation3], 4294964224 }
 0x326   :  { %1379 = vsyncpa [#allocation3], 1 }

</bundles_post_ra>
